<compile_context>
chip_gen: v6e
topology: v6e:2x2x1
jax: 0.10.0
libtpu: 0.0.40
codegen_flags: <defaults>
</compile_context>

<pallas_src>
import functools

import jax
import jax.numpy as jnp
from jax.experimental import pallas as pl
from jax.experimental.pallas import tpu as pltpu

# ----------------------------- model dims -----------------------------------
VOCAB = 16
EMBED = 32            # lm embed_dim ("nano"-scale)
N_HEADS = 2
HEAD_DIM = EMBED // N_HEADS
MLP_DIM = 64
CONV_DIM = 16         # pred-head pairwise channel dim
NUM_RESNET_BLOCKS = 2

# 3x3 conv tap offsets; tap index t = (dy+1)*3 + (dx+1) matches the HWIO (9,Cin,Cout) reshape.
_TAPS = tuple((dy, dx) for dy in (-1, 0, 1) for dx in (-1, 0, 1))

_COMPILER_PARAMS = pltpu.CompilerParams(
    dimension_semantics=("arbitrary",),
    vmem_limit_bytes=32 * 1024 * 1024,
)


# ----------------------------- helpers ---------------------------------------
def _whole_specs(arrays):
    """Whole-array BlockSpecs for a grid=(1,) single-block call."""
    specs = []
    for a in arrays:
        nd = a.ndim
        specs.append(pl.BlockSpec(a.shape, lambda i, _nd=nd: (0,) * _nd))
    return specs


def _layernorm(x, g, b, eps=1e-5):
    mu = jnp.mean(x, axis=-1, keepdims=True)
    var = jnp.mean((x - mu) ** 2, axis=-1, keepdims=True)
    return (x - mu) * jax.lax.rsqrt(var + eps) * g + b


def _bf16(x):
    return x.astype(jnp.bfloat16)


# ----------------------------- fused kernel ----------------------------------
def _fused_kernel(*refs, B, S, num_blocks):
    P = S                       # spatial size of the padded pairwise map; valid region [1, S-1)
    N = B * P * P               # flat pairwise rows (row index = b*P*P + i*P + j)
    C = CONV_DIM

    (h_ref, ln1g, ln1b, wqkv, bqkv, wo, bo, ln2g, ln2b,
     wm1, bm1, wm2, bm2, lnfg, lnfb,
     win, bin_, mpair, bmask) = refs[:19]
    blk = refs[19:19 + 4 * num_blocks]
    wout, a_sel, b_sel, bout = refs[19 + 4 * num_blocks:23 + 4 * num_blocks]
    o_ref = refs[23 + 4 * num_blocks]

    # ---------------- RiNALMo transformer block (pre-LN) --------------------
    h = h_ref[...]                                               # (B*S, E) f32
    a = _layernorm(h, ln1g[...], ln1b[...])
    a16 = _bf16(a)

    def head_proj(kind, hd):     # kind: 0=Q (scale pre-folded), 1=K, 2=V
        idx = kind * N_HEADS + hd
        y = jnp.dot(a16, wqkv[idx], preferred_element_type=jnp.float32) + bqkv[idx]
        return y.reshape(B, S, HEAD_DIM)

    head_outs = []
    for hd in range(N_HEADS):
        q = head_proj(0, hd)
        k = head_proj(1, hd)
        v = head_proj(2, hd)
        s = jnp.einsum("bqd,bkd->bqk", q, k, preferred_element_type=jnp.float32)
        s = s - jnp.max(s, axis=-1, keepdims=True)
        p = jnp.exp(s)
        p = p * pl.reciprocal(jnp.sum(p, axis=-1, keepdims=True), approx=True)
        oh = jnp.einsum("bqk,bkd->bqd", p, v, preferred_element_type=jnp.float32)
        head_outs.append(oh.reshape(B * S, HEAD_DIM))
    o = jnp.concatenate(head_outs, axis=-1)                      # (B*S, E)

    h = h + jnp.dot(_bf16(o), wo[...], preferred_element_type=jnp.float32) + bo[...]

    m = _layernorm(h, ln2g[...], ln2b[...])
    m = jax.nn.gelu(jnp.dot(_bf16(m), wm1[...], preferred_element_type=jnp.float32) + bm1[...])
    h = h + jnp.dot(_bf16(m), wm2[...], preferred_element_type=jnp.float32) + bm2[...]

    rep = _layernorm(h, lnfg[...], lnfb[...])                    # (B*S, E)

    # ---------------- SecStructPredictionHead -------------------------------
    # Per-token projection, then pairwise outer-sum z_i + z_j as one matmul against a
    # constant 0/1 matrix so the pairwise map stays flat (rows = positions, lanes = C).
    z = jnp.dot(_bf16(rep), win[...], preferred_element_type=jnp.float32) + bin_[...]
    pmap = jnp.dot(mpair[...], _bf16(z), preferred_element_type=jnp.float32)   # (N, C)

    mask = bmask[...]                                            # (N, 1) {0,1} interior mask

    def conv3x3(x, w_ref, b_row, relu):
        """'same' zero-padded 3x3 conv over the interior of the flat P x P map."""
        x = x * mask                                             # zero padding ring
        acc = None
        for t, (dy, dx) in enumerate(_TAPS):
            shift = dy * P + dx
            xs = x if shift == 0 else pltpu.roll(x, shift=(-shift) % N, axis=0)
            y = jnp.dot(_bf16(xs), w_ref[t], preferred_element_type=jnp.float32)
            acc = y if acc is None else acc + y
        acc = acc + b_row
        return jnp.maximum(acc, 0.0) if relu else acc

    for i in range(num_blocks):
        w1, b1, w2, b2 = blk[4 * i:4 * i + 4]
        h1 = conv3x3(pmap, w1, b1[...], relu=True)
        h2 = conv3x3(h1, w2, b2[...], relu=False)
        pmap = jnp.maximum(h2 + pmap, 0.0)

    # Final 3x3 conv with a single output channel: broadcast-mul + lane reduce per tap.
    x = pmap * mask
    f = None
    for t, (dy, dx) in enumerate(_TAPS):
        shift = dy * P + dx
        xs = x if shift == 0 else pltpu.roll(x, shift=(-shift) % N, axis=0)
        term = jnp.sum(xs * wout[t], axis=-1, keepdims=True)     # (N, 1)
        f = term if f is None else f + term

    # Extract the valid (S-2)x(S-2) logits per batch with constant 0/1 selection matmuls.
    for b in range(B):
        fb = f[b * P * P:(b + 1) * P * P]                        # (P*P, 1), tile-aligned slice
        o_ref[b] = (jnp.dot(a_sel[...], fb * b_sel[...],
                            preferred_element_type=jnp.float32) + bout[...])


# ----------------------------- parameters ------------------------------------
def init_params(key):
    keys = iter(jax.random.split(key, 32))
    nrm = lambda shape, s=0.02: s * jax.random.normal(next(keys), shape, dtype=jnp.float32)
    p = {}
    # LM
    p["emb"] = nrm((VOCAB, EMBED), 1.0)
    p["w_qkv"] = nrm((EMBED, 3 * EMBED)); p["b_qkv"] = jnp.zeros((3 * EMBED,), jnp.float32)
    p["w_o"] = nrm((EMBED, EMBED));       p["b_o"] = jnp.zeros((EMBED,), jnp.float32)
    for n in ("ln1", "ln2", "lnf"):
        p[n + "_g"] = jnp.ones((EMBED,), jnp.float32)
        p[n + "_b"] = jnp.zeros((EMBED,), jnp.float32)
    p["w_mlp1"] = nrm((EMBED, MLP_DIM)); p["b_mlp1"] = jnp.zeros((MLP_DIM,), jnp.float32)
    p["w_mlp2"] = nrm((MLP_DIM, EMBED)); p["b_mlp2"] = jnp.zeros((EMBED,), jnp.float32)
    # prediction head
    p["w_in"] = nrm((EMBED, CONV_DIM)); p["b_in"] = jnp.zeros((CONV_DIM,), jnp.float32)
    for i in range(NUM_RESNET_BLOCKS):
        p[f"blk{i}_w1"] = nrm((3, 3, CONV_DIM, CONV_DIM))
        p[f"blk{i}_b1"] = jnp.zeros((CONV_DIM,), jnp.float32)
        p[f"blk{i}_w2"] = nrm((3, 3, CONV_DIM, CONV_DIM))
        p[f"blk{i}_b2"] = jnp.zeros((CONV_DIM,), jnp.float32)
    p["w_out"] = nrm((3, 3, CONV_DIM, 1)); p["b_out"] = jnp.zeros((1,), jnp.float32)
    return p


# ----------------------------- wrapper ----------------------------------------
def _pairwise_constants(B, S):
    """Constant 0/1 matrices for the flat pairwise map (built wrapper-side, constant-folded)."""
    P, L = S, S - 2
    r = jnp.arange(P * P)
    ri, rj = r // P, r % P
    k = jnp.arange(S)
    # outer-sum builder: pmap[b*P*P + i*P + j] = z[b*S + i] + z[b*S + j]
    m_single = ((k[None, :] == ri[:, None]).astype(jnp.float32)
                + (k[None, :] == rj[:, None]).astype(jnp.float32))                 # (P*P, S)
    m_pair = jnp.kron(jnp.eye(B, dtype=jnp.float32), m_single)                     # (B*P*P, B*S)
    # {0,1} interior mask (valid tokens are [1, S-1): BOS/EOS dropped, also the conv zero-pad)
    valid = ((ri >= 1) & (ri < P - 1) & (rj >= 1) & (rj < P - 1)).astype(jnp.float32)
    border_mask = jnp.tile(valid[:, None], (B, 1))                                  # (B*P*P, 1)
    # valid-region extraction: logits[i, j] = f[(i+1)*P + (j+1)]
    a_sel = (ri[None, :] == (jnp.arange(L)[:, None] + 1)).astype(jnp.float32)       # (L, P*P)
    b_sel = (rj[:, None] == (jnp.arange(L)[None, :] + 1)).astype(jnp.float32)       # (P*P, L)
    return m_pair, border_mask, a_sel, b_sel


def sec_struct_prediction_model(params, tokens):
    B, S = tokens.shape
    L = S - 2
    assert S % 8 == 0, "toy fused kernel assumes the sequence length is a multiple of 8"
    C = CONV_DIM

    h = params["emb"][tokens].reshape(B * S, EMBED)              # embedding gather (glue)

    # fold the 1/sqrt(head_dim) attention scale into the Q columns of the QKV projection
    scale = jnp.concatenate([jnp.full((EMBED,), 1.0 / (HEAD_DIM ** 0.5), jnp.float32),
                             jnp.ones((2 * EMBED,), jnp.float32)])
    w_qkv = ((params["w_qkv"] * scale[None, :])
             .reshape(EMBED, 3 * N_HEADS, HEAD_DIM).transpose(1, 0, 2))  # (6, E, Dh): Q0 Q1 K0 K1 V0 V1
    b_qkv = (params["b_qkv"] * scale).reshape(3 * N_HEADS, 1, HEAD_DIM)  # (6, 1, Dh)

    m_pair, border_mask, a_sel, b_sel = _pairwise_constants(B, S)
    bf = lambda a: a.astype(jnp.bfloat16)

    ins = [
        h,
        params["ln1_g"].reshape(1, EMBED), params["ln1_b"].reshape(1, EMBED),
        bf(w_qkv), b_qkv,
        bf(params["w_o"]), params["b_o"].reshape(1, EMBED),
        params["ln2_g"].reshape(1, EMBED), params["ln2_b"].reshape(1, EMBED),
        bf(params["w_mlp1"]), params["b_mlp1"].reshape(1, MLP_DIM),
        bf(params["w_mlp2"]), params["b_mlp2"].reshape(1, EMBED),
        params["lnf_g"].reshape(1, EMBED), params["lnf_b"].reshape(1, EMBED),
        bf(params["w_in"]), params["b_in"].reshape(1, C),
        bf(m_pair), border_mask,
    ]
    for i in range(NUM_RESNET_BLOCKS):
        ins += [bf(params[f"blk{i}_w1"].reshape(9, C, C)), params[f"blk{i}_b1"].reshape(1, C),
                bf(params[f"blk{i}_w2"].reshape(9, C, C)), params[f"blk{i}_b2"].reshape(1, C)]
    ins += [params["w_out"].reshape(9, 1, C),    # used on VPU (mul + lane reduce): keep f32
            a_sel, b_sel, params["b_out"].reshape(1, 1)]

    logits = pl.pallas_call(
        functools.partial(_fused_kernel, B=B, S=S, num_blocks=NUM_RESNET_BLOCKS),
        out_shape=jax.ShapeDtypeStruct((B, L, L), jnp.float32),
        grid=(1,),
        in_specs=_whole_specs(ins),
        out_specs=pl.BlockSpec((B, L, L), lambda i: (0, 0, 0)),
        compiler_params=_COMPILER_PARAMS,
    )(*ins)
    return logits                                                # (B, S-2, S-2)


# ----------------------------- main -------------------------------------------
if __name__ == "__main__":
    key = jax.random.PRNGKey(0)
    pkey, tkey = jax.random.split(key)
    params = init_params(pkey)

    B, S = 2, 8
    tokens = jax.random.randint(tkey, (B, S), 0, VOCAB, dtype=jnp.int32)

    fwd = jax.jit(lambda t: sec_struct_prediction_model(params, t))
    logits = fwd(tokens)
    jax.block_until_ready(logits)

    assert logits.shape == (B, S - 2, S - 2), logits.shape
    assert logits.dtype == jnp.float32
    print("KERNEL_OK")
</pallas_src>

<mosaic_0001>
module attributes {stable_mosaic.version = 11 : i64} {
  func.func @_fused_kernel(%arg0: i32, %arg1: memref<16x32xf32, #tpu.memory_space<vmem>>, %arg2: memref<1x32xf32, #tpu.memory_space<vmem>>, %arg3: memref<1x32xf32, #tpu.memory_space<vmem>>, %arg4: memref<6x32x16xbf16, #tpu.memory_space<vmem>>, %arg5: memref<6x1x16xf32, #tpu.memory_space<vmem>>, %arg6: memref<32x32xbf16, #tpu.memory_space<vmem>>, %arg7: memref<1x32xf32, #tpu.memory_space<vmem>>, %arg8: memref<1x32xf32, #tpu.memory_space<vmem>>, %arg9: memref<1x32xf32, #tpu.memory_space<vmem>>, %arg10: memref<32x64xbf16, #tpu.memory_space<vmem>>, %arg11: memref<1x64xf32, #tpu.memory_space<vmem>>, %arg12: memref<64x32xbf16, #tpu.memory_space<vmem>>, %arg13: memref<1x32xf32, #tpu.memory_space<vmem>>, %arg14: memref<1x32xf32, #tpu.memory_space<vmem>>, %arg15: memref<1x32xf32, #tpu.memory_space<vmem>>, %arg16: memref<32x16xbf16, #tpu.memory_space<vmem>>, %arg17: memref<1x16xf32, #tpu.memory_space<vmem>>, %arg18: memref<128x16xbf16, #tpu.memory_space<vmem>>, %arg19: memref<128x1xf32, #tpu.memory_space<vmem>>, %arg20: memref<9x16x16xbf16, #tpu.memory_space<vmem>>, %arg21: memref<1x16xf32, #tpu.memory_space<vmem>>, %arg22: memref<9x16x16xbf16, #tpu.memory_space<vmem>>, %arg23: memref<1x16xf32, #tpu.memory_space<vmem>>, %arg24: memref<9x16x16xbf16, #tpu.memory_space<vmem>>, %arg25: memref<1x16xf32, #tpu.memory_space<vmem>>, %arg26: memref<9x16x16xbf16, #tpu.memory_space<vmem>>, %arg27: memref<1x16xf32, #tpu.memory_space<vmem>>, %arg28: memref<9x1x16xf32, #tpu.memory_space<vmem>>, %arg29: memref<6x64xf32, #tpu.memory_space<vmem>>, %arg30: memref<64x6xf32, #tpu.memory_space<vmem>>, %arg31: memref<1x1xf32, #tpu.memory_space<vmem>>, %arg32: memref<2x6x6xf32, #tpu.memory_space<vmem>>) attributes {dimension_semantics = [#tpu.dimension_semantics<arbitrary>], iteration_bounds = array<i64: 1>, scalar_prefetch = 0 : i64, scratch_operands = 0 : i64, tpu.core_type = #tpu.core_type<tc>, window_params = [{pipeline_mode = #tpu.pipeline_mode<synchronous>, transform_indices = @transform_0, window_bounds = array<i64: 16, 32>}, {pipeline_mode = #tpu.pipeline_mode<synchronous>, transform_indices = @transform_1, window_bounds = array<i64: 1, 32>}, {pipeline_mode = #tpu.pipeline_mode<synchronous>, transform_indices = @transform_2, window_bounds = array<i64: 1, 32>}, {pipeline_mode = #tpu.pipeline_mode<synchronous>, transform_indices = @transform_3, window_bounds = array<i64: 6, 32, 16>}, {pipeline_mode = #tpu.pipeline_mode<synchronous>, transform_indices = @transform_4, window_bounds = array<i64: 6, 1, 16>}, {pipeline_mode = #tpu.pipeline_mode<synchronous>, transform_indices = @transform_5, window_bounds = array<i64: 32, 32>}, {pipeline_mode = #tpu.pipeline_mode<synchronous>, transform_indices = @transform_6, window_bounds = array<i64: 1, 32>}, {pipeline_mode = #tpu.pipeline_mode<synchronous>, transform_indices = @transform_7, window_bounds = array<i64: 1, 32>}, {pipeline_mode = #tpu.pipeline_mode<synchronous>, transform_indices = @transform_8, window_bounds = array<i64: 1, 32>}, {pipeline_mode = #tpu.pipeline_mode<synchronous>, transform_indices = @transform_9, window_bounds = array<i64: 32, 64>}, {pipeline_mode = #tpu.pipeline_mode<synchronous>, transform_indices = @transform_10, window_bounds = array<i64: 1, 64>}, {pipeline_mode = #tpu.pipeline_mode<synchronous>, transform_indices = @transform_11, window_bounds = array<i64: 64, 32>}, {pipeline_mode = #tpu.pipeline_mode<synchronous>, transform_indices = @transform_12, window_bounds = array<i64: 1, 32>}, {pipeline_mode = #tpu.pipeline_mode<synchronous>, transform_indices = @transform_13, window_bounds = array<i64: 1, 32>}, {pipeline_mode = #tpu.pipeline_mode<synchronous>, transform_indices = @transform_14, window_bounds = array<i64: 1, 32>}, {pipeline_mode = #tpu.pipeline_mode<synchronous>, transform_indices = @transform_15, window_bounds = array<i64: 32, 16>}, {pipeline_mode = #tpu.pipeline_mode<synchronous>, transform_indices = @transform_16, window_bounds = array<i64: 1, 16>}, {pipeline_mode = #tpu.pipeline_mode<synchronous>, transform_indices = @transform_17, window_bounds = array<i64: 128, 16>}, {pipeline_mode = #tpu.pipeline_mode<synchronous>, transform_indices = @transform_18, window_bounds = array<i64: 128, 1>}, {pipeline_mode = #tpu.pipeline_mode<synchronous>, transform_indices = @transform_19, window_bounds = array<i64: 9, 16, 16>}, {pipeline_mode = #tpu.pipeline_mode<synchronous>, transform_indices = @transform_20, window_bounds = array<i64: 1, 16>}, {pipeline_mode = #tpu.pipeline_mode<synchronous>, transform_indices = @transform_21, window_bounds = array<i64: 9, 16, 16>}, {pipeline_mode = #tpu.pipeline_mode<synchronous>, transform_indices = @transform_22, window_bounds = array<i64: 1, 16>}, {pipeline_mode = #tpu.pipeline_mode<synchronous>, transform_indices = @transform_23, window_bounds = array<i64: 9, 16, 16>}, {pipeline_mode = #tpu.pipeline_mode<synchronous>, transform_indices = @transform_24, window_bounds = array<i64: 1, 16>}, {pipeline_mode = #tpu.pipeline_mode<synchronous>, transform_indices = @transform_25, window_bounds = array<i64: 9, 16, 16>}, {pipeline_mode = #tpu.pipeline_mode<synchronous>, transform_indices = @transform_26, window_bounds = array<i64: 1, 16>}, {pipeline_mode = #tpu.pipeline_mode<synchronous>, transform_indices = @transform_27, window_bounds = array<i64: 9, 1, 16>}, {pipeline_mode = #tpu.pipeline_mode<synchronous>, transform_indices = @transform_28, window_bounds = array<i64: 6, 64>}, {pipeline_mode = #tpu.pipeline_mode<synchronous>, transform_indices = @transform_29, window_bounds = array<i64: 64, 6>}, {pipeline_mode = #tpu.pipeline_mode<synchronous>, transform_indices = @transform_30, window_bounds = array<i64: 1, 1>}, {pipeline_mode = #tpu.pipeline_mode<synchronous>, transform_indices = @transform_31, window_bounds = array<i64: 2, 6, 6>}]} {
    %c0 = arith.constant 0 : index
    %c0_0 = arith.constant 0 : index
    %0 = vector.load %arg1[%c0, %c0_0] : memref<16x32xf32, #tpu.memory_space<vmem>>, vector<16x32xf32>
    %c0_1 = arith.constant 0 : index
    %c0_2 = arith.constant 0 : index
    %1 = vector.load %arg2[%c0_1, %c0_2] : memref<1x32xf32, #tpu.memory_space<vmem>>, vector<1x32xf32>
    %c0_3 = arith.constant 0 : index
    %c0_4 = arith.constant 0 : index
    %2 = vector.load %arg3[%c0_3, %c0_4] : memref<1x32xf32, #tpu.memory_space<vmem>>, vector<1x32xf32>
    %cst = arith.constant dense<0.000000e+00> : vector<16xf32>
    %3 = vector.multi_reduction <add>, %0, %cst [1] : vector<16x32xf32> to vector<16xf32>
    %4 = vector.shape_cast %3 : vector<16xf32> to vector<16x1xf32>
    %cst_5 = arith.constant 3.200000e+01 : f32
    %5 = vector.broadcast %cst_5 : f32 to vector<16x1xf32>
    %6 = arith.divf %4, %5 : vector<16x1xf32>
    %7 = vector.broadcast %6 : vector<16x1xf32> to vector<16x32xf32>
    %8 = arith.subf %0, %7 : vector<16x32xf32>
    %9 = arith.mulf %8, %8 : vector<16x32xf32>
    %cst_6 = arith.constant dense<0.000000e+00> : vector<16xf32>
    %10 = vector.multi_reduction <add>, %9, %cst_6 [1] : vector<16x32xf32> to vector<16xf32>
    %11 = vector.shape_cast %10 : vector<16xf32> to vector<16x1xf32>
    %cst_7 = arith.constant 3.200000e+01 : f32
    %12 = vector.broadcast %cst_7 : f32 to vector<16x1xf32>
    %13 = arith.divf %11, %12 : vector<16x1xf32>
    %14 = vector.broadcast %6 : vector<16x1xf32> to vector<16x32xf32>
    %15 = arith.subf %0, %14 : vector<16x32xf32>
    %cst_8 = arith.constant 9.99999974E-6 : f32
    %16 = vector.broadcast %cst_8 : f32 to vector<16x1xf32>
    %17 = arith.addf %13, %16 : vector<16x1xf32>
    %18 = math.rsqrt %17 : vector<16x1xf32>
    %19 = vector.broadcast %18 : vector<16x1xf32> to vector<16x32xf32>
    %20 = arith.mulf %15, %19 : vector<16x32xf32>
    %21 = vector.broadcast %1 : vector<1x32xf32> to vector<16x32xf32>
    %22 = arith.mulf %20, %21 : vector<16x32xf32>
    %23 = vector.broadcast %2 : vector<1x32xf32> to vector<16x32xf32>
    %24 = arith.addf %22, %23 : vector<16x32xf32>
    %25 = arith.truncf %24 : vector<16x32xf32> to vector<16x32xbf16>
    %c0_9 = arith.constant 0 : index
    %c0_10 = arith.constant 0 : index
    %c0_11 = arith.constant 0 : index
    %26 = vector.load %arg4[%c0_9, %c0_10, %c0_11] : memref<6x32x16xbf16, #tpu.memory_space<vmem>>, vector<1x32x16xbf16>
    %27 = vector.shape_cast %26 : vector<1x32x16xbf16> to vector<32x16xbf16>
    %cst_12 = arith.constant dense<0.000000e+00> : vector<16x16xf32>
    %28 = tpu.matmul %25, %27, %cst_12 {dimension_numbers = #tpu.dot_dimension_numbers<[1], [0], [0], [1], [0, 0, 1, 1], [], []>} : vector<16x32xbf16>, vector<32x16xbf16>, vector<16x16xf32> -> vector<16x16xf32>
    %c0_13 = arith.constant 0 : index
    %c0_14 = arith.constant 0 : index
    %c0_15 = arith.constant 0 : index
    %29 = vector.load %arg5[%c0_13, %c0_14, %c0_15] : memref<6x1x16xf32, #tpu.memory_space<vmem>>, vector<1x1x16xf32>
    %30 = vector.shape_cast %29 : vector<1x1x16xf32> to vector<1x16xf32>
    %31 = vector.broadcast %30 : vector<1x16xf32> to vector<16x16xf32>
    %32 = arith.addf %28, %31 : vector<16x16xf32>
    %33 = vector.shape_cast %32 : vector<16x16xf32> to vector<2x8x16xf32>
    %c2 = arith.constant 2 : index
    %c0_16 = arith.constant 0 : index
    %c0_17 = arith.constant 0 : index
    %34 = vector.load %arg4[%c2, %c0_16, %c0_17] : memref<6x32x16xbf16, #tpu.memory_space<vmem>>, vector<1x32x16xbf16>
    %35 = vector.shape_cast %34 : vector<1x32x16xbf16> to vector<32x16xbf16>
    %cst_18 = arith.constant dense<0.000000e+00> : vector<16x16xf32>
    %36 = tpu.matmul %25, %35, %cst_18 {dimension_numbers = #tpu.dot_dimension_numbers<[1], [0], [0], [1], [0, 0, 1, 1], [], []>} : vector<16x32xbf16>, vector<32x16xbf16>, vector<16x16xf32> -> vector<16x16xf32>
    %c2_19 = arith.constant 2 : index
    %c0_20 = arith.constant 0 : index
    %c0_21 = arith.constant 0 : index
    %37 = vector.load %arg5[%c2_19, %c0_20, %c0_21] : memref<6x1x16xf32, #tpu.memory_space<vmem>>, vector<1x1x16xf32>
    %38 = vector.shape_cast %37 : vector<1x1x16xf32> to vector<1x16xf32>
    %39 = vector.broadcast %38 : vector<1x16xf32> to vector<16x16xf32>
    %40 = arith.addf %36, %39 : vector<16x16xf32>
    %41 = vector.shape_cast %40 : vector<16x16xf32> to vector<2x8x16xf32>
    %c4 = arith.constant 4 : index
    %c0_22 = arith.constant 0 : index
    %c0_23 = arith.constant 0 : index
    %42 = vector.load %arg4[%c4, %c0_22, %c0_23] : memref<6x32x16xbf16, #tpu.memory_space<vmem>>, vector<1x32x16xbf16>
    %43 = vector.shape_cast %42 : vector<1x32x16xbf16> to vector<32x16xbf16>
    %cst_24 = arith.constant dense<0.000000e+00> : vector<16x16xf32>
    %44 = tpu.matmul %25, %43, %cst_24 {dimension_numbers = #tpu.dot_dimension_numbers<[1], [0], [0], [1], [0, 0, 1, 1], [], []>} : vector<16x32xbf16>, vector<32x16xbf16>, vector<16x16xf32> -> vector<16x16xf32>
    %c4_25 = arith.constant 4 : index
    %c0_26 = arith.constant 0 : index
    %c0_27 = arith.constant 0 : index
    %45 = vector.load %arg5[%c4_25, %c0_26, %c0_27] : memref<6x1x16xf32, #tpu.memory_space<vmem>>, vector<1x1x16xf32>
    %46 = vector.shape_cast %45 : vector<1x1x16xf32> to vector<1x16xf32>
    %47 = vector.broadcast %46 : vector<1x16xf32> to vector<16x16xf32>
    %48 = arith.addf %44, %47 : vector<16x16xf32>
    %49 = vector.shape_cast %48 : vector<16x16xf32> to vector<2x8x16xf32>
    "tpu.trace_start"() <{level = 10 : i32, message = "bqd,bkd->bqk"}> : () -> ()
    %cst_28 = arith.constant dense<0.000000e+00> : vector<2x8x8xf32>
    %50 = tpu.matmul %33, %41, %cst_28 {dimension_numbers = #tpu.dot_dimension_numbers<[2], [2], [1], [1], [0, 0, 0, 1, 1, 1], [0], [0]>} : vector<2x8x16xf32>, vector<2x8x16xf32>, vector<2x8x8xf32> -> vector<2x8x8xf32>
    "tpu.trace_stop"() : () -> ()
    %cst_29 = arith.constant dense<0xFF800000> : vector<2x8xf32>
    %51 = vector.multi_reduction <maximumf>, %50, %cst_29 [2] : vector<2x8x8xf32> to vector<2x8xf32>
    %52 = vector.shape_cast %51 : vector<2x8xf32> to vector<2x8x1xf32>
    %53 = vector.broadcast %52 : vector<2x8x1xf32> to vector<2x8x8xf32>
    %54 = arith.subf %50, %53 : vector<2x8x8xf32>
    %55 = math.exp %54 : vector<2x8x8xf32>
    %cst_30 = arith.constant dense<0.000000e+00> : vector<2x8xf32>
    %56 = vector.multi_reduction <add>, %55, %cst_30 [2] : vector<2x8x8xf32> to vector<2x8xf32>
    %57 = vector.shape_cast %56 : vector<2x8xf32> to vector<2x8x1xf32>
    %58 = tpu.reciprocal %57 {approx = true} : vector<2x8x1xf32> -> vector<2x8x1xf32>
    %59 = vector.broadcast %58 : vector<2x8x1xf32> to vector<2x8x8xf32>
    %60 = arith.mulf %55, %59 : vector<2x8x8xf32>
    "tpu.trace_start"() <{level = 10 : i32, message = "bqk,bkd->bqd"}> : () -> ()
    %cst_31 = arith.constant dense<0.000000e+00> : vector<2x8x16xf32>
    %61 = tpu.matmul %60, %49, %cst_31 {dimension_numbers = #tpu.dot_dimension_numbers<[2], [1], [1], [2], [0, 0, 0, 1, 1, 2], [0], [0]>} : vector<2x8x8xf32>, vector<2x8x16xf32>, vector<2x8x16xf32> -> vector<2x8x16xf32>
    "tpu.trace_stop"() : () -> ()
    %62 = vector.shape_cast %61 : vector<2x8x16xf32> to vector<16x16xf32>
    %c1 = arith.constant 1 : index
    %c0_32 = arith.constant 0 : index
    %c0_33 = arith.constant 0 : index
    %63 = vector.load %arg4[%c1, %c0_32, %c0_33] : memref<6x32x16xbf16, #tpu.memory_space<vmem>>, vector<1x32x16xbf16>
    %64 = vector.shape_cast %63 : vector<1x32x16xbf16> to vector<32x16xbf16>
    %cst_34 = arith.constant dense<0.000000e+00> : vector<16x16xf32>
    %65 = tpu.matmul %25, %64, %cst_34 {dimension_numbers = #tpu.dot_dimension_numbers<[1], [0], [0], [1], [0, 0, 1, 1], [], []>} : vector<16x32xbf16>, vector<32x16xbf16>, vector<16x16xf32> -> vector<16x16xf32>
    %c1_35 = arith.constant 1 : index
    %c0_36 = arith.constant 0 : index
    %c0_37 = arith.constant 0 : index
    %66 = vector.load %arg5[%c1_35, %c0_36, %c0_37] : memref<6x1x16xf32, #tpu.memory_space<vmem>>, vector<1x1x16xf32>
    %67 = vector.shape_cast %66 : vector<1x1x16xf32> to vector<1x16xf32>
    %68 = vector.broadcast %67 : vector<1x16xf32> to vector<16x16xf32>
    %69 = arith.addf %65, %68 : vector<16x16xf32>
    %70 = vector.shape_cast %69 : vector<16x16xf32> to vector<2x8x16xf32>
    %c3 = arith.constant 3 : index
    %c0_38 = arith.constant 0 : index
    %c0_39 = arith.constant 0 : index
    %71 = vector.load %arg4[%c3, %c0_38, %c0_39] : memref<6x32x16xbf16, #tpu.memory_space<vmem>>, vector<1x32x16xbf16>
    %72 = vector.shape_cast %71 : vector<1x32x16xbf16> to vector<32x16xbf16>
    %cst_40 = arith.constant dense<0.000000e+00> : vector<16x16xf32>
    %73 = tpu.matmul %25, %72, %cst_40 {dimension_numbers = #tpu.dot_dimension_numbers<[1], [0], [0], [1], [0, 0, 1, 1], [], []>} : vector<16x32xbf16>, vector<32x16xbf16>, vector<16x16xf32> -> vector<16x16xf32>
    %c3_41 = arith.constant 3 : index
    %c0_42 = arith.constant 0 : index
    %c0_43 = arith.constant 0 : index
    %74 = vector.load %arg5[%c3_41, %c0_42, %c0_43] : memref<6x1x16xf32, #tpu.memory_space<vmem>>, vector<1x1x16xf32>
    %75 = vector.shape_cast %74 : vector<1x1x16xf32> to vector<1x16xf32>
    %76 = vector.broadcast %75 : vector<1x16xf32> to vector<16x16xf32>
    %77 = arith.addf %73, %76 : vector<16x16xf32>
    %78 = vector.shape_cast %77 : vector<16x16xf32> to vector<2x8x16xf32>
    %c5 = arith.constant 5 : index
    %c0_44 = arith.constant 0 : index
    %c0_45 = arith.constant 0 : index
    %79 = vector.load %arg4[%c5, %c0_44, %c0_45] : memref<6x32x16xbf16, #tpu.memory_space<vmem>>, vector<1x32x16xbf16>
    %80 = vector.shape_cast %79 : vector<1x32x16xbf16> to vector<32x16xbf16>
    %cst_46 = arith.constant dense<0.000000e+00> : vector<16x16xf32>
    %81 = tpu.matmul %25, %80, %cst_46 {dimension_numbers = #tpu.dot_dimension_numbers<[1], [0], [0], [1], [0, 0, 1, 1], [], []>} : vector<16x32xbf16>, vector<32x16xbf16>, vector<16x16xf32> -> vector<16x16xf32>
    %c5_47 = arith.constant 5 : index
    %c0_48 = arith.constant 0 : index
    %c0_49 = arith.constant 0 : index
    %82 = vector.load %arg5[%c5_47, %c0_48, %c0_49] : memref<6x1x16xf32, #tpu.memory_space<vmem>>, vector<1x1x16xf32>
    %83 = vector.shape_cast %82 : vector<1x1x16xf32> to vector<1x16xf32>
    %84 = vector.broadcast %83 : vector<1x16xf32> to vector<16x16xf32>
    %85 = arith.addf %81, %84 : vector<16x16xf32>
    %86 = vector.shape_cast %85 : vector<16x16xf32> to vector<2x8x16xf32>
    "tpu.trace_start"() <{level = 10 : i32, message = "bqd,bkd->bqk"}> : () -> ()
    %cst_50 = arith.constant dense<0.000000e+00> : vector<2x8x8xf32>
    %87 = tpu.matmul %70, %78, %cst_50 {dimension_numbers = #tpu.dot_dimension_numbers<[2], [2], [1], [1], [0, 0, 0, 1, 1, 1], [0], [0]>} : vector<2x8x16xf32>, vector<2x8x16xf32>, vector<2x8x8xf32> -> vector<2x8x8xf32>
    "tpu.trace_stop"() : () -> ()
    %cst_51 = arith.constant dense<0xFF800000> : vector<2x8xf32>
    %88 = vector.multi_reduction <maximumf>, %87, %cst_51 [2] : vector<2x8x8xf32> to vector<2x8xf32>
    %89 = vector.shape_cast %88 : vector<2x8xf32> to vector<2x8x1xf32>
    %90 = vector.broadcast %89 : vector<2x8x1xf32> to vector<2x8x8xf32>
    %91 = arith.subf %87, %90 : vector<2x8x8xf32>
    %92 = math.exp %91 : vector<2x8x8xf32>
    %cst_52 = arith.constant dense<0.000000e+00> : vector<2x8xf32>
    %93 = vector.multi_reduction <add>, %92, %cst_52 [2] : vector<2x8x8xf32> to vector<2x8xf32>
    %94 = vector.shape_cast %93 : vector<2x8xf32> to vector<2x8x1xf32>
    %95 = tpu.reciprocal %94 {approx = true} : vector<2x8x1xf32> -> vector<2x8x1xf32>
    %96 = vector.broadcast %95 : vector<2x8x1xf32> to vector<2x8x8xf32>
    %97 = arith.mulf %92, %96 : vector<2x8x8xf32>
    "tpu.trace_start"() <{level = 10 : i32, message = "bqk,bkd->bqd"}> : () -> ()
    %cst_53 = arith.constant dense<0.000000e+00> : vector<2x8x16xf32>
    %98 = tpu.matmul %97, %86, %cst_53 {dimension_numbers = #tpu.dot_dimension_numbers<[2], [1], [1], [2], [0, 0, 0, 1, 1, 2], [0], [0]>} : vector<2x8x8xf32>, vector<2x8x16xf32>, vector<2x8x16xf32> -> vector<2x8x16xf32>
    "tpu.trace_stop"() : () -> ()
    %99 = vector.shape_cast %98 : vector<2x8x16xf32> to vector<16x16xf32>
    %100 = tpu.concatenate %62, %99 in 1 : vector<16x16xf32>, vector<16x16xf32> -> vector<16x32xf32>
    %101 = arith.truncf %100 : vector<16x32xf32> to vector<16x32xbf16>
    %c0_54 = arith.constant 0 : index
    %c0_55 = arith.constant 0 : index
    %102 = vector.load %arg6[%c0_54, %c0_55] : memref<32x32xbf16, #tpu.memory_space<vmem>>, vector<32x32xbf16>
    %cst_56 = arith.constant dense<0.000000e+00> : vector<16x32xf32>
    %103 = tpu.matmul %101, %102, %cst_56 {dimension_numbers = #tpu.dot_dimension_numbers<[1], [0], [0], [1], [0, 0, 1, 1], [], []>} : vector<16x32xbf16>, vector<32x32xbf16>, vector<16x32xf32> -> vector<16x32xf32>
    %104 = arith.addf %0, %103 : vector<16x32xf32>
    %c0_57 = arith.constant 0 : index
    %c0_58 = arith.constant 0 : index
    %105 = vector.load %arg7[%c0_57, %c0_58] : memref<1x32xf32, #tpu.memory_space<vmem>>, vector<1x32xf32>
    %106 = vector.broadcast %105 : vector<1x32xf32> to vector<16x32xf32>
    %107 = arith.addf %104, %106 : vector<16x32xf32>
    %c0_59 = arith.constant 0 : index
    %c0_60 = arith.constant 0 : index
    %108 = vector.load %arg8[%c0_59, %c0_60] : memref<1x32xf32, #tpu.memory_space<vmem>>, vector<1x32xf32>
    %c0_61 = arith.constant 0 : index
    %c0_62 = arith.constant 0 : index
    %109 = vector.load %arg9[%c0_61, %c0_62] : memref<1x32xf32, #tpu.memory_space<vmem>>, vector<1x32xf32>
    %cst_63 = arith.constant dense<0.000000e+00> : vector<16xf32>
    %110 = vector.multi_reduction <add>, %107, %cst_63 [1] : vector<16x32xf32> to vector<16xf32>
    %111 = vector.shape_cast %110 : vector<16xf32> to vector<16x1xf32>
    %cst_64 = arith.constant 3.200000e+01 : f32
    %112 = vector.broadcast %cst_64 : f32 to vector<16x1xf32>
    %113 = arith.divf %111, %112 : vector<16x1xf32>
    %114 = vector.broadcast %113 : vector<16x1xf32> to vector<16x32xf32>
    %115 = arith.subf %107, %114 : vector<16x32xf32>
    %116 = arith.mulf %115, %115 : vector<16x32xf32>
    %cst_65 = arith.constant dense<0.000000e+00> : vector<16xf32>
    %117 = vector.multi_reduction <add>, %116, %cst_65 [1] : vector<16x32xf32> to vector<16xf32>
    %118 = vector.shape_cast %117 : vector<16xf32> to vector<16x1xf32>
    %cst_66 = arith.constant 3.200000e+01 : f32
    %119 = vector.broadcast %cst_66 : f32 to vector<16x1xf32>
    %120 = arith.divf %118, %119 : vector<16x1xf32>
    %121 = vector.broadcast %113 : vector<16x1xf32> to vector<16x32xf32>
    %122 = arith.subf %107, %121 : vector<16x32xf32>
    %cst_67 = arith.constant 9.99999974E-6 : f32
    %123 = vector.broadcast %cst_67 : f32 to vector<16x1xf32>
    %124 = arith.addf %120, %123 : vector<16x1xf32>
    %125 = math.rsqrt %124 : vector<16x1xf32>
    %126 = vector.broadcast %125 : vector<16x1xf32> to vector<16x32xf32>
    %127 = arith.mulf %122, %126 : vector<16x32xf32>
    %128 = vector.broadcast %108 : vector<1x32xf32> to vector<16x32xf32>
    %129 = arith.mulf %127, %128 : vector<16x32xf32>
    %130 = vector.broadcast %109 : vector<1x32xf32> to vector<16x32xf32>
    %131 = arith.addf %129, %130 : vector<16x32xf32>
    %132 = arith.truncf %131 : vector<16x32xf32> to vector<16x32xbf16>
    %c0_68 = arith.constant 0 : index
    %c0_69 = arith.constant 0 : index
    %133 = vector.load %arg10[%c0_68, %c0_69] : memref<32x64xbf16, #tpu.memory_space<vmem>>, vector<32x64xbf16>
    %cst_70 = arith.constant dense<0.000000e+00> : vector<16x64xf32>
    %134 = tpu.matmul %132, %133, %cst_70 {dimension_numbers = #tpu.dot_dimension_numbers<[1], [0], [0], [1], [0, 0, 1, 1], [], []>} : vector<16x32xbf16>, vector<32x64xbf16>, vector<16x64xf32> -> vector<16x64xf32>
    %c0_71 = arith.constant 0 : index
    %c0_72 = arith.constant 0 : index
    %135 = vector.load %arg11[%c0_71, %c0_72] : memref<1x64xf32, #tpu.memory_space<vmem>>, vector<1x64xf32>
    %136 = vector.broadcast %135 : vector<1x64xf32> to vector<16x64xf32>
    %137 = arith.addf %134, %136 : vector<16x64xf32>
    %138 = arith.mulf %137, %137 : vector<16x64xf32>
    %139 = arith.mulf %137, %138 : vector<16x64xf32>
    %cst_73 = arith.constant 4.471500e-02 : f32
    %140 = vector.broadcast %cst_73 : f32 to vector<16x64xf32>
    %141 = arith.mulf %140, %139 : vector<16x64xf32>
    %142 = arith.addf %137, %141 : vector<16x64xf32>
    %cst_74 = arith.constant 0.797884583 : f32
    %143 = vector.broadcast %cst_74 : f32 to vector<16x64xf32>
    %144 = arith.mulf %143, %142 : vector<16x64xf32>
    %145 = math.tanh %144 : vector<16x64xf32>
    %cst_75 = arith.constant 1.000000e+00 : f32
    %146 = vector.broadcast %cst_75 : f32 to vector<16x64xf32>
    %147 = arith.addf %146, %145 : vector<16x64xf32>
    %cst_76 = arith.constant 5.000000e-01 : f32
    %148 = vector.broadcast %cst_76 : f32 to vector<16x64xf32>
    %149 = arith.mulf %148, %147 : vector<16x64xf32>
    %150 = arith.mulf %137, %149 : vector<16x64xf32>
    %151 = arith.truncf %150 : vector<16x64xf32> to vector<16x64xbf16>
    %c0_77 = arith.constant 0 : index
    %c0_78 = arith.constant 0 : index
    %152 = vector.load %arg12[%c0_77, %c0_78] : memref<64x32xbf16, #tpu.memory_space<vmem>>, vector<64x32xbf16>
    %cst_79 = arith.constant dense<0.000000e+00> : vector<16x32xf32>
    %153 = tpu.matmul %151, %152, %cst_79 {dimension_numbers = #tpu.dot_dimension_numbers<[1], [0], [0], [1], [0, 0, 1, 1], [], []>} : vector<16x64xbf16>, vector<64x32xbf16>, vector<16x32xf32> -> vector<16x32xf32>
    %154 = arith.addf %107, %153 : vector<16x32xf32>
    %c0_80 = arith.constant 0 : index
    %c0_81 = arith.constant 0 : index
    %155 = vector.load %arg13[%c0_80, %c0_81] : memref<1x32xf32, #tpu.memory_space<vmem>>, vector<1x32xf32>
    %156 = vector.broadcast %155 : vector<1x32xf32> to vector<16x32xf32>
    %157 = arith.addf %154, %156 : vector<16x32xf32>
    %c0_82 = arith.constant 0 : index
    %c0_83 = arith.constant 0 : index
    %158 = vector.load %arg14[%c0_82, %c0_83] : memref<1x32xf32, #tpu.memory_space<vmem>>, vector<1x32xf32>
    %c0_84 = arith.constant 0 : index
    %c0_85 = arith.constant 0 : index
    %159 = vector.load %arg15[%c0_84, %c0_85] : memref<1x32xf32, #tpu.memory_space<vmem>>, vector<1x32xf32>
    %cst_86 = arith.constant dense<0.000000e+00> : vector<16xf32>
    %160 = vector.multi_reduction <add>, %157, %cst_86 [1] : vector<16x32xf32> to vector<16xf32>
    %161 = vector.shape_cast %160 : vector<16xf32> to vector<16x1xf32>
    %cst_87 = arith.constant 3.200000e+01 : f32
    %162 = vector.broadcast %cst_87 : f32 to vector<16x1xf32>
    %163 = arith.divf %161, %162 : vector<16x1xf32>
    %164 = vector.broadcast %163 : vector<16x1xf32> to vector<16x32xf32>
    %165 = arith.subf %157, %164 : vector<16x32xf32>
    %166 = arith.mulf %165, %165 : vector<16x32xf32>
    %cst_88 = arith.constant dense<0.000000e+00> : vector<16xf32>
    %167 = vector.multi_reduction <add>, %166, %cst_88 [1] : vector<16x32xf32> to vector<16xf32>
    %168 = vector.shape_cast %167 : vector<16xf32> to vector<16x1xf32>
    %cst_89 = arith.constant 3.200000e+01 : f32
    %169 = vector.broadcast %cst_89 : f32 to vector<16x1xf32>
    %170 = arith.divf %168, %169 : vector<16x1xf32>
    %171 = vector.broadcast %163 : vector<16x1xf32> to vector<16x32xf32>
    %172 = arith.subf %157, %171 : vector<16x32xf32>
    %cst_90 = arith.constant 9.99999974E-6 : f32
    %173 = vector.broadcast %cst_90 : f32 to vector<16x1xf32>
    %174 = arith.addf %170, %173 : vector<16x1xf32>
    %175 = math.rsqrt %174 : vector<16x1xf32>
    %176 = vector.broadcast %175 : vector<16x1xf32> to vector<16x32xf32>
    %177 = arith.mulf %172, %176 : vector<16x32xf32>
    %178 = vector.broadcast %158 : vector<1x32xf32> to vector<16x32xf32>
    %179 = arith.mulf %177, %178 : vector<16x32xf32>
    %180 = vector.broadcast %159 : vector<1x32xf32> to vector<16x32xf32>
    %181 = arith.addf %179, %180 : vector<16x32xf32>
    %182 = arith.truncf %181 : vector<16x32xf32> to vector<16x32xbf16>
    %c0_91 = arith.constant 0 : index
    %c0_92 = arith.constant 0 : index
    %183 = vector.load %arg16[%c0_91, %c0_92] : memref<32x16xbf16, #tpu.memory_space<vmem>>, vector<32x16xbf16>
    %cst_93 = arith.constant dense<0.000000e+00> : vector<16x16xf32>
    %184 = tpu.matmul %182, %183, %cst_93 {dimension_numbers = #tpu.dot_dimension_numbers<[1], [0], [0], [1], [0, 0, 1, 1], [], []>} : vector<16x32xbf16>, vector<32x16xbf16>, vector<16x16xf32> -> vector<16x16xf32>
    %c0_94 = arith.constant 0 : index
    %c0_95 = arith.constant 0 : index
    %185 = vector.load %arg17[%c0_94, %c0_95] : memref<1x16xf32, #tpu.memory_space<vmem>>, vector<1x16xf32>
    %186 = vector.broadcast %185 : vector<1x16xf32> to vector<16x16xf32>
    %187 = arith.addf %184, %186 : vector<16x16xf32>
    %c0_96 = arith.constant 0 : index
    %c0_97 = arith.constant 0 : index
    %188 = vector.load %arg18[%c0_96, %c0_97] : memref<128x16xbf16, #tpu.memory_space<vmem>>, vector<128x16xbf16>
    %189 = arith.truncf %187 : vector<16x16xf32> to vector<16x16xbf16>
    %cst_98 = arith.constant dense<0.000000e+00> : vector<128x16xf32>
    %190 = tpu.matmul %188, %189, %cst_98 {dimension_numbers = #tpu.dot_dimension_numbers<[1], [0], [0], [1], [0, 0, 1, 1], [], []>} : vector<128x16xbf16>, vector<16x16xbf16>, vector<128x16xf32> -> vector<128x16xf32>
    %c0_99 = arith.constant 0 : index
    %c0_100 = arith.constant 0 : index
    %191 = vector.load %arg19[%c0_99, %c0_100] : memref<128x1xf32, #tpu.memory_space<vmem>>, vector<128x1xf32>
    %c0_101 = arith.constant 0 : index
    %c0_102 = arith.constant 0 : index
    %192 = vector.load %arg21[%c0_101, %c0_102] : memref<1x16xf32, #tpu.memory_space<vmem>>, vector<1x16xf32>
    %193 = vector.broadcast %191 : vector<128x1xf32> to vector<128x16xf32>
    %194 = arith.mulf %190, %193 : vector<128x16xf32>
    %c9_i32 = arith.constant 9 : i32
    %195 = tpu.dynamic_rotate %194 by %c9_i32 dim 0 : vector<128x16xf32>, i32 -> vector<128x16xf32>
    %196 = arith.truncf %195 : vector<128x16xf32> to vector<128x16xbf16>
    %c0_103 = arith.constant 0 : index
    %c0_104 = arith.constant 0 : index
    %c0_105 = arith.constant 0 : index
    %197 = vector.load %arg20[%c0_103, %c0_104, %c0_105] : memref<9x16x16xbf16, #tpu.memory_space<vmem>>, vector<1x16x16xbf16>
    %198 = vector.shape_cast %197 : vector<1x16x16xbf16> to vector<16x16xbf16>
    %cst_106 = arith.constant dense<0.000000e+00> : vector<128x16xf32>
    %199 = tpu.matmul %196, %198, %cst_106 {dimension_numbers = #tpu.dot_dimension_numbers<[1], [0], [0], [1], [0, 0, 1, 1], [], []>} : vector<128x16xbf16>, vector<16x16xbf16>, vector<128x16xf32> -> vector<128x16xf32>
    %c8_i32 = arith.constant 8 : i32
    %200 = tpu.dynamic_rotate %194 by %c8_i32 dim 0 : vector<128x16xf32>, i32 -> vector<128x16xf32>
    %201 = arith.truncf %200 : vector<128x16xf32> to vector<128x16xbf16>
    %c1_107 = arith.constant 1 : index
    %c0_108 = arith.constant 0 : index
    %c0_109 = arith.constant 0 : index
    %202 = vector.load %arg20[%c1_107, %c0_108, %c0_109] : memref<9x16x16xbf16, #tpu.memory_space<vmem>>, vector<1x16x16xbf16>
    %203 = vector.shape_cast %202 : vector<1x16x16xbf16> to vector<16x16xbf16>
    %cst_110 = arith.constant dense<0.000000e+00> : vector<128x16xf32>
    %204 = tpu.matmul %201, %203, %cst_110 {dimension_numbers = #tpu.dot_dimension_numbers<[1], [0], [0], [1], [0, 0, 1, 1], [], []>} : vector<128x16xbf16>, vector<16x16xbf16>, vector<128x16xf32> -> vector<128x16xf32>
    %205 = arith.addf %199, %204 : vector<128x16xf32>
    %c7_i32 = arith.constant 7 : i32
    %206 = tpu.dynamic_rotate %194 by %c7_i32 dim 0 : vector<128x16xf32>, i32 -> vector<128x16xf32>
    %207 = arith.truncf %206 : vector<128x16xf32> to vector<128x16xbf16>
    %c2_111 = arith.constant 2 : index
    %c0_112 = arith.constant 0 : index
    %c0_113 = arith.constant 0 : index
    %208 = vector.load %arg20[%c2_111, %c0_112, %c0_113] : memref<9x16x16xbf16, #tpu.memory_space<vmem>>, vector<1x16x16xbf16>
    %209 = vector.shape_cast %208 : vector<1x16x16xbf16> to vector<16x16xbf16>
    %cst_114 = arith.constant dense<0.000000e+00> : vector<128x16xf32>
    %210 = tpu.matmul %207, %209, %cst_114 {dimension_numbers = #tpu.dot_dimension_numbers<[1], [0], [0], [1], [0, 0, 1, 1], [], []>} : vector<128x16xbf16>, vector<16x16xbf16>, vector<128x16xf32> -> vector<128x16xf32>
    %211 = arith.addf %205, %210 : vector<128x16xf32>
    %c1_i32 = arith.constant 1 : i32
    %212 = tpu.dynamic_rotate %194 by %c1_i32 dim 0 : vector<128x16xf32>, i32 -> vector<128x16xf32>
    %213 = arith.truncf %212 : vector<128x16xf32> to vector<128x16xbf16>
    %c3_115 = arith.constant 3 : index
    %c0_116 = arith.constant 0 : index
    %c0_117 = arith.constant 0 : index
    %214 = vector.load %arg20[%c3_115, %c0_116, %c0_117] : memref<9x16x16xbf16, #tpu.memory_space<vmem>>, vector<1x16x16xbf16>
    %215 = vector.shape_cast %214 : vector<1x16x16xbf16> to vector<16x16xbf16>
    %cst_118 = arith.constant dense<0.000000e+00> : vector<128x16xf32>
    %216 = tpu.matmul %213, %215, %cst_118 {dimension_numbers = #tpu.dot_dimension_numbers<[1], [0], [0], [1], [0, 0, 1, 1], [], []>} : vector<128x16xbf16>, vector<16x16xbf16>, vector<128x16xf32> -> vector<128x16xf32>
    %217 = arith.addf %211, %216 : vector<128x16xf32>
    %218 = arith.truncf %194 : vector<128x16xf32> to vector<128x16xbf16>
    %c4_119 = arith.constant 4 : index
    %c0_120 = arith.constant 0 : index
    %c0_121 = arith.constant 0 : index
    %219 = vector.load %arg20[%c4_119, %c0_120, %c0_121] : memref<9x16x16xbf16, #tpu.memory_space<vmem>>, vector<1x16x16xbf16>
    %220 = vector.shape_cast %219 : vector<1x16x16xbf16> to vector<16x16xbf16>
    %cst_122 = arith.constant dense<0.000000e+00> : vector<128x16xf32>
    %221 = tpu.matmul %218, %220, %cst_122 {dimension_numbers = #tpu.dot_dimension_numbers<[1], [0], [0], [1], [0, 0, 1, 1], [], []>} : vector<128x16xbf16>, vector<16x16xbf16>, vector<128x16xf32> -> vector<128x16xf32>
    %222 = arith.addf %217, %221 : vector<128x16xf32>
    %c127_i32 = arith.constant 127 : i32
    %223 = tpu.dynamic_rotate %194 by %c127_i32 dim 0 : vector<128x16xf32>, i32 -> vector<128x16xf32>
    %224 = arith.truncf %223 : vector<128x16xf32> to vector<128x16xbf16>
    %c5_123 = arith.constant 5 : index
    %c0_124 = arith.constant 0 : index
    %c0_125 = arith.constant 0 : index
    %225 = vector.load %arg20[%c5_123, %c0_124, %c0_125] : memref<9x16x16xbf16, #tpu.memory_space<vmem>>, vector<1x16x16xbf16>
    %226 = vector.shape_cast %225 : vector<1x16x16xbf16> to vector<16x16xbf16>
    %cst_126 = arith.constant dense<0.000000e+00> : vector<128x16xf32>
    %227 = tpu.matmul %224, %226, %cst_126 {dimension_numbers = #tpu.dot_dimension_numbers<[1], [0], [0], [1], [0, 0, 1, 1], [], []>} : vector<128x16xbf16>, vector<16x16xbf16>, vector<128x16xf32> -> vector<128x16xf32>
    %228 = arith.addf %222, %227 : vector<128x16xf32>
    %c121_i32 = arith.constant 121 : i32
    %229 = tpu.dynamic_rotate %194 by %c121_i32 dim 0 : vector<128x16xf32>, i32 -> vector<128x16xf32>
    %230 = arith.truncf %229 : vector<128x16xf32> to vector<128x16xbf16>
    %c6 = arith.constant 6 : index
    %c0_127 = arith.constant 0 : index
    %c0_128 = arith.constant 0 : index
    %231 = vector.load %arg20[%c6, %c0_127, %c0_128] : memref<9x16x16xbf16, #tpu.memory_space<vmem>>, vector<1x16x16xbf16>
    %232 = vector.shape_cast %231 : vector<1x16x16xbf16> to vector<16x16xbf16>
    %cst_129 = arith.constant dense<0.000000e+00> : vector<128x16xf32>
    %233 = tpu.matmul %230, %232, %cst_129 {dimension_numbers = #tpu.dot_dimension_numbers<[1], [0], [0], [1], [0, 0, 1, 1], [], []>} : vector<128x16xbf16>, vector<16x16xbf16>, vector<128x16xf32> -> vector<128x16xf32>
    %234 = arith.addf %228, %233 : vector<128x16xf32>
    %c120_i32 = arith.constant 120 : i32
    %235 = tpu.dynamic_rotate %194 by %c120_i32 dim 0 : vector<128x16xf32>, i32 -> vector<128x16xf32>
    %236 = arith.truncf %235 : vector<128x16xf32> to vector<128x16xbf16>
    %c7 = arith.constant 7 : index
    %c0_130 = arith.constant 0 : index
    %c0_131 = arith.constant 0 : index
    %237 = vector.load %arg20[%c7, %c0_130, %c0_131] : memref<9x16x16xbf16, #tpu.memory_space<vmem>>, vector<1x16x16xbf16>
    %238 = vector.shape_cast %237 : vector<1x16x16xbf16> to vector<16x16xbf16>
    %cst_132 = arith.constant dense<0.000000e+00> : vector<128x16xf32>
    %239 = tpu.matmul %236, %238, %cst_132 {dimension_numbers = #tpu.dot_dimension_numbers<[1], [0], [0], [1], [0, 0, 1, 1], [], []>} : vector<128x16xbf16>, vector<16x16xbf16>, vector<128x16xf32> -> vector<128x16xf32>
    %240 = arith.addf %234, %239 : vector<128x16xf32>
    %c119_i32 = arith.constant 119 : i32
    %241 = tpu.dynamic_rotate %194 by %c119_i32 dim 0 : vector<128x16xf32>, i32 -> vector<128x16xf32>
    %242 = arith.truncf %241 : vector<128x16xf32> to vector<128x16xbf16>
    %c8 = arith.constant 8 : index
    %c0_133 = arith.constant 0 : index
    %c0_134 = arith.constant 0 : index
    %243 = vector.load %arg20[%c8, %c0_133, %c0_134] : memref<9x16x16xbf16, #tpu.memory_space<vmem>>, vector<1x16x16xbf16>
    %244 = vector.shape_cast %243 : vector<1x16x16xbf16> to vector<16x16xbf16>
    %cst_135 = arith.constant dense<0.000000e+00> : vector<128x16xf32>
    %245 = tpu.matmul %242, %244, %cst_135 {dimension_numbers = #tpu.dot_dimension_numbers<[1], [0], [0], [1], [0, 0, 1, 1], [], []>} : vector<128x16xbf16>, vector<16x16xbf16>, vector<128x16xf32> -> vector<128x16xf32>
    %246 = arith.addf %240, %245 : vector<128x16xf32>
    %247 = vector.broadcast %192 : vector<1x16xf32> to vector<128x16xf32>
    %248 = arith.addf %246, %247 : vector<128x16xf32>
    %cst_136 = arith.constant 0.000000e+00 : f32
    %249 = vector.broadcast %cst_136 : f32 to vector<128x16xf32>
    %250 = arith.maximumf %248, %249 : vector<128x16xf32>
    %c0_137 = arith.constant 0 : index
    %c0_138 = arith.constant 0 : index
    %251 = vector.load %arg23[%c0_137, %c0_138] : memref<1x16xf32, #tpu.memory_space<vmem>>, vector<1x16xf32>
    %252 = vector.broadcast %191 : vector<128x1xf32> to vector<128x16xf32>
    %253 = arith.mulf %250, %252 : vector<128x16xf32>
    %c9_i32_139 = arith.constant 9 : i32
    %254 = tpu.dynamic_rotate %253 by %c9_i32_139 dim 0 : vector<128x16xf32>, i32 -> vector<128x16xf32>
    %255 = arith.truncf %254 : vector<128x16xf32> to vector<128x16xbf16>
    %c0_140 = arith.constant 0 : index
    %c0_141 = arith.constant 0 : index
    %c0_142 = arith.constant 0 : index
    %256 = vector.load %arg22[%c0_140, %c0_141, %c0_142] : memref<9x16x16xbf16, #tpu.memory_space<vmem>>, vector<1x16x16xbf16>
    %257 = vector.shape_cast %256 : vector<1x16x16xbf16> to vector<16x16xbf16>
    %cst_143 = arith.constant dense<0.000000e+00> : vector<128x16xf32>
    %258 = tpu.matmul %255, %257, %cst_143 {dimension_numbers = #tpu.dot_dimension_numbers<[1], [0], [0], [1], [0, 0, 1, 1], [], []>} : vector<128x16xbf16>, vector<16x16xbf16>, vector<128x16xf32> -> vector<128x16xf32>
    %c8_i32_144 = arith.constant 8 : i32
    %259 = tpu.dynamic_rotate %253 by %c8_i32_144 dim 0 : vector<128x16xf32>, i32 -> vector<128x16xf32>
    %260 = arith.truncf %259 : vector<128x16xf32> to vector<128x16xbf16>
    %c1_145 = arith.constant 1 : index
    %c0_146 = arith.constant 0 : index
    %c0_147 = arith.constant 0 : index
    %261 = vector.load %arg22[%c1_145, %c0_146, %c0_147] : memref<9x16x16xbf16, #tpu.memory_space<vmem>>, vector<1x16x16xbf16>
    %262 = vector.shape_cast %261 : vector<1x16x16xbf16> to vector<16x16xbf16>
    %cst_148 = arith.constant dense<0.000000e+00> : vector<128x16xf32>
    %263 = tpu.matmul %260, %262, %cst_148 {dimension_numbers = #tpu.dot_dimension_numbers<[1], [0], [0], [1], [0, 0, 1, 1], [], []>} : vector<128x16xbf16>, vector<16x16xbf16>, vector<128x16xf32> -> vector<128x16xf32>
    %264 = arith.addf %258, %263 : vector<128x16xf32>
    %c7_i32_149 = arith.constant 7 : i32
    %265 = tpu.dynamic_rotate %253 by %c7_i32_149 dim 0 : vector<128x16xf32>, i32 -> vector<128x16xf32>
    %266 = arith.truncf %265 : vector<128x16xf32> to vector<128x16xbf16>
    %c2_150 = arith.constant 2 : index
    %c0_151 = arith.constant 0 : index
    %c0_152 = arith.constant 0 : index
    %267 = vector.load %arg22[%c2_150, %c0_151, %c0_152] : memref<9x16x16xbf16, #tpu.memory_space<vmem>>, vector<1x16x16xbf16>
    %268 = vector.shape_cast %267 : vector<1x16x16xbf16> to vector<16x16xbf16>
    %cst_153 = arith.constant dense<0.000000e+00> : vector<128x16xf32>
    %269 = tpu.matmul %266, %268, %cst_153 {dimension_numbers = #tpu.dot_dimension_numbers<[1], [0], [0], [1], [0, 0, 1, 1], [], []>} : vector<128x16xbf16>, vector<16x16xbf16>, vector<128x16xf32> -> vector<128x16xf32>
    %270 = arith.addf %264, %269 : vector<128x16xf32>
    %c1_i32_154 = arith.constant 1 : i32
    %271 = tpu.dynamic_rotate %253 by %c1_i32_154 dim 0 : vector<128x16xf32>, i32 -> vector<128x16xf32>
    %272 = arith.truncf %271 : vector<128x16xf32> to vector<128x16xbf16>
    %c3_155 = arith.constant 3 : index
    %c0_156 = arith.constant 0 : index
    %c0_157 = arith.constant 0 : index
    %273 = vector.load %arg22[%c3_155, %c0_156, %c0_157] : memref<9x16x16xbf16, #tpu.memory_space<vmem>>, vector<1x16x16xbf16>
    %274 = vector.shape_cast %273 : vector<1x16x16xbf16> to vector<16x16xbf16>
    %cst_158 = arith.constant dense<0.000000e+00> : vector<128x16xf32>
    %275 = tpu.matmul %272, %274, %cst_158 {dimension_numbers = #tpu.dot_dimension_numbers<[1], [0], [0], [1], [0, 0, 1, 1], [], []>} : vector<128x16xbf16>, vector<16x16xbf16>, vector<128x16xf32> -> vector<128x16xf32>
    %276 = arith.addf %270, %275 : vector<128x16xf32>
    %277 = arith.truncf %253 : vector<128x16xf32> to vector<128x16xbf16>
    %c4_159 = arith.constant 4 : index
    %c0_160 = arith.constant 0 : index
    %c0_161 = arith.constant 0 : index
    %278 = vector.load %arg22[%c4_159, %c0_160, %c0_161] : memref<9x16x16xbf16, #tpu.memory_space<vmem>>, vector<1x16x16xbf16>
    %279 = vector.shape_cast %278 : vector<1x16x16xbf16> to vector<16x16xbf16>
    %cst_162 = arith.constant dense<0.000000e+00> : vector<128x16xf32>
    %280 = tpu.matmul %277, %279, %cst_162 {dimension_numbers = #tpu.dot_dimension_numbers<[1], [0], [0], [1], [0, 0, 1, 1], [], []>} : vector<128x16xbf16>, vector<16x16xbf16>, vector<128x16xf32> -> vector<128x16xf32>
    %281 = arith.addf %276, %280 : vector<128x16xf32>
    %c127_i32_163 = arith.constant 127 : i32
    %282 = tpu.dynamic_rotate %253 by %c127_i32_163 dim 0 : vector<128x16xf32>, i32 -> vector<128x16xf32>
    %283 = arith.truncf %282 : vector<128x16xf32> to vector<128x16xbf16>
    %c5_164 = arith.constant 5 : index
    %c0_165 = arith.constant 0 : index
    %c0_166 = arith.constant 0 : index
    %284 = vector.load %arg22[%c5_164, %c0_165, %c0_166] : memref<9x16x16xbf16, #tpu.memory_space<vmem>>, vector<1x16x16xbf16>
    %285 = vector.shape_cast %284 : vector<1x16x16xbf16> to vector<16x16xbf16>
    %cst_167 = arith.constant dense<0.000000e+00> : vector<128x16xf32>
    %286 = tpu.matmul %283, %285, %cst_167 {dimension_numbers = #tpu.dot_dimension_numbers<[1], [0], [0], [1], [0, 0, 1, 1], [], []>} : vector<128x16xbf16>, vector<16x16xbf16>, vector<128x16xf32> -> vector<128x16xf32>
    %287 = arith.addf %281, %286 : vector<128x16xf32>
    %c121_i32_168 = arith.constant 121 : i32
    %288 = tpu.dynamic_rotate %253 by %c121_i32_168 dim 0 : vector<128x16xf32>, i32 -> vector<128x16xf32>
    %289 = arith.truncf %288 : vector<128x16xf32> to vector<128x16xbf16>
    %c6_169 = arith.constant 6 : index
    %c0_170 = arith.constant 0 : index
    %c0_171 = arith.constant 0 : index
    %290 = vector.load %arg22[%c6_169, %c0_170, %c0_171] : memref<9x16x16xbf16, #tpu.memory_space<vmem>>, vector<1x16x16xbf16>
    %291 = vector.shape_cast %290 : vector<1x16x16xbf16> to vector<16x16xbf16>
    %cst_172 = arith.constant dense<0.000000e+00> : vector<128x16xf32>
    %292 = tpu.matmul %289, %291, %cst_172 {dimension_numbers = #tpu.dot_dimension_numbers<[1], [0], [0], [1], [0, 0, 1, 1], [], []>} : vector<128x16xbf16>, vector<16x16xbf16>, vector<128x16xf32> -> vector<128x16xf32>
    %293 = arith.addf %287, %292 : vector<128x16xf32>
    %c120_i32_173 = arith.constant 120 : i32
    %294 = tpu.dynamic_rotate %253 by %c120_i32_173 dim 0 : vector<128x16xf32>, i32 -> vector<128x16xf32>
    %295 = arith.truncf %294 : vector<128x16xf32> to vector<128x16xbf16>
    %c7_174 = arith.constant 7 : index
    %c0_175 = arith.constant 0 : index
    %c0_176 = arith.constant 0 : index
    %296 = vector.load %arg22[%c7_174, %c0_175, %c0_176] : memref<9x16x16xbf16, #tpu.memory_space<vmem>>, vector<1x16x16xbf16>
    %297 = vector.shape_cast %296 : vector<1x16x16xbf16> to vector<16x16xbf16>
    %cst_177 = arith.constant dense<0.000000e+00> : vector<128x16xf32>
    %298 = tpu.matmul %295, %297, %cst_177 {dimension_numbers = #tpu.dot_dimension_numbers<[1], [0], [0], [1], [0, 0, 1, 1], [], []>} : vector<128x16xbf16>, vector<16x16xbf16>, vector<128x16xf32> -> vector<128x16xf32>
    %299 = arith.addf %293, %298 : vector<128x16xf32>
    %c119_i32_178 = arith.constant 119 : i32
    %300 = tpu.dynamic_rotate %253 by %c119_i32_178 dim 0 : vector<128x16xf32>, i32 -> vector<128x16xf32>
    %301 = arith.truncf %300 : vector<128x16xf32> to vector<128x16xbf16>
    %c8_179 = arith.constant 8 : index
    %c0_180 = arith.constant 0 : index
    %c0_181 = arith.constant 0 : index
    %302 = vector.load %arg22[%c8_179, %c0_180, %c0_181] : memref<9x16x16xbf16, #tpu.memory_space<vmem>>, vector<1x16x16xbf16>
    %303 = vector.shape_cast %302 : vector<1x16x16xbf16> to vector<16x16xbf16>
    %cst_182 = arith.constant dense<0.000000e+00> : vector<128x16xf32>
    %304 = tpu.matmul %301, %303, %cst_182 {dimension_numbers = #tpu.dot_dimension_numbers<[1], [0], [0], [1], [0, 0, 1, 1], [], []>} : vector<128x16xbf16>, vector<16x16xbf16>, vector<128x16xf32> -> vector<128x16xf32>
    %305 = arith.addf %299, %304 : vector<128x16xf32>
    %306 = vector.broadcast %251 : vector<1x16xf32> to vector<128x16xf32>
    %307 = arith.addf %305, %306 : vector<128x16xf32>
    %308 = arith.addf %307, %190 : vector<128x16xf32>
    %cst_183 = arith.constant 0.000000e+00 : f32
    %309 = vector.broadcast %cst_183 : f32 to vector<128x16xf32>
    %310 = arith.maximumf %308, %309 : vector<128x16xf32>
    %c0_184 = arith.constant 0 : index
    %c0_185 = arith.constant 0 : index
    %311 = vector.load %arg25[%c0_184, %c0_185] : memref<1x16xf32, #tpu.memory_space<vmem>>, vector<1x16xf32>
    %312 = vector.broadcast %191 : vector<128x1xf32> to vector<128x16xf32>
    %313 = arith.mulf %310, %312 : vector<128x16xf32>
    %c9_i32_186 = arith.constant 9 : i32
    %314 = tpu.dynamic_rotate %313 by %c9_i32_186 dim 0 : vector<128x16xf32>, i32 -> vector<128x16xf32>
    %315 = arith.truncf %314 : vector<128x16xf32> to vector<128x16xbf16>
    %c0_187 = arith.constant 0 : index
    %c0_188 = arith.constant 0 : index
    %c0_189 = arith.constant 0 : index
    %316 = vector.load %arg24[%c0_187, %c0_188, %c0_189] : memref<9x16x16xbf16, #tpu.memory_space<vmem>>, vector<1x16x16xbf16>
    %317 = vector.shape_cast %316 : vector<1x16x16xbf16> to vector<16x16xbf16>
    %cst_190 = arith.constant dense<0.000000e+00> : vector<128x16xf32>
    %318 = tpu.matmul %315, %317, %cst_190 {dimension_numbers = #tpu.dot_dimension_numbers<[1], [0], [0], [1], [0, 0, 1, 1], [], []>} : vector<128x16xbf16>, vector<16x16xbf16>, vector<128x16xf32> -> vector<128x16xf32>
    %c8_i32_191 = arith.constant 8 : i32
    %319 = tpu.dynamic_rotate %313 by %c8_i32_191 dim 0 : vector<128x16xf32>, i32 -> vector<128x16xf32>
    %320 = arith.truncf %319 : vector<128x16xf32> to vector<128x16xbf16>
    %c1_192 = arith.constant 1 : index
    %c0_193 = arith.constant 0 : index
    %c0_194 = arith.constant 0 : index
    %321 = vector.load %arg24[%c1_192, %c0_193, %c0_194] : memref<9x16x16xbf16, #tpu.memory_space<vmem>>, vector<1x16x16xbf16>
    %322 = vector.shape_cast %321 : vector<1x16x16xbf16> to vector<16x16xbf16>
    %cst_195 = arith.constant dense<0.000000e+00> : vector<128x16xf32>
    %323 = tpu.matmul %320, %322, %cst_195 {dimension_numbers = #tpu.dot_dimension_numbers<[1], [0], [0], [1], [0, 0, 1, 1], [], []>} : vector<128x16xbf16>, vector<16x16xbf16>, vector<128x16xf32> -> vector<128x16xf32>
    %324 = arith.addf %318, %323 : vector<128x16xf32>
    %c7_i32_196 = arith.constant 7 : i32
    %325 = tpu.dynamic_rotate %313 by %c7_i32_196 dim 0 : vector<128x16xf32>, i32 -> vector<128x16xf32>
    %326 = arith.truncf %325 : vector<128x16xf32> to vector<128x16xbf16>
    %c2_197 = arith.constant 2 : index
    %c0_198 = arith.constant 0 : index
    %c0_199 = arith.constant 0 : index
    %327 = vector.load %arg24[%c2_197, %c0_198, %c0_199] : memref<9x16x16xbf16, #tpu.memory_space<vmem>>, vector<1x16x16xbf16>
    %328 = vector.shape_cast %327 : vector<1x16x16xbf16> to vector<16x16xbf16>
    %cst_200 = arith.constant dense<0.000000e+00> : vector<128x16xf32>
    %329 = tpu.matmul %326, %328, %cst_200 {dimension_numbers = #tpu.dot_dimension_numbers<[1], [0], [0], [1], [0, 0, 1, 1], [], []>} : vector<128x16xbf16>, vector<16x16xbf16>, vector<128x16xf32> -> vector<128x16xf32>
    %330 = arith.addf %324, %329 : vector<128x16xf32>
    %c1_i32_201 = arith.constant 1 : i32
    %331 = tpu.dynamic_rotate %313 by %c1_i32_201 dim 0 : vector<128x16xf32>, i32 -> vector<128x16xf32>
    %332 = arith.truncf %331 : vector<128x16xf32> to vector<128x16xbf16>
    %c3_202 = arith.constant 3 : index
    %c0_203 = arith.constant 0 : index
    %c0_204 = arith.constant 0 : index
    %333 = vector.load %arg24[%c3_202, %c0_203, %c0_204] : memref<9x16x16xbf16, #tpu.memory_space<vmem>>, vector<1x16x16xbf16>
    %334 = vector.shape_cast %333 : vector<1x16x16xbf16> to vector<16x16xbf16>
    %cst_205 = arith.constant dense<0.000000e+00> : vector<128x16xf32>
    %335 = tpu.matmul %332, %334, %cst_205 {dimension_numbers = #tpu.dot_dimension_numbers<[1], [0], [0], [1], [0, 0, 1, 1], [], []>} : vector<128x16xbf16>, vector<16x16xbf16>, vector<128x16xf32> -> vector<128x16xf32>
    %336 = arith.addf %330, %335 : vector<128x16xf32>
    %337 = arith.truncf %313 : vector<128x16xf32> to vector<128x16xbf16>
    %c4_206 = arith.constant 4 : index
    %c0_207 = arith.constant 0 : index
    %c0_208 = arith.constant 0 : index
    %338 = vector.load %arg24[%c4_206, %c0_207, %c0_208] : memref<9x16x16xbf16, #tpu.memory_space<vmem>>, vector<1x16x16xbf16>
    %339 = vector.shape_cast %338 : vector<1x16x16xbf16> to vector<16x16xbf16>
    %cst_209 = arith.constant dense<0.000000e+00> : vector<128x16xf32>
    %340 = tpu.matmul %337, %339, %cst_209 {dimension_numbers = #tpu.dot_dimension_numbers<[1], [0], [0], [1], [0, 0, 1, 1], [], []>} : vector<128x16xbf16>, vector<16x16xbf16>, vector<128x16xf32> -> vector<128x16xf32>
    %341 = arith.addf %336, %340 : vector<128x16xf32>
    %c127_i32_210 = arith.constant 127 : i32
    %342 = tpu.dynamic_rotate %313 by %c127_i32_210 dim 0 : vector<128x16xf32>, i32 -> vector<128x16xf32>
    %343 = arith.truncf %342 : vector<128x16xf32> to vector<128x16xbf16>
    %c5_211 = arith.constant 5 : index
    %c0_212 = arith.constant 0 : index
    %c0_213 = arith.constant 0 : index
    %344 = vector.load %arg24[%c5_211, %c0_212, %c0_213] : memref<9x16x16xbf16, #tpu.memory_space<vmem>>, vector<1x16x16xbf16>
    %345 = vector.shape_cast %344 : vector<1x16x16xbf16> to vector<16x16xbf16>
    %cst_214 = arith.constant dense<0.000000e+00> : vector<128x16xf32>
    %346 = tpu.matmul %343, %345, %cst_214 {dimension_numbers = #tpu.dot_dimension_numbers<[1], [0], [0], [1], [0, 0, 1, 1], [], []>} : vector<128x16xbf16>, vector<16x16xbf16>, vector<128x16xf32> -> vector<128x16xf32>
    %347 = arith.addf %341, %346 : vector<128x16xf32>
    %c121_i32_215 = arith.constant 121 : i32
    %348 = tpu.dynamic_rotate %313 by %c121_i32_215 dim 0 : vector<128x16xf32>, i32 -> vector<128x16xf32>
    %349 = arith.truncf %348 : vector<128x16xf32> to vector<128x16xbf16>
    %c6_216 = arith.constant 6 : index
    %c0_217 = arith.constant 0 : index
    %c0_218 = arith.constant 0 : index
    %350 = vector.load %arg24[%c6_216, %c0_217, %c0_218] : memref<9x16x16xbf16, #tpu.memory_space<vmem>>, vector<1x16x16xbf16>
    %351 = vector.shape_cast %350 : vector<1x16x16xbf16> to vector<16x16xbf16>
    %cst_219 = arith.constant dense<0.000000e+00> : vector<128x16xf32>
    %352 = tpu.matmul %349, %351, %cst_219 {dimension_numbers = #tpu.dot_dimension_numbers<[1], [0], [0], [1], [0, 0, 1, 1], [], []>} : vector<128x16xbf16>, vector<16x16xbf16>, vector<128x16xf32> -> vector<128x16xf32>
    %353 = arith.addf %347, %352 : vector<128x16xf32>
    %c120_i32_220 = arith.constant 120 : i32
    %354 = tpu.dynamic_rotate %313 by %c120_i32_220 dim 0 : vector<128x16xf32>, i32 -> vector<128x16xf32>
    %355 = arith.truncf %354 : vector<128x16xf32> to vector<128x16xbf16>
    %c7_221 = arith.constant 7 : index
    %c0_222 = arith.constant 0 : index
    %c0_223 = arith.constant 0 : index
    %356 = vector.load %arg24[%c7_221, %c0_222, %c0_223] : memref<9x16x16xbf16, #tpu.memory_space<vmem>>, vector<1x16x16xbf16>
    %357 = vector.shape_cast %356 : vector<1x16x16xbf16> to vector<16x16xbf16>
    %cst_224 = arith.constant dense<0.000000e+00> : vector<128x16xf32>
    %358 = tpu.matmul %355, %357, %cst_224 {dimension_numbers = #tpu.dot_dimension_numbers<[1], [0], [0], [1], [0, 0, 1, 1], [], []>} : vector<128x16xbf16>, vector<16x16xbf16>, vector<128x16xf32> -> vector<128x16xf32>
    %359 = arith.addf %353, %358 : vector<128x16xf32>
    %c119_i32_225 = arith.constant 119 : i32
    %360 = tpu.dynamic_rotate %313 by %c119_i32_225 dim 0 : vector<128x16xf32>, i32 -> vector<128x16xf32>
    %361 = arith.truncf %360 : vector<128x16xf32> to vector<128x16xbf16>
    %c8_226 = arith.constant 8 : index
    %c0_227 = arith.constant 0 : index
    %c0_228 = arith.constant 0 : index
    %362 = vector.load %arg24[%c8_226, %c0_227, %c0_228] : memref<9x16x16xbf16, #tpu.memory_space<vmem>>, vector<1x16x16xbf16>
    %363 = vector.shape_cast %362 : vector<1x16x16xbf16> to vector<16x16xbf16>
    %cst_229 = arith.constant dense<0.000000e+00> : vector<128x16xf32>
    %364 = tpu.matmul %361, %363, %cst_229 {dimension_numbers = #tpu.dot_dimension_numbers<[1], [0], [0], [1], [0, 0, 1, 1], [], []>} : vector<128x16xbf16>, vector<16x16xbf16>, vector<128x16xf32> -> vector<128x16xf32>
    %365 = arith.addf %359, %364 : vector<128x16xf32>
    %366 = vector.broadcast %311 : vector<1x16xf32> to vector<128x16xf32>
    %367 = arith.addf %365, %366 : vector<128x16xf32>
    %cst_230 = arith.constant 0.000000e+00 : f32
    %368 = vector.broadcast %cst_230 : f32 to vector<128x16xf32>
    %369 = arith.maximumf %367, %368 : vector<128x16xf32>
    %c0_231 = arith.constant 0 : index
    %c0_232 = arith.constant 0 : index
    %370 = vector.load %arg27[%c0_231, %c0_232] : memref<1x16xf32, #tpu.memory_space<vmem>>, vector<1x16xf32>
    %371 = vector.broadcast %191 : vector<128x1xf32> to vector<128x16xf32>
    %372 = arith.mulf %369, %371 : vector<128x16xf32>
    %c9_i32_233 = arith.constant 9 : i32
    %373 = tpu.dynamic_rotate %372 by %c9_i32_233 dim 0 : vector<128x16xf32>, i32 -> vector<128x16xf32>
    %374 = arith.truncf %373 : vector<128x16xf32> to vector<128x16xbf16>
    %c0_234 = arith.constant 0 : index
    %c0_235 = arith.constant 0 : index
    %c0_236 = arith.constant 0 : index
    %375 = vector.load %arg26[%c0_234, %c0_235, %c0_236] : memref<9x16x16xbf16, #tpu.memory_space<vmem>>, vector<1x16x16xbf16>
    %376 = vector.shape_cast %375 : vector<1x16x16xbf16> to vector<16x16xbf16>
    %cst_237 = arith.constant dense<0.000000e+00> : vector<128x16xf32>
    %377 = tpu.matmul %374, %376, %cst_237 {dimension_numbers = #tpu.dot_dimension_numbers<[1], [0], [0], [1], [0, 0, 1, 1], [], []>} : vector<128x16xbf16>, vector<16x16xbf16>, vector<128x16xf32> -> vector<128x16xf32>
    %c8_i32_238 = arith.constant 8 : i32
    %378 = tpu.dynamic_rotate %372 by %c8_i32_238 dim 0 : vector<128x16xf32>, i32 -> vector<128x16xf32>
    %379 = arith.truncf %378 : vector<128x16xf32> to vector<128x16xbf16>
    %c1_239 = arith.constant 1 : index
    %c0_240 = arith.constant 0 : index
    %c0_241 = arith.constant 0 : index
    %380 = vector.load %arg26[%c1_239, %c0_240, %c0_241] : memref<9x16x16xbf16, #tpu.memory_space<vmem>>, vector<1x16x16xbf16>
    %381 = vector.shape_cast %380 : vector<1x16x16xbf16> to vector<16x16xbf16>
    %cst_242 = arith.constant dense<0.000000e+00> : vector<128x16xf32>
    %382 = tpu.matmul %379, %381, %cst_242 {dimension_numbers = #tpu.dot_dimension_numbers<[1], [0], [0], [1], [0, 0, 1, 1], [], []>} : vector<128x16xbf16>, vector<16x16xbf16>, vector<128x16xf32> -> vector<128x16xf32>
    %383 = arith.addf %377, %382 : vector<128x16xf32>
    %c7_i32_243 = arith.constant 7 : i32
    %384 = tpu.dynamic_rotate %372 by %c7_i32_243 dim 0 : vector<128x16xf32>, i32 -> vector<128x16xf32>
    %385 = arith.truncf %384 : vector<128x16xf32> to vector<128x16xbf16>
    %c2_244 = arith.constant 2 : index
    %c0_245 = arith.constant 0 : index
    %c0_246 = arith.constant 0 : index
    %386 = vector.load %arg26[%c2_244, %c0_245, %c0_246] : memref<9x16x16xbf16, #tpu.memory_space<vmem>>, vector<1x16x16xbf16>
    %387 = vector.shape_cast %386 : vector<1x16x16xbf16> to vector<16x16xbf16>
    %cst_247 = arith.constant dense<0.000000e+00> : vector<128x16xf32>
    %388 = tpu.matmul %385, %387, %cst_247 {dimension_numbers = #tpu.dot_dimension_numbers<[1], [0], [0], [1], [0, 0, 1, 1], [], []>} : vector<128x16xbf16>, vector<16x16xbf16>, vector<128x16xf32> -> vector<128x16xf32>
    %389 = arith.addf %383, %388 : vector<128x16xf32>
    %c1_i32_248 = arith.constant 1 : i32
    %390 = tpu.dynamic_rotate %372 by %c1_i32_248 dim 0 : vector<128x16xf32>, i32 -> vector<128x16xf32>
    %391 = arith.truncf %390 : vector<128x16xf32> to vector<128x16xbf16>
    %c3_249 = arith.constant 3 : index
    %c0_250 = arith.constant 0 : index
    %c0_251 = arith.constant 0 : index
    %392 = vector.load %arg26[%c3_249, %c0_250, %c0_251] : memref<9x16x16xbf16, #tpu.memory_space<vmem>>, vector<1x16x16xbf16>
    %393 = vector.shape_cast %392 : vector<1x16x16xbf16> to vector<16x16xbf16>
    %cst_252 = arith.constant dense<0.000000e+00> : vector<128x16xf32>
    %394 = tpu.matmul %391, %393, %cst_252 {dimension_numbers = #tpu.dot_dimension_numbers<[1], [0], [0], [1], [0, 0, 1, 1], [], []>} : vector<128x16xbf16>, vector<16x16xbf16>, vector<128x16xf32> -> vector<128x16xf32>
    %395 = arith.addf %389, %394 : vector<128x16xf32>
    %396 = arith.truncf %372 : vector<128x16xf32> to vector<128x16xbf16>
    %c4_253 = arith.constant 4 : index
    %c0_254 = arith.constant 0 : index
    %c0_255 = arith.constant 0 : index
    %397 = vector.load %arg26[%c4_253, %c0_254, %c0_255] : memref<9x16x16xbf16, #tpu.memory_space<vmem>>, vector<1x16x16xbf16>
    %398 = vector.shape_cast %397 : vector<1x16x16xbf16> to vector<16x16xbf16>
    %cst_256 = arith.constant dense<0.000000e+00> : vector<128x16xf32>
    %399 = tpu.matmul %396, %398, %cst_256 {dimension_numbers = #tpu.dot_dimension_numbers<[1], [0], [0], [1], [0, 0, 1, 1], [], []>} : vector<128x16xbf16>, vector<16x16xbf16>, vector<128x16xf32> -> vector<128x16xf32>
    %400 = arith.addf %395, %399 : vector<128x16xf32>
    %c127_i32_257 = arith.constant 127 : i32
    %401 = tpu.dynamic_rotate %372 by %c127_i32_257 dim 0 : vector<128x16xf32>, i32 -> vector<128x16xf32>
    %402 = arith.truncf %401 : vector<128x16xf32> to vector<128x16xbf16>
    %c5_258 = arith.constant 5 : index
    %c0_259 = arith.constant 0 : index
    %c0_260 = arith.constant 0 : index
    %403 = vector.load %arg26[%c5_258, %c0_259, %c0_260] : memref<9x16x16xbf16, #tpu.memory_space<vmem>>, vector<1x16x16xbf16>
    %404 = vector.shape_cast %403 : vector<1x16x16xbf16> to vector<16x16xbf16>
    %cst_261 = arith.constant dense<0.000000e+00> : vector<128x16xf32>
    %405 = tpu.matmul %402, %404, %cst_261 {dimension_numbers = #tpu.dot_dimension_numbers<[1], [0], [0], [1], [0, 0, 1, 1], [], []>} : vector<128x16xbf16>, vector<16x16xbf16>, vector<128x16xf32> -> vector<128x16xf32>
    %406 = arith.addf %400, %405 : vector<128x16xf32>
    %c121_i32_262 = arith.constant 121 : i32
    %407 = tpu.dynamic_rotate %372 by %c121_i32_262 dim 0 : vector<128x16xf32>, i32 -> vector<128x16xf32>
    %408 = arith.truncf %407 : vector<128x16xf32> to vector<128x16xbf16>
    %c6_263 = arith.constant 6 : index
    %c0_264 = arith.constant 0 : index
    %c0_265 = arith.constant 0 : index
    %409 = vector.load %arg26[%c6_263, %c0_264, %c0_265] : memref<9x16x16xbf16, #tpu.memory_space<vmem>>, vector<1x16x16xbf16>
    %410 = vector.shape_cast %409 : vector<1x16x16xbf16> to vector<16x16xbf16>
    %cst_266 = arith.constant dense<0.000000e+00> : vector<128x16xf32>
    %411 = tpu.matmul %408, %410, %cst_266 {dimension_numbers = #tpu.dot_dimension_numbers<[1], [0], [0], [1], [0, 0, 1, 1], [], []>} : vector<128x16xbf16>, vector<16x16xbf16>, vector<128x16xf32> -> vector<128x16xf32>
    %412 = arith.addf %406, %411 : vector<128x16xf32>
    %c120_i32_267 = arith.constant 120 : i32
    %413 = tpu.dynamic_rotate %372 by %c120_i32_267 dim 0 : vector<128x16xf32>, i32 -> vector<128x16xf32>
    %414 = arith.truncf %413 : vector<128x16xf32> to vector<128x16xbf16>
    %c7_268 = arith.constant 7 : index
    %c0_269 = arith.constant 0 : index
    %c0_270 = arith.constant 0 : index
    %415 = vector.load %arg26[%c7_268, %c0_269, %c0_270] : memref<9x16x16xbf16, #tpu.memory_space<vmem>>, vector<1x16x16xbf16>
    %416 = vector.shape_cast %415 : vector<1x16x16xbf16> to vector<16x16xbf16>
    %cst_271 = arith.constant dense<0.000000e+00> : vector<128x16xf32>
    %417 = tpu.matmul %414, %416, %cst_271 {dimension_numbers = #tpu.dot_dimension_numbers<[1], [0], [0], [1], [0, 0, 1, 1], [], []>} : vector<128x16xbf16>, vector<16x16xbf16>, vector<128x16xf32> -> vector<128x16xf32>
    %418 = arith.addf %412, %417 : vector<128x16xf32>
    %c119_i32_272 = arith.constant 119 : i32
    %419 = tpu.dynamic_rotate %372 by %c119_i32_272 dim 0 : vector<128x16xf32>, i32 -> vector<128x16xf32>
    %420 = arith.truncf %419 : vector<128x16xf32> to vector<128x16xbf16>
    %c8_273 = arith.constant 8 : index
    %c0_274 = arith.constant 0 : index
    %c0_275 = arith.constant 0 : index
    %421 = vector.load %arg26[%c8_273, %c0_274, %c0_275] : memref<9x16x16xbf16, #tpu.memory_space<vmem>>, vector<1x16x16xbf16>
    %422 = vector.shape_cast %421 : vector<1x16x16xbf16> to vector<16x16xbf16>
    %cst_276 = arith.constant dense<0.000000e+00> : vector<128x16xf32>
    %423 = tpu.matmul %420, %422, %cst_276 {dimension_numbers = #tpu.dot_dimension_numbers<[1], [0], [0], [1], [0, 0, 1, 1], [], []>} : vector<128x16xbf16>, vector<16x16xbf16>, vector<128x16xf32> -> vector<128x16xf32>
    %424 = arith.addf %418, %423 : vector<128x16xf32>
    %425 = vector.broadcast %370 : vector<1x16xf32> to vector<128x16xf32>
    %426 = arith.addf %424, %425 : vector<128x16xf32>
    %427 = arith.addf %426, %310 : vector<128x16xf32>
    %cst_277 = arith.constant 0.000000e+00 : f32
    %428 = vector.broadcast %cst_277 : f32 to vector<128x16xf32>
    %429 = arith.maximumf %427, %428 : vector<128x16xf32>
    %430 = vector.broadcast %191 : vector<128x1xf32> to vector<128x16xf32>
    %431 = arith.mulf %429, %430 : vector<128x16xf32>
    %c9_i32_278 = arith.constant 9 : i32
    %432 = tpu.dynamic_rotate %431 by %c9_i32_278 dim 0 : vector<128x16xf32>, i32 -> vector<128x16xf32>
    %c0_279 = arith.constant 0 : index
    %c0_280 = arith.constant 0 : index
    %c0_281 = arith.constant 0 : index
    %433 = vector.load %arg28[%c0_279, %c0_280, %c0_281] : memref<9x1x16xf32, #tpu.memory_space<vmem>>, vector<1x1x16xf32>
    %434 = vector.shape_cast %433 : vector<1x1x16xf32> to vector<1x16xf32>
    %435 = vector.broadcast %434 : vector<1x16xf32> to vector<128x16xf32>
    %436 = arith.mulf %432, %435 : vector<128x16xf32>
    %cst_282 = arith.constant dense<0.000000e+00> : vector<128xf32>
    %437 = vector.multi_reduction <add>, %436, %cst_282 [1] : vector<128x16xf32> to vector<128xf32>
    %438 = vector.shape_cast %437 : vector<128xf32> to vector<128x1xf32>
    %c8_i32_283 = arith.constant 8 : i32
    %439 = tpu.dynamic_rotate %431 by %c8_i32_283 dim 0 : vector<128x16xf32>, i32 -> vector<128x16xf32>
    %c1_284 = arith.constant 1 : index
    %c0_285 = arith.constant 0 : index
    %c0_286 = arith.constant 0 : index
    %440 = vector.load %arg28[%c1_284, %c0_285, %c0_286] : memref<9x1x16xf32, #tpu.memory_space<vmem>>, vector<1x1x16xf32>
    %441 = vector.shape_cast %440 : vector<1x1x16xf32> to vector<1x16xf32>
    %442 = vector.broadcast %441 : vector<1x16xf32> to vector<128x16xf32>
    %443 = arith.mulf %439, %442 : vector<128x16xf32>
    %cst_287 = arith.constant dense<0.000000e+00> : vector<128xf32>
    %444 = vector.multi_reduction <add>, %443, %cst_287 [1] : vector<128x16xf32> to vector<128xf32>
    %445 = vector.shape_cast %444 : vector<128xf32> to vector<128x1xf32>
    %446 = arith.addf %438, %445 : vector<128x1xf32>
    %c7_i32_288 = arith.constant 7 : i32
    %447 = tpu.dynamic_rotate %431 by %c7_i32_288 dim 0 : vector<128x16xf32>, i32 -> vector<128x16xf32>
    %c2_289 = arith.constant 2 : index
    %c0_290 = arith.constant 0 : index
    %c0_291 = arith.constant 0 : index
    %448 = vector.load %arg28[%c2_289, %c0_290, %c0_291] : memref<9x1x16xf32, #tpu.memory_space<vmem>>, vector<1x1x16xf32>
    %449 = vector.shape_cast %448 : vector<1x1x16xf32> to vector<1x16xf32>
    %450 = vector.broadcast %449 : vector<1x16xf32> to vector<128x16xf32>
    %451 = arith.mulf %447, %450 : vector<128x16xf32>
    %cst_292 = arith.constant dense<0.000000e+00> : vector<128xf32>
    %452 = vector.multi_reduction <add>, %451, %cst_292 [1] : vector<128x16xf32> to vector<128xf32>
    %453 = vector.shape_cast %452 : vector<128xf32> to vector<128x1xf32>
    %454 = arith.addf %446, %453 : vector<128x1xf32>
    %c1_i32_293 = arith.constant 1 : i32
    %455 = tpu.dynamic_rotate %431 by %c1_i32_293 dim 0 : vector<128x16xf32>, i32 -> vector<128x16xf32>
    %c3_294 = arith.constant 3 : index
    %c0_295 = arith.constant 0 : index
    %c0_296 = arith.constant 0 : index
    %456 = vector.load %arg28[%c3_294, %c0_295, %c0_296] : memref<9x1x16xf32, #tpu.memory_space<vmem>>, vector<1x1x16xf32>
    %457 = vector.shape_cast %456 : vector<1x1x16xf32> to vector<1x16xf32>
    %458 = vector.broadcast %457 : vector<1x16xf32> to vector<128x16xf32>
    %459 = arith.mulf %455, %458 : vector<128x16xf32>
    %cst_297 = arith.constant dense<0.000000e+00> : vector<128xf32>
    %460 = vector.multi_reduction <add>, %459, %cst_297 [1] : vector<128x16xf32> to vector<128xf32>
    %461 = vector.shape_cast %460 : vector<128xf32> to vector<128x1xf32>
    %462 = arith.addf %454, %461 : vector<128x1xf32>
    %c4_298 = arith.constant 4 : index
    %c0_299 = arith.constant 0 : index
    %c0_300 = arith.constant 0 : index
    %463 = vector.load %arg28[%c4_298, %c0_299, %c0_300] : memref<9x1x16xf32, #tpu.memory_space<vmem>>, vector<1x1x16xf32>
    %464 = vector.shape_cast %463 : vector<1x1x16xf32> to vector<1x16xf32>
    %465 = vector.broadcast %464 : vector<1x16xf32> to vector<128x16xf32>
    %466 = arith.mulf %431, %465 : vector<128x16xf32>
    %cst_301 = arith.constant dense<0.000000e+00> : vector<128xf32>
    %467 = vector.multi_reduction <add>, %466, %cst_301 [1] : vector<128x16xf32> to vector<128xf32>
    %468 = vector.shape_cast %467 : vector<128xf32> to vector<128x1xf32>
    %469 = arith.addf %462, %468 : vector<128x1xf32>
    %c127_i32_302 = arith.constant 127 : i32
    %470 = tpu.dynamic_rotate %431 by %c127_i32_302 dim 0 : vector<128x16xf32>, i32 -> vector<128x16xf32>
    %c5_303 = arith.constant 5 : index
    %c0_304 = arith.constant 0 : index
    %c0_305 = arith.constant 0 : index
    %471 = vector.load %arg28[%c5_303, %c0_304, %c0_305] : memref<9x1x16xf32, #tpu.memory_space<vmem>>, vector<1x1x16xf32>
    %472 = vector.shape_cast %471 : vector<1x1x16xf32> to vector<1x16xf32>
    %473 = vector.broadcast %472 : vector<1x16xf32> to vector<128x16xf32>
    %474 = arith.mulf %470, %473 : vector<128x16xf32>
    %cst_306 = arith.constant dense<0.000000e+00> : vector<128xf32>
    %475 = vector.multi_reduction <add>, %474, %cst_306 [1] : vector<128x16xf32> to vector<128xf32>
    %476 = vector.shape_cast %475 : vector<128xf32> to vector<128x1xf32>
    %477 = arith.addf %469, %476 : vector<128x1xf32>
    %c121_i32_307 = arith.constant 121 : i32
    %478 = tpu.dynamic_rotate %431 by %c121_i32_307 dim 0 : vector<128x16xf32>, i32 -> vector<128x16xf32>
    %c6_308 = arith.constant 6 : index
    %c0_309 = arith.constant 0 : index
    %c0_310 = arith.constant 0 : index
    %479 = vector.load %arg28[%c6_308, %c0_309, %c0_310] : memref<9x1x16xf32, #tpu.memory_space<vmem>>, vector<1x1x16xf32>
    %480 = vector.shape_cast %479 : vector<1x1x16xf32> to vector<1x16xf32>
    %481 = vector.broadcast %480 : vector<1x16xf32> to vector<128x16xf32>
    %482 = arith.mulf %478, %481 : vector<128x16xf32>
    %cst_311 = arith.constant dense<0.000000e+00> : vector<128xf32>
    %483 = vector.multi_reduction <add>, %482, %cst_311 [1] : vector<128x16xf32> to vector<128xf32>
    %484 = vector.shape_cast %483 : vector<128xf32> to vector<128x1xf32>
    %485 = arith.addf %477, %484 : vector<128x1xf32>
    %c120_i32_312 = arith.constant 120 : i32
    %486 = tpu.dynamic_rotate %431 by %c120_i32_312 dim 0 : vector<128x16xf32>, i32 -> vector<128x16xf32>
    %c7_313 = arith.constant 7 : index
    %c0_314 = arith.constant 0 : index
    %c0_315 = arith.constant 0 : index
    %487 = vector.load %arg28[%c7_313, %c0_314, %c0_315] : memref<9x1x16xf32, #tpu.memory_space<vmem>>, vector<1x1x16xf32>
    %488 = vector.shape_cast %487 : vector<1x1x16xf32> to vector<1x16xf32>
    %489 = vector.broadcast %488 : vector<1x16xf32> to vector<128x16xf32>
    %490 = arith.mulf %486, %489 : vector<128x16xf32>
    %cst_316 = arith.constant dense<0.000000e+00> : vector<128xf32>
    %491 = vector.multi_reduction <add>, %490, %cst_316 [1] : vector<128x16xf32> to vector<128xf32>
    %492 = vector.shape_cast %491 : vector<128xf32> to vector<128x1xf32>
    %493 = arith.addf %485, %492 : vector<128x1xf32>
    %c119_i32_317 = arith.constant 119 : i32
    %494 = tpu.dynamic_rotate %431 by %c119_i32_317 dim 0 : vector<128x16xf32>, i32 -> vector<128x16xf32>
    %c8_318 = arith.constant 8 : index
    %c0_319 = arith.constant 0 : index
    %c0_320 = arith.constant 0 : index
    %495 = vector.load %arg28[%c8_318, %c0_319, %c0_320] : memref<9x1x16xf32, #tpu.memory_space<vmem>>, vector<1x1x16xf32>
    %496 = vector.shape_cast %495 : vector<1x1x16xf32> to vector<1x16xf32>
    %497 = vector.broadcast %496 : vector<1x16xf32> to vector<128x16xf32>
    %498 = arith.mulf %494, %497 : vector<128x16xf32>
    %cst_321 = arith.constant dense<0.000000e+00> : vector<128xf32>
    %499 = vector.multi_reduction <add>, %498, %cst_321 [1] : vector<128x16xf32> to vector<128xf32>
    %500 = vector.shape_cast %499 : vector<128xf32> to vector<128x1xf32>
    %501 = arith.addf %493, %500 : vector<128x1xf32>
    %502 = vector.extract_strided_slice %501 {offsets = [0, 0], sizes = [64, 1], strides = [1, 1]} : vector<128x1xf32> to vector<64x1xf32>
    %c0_322 = arith.constant 0 : index
    %c0_323 = arith.constant 0 : index
    %503 = vector.load %arg29[%c0_322, %c0_323] : memref<6x64xf32, #tpu.memory_space<vmem>>, vector<6x64xf32>
    %c0_324 = arith.constant 0 : index
    %c0_325 = arith.constant 0 : index
    %504 = vector.load %arg30[%c0_324, %c0_325] : memref<64x6xf32, #tpu.memory_space<vmem>>, vector<64x6xf32>
    %505 = vector.broadcast %502 : vector<64x1xf32> to vector<64x6xf32>
    %506 = arith.mulf %505, %504 : vector<64x6xf32>
    %cst_326 = arith.constant dense<0.000000e+00> : vector<6x6xf32>
    %507 = tpu.matmul %503, %506, %cst_326 {dimension_numbers = #tpu.dot_dimension_numbers<[1], [0], [0], [1], [0, 0, 1, 1], [], []>} : vector<6x64xf32>, vector<64x6xf32>, vector<6x6xf32> -> vector<6x6xf32>
    %c0_327 = arith.constant 0 : index
    %c0_328 = arith.constant 0 : index
    %508 = vector.load %arg31[%c0_327, %c0_328] : memref<1x1xf32, #tpu.memory_space<vmem>>, vector<1x1xf32>
    %509 = vector.broadcast %508 : vector<1x1xf32> to vector<6x6xf32>
    %510 = arith.addf %507, %509 : vector<6x6xf32>
    %c0_329 = arith.constant 0 : index
    %c0_330 = arith.constant 0 : index
    %c0_331 = arith.constant 0 : index
    %511 = vector.load %arg32[%c0_329, %c0_330, %c0_331] : memref<2x6x6xf32, #tpu.memory_space<vmem>>, vector<1x6x6xf32>
    %512 = vector.shape_cast %511 : vector<1x6x6xf32> to vector<6x6xf32>
    %513 = vector.shape_cast %510 : vector<6x6xf32> to vector<1x6x6xf32>
    tpu.vector_store %arg32[%c0_329, %c0_330, %c0_331], %513 {strides = array<i32>} : memref<2x6x6xf32, #tpu.memory_space<vmem>>, vector<1x6x6xf32>,
    %514 = vector.extract_strided_slice %501 {offsets = [64, 0], sizes = [64, 1], strides = [1, 1]} : vector<128x1xf32> to vector<64x1xf32>
    %c0_332 = arith.constant 0 : index
    %c0_333 = arith.constant 0 : index
    %515 = vector.load %arg29[%c0_332, %c0_333] : memref<6x64xf32, #tpu.memory_space<vmem>>, vector<6x64xf32>
    %c0_334 = arith.constant 0 : index
    %c0_335 = arith.constant 0 : index
    %516 = vector.load %arg30[%c0_334, %c0_335] : memref<64x6xf32, #tpu.memory_space<vmem>>, vector<64x6xf32>
    %517 = vector.broadcast %514 : vector<64x1xf32> to vector<64x6xf32>
    %518 = arith.mulf %517, %516 : vector<64x6xf32>
    %cst_336 = arith.constant dense<0.000000e+00> : vector<6x6xf32>
    %519 = tpu.matmul %515, %518, %cst_336 {dimension_numbers = #tpu.dot_dimension_numbers<[1], [0], [0], [1], [0, 0, 1, 1], [], []>} : vector<6x64xf32>, vector<64x6xf32>, vector<6x6xf32> -> vector<6x6xf32>
    %c0_337 = arith.constant 0 : index
    %c0_338 = arith.constant 0 : index
    %520 = vector.load %arg31[%c0_337, %c0_338] : memref<1x1xf32, #tpu.memory_space<vmem>>, vector<1x1xf32>
    %521 = vector.broadcast %520 : vector<1x1xf32> to vector<6x6xf32>
    %522 = arith.addf %519, %521 : vector<6x6xf32>
    %c1_339 = arith.constant 1 : index
    %c0_340 = arith.constant 0 : index
    %c0_341 = arith.constant 0 : index
    %523 = vector.load %arg32[%c1_339, %c0_340, %c0_341] : memref<2x6x6xf32, #tpu.memory_space<vmem>>, vector<1x6x6xf32>
    %524 = vector.shape_cast %523 : vector<1x6x6xf32> to vector<6x6xf32>
    %525 = vector.shape_cast %522 : vector<6x6xf32> to vector<1x6x6xf32>
    tpu.vector_store %arg32[%c1_339, %c0_340, %c0_341], %525 {strides = array<i32>} : memref<2x6x6xf32, #tpu.memory_space<vmem>>, vector<1x6x6xf32>,
    return
  }
  func.func @transform_0(%arg0: i32) -> (i32, i32) {
    %c0_i32 = arith.constant 0 : i32
    %c0_i32_0 = arith.constant 0 : i32
    %c0_i32_1 = arith.constant 0 : i32
    return %c0_i32, %c0_i32_0 : i32, i32
  }
  func.func @transform_1(%arg0: i32) -> (i32, i32) {
    %c0_i32 = arith.constant 0 : i32
    %c0_i32_0 = arith.constant 0 : i32
    %c0_i32_1 = arith.constant 0 : i32
    return %c0_i32, %c0_i32_0 : i32, i32
  }
  func.func @transform_2(%arg0: i32) -> (i32, i32) {
    %c0_i32 = arith.constant 0 : i32
    %c0_i32_0 = arith.constant 0 : i32
    %c0_i32_1 = arith.constant 0 : i32
    return %c0_i32, %c0_i32_0 : i32, i32
  }
  func.func @transform_3(%arg0: i32) -> (i32, i32, i32) {
    %c0_i32 = arith.constant 0 : i32
    %c0_i32_0 = arith.constant 0 : i32
    %c0_i32_1 = arith.constant 0 : i32
    %c0_i32_2 = arith.constant 0 : i32
    return %c0_i32, %c0_i32_0, %c0_i32_1 : i32, i32, i32
  }
  func.func @transform_4(%arg0: i32) -> (i32, i32, i32) {
    %c0_i32 = arith.constant 0 : i32
    %c0_i32_0 = arith.constant 0 : i32
    %c0_i32_1 = arith.constant 0 : i32
    %c0_i32_2 = arith.constant 0 : i32
    return %c0_i32, %c0_i32_0, %c0_i32_1 : i32, i32, i32
  }
  func.func @transform_5(%arg0: i32) -> (i32, i32) {
    %c0_i32 = arith.constant 0 : i32
    %c0_i32_0 = arith.constant 0 : i32
    %c0_i32_1 = arith.constant 0 : i32
    return %c0_i32, %c0_i32_0 : i32, i32
  }
  func.func @transform_6(%arg0: i32) -> (i32, i32) {
    %c0_i32 = arith.constant 0 : i32
    %c0_i32_0 = arith.constant 0 : i32
    %c0_i32_1 = arith.constant 0 : i32
    return %c0_i32, %c0_i32_0 : i32, i32
  }
  func.func @transform_7(%arg0: i32) -> (i32, i32) {
    %c0_i32 = arith.constant 0 : i32
    %c0_i32_0 = arith.constant 0 : i32
    %c0_i32_1 = arith.constant 0 : i32
    return %c0_i32, %c0_i32_0 : i32, i32
  }
  func.func @transform_8(%arg0: i32) -> (i32, i32) {
    %c0_i32 = arith.constant 0 : i32
    %c0_i32_0 = arith.constant 0 : i32
    %c0_i32_1 = arith.constant 0 : i32
    return %c0_i32, %c0_i32_0 : i32, i32
  }
  func.func @transform_9(%arg0: i32) -> (i32, i32) {
    %c0_i32 = arith.constant 0 : i32
    %c0_i32_0 = arith.constant 0 : i32
    %c0_i32_1 = arith.constant 0 : i32
    return %c0_i32, %c0_i32_0 : i32, i32
  }
  func.func @transform_10(%arg0: i32) -> (i32, i32) {
    %c0_i32 = arith.constant 0 : i32
    %c0_i32_0 = arith.constant 0 : i32
    %c0_i32_1 = arith.constant 0 : i32
    return %c0_i32, %c0_i32_0 : i32, i32
  }
  func.func @transform_11(%arg0: i32) -> (i32, i32) {
    %c0_i32 = arith.constant 0 : i32
    %c0_i32_0 = arith.constant 0 : i32
    %c0_i32_1 = arith.constant 0 : i32
    return %c0_i32, %c0_i32_0 : i32, i32
  }
  func.func @transform_12(%arg0: i32) -> (i32, i32) {
    %c0_i32 = arith.constant 0 : i32
    %c0_i32_0 = arith.constant 0 : i32
    %c0_i32_1 = arith.constant 0 : i32
    return %c0_i32, %c0_i32_0 : i32, i32
  }
  func.func @transform_13(%arg0: i32) -> (i32, i32) {
    %c0_i32 = arith.constant 0 : i32
    %c0_i32_0 = arith.constant 0 : i32
    %c0_i32_1 = arith.constant 0 : i32
    return %c0_i32, %c0_i32_0 : i32, i32
  }
  func.func @transform_14(%arg0: i32) -> (i32, i32) {
    %c0_i32 = arith.constant 0 : i32
    %c0_i32_0 = arith.constant 0 : i32
    %c0_i32_1 = arith.constant 0 : i32
    return %c0_i32, %c0_i32_0 : i32, i32
  }
  func.func @transform_15(%arg0: i32) -> (i32, i32) {
    %c0_i32 = arith.constant 0 : i32
    %c0_i32_0 = arith.constant 0 : i32
    %c0_i32_1 = arith.constant 0 : i32
    return %c0_i32, %c0_i32_0 : i32, i32
  }
  func.func @transform_16(%arg0: i32) -> (i32, i32) {
    %c0_i32 = arith.constant 0 : i32
    %c0_i32_0 = arith.constant 0 : i32
    %c0_i32_1 = arith.constant 0 : i32
    return %c0_i32, %c0_i32_0 : i32, i32
  }
  func.func @transform_17(%arg0: i32) -> (i32, i32) {
    %c0_i32 = arith.constant 0 : i32
    %c0_i32_0 = arith.constant 0 : i32
    %c0_i32_1 = arith.constant 0 : i32
    return %c0_i32, %c0_i32_0 : i32, i32
  }
  func.func @transform_18(%arg0: i32) -> (i32, i32) {
    %c0_i32 = arith.constant 0 : i32
    %c0_i32_0 = arith.constant 0 : i32
    %c0_i32_1 = arith.constant 0 : i32
    return %c0_i32, %c0_i32_0 : i32, i32
  }
  func.func @transform_19(%arg0: i32) -> (i32, i32, i32) {
    %c0_i32 = arith.constant 0 : i32
    %c0_i32_0 = arith.constant 0 : i32
    %c0_i32_1 = arith.constant 0 : i32
    %c0_i32_2 = arith.constant 0 : i32
    return %c0_i32, %c0_i32_0, %c0_i32_1 : i32, i32, i32
  }
  func.func @transform_20(%arg0: i32) -> (i32, i32) {
    %c0_i32 = arith.constant 0 : i32
    %c0_i32_0 = arith.constant 0 : i32
    %c0_i32_1 = arith.constant 0 : i32
    return %c0_i32, %c0_i32_0 : i32, i32
  }
  func.func @transform_21(%arg0: i32) -> (i32, i32, i32) {
    %c0_i32 = arith.constant 0 : i32
    %c0_i32_0 = arith.constant 0 : i32
    %c0_i32_1 = arith.constant 0 : i32
    %c0_i32_2 = arith.constant 0 : i32
    return %c0_i32, %c0_i32_0, %c0_i32_1 : i32, i32, i32
  }
  func.func @transform_22(%arg0: i32) -> (i32, i32) {
    %c0_i32 = arith.constant 0 : i32
    %c0_i32_0 = arith.constant 0 : i32
    %c0_i32_1 = arith.constant 0 : i32
    return %c0_i32, %c0_i32_0 : i32, i32
  }
  func.func @transform_23(%arg0: i32) -> (i32, i32, i32) {
    %c0_i32 = arith.constant 0 : i32
    %c0_i32_0 = arith.constant 0 : i32
    %c0_i32_1 = arith.constant 0 : i32
    %c0_i32_2 = arith.constant 0 : i32
    return %c0_i32, %c0_i32_0, %c0_i32_1 : i32, i32, i32
  }
  func.func @transform_24(%arg0: i32) -> (i32, i32) {
    %c0_i32 = arith.constant 0 : i32
    %c0_i32_0 = arith.constant 0 : i32
    %c0_i32_1 = arith.constant 0 : i32
    return %c0_i32, %c0_i32_0 : i32, i32
  }
  func.func @transform_25(%arg0: i32) -> (i32, i32, i32) {
    %c0_i32 = arith.constant 0 : i32
    %c0_i32_0 = arith.constant 0 : i32
    %c0_i32_1 = arith.constant 0 : i32
    %c0_i32_2 = arith.constant 0 : i32
    return %c0_i32, %c0_i32_0, %c0_i32_1 : i32, i32, i32
  }
  func.func @transform_26(%arg0: i32) -> (i32, i32) {
    %c0_i32 = arith.constant 0 : i32
    %c0_i32_0 = arith.constant 0 : i32
    %c0_i32_1 = arith.constant 0 : i32
    return %c0_i32, %c0_i32_0 : i32, i32
  }
  func.func @transform_27(%arg0: i32) -> (i32, i32, i32) {
    %c0_i32 = arith.constant 0 : i32
    %c0_i32_0 = arith.constant 0 : i32
    %c0_i32_1 = arith.constant 0 : i32
    %c0_i32_2 = arith.constant 0 : i32
    return %c0_i32, %c0_i32_0, %c0_i32_1 : i32, i32, i32
  }
  func.func @transform_28(%arg0: i32) -> (i32, i32) {
    %c0_i32 = arith.constant 0 : i32
    %c0_i32_0 = arith.constant 0 : i32
    %c0_i32_1 = arith.constant 0 : i32
    return %c0_i32, %c0_i32_0 : i32, i32
  }
  func.func @transform_29(%arg0: i32) -> (i32, i32) {
    %c0_i32 = arith.constant 0 : i32
    %c0_i32_0 = arith.constant 0 : i32
    %c0_i32_1 = arith.constant 0 : i32
    return %c0_i32, %c0_i32_0 : i32, i32
  }
  func.func @transform_30(%arg0: i32) -> (i32, i32) {
    %c0_i32 = arith.constant 0 : i32
    %c0_i32_0 = arith.constant 0 : i32
    %c0_i32_1 = arith.constant 0 : i32
    return %c0_i32, %c0_i32_0 : i32, i32
  }
  func.func @transform_31(%arg0: i32) -> (i32, i32, i32) {
    %c0_i32 = arith.constant 0 : i32
    %c0_i32_0 = arith.constant 0 : i32
    %c0_i32_1 = arith.constant 0 : i32
    %c0_i32_2 = arith.constant 0 : i32
    return %c0_i32, %c0_i32_0, %c0_i32_1 : i32, i32, i32
  }
}

</mosaic_0001>

<bundles_post_ra>
// kernel: _lambda_.1
= control target key start
LH: loop header
LB: loop body
LE: loop exit
PB: predicated region body
PF: predicated region fallthrough
CT: control target
= control target key end

     0   :  { %vm137_vm0 = vcmask 261120   ;;  %s10432_s6 = smov 3   ;;  %v14793_v15 = vmov 0.0   ;;  %vm10434_vm1 = vmmov 0   ;;  %s10435_s10 = smov 1   ;;  %vm381_vm2 = vcmask 130048   ;;  %s14792_s0 = inlined_call_operand.smem [shape: u32[32], index: -1, kind: input, shape index: {}] }
   0x1   :  { %s1_s5 = sld [smem:[%s14792_s0]]   ;;  %9456 = vmatprep.subr.bf16.mxu0 %v14793_v15  ;;  %9464 = vmatprep.subr.bf16.mxu1 %v14793_v15  ;;  %s10436_s14 = smov 2   ;;  %vm534_vm3 = vcmask 64512   ;;  %vm1466_vm4 = vcmask 523264   ;;  %vm8403_vm7 = vcmask 46080  }
   0x2   :  { %s10489_s9 = sld [smem:[%s14792_s0 + %s10432_s6]]   ;;  %9460 = vmatprep.mubr.msk.bf16.mxu0 %vm10434_vm1, %v14793_v15  ;;  %9468 = vmatprep.mubr.msk.bf16.mxu1 %vm10434_vm1, %v14793_v15  ;;  %s10437_s18 = smov 4  }
   0x3   :  { %s8511_s13 = sld [smem:[%s14792_s0 + %s10435_s10]]   ;;  %s10438_s22 = smov 5  }
   0x4   :  { %s8512_s17 = sld [smem:[%s14792_s0 + %s10436_s14]]   ;;  %s10439_s26 = smov 16  }
   0x5   :  { %s10532_s21 = sld [smem:[%s14792_s0 + %s10437_s18]]   ;;  %s10440_s27 = smov 6  }
   0x6   :  { %s8515_s25 = sld [smem:[%s14792_s0 + %s10438_s22]]   ;;  %s10441_s1 = smov 9  }
   0x7   :  { %v10474_v0 = vld [vmem:[%s1_s5] sm:$0xff]  ;;  %v10476_v1 = vld [vmem:[%s1_s5 + $0x8] sm:$0xff]  ;;  %s8516_s30 = sld [smem:[%s14792_s0 + %s10440_s27]]   ;;  %s10442_s5 = smov 7  }
   0x8   :  { %v138_v2 = vsel %vm137_vm0, %v10474_v0, 0.0  ;;  %v141_v3 = vsel %vm137_vm0, %v10476_v1, 0.0  ;;  %v10325_v14 = vld [vmem:[%s10489_s9 + $0x8] sm:$0xff]   ;;  %v10327_v17 = vld [vmem:[%s10489_s9] sm:$0xff]   ;;  %s8519_s4 = sld [smem:[%s14792_s0 + %s10441_s1]]   ;;  %s10454_s22 = smov 21  }
   0x9   :  { %139 = vadd.xlane.f32.xlu0 %v138_v2  ;;  %v10326_v16 = vld [vmem:[%s10489_s9 + $0x28] sm:$0xff]   ;;  %9457 = vmatpush3.bf16.msra.mxu0 %v10325_v14  ;;  %v10328_v18 = vld [vmem:[%s10489_s9 + $0x20] sm:$0xff]   ;;  %s8517_s8 = sld [smem:[%s14792_s0 + %s10442_s5]]   ;;  %s10455_s27 = smov 20  }
   0xa   :  { %9465 = vmatpush3.bf16.msra.mxu1 %v10326_v16  ;;  %9458 = vmatprep.subr.bf16.mxu0 %v14793_v15  ;;  %v8542_v27 = vld [vmem:[%s8511_s13] ss:$0 sm:$0xff]  ;;  %v10329_v35 = vld [vmem:[%s10489_s9 + $0x48] sm:$0xff]   ;;  %s10444_s13 = smov 11   ;;  %s8526_s18 = sld [smem:[%s14792_s0 + %s10439_s26]]  }
   0xb   :  { %9466 = vmatprep.subr.bf16.mxu1 %v14793_v15  ;;  %v8543_v31 = vld [vmem:[%s8512_s17] ss:$0 sm:$0xff]  ;;  %v8553_v38 = vld [vmem:[%s10532_s21 + $0x2] ss:$0 sm:$0xff]  ;;  %v8562_v51 = vld [vmem:[%s10532_s21 + $0x4] ss:$0 sm:$0xff]  ;;  %s8521_s16 = sld [smem:[%s14792_s0 + %s10444_s13]]  }
   0xc   :  { %v10330_v37 = vld [vmem:[%s10489_s9 + $0x40] sm:$0xff]   ;;  %s10445_s17 = smov 10   ;;  %s10456_s1 = smov 23  }
   0xd   :  { %142 = vadd.xlane.f32.xlu0 %v141_v3  ;;  %9459 = vmatpush3.bf16.msra.mxu0 %v10327_v17  ;;  %v8544_v41 = vld [vmem:[%s10532_s21] ss:$0 sm:$0xff]  ;;  %v10331_v17 = vld [vmem:[%s10489_s9 + $0x18] sm:$0xff]   ;;  %s8520_s20 = sld [smem:[%s14792_s0 + %s10445_s17]]   ;;  %s10457_s5 = smov 22  }
   0xe   :  { %9467 = vmatpush3.bf16.msra.mxu1 %v10328_v18  ;;  %9472 = vmatprep.subr.bf16.mxu0 %v14793_v15  ;;  %s10459_s13 = smov 24   ;;  %s10460_s17 = smov 26  }
   0xf   :  { %9480 = vmatprep.subr.mxu1 %v14793_v15  ;;  %s8536_s19 = sld [smem:[%s14792_s0 + %s10460_s17]]  }
  0x92   :  { %v140_v4 = vpop.xlane.xlu0 %139 }
  0x93   :  { %v145_v5 = vmul.f32 0.03125, %v140_v4 }
  0x95   :  { %v147_v6 = vsub.f32 %v10474_v0, %v145_v5 }
  0x96   :  { %v143_v7 = vpop.xlane.xlu0 %142 }
  0x97   :  { %v146_v8 = vmul.f32 0.03125, %v143_v7  ;;  %v149_v9 = vmul.f32 %v147_v6, %v147_v6 }
  0x99   :  { %v148_v10 = vsub.f32 %v10476_v1, %v146_v8  ;;  %v151_v11 = vsel %vm137_vm0, %v149_v9, 0.0 }
  0x9a   :  { %152 = vadd.xlane.f32.xlu1 %v151_v11 }
  0x9b   :  { %v150_v12 = vmul.f32 %v148_v10, %v148_v10 }
  0x9d   :  { %v154_v13 = vsel %vm137_vm0, %v150_v12, 0.0 }
  0x9e   :  { %155 = vadd.xlane.f32.xlu1 %v154_v13 }
 0x123   :  { %v153_v19 = vpop.xlane.xlu1 %152 }
 0x124   :  { %v157_v20 = vmul.f32 0.03125, %v153_v19 }
 0x126   :  { %v159_v21 = vadd.f32 1e-05, %v157_v20  ;;  %v10332_v20 = vld [vmem:[%s10489_s9 + $0x10] sm:$0xff]  }
 0x127   :  { %v156_v22 = vpop.xlane.xlu1 %155 }
 0x128   :  { %10391 = vrsqrt.f32 %v159_v21  ;;  %v158_v23 = vmul.f32 0.03125, %v156_v22  ;;  %v10333_v21 = vld [vmem:[%s10489_s9 + $0x38] sm:$0xff]  }
 0x12a   :  { %v160_v24 = vadd.f32 1e-05, %v158_v23  ;;  %v10334_v23 = vld [vmem:[%s10489_s9 + $0x30] sm:$0xff]  }
 0x12c   :  { %10393 = vrsqrt.f32 %v160_v24  ;;  %v10335_v24 = vld [vmem:[%s10489_s9 + $0x58] sm:$0xff]  }
 0x135   :  { %v10392_v25 = vpop.eup %10391 }
 0x136   :  { %v163_v26 = vmul.f32 %v10392_v25, %v147_v6  ;;  %v10336_v25 = vld [vmem:[%s10489_s9 + $0x50] sm:$0xff]   ;;  %s10443_s9 = smov 8  }
 0x137   :  { %s8518_s12 = sld [smem:[%s14792_s0 + %s10443_s9]]   ;;  %s10458_s9 = smov 25  }
 0x138   :  { %v171_v29 = vmul.f32 %v8542_v27, %v163_v26 }
 0x139   :  { %v10394_v28 = vpop.eup %10393 }
 0x13a   :  { %v164_v30 = vmul.f32 %v10394_v28, %v148_v10  ;;  %v179_v33 = vadd.f32 %v8543_v31, %v171_v29 }
 0x13c   :  { %v172_v32 = vmul.f32 %v8542_v27, %v164_v30 }
 0x13e   :  { %v180_v34 = vadd.f32 %v8543_v31, %v172_v32  ;;  %v8586_v32 = vld [vmem:[%s10532_s21 + $0x3] ss:$0 sm:$0xff] }
 0x140   :  { %v10512_v36 = vpack.c.bf16 %v180_v34, %v179_v33 }
 0x142   :  { %9461 = vmatmul.mubr.msk.bf16.vlgmr.msra.gmra.mxu0 %vm137_vm0, %v10512_v36  ;;  %9469 = vmatmul.mubr.msk.bf16.vlgmr.msra.gmra.mxu1 %vm137_vm0, %v10512_v36 }
 0x143   :  { %9473 = vmatpush3.bf16.msra.mxu0 %v10329_v35  ;;  %9476 = vmatprep.mubr.msk.bf16.mxu0 %vm10434_vm1, %v14793_v15  ;;  %v8577_v35 = vld [vmem:[%s10532_s21 + $0x1] ss:$0 sm:$0xff] }
 0x144   :  { %9474 = vmatprep.subr.bf16.mxu0 %v14793_v15  ;;  %9482 = vmatprep.mubr.msk.f32.mxu1 %vm10434_vm1, %v14793_v15 }
 0x147   :  { %9475 = vmatpush3.bf16.msra.mxu0 %v10330_v37 }
 0x148   :  { %9490 = vmatprep.subr.mxu0 %v14793_v15 }
 0x14a   :  { %9477 = vmatmul.mubr.msk.bf16.vlgmr.msra.gmra.mxu0 %vm137_vm0, %v10512_v36 }
 0x14b   :  { %9492 = vmatprep.mubr.msk.f32.mxu0 %vm10434_vm1, %v14793_v15 }
 0x202   :  { %v242_v39 = vpop.f32.mrf.mxu0  ;;  %v308_v40 = vpop.f32.mrf.mxu1 }
 0x203   :  { %v309_v42 = vadd.f32 %v8553_v38, %v308_v40  ;;  %v243_v45 = vadd.f32 %v8544_v41, %v242_v39  ;;  %v8595_v40 = vld [vmem:[%s10532_s21 + $0x5] ss:$0 sm:$0xff]  ;;  %s10446_s21 = smov 12  }
 0x204   :  { %v9462_v43 = vpop.f32.mrf.mxu0  ;;  %v9470_v44 = vpop.f32.mrf.mxu1  ;;  %s8522_s24 = sld [smem:[%s14792_s0 + %s10446_s21]]  }
 0x205   :  { %9481 = vmatpush3.xpose.msk.msra.mxu1 %vm381_vm2, %v309_v42 }
 0x206   :  { %v245_v46 = vpop.f32.mrf.mxu0  ;;  %v311_v47 = vpop.f32.mrf.mxu1  ;;  %9485 = vmatprep.subr.mxu1 %v14793_v15 }
 0x207   :  { %v312_v48 = vadd.f32 %v8553_v38, %v311_v47  ;;  %v246_v52 = vadd.f32 %v8544_v41, %v245_v46 }
 0x208   :  { %v9463_v49 = vpop.f32.mrf.mxu0  ;;  %v9471_v50 = vpop.f32.mrf.mxu1  ;;  %9483 = vmatmul.mubr.msk.f32.vlgmr.msra.gmra.mxu1 %vm381_vm2, %v243_v45 }
 0x209   :  { %9486 = vmatpush3.xpose.msk.msra.mxu1 %vm381_vm2, %v312_v48  ;;  %9487 = vmatprep.mubr.msk.f32.mxu1 %vm10434_vm1, %v14793_v15 }
 0x20a   :  { %v374_v53 = vpop.f32.mrf.mxu0  ;;  %9495 = vmatprep.subr.mxu1 %v14793_v15 }
 0x20b   :  { %v375_v54 = vadd.f32 %v8562_v51, %v374_v53 }
 0x20c   :  { %v9478_v55 = vpop.f32.mrf.mxu0  ;;  %9488 = vmatmul.mubr.msk.f32.vlgmr.msra.gmra.mxu1 %vm381_vm2, %v246_v52 }
 0x20d   :  { %9491 = vmatpush3.msra.mxu0 %v375_v54  ;;  %9497 = vmatprep.mubr.msk.f32.mxu1 %vm10434_vm1, %v14793_v15 }
 0x20e   :  { %v377_v56 = vpop.f32.mrf.mxu0  ;;  %9500 = vmatprep.subr.bf16.mxu0 %v14793_v15 }
 0x20f   :  { %v378_v57 = vadd.f32 %v8562_v51, %v377_v56 }
 0x210   :  { %v9479_v58 = vpop.f32.mrf.mxu0 }
 0x211   :  { %9496 = vmatpush3.msra.mxu1 %v378_v57 }
 0x212   :  { %9508 = vmatprep.subr.bf16.mxu1 %v14793_v15 }
 0x2c8   :  { %v454_v59 = vpop.f32.mrf.mxu1 }
 0x2c9   :  { %v535_v60 = vsel %vm534_vm3, %v454_v59, -inf }
 0x2ca   :  { %536 = vmax.xlane.f32.xlu1 %v535_v60  ;;  %v9484_v61 = vpop.f32.mrf.mxu1 }
 0x2cc   :  { %v530_v62 = vpop.f32.mrf.mxu1 }
 0x2cd   :  { %v538_v63 = vsel %vm534_vm3, %v530_v62, -inf }
 0x2ce   :  { %539 = vmax.xlane.f32.xlu0 %v538_v63  ;;  %v9489_v2 = vpop.f32.mrf.mxu1 }
 0x353   :  { %v537_v3 = vpop.xlane.xlu1 %536 }
 0x354   :  { %v541_v4 = vsub.f32 %v454_v59, %v537_v3 }
 0x356   :  { %v543_v5 = vmul.f32 1.442695, %v541_v4 }
 0x357   :  { %v540_v6 = vpop.xlane.xlu0 %539 }
 0x358   :  { %10395 = vpow2.f32 %v543_v5  ;;  %v542_v7 = vsub.f32 %v530_v62, %v540_v6 }
 0x35a   :  { %v545_v8 = vmul.f32 1.442695, %v542_v7 }
 0x35c   :  { %10397 = vpow2.f32 %v545_v8 }
 0x365   :  { %v10396_v9 = vpop.eup %10395 }
 0x366   :  { %v547_v10 = vsel %vm534_vm3, %v10396_v9, 0.0 }
 0x367   :  { %548 = vadd.xlane.f32.xlu1 %v547_v10 }
 0x369   :  { %v10398_v11 = vpop.eup %10397 }
 0x36a   :  { %v550_v12 = vsel %vm534_vm3, %v10398_v11, 0.0 }
 0x36b   :  { %551 = vadd.xlane.f32.xlu0 %v550_v12  ;;  %v10338_v12 = vld [vmem:[%s8515_s25] sm:$0xff]  }
 0x3f0   :  { %v549_v13 = vpop.xlane.xlu1 %548 }
 0x3f1   :  { %10399 = vrcp.f32 %v549_v13 }
 0x3f4   :  { %v552_v14 = vpop.xlane.xlu0 %551 }
 0x3f5   :  { %10401 = vrcp.f32 %v552_v14 }
 0x3fe   :  { %v10400_v16 = vpop.eup %10399 }
 0x3ff   :  { %v555_v18 = vmul.f32 %v10400_v16, %v10396_v9 }
 0x401   :  { %9493 = vmatmul.mubr.msk.f32.vlgmr.msra.gmra.mxu0 %vm534_vm3, %v555_v18 }
 0x402   :  { %v10402_v19 = vpop.eup %10401  ;;  %9501 = vmatpush3.bf16.msra.mxu0 %v10331_v17  ;;  %9504 = vmatprep.mubr.msk.bf16.mxu0 %vm10434_vm1, %v14793_v15 }
 0x403   :  { %9502 = vmatprep.subr.bf16.mxu0 %v14793_v15  ;;  %v556_v22 = vmul.f32 %v10402_v19, %v10398_v11  ;;  %v10337_v11 = vld [vmem:[%s8515_s25 + $0x8] sm:$0xff]   ;;  %s10447_s25 = smov 15  }
 0x404   :  { %s8525_s29 = sld [smem:[%s14792_s0 + %s10447_s25]]  }
 0x405   :  { %9498 = vmatmul.mubr.msk.f32.vlgmr.msra.gmra.mxu1 %vm534_vm3, %v556_v22  ;;  %s11307_s25 = sld [smem:[%s14792_s0 + %s10454_s22]]  }
 0x406   :  { %9503 = vmatpush3.bf16.msra.mxu0 %v10332_v20  ;;  %9509 = vmatpush3.bf16.msra.mxu1 %v10333_v21 }
 0x407   :  { %9510 = vmatprep.subr.bf16.mxu1 %v14793_v15  ;;  %9516 = vmatprep.subr.bf16.mxu0 %v14793_v15 }
 0x408   :  { %9512 = vmatprep.mubr.msk.bf16.mxu1 %vm10434_vm1, %v14793_v15 }
 0x409   :  { %9505 = vmatmul.mubr.msk.bf16.vlgmr.msra.gmra.mxu0 %vm137_vm0, %v10512_v36 }
 0x40a   :  { %9511 = vmatpush3.bf16.msra.mxu1 %v10334_v23  ;;  %9517 = vmatpush3.bf16.msra.mxu0 %v10335_v24 }
 0x40b   :  { %9518 = vmatprep.subr.bf16.mxu0 %v14793_v15  ;;  %9520 = vmatprep.mubr.msk.bf16.mxu0 %vm10434_vm1, %v14793_v15 }
 0x40c   :  { %9524 = vmatprep.subr.mxu1 %v14793_v15 }
 0x40d   :  { %9513 = vmatmul.mubr.msk.bf16.vlgmr.msra.gmra.mxu1 %vm137_vm0, %v10512_v36 }
 0x40e   :  { %9519 = vmatpush3.bf16.msra.mxu0 %v10336_v25  ;;  %9526 = vmatprep.mubr.msk.f32.mxu1 %vm10434_vm1, %v14793_v15 }
 0x40f   :  { %9534 = vmatprep.subr.mxu0 %v14793_v15 }
 0x411   :  { %9521 = vmatmul.mubr.msk.bf16.vlgmr.msra.gmra.mxu0 %vm137_vm0, %v10512_v36 }
 0x412   :  { %9536 = vmatprep.mubr.msk.f32.mxu0 %vm10434_vm1, %v14793_v15 }
 0x4c1   :  { %v10583_v26 = vpop.f32.mrf.mxu0 }
 0x4c3   :  { %v9494_v27 = vpop.f32.mrf.mxu0 }
 0x4c4   :  { %v8608_v27 = vld [vmem:[%s8516_s30] ss:$0 sm:$0xff]  ;;  %s10448_s30 = smov 13  }
 0x4c5   :  { %v10585_v28 = vpop.f32.mrf.mxu1  ;;  %s8523_s3 = sld [smem:[%s14792_s0 + %s10448_s30]]  }
 0x4c6   :  { %s11459_s30 = sld [smem:[%s14792_s0 + %s10455_s27]]  }
 0x4c7   :  { %v9499_v29 = vpop.f32.mrf.mxu1 }
 0x4c9   :  { %v762_v30 = vpop.f32.mrf.mxu0 }
 0x4ca   :  { %v763_v36 = vadd.f32 %v8577_v35, %v762_v30 }
 0x4cb   :  { %v9506_v31 = vpop.f32.mrf.mxu0 }
 0x4cd   :  { %v765_v33 = vpop.f32.mrf.mxu0  ;;  %v828_v34 = vpop.f32.mrf.mxu1 }
 0x4ce   :  { %v829_v37 = vadd.f32 %v8586_v32, %v828_v34  ;;  %v766_v47 = vadd.f32 %v8577_v35, %v765_v33 }
 0x4cf   :  { %v9507_v38 = vpop.f32.mrf.mxu0  ;;  %v9514_v39 = vpop.f32.mrf.mxu1 }
 0x4d0   :  { %9525 = vmatpush3.xpose.msk.msra.mxu1 %vm381_vm2, %v829_v37 }
 0x4d1   :  { %v831_v41 = vpop.f32.mrf.mxu1  ;;  %v894_v42 = vpop.f32.mrf.mxu0  ;;  %9529 = vmatprep.subr.mxu1 %v14793_v15 }
 0x4d2   :  { %v832_v43 = vadd.f32 %v8586_v32, %v831_v41  ;;  %v895_v44 = vadd.f32 %v8595_v40, %v894_v42 }
 0x4d3   :  { %v9515_v45 = vpop.f32.mrf.mxu1  ;;  %v9522_v46 = vpop.f32.mrf.mxu0  ;;  %9527 = vmatmul.mubr.msk.f32.vlgmr.msra.gmra.mxu1 %vm381_vm2, %v763_v36 }
 0x4d4   :  { %9530 = vmatpush3.xpose.msk.msra.mxu1 %vm381_vm2, %v832_v43  ;;  %9535 = vmatpush3.msra.mxu0 %v895_v44  ;;  %v10339_v44 = vld [vmem:[%s8519_s4 + $0x8] sm:$0xff]   ;;  %v10340_v45 = vld [vmem:[%s8519_s4] sm:$0xff]   ;;  %s10449_s4 = smov 14  }
 0x4d5   :  { %v897_v48 = vpop.f32.mrf.mxu0  ;;  %9531 = vmatprep.mubr.msk.f32.mxu1 %vm10434_vm1, %v14793_v15  ;;  %9539 = vmatprep.subr.mxu1 %v14793_v15  ;;  %s8524_s7 = sld [smem:[%s14792_s0 + %s10449_s4]]  }
 0x4d6   :  { %v898_v49 = vadd.f32 %v8595_v40, %v897_v48  ;;  %9544 = vmatprep.subr.bf16.mxu0 %v14793_v15  ;;  %s12102_s4 = sld [smem:[%s14792_s0 + %s10456_s1]]  }
 0x4d7   :  { %v9523_v50 = vpop.f32.mrf.mxu0  ;;  %9532 = vmatmul.mubr.msk.f32.vlgmr.msra.gmra.mxu1 %vm381_vm2, %v766_v47 }
 0x4d8   :  { %9540 = vmatpush3.msra.mxu1 %v898_v49  ;;  %9541 = vmatprep.mubr.msk.f32.mxu1 %vm10434_vm1, %v14793_v15 }
 0x4d9   :  { %9552 = vmatprep.subr.bf16.mxu1 %v14793_v15 }
 0x593   :  { %v973_v51 = vpop.f32.mrf.mxu1 }
 0x594   :  { %v1053_v52 = vsel %vm534_vm3, %v973_v51, -inf }
 0x595   :  { %1054 = vmax.xlane.f32.xlu0 %v1053_v52  ;;  %v9528_v53 = vpop.f32.mrf.mxu1 }
 0x597   :  { %v1049_v54 = vpop.f32.mrf.mxu1 }
 0x598   :  { %v1056_v55 = vsel %vm534_vm3, %v1049_v54, -inf }
 0x599   :  { %1057 = vmax.xlane.f32.xlu1 %v1056_v55  ;;  %v9533_v56 = vpop.f32.mrf.mxu1 }
 0x61e   :  { %v1055_v57 = vpop.xlane.xlu0 %1054 }
 0x61f   :  { %v1059_v58 = vsub.f32 %v973_v51, %v1055_v57 }
 0x621   :  { %v1061_v59 = vmul.f32 1.442695, %v1059_v58  ;;  %v8610_v58 = vld [vmem:[%s8518_s12] ss:$0 sm:$0xff]  ;;  %s10451_s12 = smov 18  }
 0x622   :  { %v1058_v60 = vpop.xlane.xlu1 %1057  ;;  %s10696_s15 = sld [smem:[%s14792_s0 + %s10451_s12]]  }
 0x623   :  { %10403 = vpow2.f32 %v1061_v59  ;;  %v1060_v61 = vsub.f32 %v1049_v54, %v1058_v60  ;;  %v8609_v54 = vld [vmem:[%s8517_s8] ss:$0 sm:$0xff]  ;;  %s10450_s8 = smov 17   ;;  %s12911_s12 = sld [smem:[%s14792_s0 + %s10458_s9]]  }
 0x624   :  { %s10689_s11 = sld [smem:[%s14792_s0 + %s10450_s8]]  }
 0x625   :  { %v1063_v62 = vmul.f32 1.442695, %v1060_v61  ;;  %s8532_s8 = sld [smem:[%s14792_s0 + %s10457_s5]]  }
 0x627   :  { %10405 = vpow2.f32 %v1063_v62 }
 0x630   :  { %v10404_v63 = vpop.eup %10403 }
 0x631   :  { %v1065_v2 = vsel %vm534_vm3, %v10404_v63, 0.0 }
 0x632   :  { %1066 = vadd.xlane.f32.xlu0 %v1065_v2  ;;  %v10342_v2 = vld [vmem:[%s8521_s16 + $0x10] sm:$0xff]  }
 0x634   :  { %v10406_v3 = vpop.eup %10405 }
 0x635   :  { %v1068_v4 = vsel %vm534_vm3, %v10406_v3, 0.0 }
 0x636   :  { %1069 = vadd.xlane.f32.xlu1 %v1068_v4  ;;  %v10344_v4 = vld [vmem:[%s8521_s16] sm:$0xff]  }
 0x6bb   :  { %v1067_v5 = vpop.xlane.xlu0 %1066 }
 0x6bc   :  { %10407 = vrcp.f32 %v1067_v5  ;;  %v8611_v5 = vld [vmem:[%s8520_s20] ss:$0 sm:$0xff]  ;;  %s10461_s20 = smov 27  }
 0x6bd   :  { %s13762_s23 = sld [smem:[%s14792_s0 + %s10461_s20]]  }
 0x6bf   :  { %v1070_v6 = vpop.xlane.xlu1 %1069 }
 0x6c0   :  { %10409 = vrcp.f32 %v1070_v6 }
 0x6c9   :  { %v10408_v7 = vpop.eup %10407 }
 0x6ca   :  { %v1073_v8 = vmul.f32 %v10408_v7, %v10404_v63  ;;  %v10341_v63 = vld [vmem:[%s8521_s16 + $0x18] sm:$0xff]  }
 0x6cc   :  { %9537 = vmatmul.mubr.msk.f32.vlgmr.msra.gmra.mxu0 %vm534_vm3, %v1073_v8 }
 0x6cd   :  { %v10410_v9 = vpop.eup %10409  ;;  %9548 = vmatprep.mubr.msk.bf16.mxu0 %vm10434_vm1, %v14793_v15  ;;  %9545 = vmatpush3.bf16.msra.mxu0 %v10337_v11 }
 0x6ce   :  { %v1074_v10 = vmul.f32 %v10410_v9, %v10406_v3  ;;  %9546 = vmatprep.subr.bf16.mxu0 %v14793_v15  ;;  %v10343_v3 = vld [vmem:[%s8521_s16 + $0x8] sm:$0xff]   ;;  %s13067_s16 = sld [smem:[%s14792_s0 + %s10459_s13]]  }
 0x6d0   :  { %9542 = vmatmul.mubr.msk.f32.vlgmr.msra.gmra.mxu1 %vm534_vm3, %v1074_v10 }
 0x6d1   :  { %9556 = vmatprep.mubr.msk.bf16.mxu1 %vm10434_vm1, %v14793_v15  ;;  %9547 = vmatpush3.bf16.msra.mxu0 %v10338_v12 }
 0x6d2   :  { %9560 = vmatprep.subr.bf16.mxu0 %v14793_v15  ;;  %9553 = vmatpush3.bf16.msra.mxu1 %v10339_v44 }
 0x6d3   :  { %9554 = vmatprep.subr.bf16.mxu1 %v14793_v15 }
 0x6d6   :  { %9555 = vmatpush3.bf16.msra.mxu1 %v10340_v45 }
 0x6d7   :  { %9572 = vmatprep.subr.bf16.mxu1 %v14793_v15 }
 0x78c   :  { %v1144_v13 = vpop.f32.mrf.mxu0 }
 0x78e   :  { %v9538_v14 = vpop.f32.mrf.mxu0 }
 0x790   :  { %v1217_v16 = vpop.f32.mrf.mxu1 }
 0x791   :  { %v10318_v17 = vpack.i.bf16 %v1217_v16, %v1144_v13 }
 0x792   :  { %v9543_v18 = vpop.f32.mrf.mxu1 }
 0x793   :  { %10319 = vrot.lane.b32.xlu0 %v10318_v17, %s10439_s26  ;;  %s10453_s26 = smov 19  }
 0x794   :  { %s10735_s21 = sld [smem:[%s14792_s0 + %s10453_s26]]  }
 0x805   :  { %v10320_v19 = vpop.permute.xlu0 %10319 }
 0x806   :  { %v10322_v20 = vunpack.i.h.bf16 %v10320_v19  ;;  %v10321_v21 = vunpack.i.l.bf16 %v10320_v19 }
 0x808   :  { %v1230_v22 = vsel %vm381_vm2, %v10585_v28, %v10322_v20  ;;  %v1229_v23 = vsel %vm381_vm2, %v10583_v26, %v10321_v21 }
 0x809   :  { %v1231_v24 = vpack.c.bf16 %v1230_v22, %v1229_v23 }
 0x80b   :  { %9549 = vmatmul.mubr.msk.bf16.vlgmr.msra.gmra.mxu0 %vm137_vm0, %v1231_v24 }
 0x80c   :  { %9568 = vmatprep.mubr.msk.bf16.mxu0 %vm10434_vm1, %v14793_v15  ;;  %9561 = vmatpush3.bf16.msra.mxu0 %v10341_v63 }
 0x80d   :  { %9562 = vmatprep.subr.bf16.mxu0 %v14793_v15 }
 0x810   :  { %9563 = vmatpush3.bf16.msra.mxu0 %v10342_v2 }
 0x811   :  { %9564 = vmatprep.subr.bf16.mxu0 %v14793_v15 }
 0x814   :  { %9565 = vmatpush3.bf16.msra.mxu0 %v10343_v3  ;;  %v8622_v3 = vld [vmem:[%s8524_s7] ss:$0 sm:$0xff]  ;;  %s10465_s7 = smov 31  }
 0x815   :  { %9566 = vmatprep.subr.bf16.mxu0 %v14793_v15  ;;  %s8541_s10 = sld [smem:[%s14792_s0 + %s10465_s7]]  }
 0x818   :  { %9567 = vmatpush3.bf16.msra.mxu0 %v10344_v4 }
 0x8cb   :  { %v1285_v25 = vpop.f32.mrf.mxu0 }
 0x8cc   :  { %v1292_v29 = vadd.f32 %v1285_v25, %v10474_v0 }
 0x8cd   :  { %v9550_v30 = vpop.f32.mrf.mxu0 }
 0x8ce   :  { %v10629_v28 = vadd.f32 %v8608_v27, %v1292_v29 }
 0x8cf   :  { %v1288_v31 = vpop.f32.mrf.mxu0 }
 0x8d0   :  { %v1293_v26 = vadd.f32 %v1288_v31, %v10476_v1  ;;  %v1305_v32 = vsel %vm137_vm0, %v10629_v28, 0.0 }
 0x8d1   :  { %1306 = vadd.xlane.f32.xlu1 %v1305_v32  ;;  %v9551_v33 = vpop.f32.mrf.mxu0 }
 0x8d2   :  { %v10634_v34 = vadd.f32 %v8608_v27, %v1293_v26 }
 0x8d4   :  { %v1308_v35 = vsel %vm137_vm0, %v10634_v34, 0.0 }
 0x8d5   :  { %1309 = vadd.xlane.f32.xlu1 %v1308_v35  ;;  %v8620_v35 = vld [vmem:[%s8522_s24] ss:$0 sm:$0xff]  ;;  %s10462_s24 = smov 30  }
 0x8d6   :  { %s8540_s28 = sld [smem:[%s14792_s0 + %s10462_s24]]  }
 0x95a   :  { %v1307_v37 = vpop.xlane.xlu1 %1306 }
 0x95b   :  { %v1311_v38 = vmul.f32 0.03125, %v1307_v37 }
 0x95d   :  { %v1313_v0 = vsub.f32 %v10629_v28, %v1311_v38 }
 0x95e   :  { %v1310_v39 = vpop.xlane.xlu1 %1309 }
 0x95f   :  { %v1312_v40 = vmul.f32 0.03125, %v1310_v39  ;;  %v1315_v36 = vmul.f32 %v1313_v0, %v1313_v0 }
 0x961   :  { %v1314_v1 = vsub.f32 %v10634_v34, %v1312_v40  ;;  %v1317_v41 = vsel %vm137_vm0, %v1315_v36, 0.0 }
 0x962   :  { %1318 = vadd.xlane.f32.xlu1 %v1317_v41 }
 0x963   :  { %v1316_v42 = vmul.f32 %v1314_v1, %v1314_v1 }
 0x965   :  { %v1320_v43 = vsel %vm137_vm0, %v1316_v42, 0.0 }
 0x966   :  { %1321 = vadd.xlane.f32.xlu1 %v1320_v43 }
 0x9eb   :  { %v1319_v46 = vpop.xlane.xlu1 %1318 }
 0x9ec   :  { %v1323_v47 = vmul.f32 0.03125, %v1319_v46 }
 0x9ee   :  { %v1325_v48 = vadd.f32 1e-05, %v1323_v47 }
 0x9ef   :  { %v1322_v49 = vpop.xlane.xlu1 %1321 }
 0x9f0   :  { %10411 = vrsqrt.f32 %v1325_v48  ;;  %v1324_v50 = vmul.f32 0.03125, %v1322_v49 }
 0x9f2   :  { %v1326_v51 = vadd.f32 1e-05, %v1324_v50 }
 0x9f4   :  { %10413 = vrsqrt.f32 %v1326_v51  ;;  %v10345_v51 = vld [vmem:[%s8525_s29 + $0x8] sm:$0xff]  }
 0x9fd   :  { %v10412_v52 = vpop.eup %10411 }
 0x9fe   :  { %v1329_v53 = vmul.f32 %v10412_v52, %v1313_v0  ;;  %v10346_v52 = vld [vmem:[%s8525_s29] sm:$0xff]   ;;  %s10463_s29 = smov 29  }
 0x9ff   :  { %s14663_s2 = sld [smem:[%s14792_s0 + %s10463_s29]]  }
 0xa00   :  { %v1337_v57 = vmul.f32 %v8609_v54, %v1329_v53 }
 0xa01   :  { %v10414_v55 = vpop.eup %10413 }
 0xa02   :  { %v1330_v56 = vmul.f32 %v10414_v55, %v1314_v1  ;;  %v1345_v60 = vadd.f32 %v8610_v58, %v1337_v57 }
 0xa04   :  { %v1338_v59 = vmul.f32 %v8609_v54, %v1330_v56 }
 0xa06   :  { %v1346_v61 = vadd.f32 %v8610_v58, %v1338_v59 }
 0xa08   :  { %v1347_v62 = vpack.c.bf16 %v1346_v61, %v1345_v60  ;;  %v8621_v61 = vld [vmem:[%s8523_s3] ss:$0 sm:$0xff]  ;;  %s10464_s3 = smov 28  }
 0xa09   :  { %s14739_s6 = sld [smem:[%s14792_s0 + %s10464_s3]]  }
 0xa0a   :  { %9557 = vmatmul.mubr.msk.bf16.vlgmr.msra.gmra.mxu1 %vm137_vm0, %v1347_v62 }
 0xa0b   :  { %9576 = vmatprep.mubr.msk.bf16.mxu1 %vm10434_vm1, %v14793_v15  ;;  %9573 = vmatpush3.bf16.msra.mxu1 %v10345_v51 }
 0xa0c   :  { %9574 = vmatprep.subr.bf16.mxu1 %v14793_v15 }
 0xa0f   :  { %9575 = vmatpush3.bf16.msra.mxu1 %v10346_v52 }
 0xaca   :  { %v1408_v6 = vpop.f32.mrf.mxu1 }
 0xacb   :  { %v1409_v7 = vadd.f32 %v8611_v5, %v1408_v6 }
 0xacc   :  { %v9558_v8 = vpop.f32.mrf.mxu1 }
 0xacd   :  { %v1415_v9 = vmul.f32 %v1409_v7, %v1409_v7  ;;  %v10347_v8 = vld [vmem:[%s10689_s11] sm:$0xff]  }
 0xace   :  { %v1411_v10 = vpop.f32.mrf.mxu1 }
 0xacf   :  { %v1417_v11 = vmul.f32 %v1415_v9, %v1409_v7  ;;  %v1412_v12 = vadd.f32 %v8611_v5, %v1411_v10  ;;  %v10452_v9 = vmov 0   ;;  %v1812_v10 = vld [vmem:[%s10696_s15] sm:$0xff] }
 0xad0   :  { %v9559_v13 = vpop.f32.mrf.mxu1  ;;  %10323 = vset.pattern.permute.xlu1 %v10452_v9  ;;  %10324 = vset.pattern.permute.xlu0 %v10452_v9 }
 0xad1   :  { %v1419_v14 = vmul.f32 0.044715, %v1417_v11  ;;  %v1416_v16 = vmul.f32 %v1412_v12, %v1412_v12  ;;  %v1827_v11 = vld [vmem:[%s10696_s15 + $0x78] sm:$0xff] }
 0xad2   :  { %v1815_v13 = vld [vmem:[%s10696_s15 + $0x18] sm:$0xff] }
 0xad3   :  { %v1421_v17 = vadd.f32 %v1419_v14, %v1409_v7  ;;  %v1418_v18 = vmul.f32 %v1416_v16, %v1412_v12  ;;  %v1814_v14 = vld [vmem:[%s10696_s15 + $0x10] sm:$0xff] }
 0xad4   :  { %v1826_v16 = vld [vmem:[%s10696_s15 + $0x70] sm:$0xff] }
 0xad5   :  { %v1423_v19 = vmul.f32 0.7978846, %v1421_v17  ;;  %v1420_v20 = vmul.f32 0.044715, %v1418_v18  ;;  %v1816_v17 = vld [vmem:[%s10696_s15 + $0x20] sm:$0xff]  ;;  %v1817_v18 = vld [vmem:[%s10696_s15 + $0x28] sm:$0xff] }
 0xad7   :  { %10415 = vtanh.f32 %v1423_v19  ;;  %v1422_v21 = vadd.f32 %v1420_v20, %v1412_v12  ;;  %v1818_v19 = vld [vmem:[%s10696_s15 + $0x30] sm:$0xff]  ;;  %v1819_v20 = vld [vmem:[%s10696_s15 + $0x38] sm:$0xff] }
 0xad9   :  { %v1424_v22 = vmul.f32 0.7978846, %v1422_v21  ;;  %v1820_v21 = vld [vmem:[%s10696_s15 + $0x40] sm:$0xff] }
 0xadb   :  { %10417 = vtanh.f32 %v1424_v22  ;;  %v1821_v22 = vld [vmem:[%s10696_s15 + $0x48] sm:$0xff] }
 0xae4   :  { %v10416_v23 = vpop.eup %10415 }
 0xae5   :  { %v1427_v24 = vadd.f32 1.0, %v10416_v23  ;;  %v1822_v23 = vld [vmem:[%s10696_s15 + $0x50] sm:$0xff] }
 0xae7   :  { %v1429_v27 = vmul.f32 0.5, %v1427_v24  ;;  %v1823_v24 = vld [vmem:[%s10696_s15 + $0x58] sm:$0xff] }
 0xae8   :  { %v10418_v25 = vpop.eup %10417 }
 0xae9   :  { %v1428_v29 = vadd.f32 1.0, %v10418_v25  ;;  %v1431_v31 = vmul.f32 %v1429_v27, %v1409_v7  ;;  %v1824_v25 = vld [vmem:[%s10696_s15 + $0x60] sm:$0xff]  ;;  %v1825_v27 = vld [vmem:[%s10696_s15 + $0x68] sm:$0xff] }
 0xaeb   :  { %v1430_v30 = vmul.f32 0.5, %v1428_v29 }
 0xaed   :  { %v1432_v26 = vmul.f32 %v1430_v30, %v1412_v12  ;;  %v1813_v12 = vld [vmem:[%s10696_s15 + $0x8] sm:$0xff]  ;;  %v8623_v30 = vld [vmem:[%s8526_s18] ss:$0 sm:$0xff] }
 0xaef   :  { %v1433_v32 = vpack.c.bf16 %v1432_v26, %v1431_v31 }
 0xaf1   :  { %9569 = vmatmul.mubr.msk.bf16.vlgmr.msra.gmra.mxu0 %vm1466_vm4, %v1433_v32 }
 0xbb1   :  { %v1504_v33 = vpop.f32.mrf.mxu0 }
 0xbb2   :  { %v1511_v37 = vadd.f32 %v1504_v33, %v10629_v28 }
 0xbb3   :  { %v9570_v38 = vpop.f32.mrf.mxu0 }
 0xbb4   :  { %v1520_v0 = vadd.f32 %v8620_v35, %v1511_v37  ;;  %v10348_v38 = vld [vmem:[%s10689_s11 + $0x8] sm:$0xff]  }
 0xbb5   :  { %v1507_v39 = vpop.f32.mrf.mxu0 }
 0xbb6   :  { %v1512_v40 = vadd.f32 %v1507_v39, %v10634_v34  ;;  %v1524_v36 = vsel %vm137_vm0, %v1520_v0, 0.0  ;;  %v10350_v39 = vld [vmem:[%s10689_s11 + $0x18] sm:$0xff]  }
 0xbb7   :  { %1525 = vadd.xlane.f32.xlu1 %v1524_v36  ;;  %v9571_v1 = vpop.f32.mrf.mxu0  ;;  %v10352_v36 = vld [vmem:[%s10689_s11 + $0x28] sm:$0xff]  }
 0xbb8   :  { %v1521_v41 = vadd.f32 %v8620_v35, %v1512_v40  ;;  %v10351_v40 = vld [vmem:[%s10689_s11 + $0x20] sm:$0xff]   ;;  %v10353_v1 = vld [vmem:[%s10689_s11 + $0x30] sm:$0xff]  }
 0xbba   :  { %v1527_v42 = vsel %vm137_vm0, %v1521_v41, 0.0 }
 0xbbb   :  { %1528 = vadd.xlane.f32.xlu1 %v1527_v42  ;;  %v10355_v42 = vld [vmem:[%s10735_s21 + $0x8] sm:$0xff]  }
 0xbbc   :  { %9598 = vmatprep.subr.bf16.mxu0 %v10355_v42 }
 0xbbd   :  { %9599 = vmatpush3.bf16.msra.mxu0 %v10355_v42 }
 0xc40   :  { %v1526_v43 = vpop.xlane.xlu1 %1525 }
 0xc41   :  { %v1530_v44 = vmul.f32 0.03125, %v1526_v43  ;;  %v10356_v43 = vld [vmem:[%s10735_s21] sm:$0xff]  }
 0xc43   :  { %v1532_v45 = vsub.f32 %v1520_v0, %v1530_v44  ;;  %v10349_v0 = vld [vmem:[%s10689_s11 + $0x10] sm:$0xff]  }
 0xc44   :  { %v1529_v46 = vpop.xlane.xlu1 %1528  ;;  %v10740_v44 = vld [vmem:[%s10735_s21 + $0x10] sm:$0xff]  }
 0xc45   :  { %v1531_v47 = vmul.f32 0.03125, %v1529_v46  ;;  %v1534_v48 = vmul.f32 %v1532_v45, %v1532_v45  ;;  %9634 = vmatprep.subr.bf16.mxu0 %v10740_v44 }
 0xc47   :  { %v1533_v28 = vsub.f32 %v1521_v41, %v1531_v47  ;;  %v1536_v49 = vsel %vm137_vm0, %v1534_v48, 0.0  ;;  %v10354_v41 = vld [vmem:[%s10689_s11 + $0x38] sm:$0xff]  }
 0xc48   :  { %1537 = vadd.xlane.f32.xlu0 %v1536_v49 }
 0xc49   :  { %v1535_v50 = vmul.f32 %v1533_v28, %v1533_v28 }
 0xc4b   :  { %v1539_v34 = vsel %vm137_vm0, %v1535_v50, 0.0 }
 0xc4c   :  { %1540 = vadd.xlane.f32.xlu1 %v1539_v34 }
 0xc5d   :  { %1831 = vperm.xlu1 %10323, %v1812_v10  }
 0xc5e   :  { %1841 = vperm.xlu0 %10324, %v1814_v14  }
 0xc61   :  { %1906 = vperm.xlu1 %10323, %v1827_v11  }
 0xc62   :  { %1901 = vperm.xlu0 %10324, %v1826_v16  }
 0xc65   :  { %1836 = vperm.xlu1 %10323, %v1813_v12  }
 0xc69   :  { %1846 = vperm.xlu1 %10323, %v1815_v13   ;;  %v1941_v13 = vlaneseq }
 0xc6d   :  { %1851 = vperm.xlu1 %10323, %v1816_v17  }
 0xc71   :  { %1856 = vperm.xlu1 %10323, %v1817_v18  }
 0xc75   :  { %1861 = vperm.xlu1 %10323, %v1818_v19  }
 0xc79   :  { %1866 = vperm.xlu1 %10323, %v1819_v20  }
 0xc7d   :  { %1871 = vperm.xlu1 %10323, %v1820_v21  }
 0xc81   :  { %1876 = vperm.xlu1 %10323, %v1821_v22  }
 0xc85   :  { %1881 = vperm.xlu1 %10323, %v1822_v23   ;;  %v10843_v23 = vshrl.u32 %v1941_v13, 7 }
 0xc87   :  { %14949 = vst [vmem:[#allocation30_spill] sm:$0xff] %v10843_v23  ;;  %vm1943_vm5 = vcmp.lt.s32.totalorder %v10843_v23, 1  ;;  %vm2251_vm6 = vcmp.lt.s32.totalorder %v10843_v23, 7 }
 0xc89   :  { %1886 = vperm.xlu1 %10323, %v1823_v24  }
 0xc8d   :  { %1891 = vperm.xlu1 %10323, %v1824_v25  }
 0xc91   :  { %1896 = vperm.xlu1 %10323, %v1825_v27  }
 0xcd1   :  { %v1538_v53 = vpop.xlane.xlu0 %1537 }
 0xcd2   :  { %v1542_v54 = vmul.f32 0.03125, %v1538_v53 }
 0xcd4   :  { %v1544_v55 = vadd.f32 1e-05, %v1542_v54 }
 0xcd5   :  { %v1541_v56 = vpop.xlane.xlu1 %1540 }
 0xcd6   :  { %10419 = vrsqrt.f32 %v1544_v55  ;;  %v1543_v57 = vmul.f32 0.03125, %v1541_v56 }
 0xcd8   :  { %v1545_v58 = vadd.f32 1e-05, %v1543_v57 }
 0xcd9   :  { %v10747_v46 = vpop.permute.xlu1 %1831  ;;  %v10769_v55 = vpop.permute.xlu0 %1841 }
 0xcda   :  { %10421 = vrsqrt.f32 %v1545_v58  ;;  %14922 = vst [vmem:[#allocation3_spill] sm:$0xff] %v10747_v46  ;;  %14933 = vst [vmem:[#allocation14_spill] sm:$0xff] %v10769_v55 }
 0xcdd   :  { %v10749_v47 = vpop.permute.xlu1 %1906  ;;  %v10831_v19 = vpop.permute.xlu0 %1901 }
 0xcde   :  { %14923 = vst [vmem:[#allocation4_spill] sm:$0xff] %v10749_v47  ;;  %14948 = vst [vmem:[#allocation29_spill] sm:$0xff] %v10831_v19 }
 0xce1   :  { %v10751_v48 = vpop.permute.xlu1 %1836 }
 0xce2   :  { %14924 = vst [vmem:[#allocation5_spill] sm:$0xff] %v10751_v48 }
 0xce3   :  { %v10420_v59 = vpop.eup %10419 }
 0xce4   :  { %v1548_v60 = vmul.f32 %v10420_v59, %v1532_v45  ;;  %v10744_v45 = vld [vmem:[%s10735_s21 + $0x18] sm:$0xff]  }
 0xce6   :  { %v1556_v2 = vmul.f32 %v8621_v61, %v1548_v60 }
 0xce7   :  { %v10422_v62 = vpop.eup %10421 }
 0xce8   :  { %v1549_v63 = vmul.f32 %v10422_v62, %v1533_v28  ;;  %v1564_v5 = vadd.f32 %v8622_v3, %v1556_v2  ;;  %v10753_v28 = vpop.permute.xlu1 %1846 }
 0xce9   :  { %14925 = vst [vmem:[#allocation6_spill] sm:$0xff] %v10753_v28 }
 0xcea   :  { %v1557_v4 = vmul.f32 %v8621_v61, %v1549_v63 }
 0xcec   :  { %v1565_v6 = vadd.f32 %v8622_v3, %v1557_v4  ;;  %v10755_v49 = vpop.permute.xlu1 %1851 }
 0xced   :  { %14926 = vst [vmem:[#allocation7_spill] sm:$0xff] %v10755_v49 }
 0xcee   :  { %v1566_v7 = vpack.c.bf16 %v1565_v6, %v1564_v5 }
 0xcf0   :  { %9577 = vmatmul.mubr.msk.bf16.vlgmr.msra.gmra.mxu1 %vm137_vm0, %v1566_v7  ;;  %v10757_v50 = vpop.permute.xlu1 %1856 }
 0xcf1   :  { %9582 = vmatprep.mubr.msk.bf16.mxu1 %vm381_vm2, %v10347_v8  ;;  %14927 = vst [vmem:[#allocation8_spill] sm:$0xff] %v10757_v50 }
 0xcf4   :  { %v10759_v34 = vpop.permute.xlu1 %1861 }
 0xcf5   :  { %14928 = vst [vmem:[#allocation9_spill] sm:$0xff] %v10759_v34 }
 0xcf8   :  { %v10761_v51 = vpop.permute.xlu1 %1866 }
 0xcf9   :  { %14929 = vst [vmem:[#allocation10_spill] sm:$0xff] %v10761_v51 }
 0xcfc   :  { %v10765_v53 = vpop.permute.xlu1 %1871 }
 0xcfd   :  { %14931 = vst [vmem:[#allocation12_spill] sm:$0xff] %v10765_v53 }
 0xd00   :  { %v10785_v61 = vpop.permute.xlu1 %1876 }
 0xd01   :  { %14936 = vst [vmem:[#allocation17_spill] sm:$0xff] %v10785_v61 }
 0xd04   :  { %v10797_v4 = vpop.permute.xlu1 %1881 }
 0xd05   :  { %14940 = vst [vmem:[#allocation21_spill] sm:$0xff] %v10797_v4 }
 0xd08   :  { %v10811_v10 = vpop.permute.xlu1 %1886 }
 0xd09   :  { %14944 = vst [vmem:[#allocation25_spill] sm:$0xff] %v10811_v10 }
 0xdb0   :  { %v1627_v29 = vpop.f32.mrf.mxu1 }
 0xdb1   :  { %v1628_v32 = vadd.f32 %v8623_v30, %v1627_v29 }
 0xdb2   :  { %v9578_v31 = vpop.f32.mrf.mxu1 }
 0xdb4   :  { %v1630_v26 = vpop.f32.mrf.mxu1 }
 0xdb5   :  { %v1631_v33 = vadd.f32 %v8623_v30, %v1630_v26 }
 0xdb6   :  { %v9579_v35 = vpop.f32.mrf.mxu1 }
 0xdb7   :  { %v1650_v37 = vpack.c.bf16 %v1631_v33, %v1628_v32 }
 0xdb9   :  { %9580 = vmatprep.subr.bf16.mxu1 %v1650_v37 }
 0xdba   :  { %9581 = vmatpush3.bf16.msra.mxu1 %v1650_v37 }
 0xdbb   :  { %9616 = vmatprep.subr.bf16.mxu1 %v10356_v43 }
 0xdbd   :  { %9583 = vmatmul.mubr.msk.bf16.vlgmr.msra.gmra.mxu1 %vm381_vm2, %v10348_v38 }
 0xdbe   :  { %9586 = vmatprep.mubr.msk.bf16.mxu1 %vm381_vm2, %v10349_v0  ;;  %9617 = vmatpush3.bf16.msra.mxu1 %v10356_v43 }
 0xdbf   :  { %9652 = vmatprep.subr.bf16.mxu1 %v10744_v45 }
 0xdc5   :  { %9587 = vmatmul.mubr.msk.bf16.gmra.mxu1 %vm381_vm2, %v10350_v39 }
 0xdc6   :  { %9590 = vmatprep.mubr.msk.bf16.mxu1 %vm381_vm2, %v10351_v40 }
 0xdcd   :  { %9591 = vmatmul.mubr.msk.bf16.gmra.mxu1 %vm381_vm2, %v10352_v36 }
 0xdce   :  { %9594 = vmatprep.mubr.msk.bf16.mxu1 %vm381_vm2, %v10353_v1 }
 0xdd5   :  { %9595 = vmatmul.mubr.msk.bf16.gmra.mxu1 %vm381_vm2, %v10354_v41  ;;  %v10890_v41 = vld [vmem:[%s10735_s21 + $0x20] sm:$0xff]  }
 0xe7d   :  { %v10763_v52 = vpop.f32.mrf.mxu1 }
 0xe7e   :  { %14930 = vst [vmem:[#allocation11_spill] sm:$0xff] %v10763_v52  ;;  %v10779_v58 = vmul.f32 %v10763_v52, %v10769_v55 }
 0xe7f   :  { %v10767_v54 = vpop.f32.mrf.mxu1 }
 0xe80   :  { %14932 = vst [vmem:[#allocation13_spill] sm:$0xff] %v10767_v54  ;;  %v10841_v22 = vmul.f32 %v10747_v46, %v10767_v54  ;;  %v1927_v30 = vrot.slane %v10779_v58, 7 }
 0xe81   :  { %v10771_v56 = vpop.f32.mrf.mxu1 }
 0xe82   :  { %14934 = vst [vmem:[#allocation15_spill] sm:$0xff] %v10771_v56  ;;  %v10775_v57 = vmul.f32 %v10771_v56, %v10753_v28  ;;  %v1925_v32 = vrot.slane %v10841_v22, 7 }
 0xe83   :  { %v10781_v59 = vpop.f32.mrf.mxu1 }
 0xe84   :  { %14935 = vst [vmem:[#allocation16_spill] sm:$0xff] %v10781_v59  ;;  %v10827_v17 = vmul.f32 %v10751_v48, %v10781_v59  ;;  %v1928_v33 = vrot.slane %v10775_v57, 7 }
 0xe85   :  { %v10787_v62 = vpop.f32.mrf.mxu1 }
 0xe86   :  { %14937 = vst [vmem:[#allocation18_spill] sm:$0xff] %v10787_v62  ;;  %v10801_v5 = vmul.f32 %v10787_v62, %v10759_v34  ;;  %v1926_v25 = vrot.slane %v10827_v17, 7  ;;  %v10865_v35 = vpack.c.bf16 %v10779_v58, %v10827_v17  ;;  %v2237_v34 = vrot.slane %v10779_v58, 1 }
 0xe87   :  { %v10789_v63 = vpop.f32.mrf.mxu1 }
 0xe88   :  { %14938 = vst [vmem:[#allocation19_spill] sm:$0xff] %v10789_v63  ;;  %v10837_v21 = vmul.f32 %v10755_v49, %v10789_v63  ;;  %v10869_v37 = vsel %vm1943_vm5, %v1926_v25, %v1927_v30  ;;  %v10879_v40 = vsel %vm1943_vm5, %v1925_v32, %v1926_v25 }
 0xe89   :  { %v10791_v2 = vpop.f32.mrf.mxu1  ;;  %v10922_v20 = vpack.c.bf16 %v10869_v37, %v10879_v40 }
 0xe8a   :  { %14939 = vst [vmem:[#allocation20_spill] sm:$0xff] %v10791_v2  ;;  %v10795_v3 = vmul.f32 %v10791_v2, %v10761_v51  ;;  %v1929_v31 = vrot.slane %v10837_v21, 7  ;;  %v10887_v1 = vpack.c.bf16 %v10837_v21, %v10775_v57 }
 0xe8b   :  { %v10803_v6 = vpop.f32.mrf.mxu1 }
 0xe8c   :  { %14941 = vst [vmem:[#allocation22_spill] sm:$0xff] %v10803_v6  ;;  %v10883_v36 = vmul.f32 %v10757_v50, %v10803_v6  ;;  %v10912_v15 = vsel %vm1943_vm5, %v1928_v33, %v1929_v31 }
 0xe8d   :  { %v10805_v7 = vpop.f32.mrf.mxu1 }
 0xe8e   :  { %14942 = vst [vmem:[#allocation23_spill] sm:$0xff] %v10805_v7  ;;  %v10821_v14 = vmul.f32 %v10805_v7, %v10797_v4  ;;  %v1930_v8 = vrot.slane %v10883_v36, 7  ;;  %v10959_v7 = vpack.c.bf16 %v10801_v5, %v10883_v36  ;;  %v2240_v49 = vrot.slane %v10883_v36, 1 }
 0xe8f   :  { %v10809_v9 = vpop.f32.mrf.mxu1 }
 0xe90   :  { %14943 = vst [vmem:[#allocation24_spill] sm:$0xff] %v10809_v9  ;;  %v10896_v43 = vmul.f32 %v10765_v53, %v10809_v9  ;;  %v1935_v63 = vrot.slane %v10821_v14, 7 }
 0xe91   :  { %v10813_v11 = vpop.f32.mrf.mxu1 }
 0xe92   :  { %14945 = vst [vmem:[#allocation26_spill] sm:$0xff] %v10813_v11  ;;  %v10817_v12 = vmul.f32 %v10813_v11, %v10811_v10 }
 0xe93   :  { %v10823_v16 = vpop.f32.mrf.mxu1 }
 0xe94   :  { %14946 = vst [vmem:[#allocation27_spill] sm:$0xff] %v10823_v16  ;;  %v10955_v11 = vmul.f32 %v10785_v61, %v10823_v16  ;;  %v10975_v16 = vpack.c.bf16 %v10896_v43, %v10795_v3 }
 0xe95   :  { %v10829_v18 = vpop.f32.mrf.mxu1 }
 0xe96   :  { %14947 = vst [vmem:[#allocation28_spill] sm:$0xff] %v10829_v18  ;;  %v10850_v27 = vmul.f32 %v10829_v18, %v10831_v19  ;;  %v11015_v54 = vpack.c.bf16 %v10821_v14, %v10955_v11  ;;  %v2236_v19 = vrot.slane %v10827_v17, 1  ;;  %v2244_v55 = vrot.slane %v10955_v11, 1 }
 0xe97   :  { %v10845_v24 = vpop.f32.mrf.mxu1 }
 0xe98   :  { %14950 = vst [vmem:[#allocation31_spill] sm:$0xff] %v10845_v24  ;;  %v14795_v39 = vrot.slane %v10850_v27, 7  ;;  %v14958_v4 = vrot.slane %v10850_v27, 7  ;;  %v11102_v48 = vsel %vm2251_vm6, %v2236_v19, %v2237_v34 }
 0xe99   :  { %v10852_v29 = vpop.f32.mrf.mxu1 }
 0xe9a   :  { %14951 = vst [vmem:[#allocation32_spill] sm:$0xff] %v10852_v29  ;;  %v10858_v26 = vmul.f32 %v10852_v29, %v10749_v47 }
 0xe9b   :  { %v10999_v18 = vpop.f32.mrf.mxu1 }
 0xe9c   :  { %v1940_v38 = vrot.slane %v10858_v26, 7  ;;  %v10874_v0 = vpack.c.bf16 %v10841_v22, %v10858_v26  ;;  %14955 = vst [vmem:[#allocation36_spill] sm:$0xff] %v10999_v18 }
 0xe9e   :  { %14952 = vst [vmem:[#allocation33_spill] sm:$0xff] %v10874_v0  ;;  %9600 = vmatprep.mubr.msk.bf16.mxu0 %vm381_vm2, %v10874_v0  ;;  %v10904_v13 = vsel %vm1943_vm5, %v14795_v39, %v1940_v38  ;;  %v10908_v25 = vsel %vm1943_vm5, %v1940_v38, %v1925_v32  ;;  %v10928_v32 = vsel %vm1943_vm5, %v1927_v30, %v1928_v33  ;;  %v10932_v38 = vld [vmem:[%s10735_s21 + $0x28] sm:$0xff]   ;;  %v1933_v39 = vrot.slane %v10896_v43, 7  ;;  %v10951_v33 = vpop.permute.xlu1 %1891 }
 0xe9f   :  { %9601 = vmatmul.mubr.msk.bf16.vlgmr.msra.gmra.mxu0 %vm381_vm2, %v10865_v35  ;;  %v10918_v42 = vpack.c.bf16 %v10908_v25, %v10904_v13  ;;  %v10939_v60 = vpack.c.bf16 %v10912_v15, %v10928_v32  ;;  %v1932_v30 = vrot.slane %v10795_v3, 7  ;;  %14954 = vst [vmem:[#allocation35_spill] sm:$0xff] %v10951_v33  ;;  %v10971_v9 = vmul.f32 %v10951_v33, %v10845_v24 }
 0xea0   :  { %9604 = vmatprep.mubr.msk.bf16.mxu0 %vm381_vm2, %v10887_v1  ;;  %9635 = vmatpush3.bf16.msra.mxu0 %v10740_v44  ;;  %v1931_v44 = vrot.slane %v10801_v5, 7  ;;  %v1934_v24 = vrot.slane %v10955_v11, 7  ;;  %v2235_v33 = vrot.slane %v10841_v22, 1  ;;  %v2423_v0 = vpack.c.bf16 %v10928_v32, %v10869_v37 }
 0xea1   :  { %14953 = vst [vmem:[#allocation34_spill] sm:$0xff] %v10918_v42  ;;  %9618 = vmatprep.mubr.msk.bf16.mxu1 %vm381_vm2, %v10918_v42  ;;  %9670 = vmatprep.subr.bf16.mxu0 %v10890_v41  ;;  %v10979_v2 = vsel %vm1943_vm5, %v1932_v30, %v1933_v39  ;;  %v1937_v62 = vrot.slane %v10971_v9, 7  ;;  %v11027_v47 = vpack.c.bf16 %v10971_v9, %v10817_v12 }
 0xea2   :  { %9619 = vmatmul.mubr.msk.bf16.vlgmr.msra.gmra.mxu1 %vm381_vm2, %v10922_v20  ;;  %v10963_v29 = vsel %vm1943_vm5, %v1930_v8, %v1931_v44  ;;  %v11019_v56 = vsel %vm1943_vm5, %v1934_v24, %v1935_v63  ;;  %v11023_v52 = vsel %vm1943_vm5, %v1933_v39, %v1934_v24  ;;  %v11070_v53 = vsel %vm2251_vm6, %v2235_v33, %v2236_v19 }
 0xea3   :  { %9622 = vmatprep.mubr.msk.bf16.mxu1 %vm381_vm2, %v10939_v60  ;;  %9653 = vmatpush3.bf16.msra.mxu1 %v10744_v45  ;;  %v10967_v45 = vsel %vm1943_vm5, %v1929_v31, %v1930_v8  ;;  %v10991_v31 = vsel %vm1943_vm5, %v1931_v44, %v1932_v30  ;;  %v11006_v44 = vpop.permute.xlu1 %1896  ;;  %v1936_v30 = vrot.slane %v10817_v12, 7  ;;  %v11040_v24 = vpack.c.bf16 %v11019_v56, %v11023_v52 }
 0xea4   :  { %9688 = vmatprep.subr.bf16.mxu1 %v10932_v38  ;;  %v10987_v8 = vpack.c.bf16 %v10963_v29, %v10967_v45  ;;  %v10996_v6 = vpack.c.bf16 %v10979_v2, %v10991_v31  ;;  %14956 = vst [vmem:[#allocation37_spill] sm:$0xff] %v11006_v44  ;;  %v11011_v59 = vmul.f32 %v11006_v44, %v10999_v18 }
 0xea5   :  { %v11031_v18 = vsel %vm1943_vm5, %v1936_v30, %v1937_v62  ;;  %v11044_v39 = vsel %vm1943_vm5, %v1935_v63, %v1936_v30  ;;  %v14957_v63 = vrot.slane %v10858_v26, 1  ;;  %v2424_v42 = vpack.c.bf16 %v10967_v45, %v10912_v15 }
 0xea6   :  { %v1938_v44 = vrot.slane %v11011_v59, 7  ;;  %v11051_v61 = vpack.c.bf16 %v11031_v18, %v11044_v39  ;;  %v11066_v10 = vpack.c.bf16 %v10850_v27, %v11011_v59  ;;  %v2425_v45 = vpack.c.bf16 %v10991_v31, %v10963_v29 }
 0xea7   :  { %9605 = vmatmul.mubr.msk.bf16.gmra.mxu0 %vm381_vm2, %v10959_v7  ;;  %v11062_v30 = vsel %vm2251_vm6, %v14957_v63, %v2235_v33  ;;  %v2238_v33 = vrot.slane %v10775_v57, 1 }
 0xea8   :  { %9608 = vmatprep.mubr.msk.bf16.mxu0 %vm381_vm2, %v10975_v16  ;;  %v11076_v50 = vsel %vm1943_vm5, %v1938_v44, %v14958_v4  ;;  %v11080_v51 = vsel %vm1943_vm5, %v1937_v62, %v1938_v44  ;;  %v11084_v63 = vpack.c.bf16 %v11070_v53, %v11062_v30  ;;  %v2239_v4 = vrot.slane %v10837_v21, 1 }
 0xea9   :  { %v11095_v62 = vpack.c.bf16 %v11076_v50, %v11080_v51  ;;  %v2422_v44 = vpack.c.bf16 %v10879_v40, %v10908_v25  ;;  %v11113_v28 = vsel %vm2251_vm6, %v2237_v34, %v2238_v33  ;;  %v10361_v25 = vld [vmem:[%s10735_s21 + $0x30] sm:$0xff]   ;;  %v2241_v34 = vrot.slane %v10801_v5, 1 }
 0xeaa   :  { %9623 = vmatmul.mubr.msk.bf16.gmra.mxu1 %vm381_vm2, %v10987_v8  ;;  %14959 = vst [vmem:[#allocation38_spill] sm:$0xff] %v11084_v63  ;;  %v11109_v46 = vsel %vm2251_vm6, %v2239_v4, %v2240_v49  ;;  %v11117_v40 = vpack.c.bf16 %v11113_v28, %v11102_v48  ;;  %v11121_v19 = vsel %vm2251_vm6, %v2238_v33, %v2239_v4  ;;  %v10362_v33 = vld [vmem:[%s10735_s21 + $0x38] sm:$0xff]   ;;  %v2243_v4 = vrot.slane %v10896_v43, 1 }
 0xeab   :  { %9626 = vmatprep.mubr.msk.bf16.mxu1 %vm381_vm2, %v10996_v6 }
 0xeac   :  { %14960 = vst [vmem:[#allocation39_spill] sm:$0xff] %v11117_v40  ;;  %v2258_v37 = vsel %vm2251_vm6, %v2243_v4, %v2244_v55 }
 0xeaf   :  { %9609 = vmatmul.mubr.msk.bf16.gmra.mxu0 %vm381_vm2, %v11015_v54 }
 0xeb0   :  { %9612 = vmatprep.mubr.msk.bf16.mxu0 %vm381_vm2, %v11027_v47 }
 0xeb2   :  { %9627 = vmatmul.mubr.msk.bf16.gmra.mxu1 %vm381_vm2, %v11040_v24 }
 0xeb3   :  { %9630 = vmatprep.mubr.msk.bf16.mxu1 %vm381_vm2, %v11051_v61 }
 0xeb7   :  { %9613 = vmatmul.mubr.msk.bf16.gmra.mxu0 %vm381_vm2, %v11066_v10 }
 0xeb8   :  { %9636 = vmatprep.mubr.msk.bf16.mxu0 %vm381_vm2, %v11084_v63  ;;  %v2242_v63 = vrot.slane %v10795_v3, 1 }
 0xeba   :  { %9631 = vmatmul.mubr.msk.bf16.gmra.mxu1 %vm381_vm2, %v11095_v62  ;;  %v2259_v15 = vsel %vm2251_vm6, %v2242_v63, %v2243_v4 }
 0xebb   :  { %9654 = vmatprep.mubr.msk.bf16.mxu1 %vm381_vm2, %v2422_v44  ;;  %v11126_v44 = vpack.c.bf16 %v11109_v46, %v11121_v19 }
 0xebd   :  { %14961 = vst [vmem:[#allocation40_spill] sm:$0xff] %v11126_v44 }
 0xebf   :  { %9637 = vmatmul.mubr.msk.bf16.vlgmr.msra.gmra.mxu0 %vm381_vm2, %v11117_v40  ;;  %v2261_v40 = vsel %vm2251_vm6, %v2240_v49, %v2241_v34  ;;  %v2248_v49 = vrot.slane %v11011_v59, 1 }
 0xec0   :  { %9640 = vmatprep.mubr.msk.bf16.mxu0 %vm381_vm2, %v11126_v44  ;;  %9671 = vmatpush3.bf16.msra.mxu0 %v10890_v41  ;;  %v2260_v41 = vsel %vm2251_vm6, %v2241_v34, %v2242_v63  ;;  %v2247_v34 = vrot.slane %v10971_v9, 1  ;;  %v2426_v63 = vpack.c.bf16 %v11023_v52, %v10979_v2  ;;  %v2427_v52 = vpack.c.bf16 %v11044_v39, %v11019_v56  ;;  %v10363_v39 = vld [vmem:[%s10735_s21 + $0x40] sm:$0xff]  }
 0xec1   :  { %9706 = vmatprep.subr.bf16.mxu0 %v10361_v25  ;;  %v11151_v32 = vpack.c.bf16 %v2260_v41, %v2261_v40  ;;  %v2428_v2 = vpack.c.bf16 %v11080_v51, %v11031_v18  ;;  %v2576_v56 = vpack.c.bf16 %v10827_v17, %v10841_v22  ;;  %v2429_v51 = vpack.c.bf16 %v10904_v13, %v11076_v50 }
 0xec2   :  { %9655 = vmatmul.mubr.msk.bf16.vlgmr.msra.gmra.mxu1 %vm381_vm2, %v2423_v0  ;;  %v11155_v0 = vpack.c.bf16 %v2258_v37, %v2259_v15  ;;  %v2730_v18 = vpack.c.bf16 %v11102_v48, %v11070_v53  ;;  %v14965_v17 = vpack.c.bf16 %v10775_v57, %v10779_v58  ;;  %v2731_v22 = vpack.c.bf16 %v11121_v19, %v11113_v28 }
 0xec3   :  { %9658 = vmatprep.mubr.msk.bf16.mxu1 %vm381_vm2, %v2424_v42  ;;  %9689 = vmatpush3.bf16.msra.mxu1 %v10932_v38  ;;  %14962 = vst [vmem:[#allocation41_spill] sm:$0xff] %v11151_v32  ;;  %v2245_v42 = vrot.slane %v10821_v14, 1  ;;  %v2246_v38 = vrot.slane %v10817_v12, 1  ;;  %v2732_v48 = vpack.c.bf16 %v2261_v40, %v11109_v46  ;;  %v2580_v50 = vpack.c.bf16 %v10955_v11, %v10896_v43 }
 0xec4   :  { %9724 = vmatprep.subr.bf16.mxu1 %v10362_v33  ;;  %14963 = vst [vmem:[#allocation42_spill] sm:$0xff] %v11155_v0  ;;  %v14966_v53 = vpack.c.bf16 %v10795_v3, %v10801_v5  ;;  %v2733_v28 = vpack.c.bf16 %v2259_v15, %v2260_v41  ;;  %v2582_v46 = vpack.c.bf16 %v11011_v59, %v10971_v9 }
 0xec5   :  { %v2257_v4 = vsel %vm2251_vm6, %v2244_v55, %v2245_v42  ;;  %v2255_v29 = vsel %vm2251_vm6, %v2246_v38, %v2247_v34  ;;  %v2249_v55 = vrot.slane %v10850_v27, 1  ;;  %v14967_v58 = vpack.c.bf16 %v10817_v12, %v10821_v14 }
 0xec6   :  { %v2734_v57 = vpack.c.bf16 %v2257_v4, %v2258_v37  ;;  %v14968_v11 = vpack.c.bf16 %v10858_v26, %v10850_v27 }
 0xec7   :  { %9641 = vmatmul.mubr.msk.bf16.gmra.mxu0 %vm381_vm2, %v11151_v32  ;;  %v2254_v32 = vsel %vm2251_vm6, %v2247_v34, %v2248_v49 }
 0xec8   :  { %9644 = vmatprep.mubr.msk.bf16.mxu0 %vm381_vm2, %v11155_v0  ;;  %v2256_v0 = vsel %vm2251_vm6, %v2245_v42, %v2246_v38  ;;  %v11181_v31 = vpack.c.bf16 %v2254_v32, %v2255_v29  ;;  %v2253_v42 = vsel %vm2251_vm6, %v2248_v49, %v2249_v55  ;;  %v14964_v38 = vrot.slane %v10858_v26, 1 }
 0xec9   :  { %v11177_v44 = vpack.c.bf16 %v2256_v0, %v2257_v4  ;;  %v2578_v49 = vpack.c.bf16 %v10883_v36, %v10837_v21  ;;  %v2735_v3 = vpack.c.bf16 %v2255_v29, %v2256_v0  ;;  %v2736_v5 = vpack.c.bf16 %v2253_v42, %v2254_v32 }
 0xeca   :  { %9659 = vmatmul.mubr.msk.bf16.gmra.mxu1 %vm381_vm2, %v2425_v45  ;;  %v2252_v45 = vsel %vm2251_vm6, %v2249_v55, %v14964_v38 }
 0xecb   :  { %9662 = vmatprep.mubr.msk.bf16.mxu1 %vm381_vm2, %v2426_v63  ;;  %v2275_v34 = vpack.c.bf16 %v2252_v45, %v2253_v42  ;;  %v2737_v59 = vpack.c.bf16 %v11062_v30, %v2252_v45  ;;  %v14974_v9 = vld [vmem:[#allocation42_spill] sm:$0xff] }
 0xecf   :  { %9645 = vmatmul.mubr.msk.bf16.gmra.mxu0 %vm381_vm2, %v11177_v44 }
 0xed0   :  { %9648 = vmatprep.mubr.msk.bf16.mxu0 %vm381_vm2, %v11181_v31 }
 0xed2   :  { %9663 = vmatmul.mubr.msk.bf16.gmra.mxu1 %vm381_vm2, %v2427_v52 }
 0xed3   :  { %9666 = vmatprep.mubr.msk.bf16.mxu1 %vm381_vm2, %v2428_v2 }
 0xed7   :  { %9649 = vmatmul.mubr.msk.bf16.gmra.mxu0 %vm381_vm2, %v2275_v34 }
 0xed8   :  { %9672 = vmatprep.mubr.msk.bf16.mxu0 %vm381_vm2, %v2576_v56  ;;  %v10364_v56 = vld [vmem:[%s11307_s25 + $0x8] sm:$0xff]  }
 0xeda   :  { %9667 = vmatmul.mubr.msk.bf16.gmra.mxu1 %vm381_vm2, %v2429_v51 }
 0xedb   :  { %9690 = vmatprep.mubr.msk.bf16.mxu1 %vm381_vm2, %v2730_v18 }
 0xedf   :  { %9673 = vmatmul.mubr.msk.bf16.vlgmr.msra.gmra.mxu0 %vm381_vm2, %v14965_v17 }
 0xee0   :  { %9676 = vmatprep.mubr.msk.bf16.mxu0 %vm381_vm2, %v2578_v49  ;;  %9707 = vmatpush3.bf16.msra.mxu0 %v10361_v25 }
 0xee1   :  { %9742 = vmatprep.subr.bf16.mxu0 %v10363_v39 }
 0xee2   :  { %9691 = vmatmul.mubr.msk.bf16.vlgmr.msra.gmra.mxu1 %vm381_vm2, %v2731_v22 }
 0xee3   :  { %9694 = vmatprep.mubr.msk.bf16.mxu1 %vm381_vm2, %v2732_v48  ;;  %9725 = vmatpush3.bf16.msra.mxu1 %v10362_v33 }
 0xee4   :  { %9760 = vmatprep.subr.bf16.mxu1 %v10364_v56 }
 0xee7   :  { %9677 = vmatmul.mubr.msk.bf16.gmra.mxu0 %vm381_vm2, %v14966_v53 }
 0xee8   :  { %9680 = vmatprep.mubr.msk.bf16.mxu0 %vm381_vm2, %v2580_v50 }
 0xeea   :  { %9695 = vmatmul.mubr.msk.bf16.gmra.mxu1 %vm381_vm2, %v2733_v28 }
 0xeeb   :  { %9698 = vmatprep.mubr.msk.bf16.mxu1 %vm381_vm2, %v2734_v57 }
 0xeef   :  { %9681 = vmatmul.mubr.msk.bf16.gmra.mxu0 %vm381_vm2, %v14967_v58 }
 0xef0   :  { %9684 = vmatprep.mubr.msk.bf16.mxu0 %vm381_vm2, %v2582_v46 }
 0xef2   :  { %9699 = vmatmul.mubr.msk.bf16.gmra.mxu1 %vm381_vm2, %v2735_v3 }
 0xef3   :  { %9702 = vmatprep.mubr.msk.bf16.mxu1 %vm381_vm2, %v2736_v5 }
 0xef7   :  { %9685 = vmatmul.mubr.msk.bf16.gmra.mxu0 %vm381_vm2, %v14968_v11 }
 0xef8   :  { %9708 = vmatprep.mubr.msk.bf16.mxu0 %vm381_vm2, %v10922_v20 }
 0xefa   :  { %9703 = vmatmul.mubr.msk.bf16.gmra.mxu1 %vm381_vm2, %v2737_v59 }
 0xefb   :  { %9726 = vmatprep.mubr.msk.bf16.mxu1 %vm381_vm2, %v10865_v35 }
 0xeff   :  { %9709 = vmatmul.mubr.msk.bf16.vlgmr.msra.gmra.mxu0 %vm381_vm2, %v10939_v60  ;;  %v14969_v60 = vld [vmem:[#allocation34_spill] sm:$0xff] }
 0xf00   :  { %9712 = vmatprep.mubr.msk.bf16.mxu0 %vm381_vm2, %v10987_v8  ;;  %9743 = vmatpush3.bf16.msra.mxu0 %v10363_v39 }
 0xf02   :  { %9727 = vmatmul.mubr.msk.bf16.vlgmr.msra.gmra.mxu1 %vm381_vm2, %v10887_v1 }
 0xf03   :  { %9730 = vmatprep.mubr.msk.bf16.mxu1 %vm381_vm2, %v10959_v7  ;;  %v14971_v7 = vld [vmem:[#allocation33_spill] sm:$0xff]  ;;  %9761 = vmatpush3.bf16.msra.mxu1 %v10364_v56 }
 0xf07   :  { %9713 = vmatmul.mubr.msk.bf16.gmra.mxu0 %vm381_vm2, %v10996_v6  ;;  %v14970_v6 = vld [vmem:[#allocation39_spill] sm:$0xff] }
 0xf08   :  { %9716 = vmatprep.mubr.msk.bf16.mxu0 %vm381_vm2, %v11040_v24 }
 0xf0a   :  { %9731 = vmatmul.mubr.msk.bf16.gmra.mxu1 %vm381_vm2, %v10975_v16 }
 0xf0b   :  { %9734 = vmatprep.mubr.msk.bf16.mxu1 %vm381_vm2, %v11015_v54  ;;  %v14972_v54 = vld [vmem:[#allocation40_spill] sm:$0xff] }
 0xf0f   :  { %9717 = vmatmul.mubr.msk.bf16.gmra.mxu0 %vm381_vm2, %v11051_v61  ;;  %v14973_v61 = vld [vmem:[#allocation41_spill] sm:$0xff] }
 0xf10   :  { %9720 = vmatprep.mubr.msk.bf16.mxu0 %vm381_vm2, %v11095_v62 }
 0xf12   :  { %9735 = vmatmul.mubr.msk.bf16.gmra.mxu1 %vm381_vm2, %v11027_v47  ;;  %v14975_v47 = vld [vmem:[#allocation38_spill] sm:$0xff] }
 0xf13   :  { %9738 = vmatprep.mubr.msk.bf16.mxu1 %vm381_vm2, %v11066_v10 }
 0xf17   :  { %9721 = vmatmul.mubr.msk.bf16.gmra.mxu0 %vm381_vm2, %v14969_v60 }
 0xf18   :  { %9744 = vmatprep.mubr.msk.bf16.mxu0 %vm381_vm2, %v14970_v6  ;;  %v10365_v6 = vld [vmem:[%s11307_s25] sm:$0xff]  }
 0xf19   :  { %9778 = vmatprep.subr.bf16.mxu0 %v10365_v6 }
 0xf1a   :  { %9739 = vmatmul.mubr.msk.bf16.gmra.mxu1 %vm381_vm2, %v14971_v7 }
 0xf1f   :  { %9745 = vmatmul.mubr.msk.bf16.vlgmr.msra.gmra.mxu0 %vm381_vm2, %v14972_v54 }
 0xf20   :  { %9748 = vmatprep.mubr.msk.bf16.mxu0 %vm381_vm2, %v14973_v61  ;;  %9779 = vmatpush3.bf16.msra.mxu0 %v10365_v6 }
 0xf27   :  { %9749 = vmatmul.mubr.msk.bf16.gmra.mxu0 %vm381_vm2, %v14974_v9 }
 0xf28   :  { %9752 = vmatprep.mubr.msk.bf16.mxu0 %vm381_vm2, %v11177_v44 }
 0xf2f   :  { %9753 = vmatmul.mubr.msk.bf16.gmra.mxu0 %vm381_vm2, %v11181_v31 }
 0xf30   :  { %9756 = vmatprep.mubr.msk.bf16.mxu0 %vm381_vm2, %v2275_v34 }
 0xf37   :  { %9757 = vmatmul.mubr.msk.bf16.gmra.mxu0 %vm381_vm2, %v14975_v47 }
 0xf5f   :  { %v9602_v10 = vpop.f32.mrf.mxu0 }
 0xf61   :  { %v2045_v12 = vpop.f32.mrf.mxu0 }
 0xf62   :  { %v9620_v14 = vpop.f32.mrf.mxu1 }
 0xf63   :  { %v2181_v16 = vadd.f32 %v9620_v14, %v9602_v10  ;;  %v9603_v20 = vpop.f32.mrf.mxu0 }
 0xf64   :  { %v2172_v21 = vpop.f32.mrf.mxu1 }
 0xf65   :  { %v2173_v27 = vadd.f32 %v2172_v21, %v2045_v12  ;;  %v11294_v26 = vpop.f32.mrf.mxu0 }
 0xf66   :  { %v9621_v35 = vpop.f32.mrf.mxu1 }
 0xf67   :  { %v2184_v36 = vadd.f32 %v9621_v35, %v9603_v20  ;;  %v9606_v1 = vpop.f32.mrf.mxu0  ;;  %v11322_v20 = vld [vmem:[%s11307_s25 + $0x10] sm:$0xff]  }
 0xf68   :  { %v11296_v43 = vpop.f32.mrf.mxu1  ;;  %14976 = vst [vmem:[#allocation34_spill] sm:$0xff] %v11322_v20  ;;  %9796 = vmatprep.subr.bf16.mxu1 %v11322_v20 }
 0xf69   :  { %v2061_v13 = vpop.f32.mrf.mxu0 }
 0xf6a   :  { %v9624_v8 = vpop.f32.mrf.mxu1 }
 0xf6b   :  { %v2197_v24 = vadd.f32 %v9624_v8, %v9606_v1  ;;  %v9607_v30 = vpop.f32.mrf.mxu0 }
 0xf6c   :  { %v2188_v62 = vpop.f32.mrf.mxu1 }
 0xf6d   :  { %v2189_v40 = vadd.f32 %v2188_v62, %v2061_v13  ;;  %v11298_v19 = vpop.f32.mrf.mxu0 }
 0xf6e   :  { %v9625_v25 = vpop.f32.mrf.mxu1 }
 0xf6f   :  { %v2200_v44 = vadd.f32 %v9625_v25, %v9607_v30  ;;  %v9610_v33 = vpop.f32.mrf.mxu0 }
 0xf70   :  { %v11300_v37 = vpop.f32.mrf.mxu1 }
 0xf71   :  { %v2077_v41 = vpop.f32.mrf.mxu0 }
 0xf72   :  { %v9628_v32 = vpop.f32.mrf.mxu1 }
 0xf73   :  { %v2213_v15 = vadd.f32 %v9628_v32, %v9610_v33  ;;  %v9611_v0 = vpop.f32.mrf.mxu0 }
 0xf74   :  { %v2204_v63 = vpop.f32.mrf.mxu1 }
 0xf75   :  { %v2205_v4 = vadd.f32 %v2204_v63, %v2077_v41  ;;  %v11302_v29 = vpop.f32.mrf.mxu0 }
 0xf76   :  { %v9629_v31 = vpop.f32.mrf.mxu1 }
 0xf77   :  { %v2216_v52 = vadd.f32 %v9629_v31, %v9611_v0  ;;  %v9614_v55 = vpop.f32.mrf.mxu0 }
 0xf78   :  { %v11309_v2 = vpop.f32.mrf.mxu1 }
 0xf79   :  { %v2093_v42 = vpop.f32.mrf.mxu0 }
 0xf7a   :  { %v9632_v38 = vpop.f32.mrf.mxu1 }
 0xf7b   :  { %v2229_v45 = vadd.f32 %v9632_v38, %v9614_v55  ;;  %v9615_v34 = vpop.f32.mrf.mxu0 }
 0xf7c   :  { %v2220_v51 = vpop.f32.mrf.mxu1 }
 0xf7d   :  { %v2221_v18 = vadd.f32 %v2220_v51, %v2093_v42  ;;  %v11312_v39 = vpop.f32.mrf.mxu0 }
 0xf7e   :  { %v9633_v49 = vpop.f32.mrf.mxu1 }
 0xf7f   :  { %v2232_v17 = vadd.f32 %v9633_v49, %v9615_v34  ;;  %v9638_v22 = vpop.f32.mrf.mxu0 }
 0xf80   :  { %v2408_v48 = vadd.f32 %v9638_v22, %v2181_v16  ;;  %v11314_v50 = vpop.f32.mrf.mxu1 }
 0xf81   :  { %v2343_v53 = vpop.f32.mrf.mxu0 }
 0xf82   :  { %v2406_v28 = vadd.f32 %v2343_v53, %v2173_v27  ;;  %v9656_v57 = vpop.f32.mrf.mxu1 }
 0xf83   :  { %v2562_v46 = vadd.f32 %v9656_v57, %v2408_v48  ;;  %v9639_v58 = vpop.f32.mrf.mxu0 }
 0xf84   :  { %v2409_v3 = vadd.f32 %v9639_v58, %v2184_v36  ;;  %v2497_v5 = vpop.f32.mrf.mxu1 }
 0xf85   :  { %v2560_v11 = vadd.f32 %v2497_v5, %v2406_v28  ;;  %v11316_v59 = vpop.f32.mrf.mxu0 }
 0xf86   :  { %v9657_v60 = vpop.f32.mrf.mxu1 }
 0xf87   :  { %v2563_v7 = vadd.f32 %v9657_v60, %v2409_v3  ;;  %v9642_v54 = vpop.f32.mrf.mxu0  ;;  %v11352_v60 = vld [vmem:[%s11307_s25 + $0x18] sm:$0xff]  }
 0xf88   :  { %v2412_v61 = vadd.f32 %v9642_v54, %v2197_v24  ;;  %v11319_v9 = vpop.f32.mrf.mxu1  ;;  %14977 = vst [vmem:[#allocation39_spill] sm:$0xff] %v11352_v60  ;;  %9814 = vmatprep.subr.bf16.mxu0 %v11352_v60 }
 0xf89   :  { %v2359_v47 = vpop.f32.mrf.mxu0 }
 0xf8a   :  { %v2410_v10 = vadd.f32 %v2359_v47, %v2189_v40  ;;  %v9660_v12 = vpop.f32.mrf.mxu1 }
 0xf8b   :  { %v2566_v14 = vadd.f32 %v9660_v12, %v2412_v61  ;;  %v9643_v16 = vpop.f32.mrf.mxu0 }
 0xf8c   :  { %v2413_v21 = vadd.f32 %v9643_v16, %v2200_v44  ;;  %v2513_v27 = vpop.f32.mrf.mxu1 }
 0xf8d   :  { %v2564_v35 = vadd.f32 %v2513_v27, %v2410_v10  ;;  %v11324_v36 = vpop.f32.mrf.mxu0 }
 0xf8e   :  { %v9661_v1 = vpop.f32.mrf.mxu1 }
 0xf8f   :  { %v2567_v13 = vadd.f32 %v9661_v1, %v2413_v21  ;;  %v9646_v8 = vpop.f32.mrf.mxu0 }
 0xf90   :  { %v2416_v24 = vadd.f32 %v9646_v8, %v2213_v15  ;;  %v11327_v30 = vpop.f32.mrf.mxu1 }
 0xf91   :  { %v2375_v62 = vpop.f32.mrf.mxu0 }
 0xf92   :  { %v2414_v40 = vadd.f32 %v2375_v62, %v2205_v4  ;;  %v9664_v25 = vpop.f32.mrf.mxu1 }
 0xf93   :  { %v2570_v33 = vadd.f32 %v9664_v25, %v2416_v24  ;;  %v9647_v41 = vpop.f32.mrf.mxu0 }
 0xf94   :  { %v2417_v32 = vadd.f32 %v9647_v41, %v2216_v52  ;;  %v2529_v0 = vpop.f32.mrf.mxu1 }
 0xf95   :  { %v2568_v44 = vadd.f32 %v2529_v0, %v2414_v40  ;;  %v11329_v63 = vpop.f32.mrf.mxu0 }
 0xf96   :  { %v9665_v31 = vpop.f32.mrf.mxu1 }
 0xf97   :  { %v2571_v55 = vadd.f32 %v9665_v31, %v2417_v32  ;;  %v9650_v42 = vpop.f32.mrf.mxu0 }
 0xf98   :  { %v11331_v38 = vadd.f32 %v9650_v42, %v2229_v45  ;;  %v11333_v34 = vpop.f32.mrf.mxu1 }
 0xf99   :  { %v2391_v15 = vpop.f32.mrf.mxu0 }
 0xf9a   :  { %v2418_v56 = vadd.f32 %v2391_v15, %v2221_v18  ;;  %v11335_v51 = vpop.f32.mrf.mxu1 }
 0xf9b   :  { %v9651_v4 = vpop.f32.mrf.mxu0 }
 0xf9c   :  { %v11337_v49 = vadd.f32 %v9651_v4, %v2232_v17  ;;  %v2545_v52 = vpop.f32.mrf.mxu1 }
 0xf9d   :  { %v2572_v22 = vadd.f32 %v2545_v52, %v2418_v56  ;;  %v11339_v48 = vpop.f32.mrf.mxu0 }
 0xf9e   :  { %v11341_v53 = vpop.f32.mrf.mxu1 }
 0xf9f   :  { %v9674_v28 = vpop.f32.mrf.mxu0 }
 0xfa0   :  { %v11343_v57 = vadd.f32 %v9674_v28, %v2562_v46  ;;  %v11345_v45 = vpop.f32.mrf.mxu1 }
 0xfa1   :  { %v2651_v58 = vpop.f32.mrf.mxu0 }
 0xfa2   :  { %v11347_v3 = vadd.f32 %v2651_v58, %v2560_v11  ;;  %v11349_v18 = vpop.f32.mrf.mxu1 }
 0xfa3   :  { %v9675_v5 = vpop.f32.mrf.mxu0 }
 0xfa4   :  { %v11354_v17 = vadd.f32 %v9675_v5, %v2563_v7  ;;  %v11356_v6 = vpop.f32.mrf.mxu1 }
 0xfa5   :  { %v11358_v54 = vpop.f32.mrf.mxu0 }
 0xfa6   :  { %v11361_v46 = vpop.f32.mrf.mxu1 }
 0xfa7   :  { %v9678_v61 = vpop.f32.mrf.mxu0 }
 0xfa8   :  { %v11363_v47 = vadd.f32 %v9678_v61, %v2566_v14  ;;  %v11365_v11 = vpop.f32.mrf.mxu1 }
 0xfa9   :  { %v2667_v10 = vpop.f32.mrf.mxu0 }
 0xfaa   :  { %v11367_v12 = vadd.f32 %v2667_v10, %v2564_v35  ;;  %v11369_v16 = vpop.f32.mrf.mxu1 }
 0xfab   :  { %v9679_v7 = vpop.f32.mrf.mxu0 }
 0xfac   :  { %v11371_v21 = vadd.f32 %v9679_v7, %v2567_v13  ;;  %v11373_v27 = vpop.f32.mrf.mxu1 }
 0xfad   :  { %v11375_v1 = vpop.f32.mrf.mxu0 }
 0xfae   :  { %v11377_v8 = vpop.f32.mrf.mxu1 }
 0xfaf   :  { %v9682_v24 = vpop.f32.mrf.mxu0 }
 0xfb0   :  { %v11379_v62 = vadd.f32 %v9682_v24, %v2570_v33  ;;  %v11381_v14 = vpop.f32.mrf.mxu1 }
 0xfb1   :  { %v2683_v40 = vpop.f32.mrf.mxu0 }
 0xfb2   :  { %v11383_v25 = vadd.f32 %v2683_v40, %v2568_v44  ;;  %v11385_v35 = vpop.f32.mrf.mxu1 }
 0xfb3   :  { %v9683_v41 = vpop.f32.mrf.mxu0 }
 0xfb4   :  { %v11387_v32 = vadd.f32 %v9683_v41, %v2571_v55  ;;  %v11389_v13 = vpop.f32.mrf.mxu1 }
 0xfb5   :  { %v2686_v0 = vpop.f32.mrf.mxu0 }
 0xfb6   :  { %v11391_v31 = vpop.f32.mrf.mxu1 }
 0xfb7   :  { %v9686_v42 = vpop.f32.mrf.mxu0 }
 0xfb8   :  { %v11393_v15 = vpop.f32.mrf.mxu1 }
 0xfb9   :  { %v2699_v33 = vpop.f32.mrf.mxu0 }
 0xfba   :  { %v11395_v56 = vadd.f32 %v2699_v33, %v2572_v22  ;;  %v11397_v4 = vpop.f32.mrf.mxu1 }
 0xfbb   :  { %v9687_v44 = vpop.f32.mrf.mxu0 }
 0xfbc   :  { %14978 = vst [vmem:[#allocation33_spill] sm:$0xff] %v11395_v56  ;;  %v11399_v52 = vpop.f32.mrf.mxu1 }
 0xfbd   :  { %14979 = vst [vmem:[#allocation40_spill] sm:$0xff] %v11399_v52  ;;  %v2702_v28 = vpop.f32.mrf.mxu0 }
 0xfbe   :  { %v11401_v58 = vpop.f32.mrf.mxu1 }
 0xfbf   :  { %14980 = vst [vmem:[#allocation41_spill] sm:$0xff] %v11401_v58  ;;  %v9710_v55 = vpop.f32.mrf.mxu0 }
 0xfc0   :  { %v11403_v5 = vpop.f32.mrf.mxu1 }
 0xfc1   :  { %14981 = vst [vmem:[#allocation42_spill] sm:$0xff] %v11403_v5  ;;  %v2927_v61 = vpop.f32.mrf.mxu0 }
 0xfc2   :  { %v9728_v10 = vpop.f32.mrf.mxu1 }
 0xfc3   :  { %v9711_v7 = vpop.f32.mrf.mxu0 }
 0xfc4   :  { %v11405_v24 = vpop.f32.mrf.mxu1 }
 0xfc5   :  { %14982 = vst [vmem:[#allocation38_spill] sm:$0xff] %v11405_v24  ;;  %v2930_v40 = vpop.f32.mrf.mxu0  ;;  %v2176_v24 = vadd.f32 %v11296_v43, %v11294_v26  ;;  %v2224_v26 = vadd.f32 %v11314_v50, %v11312_v39  ;;  %v2870_v39 = vadd.f32 %v11349_v18, %v11343_v57  ;;  %v2871_v57 = vadd.f32 %v11361_v46, %v11354_v17 }
 0xfc6   :  { %v11407_v41 = vpop.f32.mrf.mxu1 }
 0xfc7   :  { %14983 = vst [vmem:[#allocation43_spill] sm:$0xff] %v11407_v41  ;;  %v9714_v22 = vpop.f32.mrf.mxu0  ;;  %v2993_v46 = vadd.f32 %v9711_v7, %v2871_v57 }
 0xfc8   :  { %v11409_v33 = vpop.f32.mrf.mxu1 }
 0xfc9   :  { %14984 = vst [vmem:[#allocation44_spill] sm:$0xff] %v11409_v33  ;;  %v11411_v60 = vpop.f32.mrf.mxu0  ;;  %v2192_v33 = vadd.f32 %v11300_v37, %v11298_v19 }
 0xfca   :  { %14985 = vst [vmem:[#allocation45_spill] sm:$0xff] %v11411_v60  ;;  %v11413_v20 = vpop.f32.mrf.mxu1 }
 0xfcb   :  { %14986 = vst [vmem:[#allocation46_spill] sm:$0xff] %v11413_v20  ;;  %v11415_v23 = vpop.f32.mrf.mxu0  ;;  %v2407_v20 = vadd.f32 %v11316_v59, %v2176_v24  ;;  %v2419_v24 = vadd.f32 %v11339_v48, %v2224_v26  ;;  %v2575_v48 = vadd.f32 %v11341_v53, %v11337_v49  ;;  %v2872_v49 = vadd.f32 %v11373_v27, %v11367_v12 }
 0xfcc   :  { %14987 = vst [vmem:[#allocation47_spill] sm:$0xff] %v11415_v23  ;;  %v11417_v58 = vpop.f32.mrf.mxu1  ;;  %v2876_v12 = vadd.f32 %v11389_v13, %v11383_v25  ;;  %v14995_v7 = vld [vmem:[#allocation38_spill] sm:$0xff] }
 0xfcd   :  { %14988 = vst [vmem:[#allocation48_spill] sm:$0xff] %v11417_v58  ;;  %v11419_v5 = vpop.f32.mrf.mxu0  ;;  %v2208_v58 = vadd.f32 %v11309_v2, %v11302_v29  ;;  %v2561_v19 = vadd.f32 %v11319_v9, %v2407_v20  ;;  %v2574_v20 = vadd.f32 %v11335_v51, %v11331_v38  ;;  %v2729_v53 = vadd.f32 %v9687_v44, %v2575_v48  ;;  %v14996_v25 = vld [vmem:[#allocation42_spill] sm:$0xff] }
 0xfce   :  { %14989 = vst [vmem:[#allocation49_spill] sm:$0xff] %v11419_v5  ;;  %v11421_v52 = vpop.f32.mrf.mxu1  ;;  %v14997_v26 = vld [vmem:[#allocation43_spill] sm:$0xff] }
 0xfcf   :  { %14990 = vst [vmem:[#allocation50_spill] sm:$0xff] %v11421_v52  ;;  %v11425_v56 = vpop.f32.mrf.mxu0  ;;  %v2411_v52 = vadd.f32 %v11324_v36, %v2192_v33  ;;  %v2415_v37 = vadd.f32 %v11329_v63, %v2208_v58  ;;  %v2715_v2 = vadd.f32 %v11358_v54, %v2561_v19  ;;  %v2573_v54 = vadd.f32 %v11345_v45, %v2419_v24 }
 0xfd0   :  { %v11427_v41 = vpop.f32.mrf.mxu1  ;;  %v2992_v58 = vadd.f32 %v9710_v55, %v2870_v39  ;;  %v2728_v33 = vadd.f32 %v9686_v42, %v2574_v20  ;;  %v15000_v24 = vld [vmem:[#allocation44_spill] sm:$0xff] }
 0xfd1   :  { %v11432_v60 = vpop.f32.mrf.mxu0  ;;  %v2565_v29 = vadd.f32 %v11327_v30, %v2411_v52  ;;  %v2569_v9 = vadd.f32 %v11333_v34, %v2415_v37  ;;  %v2868_v52 = vadd.f32 %v11356_v6, %v11347_v3  ;;  %v2869_v34 = vadd.f32 %v11365_v11, %v2715_v2 }
 0xfd2   :  { %v11434_v23 = vpop.f32.mrf.mxu1  ;;  %v2875_v3 = vadd.f32 %v11377_v8, %v11371_v21  ;;  %v2727_v6 = vadd.f32 %v2702_v28, %v2573_v54  ;;  %v3114_v42 = vadd.f32 %v9728_v10, %v2992_v58  ;;  %v2882_v21 = vadd.f32 %v11397_v4, %v2728_v33  ;;  %v14992_v28 = vld [vmem:[#allocation33_spill] sm:$0xff]  ;;  %v15001_v2 = vld [vmem:[#allocation46_spill] sm:$0xff] }
 0xfd3   :  { %14991 = vst [vmem:[#allocation51_spill] sm:$0xff] %v11434_v23  ;;  %v11439_v5 = vpop.f32.mrf.mxu0  ;;  %v2719_v30 = vadd.f32 %v11375_v1, %v2565_v29  ;;  %v2723_v18 = vadd.f32 %v2686_v0, %v2569_v9  ;;  %v2874_v1 = vadd.f32 %v11369_v16, %v11363_v47  ;;  %v2990_v45 = vadd.f32 %v2927_v61, %v2868_v52  ;;  %v14993_v61 = vld [vmem:[#allocation40_spill] sm:$0xff]  ;;  %v14999_v19 = vld [vmem:[#allocation47_spill] sm:$0xff] }
 0xfd4   :  { %v11443_v43 = vpop.f32.mrf.mxu1  ;;  %v2878_v0 = vadd.f32 %v11385_v35, %v11379_v62  ;;  %v2991_v55 = vadd.f32 %v2930_v40, %v2869_v34  ;;  %v2879_v16 = vadd.f32 %v11391_v31, %v11387_v32  ;;  %v2880_v62 = vadd.f32 %v14993_v61, %v14992_v28  ;;  %v14994_v35 = vld [vmem:[#allocation41_spill] sm:$0xff] }
 0xfd5   :  { %v11447_v59 = vpop.f32.mrf.mxu0  ;;  %v2873_v17 = vadd.f32 %v11381_v14, %v2719_v30  ;;  %v2996_v47 = vadd.f32 %v9714_v22, %v2874_v1  ;;  %v2877_v27 = vadd.f32 %v11393_v15, %v2723_v18  ;;  %v11495_v14 = vld [vmem:[%s11459_s30] ss:$0 sm:$0xff]  ;;  %v2883_v10 = vadd.f32 %v14994_v35, %v2729_v53  ;;  %v14998_v31 = vld [vmem:[#allocation45_spill] sm:$0xff]  ;;  %v15003_v53 = vld [vmem:[#allocation48_spill] sm:$0xff] }
 0xfd6   :  { %v11450_v23 = vpop.f32.mrf.mxu1  ;;  %v3112_v40 = vadd.f32 %v14995_v7, %v2990_v45  ;;  %v2881_v13 = vadd.f32 %v14996_v25, %v2727_v6  ;;  %v3115_v32 = vadd.f32 %v14997_v26, %v2993_v46  ;;  %v2994_v15 = vadd.f32 %v14998_v31, %v2872_v49  ;;  %v15002_v30 = vld [vmem:[#allocation49_spill] sm:$0xff] }
 0xfd7   :  { %v11454_v36 = vpop.f32.mrf.mxu0  ;;  %v2997_v4 = vadd.f32 %v14999_v19, %v2875_v3  ;;  %v3113_v29 = vadd.f32 %v15000_v24, %v2991_v55  ;;  %v3118_v39 = vadd.f32 %v15001_v2, %v2996_v47  ;;  %v2995_v48 = vadd.f32 %v15002_v30, %v2873_v17  ;;  %v15004_v3 = vld [vmem:[#allocation50_spill] sm:$0xff] }
 0xfd8   :  { %v11463_v50 = vpop.f32.mrf.mxu1  ;;  %v3000_v54 = vadd.f32 %v11425_v56, %v2878_v0  ;;  %v2998_v52 = vadd.f32 %v11432_v60, %v2876_v12  ;;  %v3001_v58 = vadd.f32 %v11439_v5, %v2879_v16  ;;  %v2999_v18 = vadd.f32 %v11447_v59, %v2877_v27  ;;  %v15006_v12 = vld [vmem:[#allocation14_spill] sm:$0xff] }
 0xfd9   :  { %v2975_v63 = vpop.f32.mrf.mxu0  ;;  %v3116_v45 = vadd.f32 %v15003_v53, %v2994_v15  ;;  %v3119_v6 = vadd.f32 %v15004_v3, %v2997_v4  ;;  %v3004_v17 = vadd.f32 %v11454_v36, %v2882_v21  ;;  %v3117_v55 = vadd.f32 %v11427_v41, %v2995_v48  ;;  %v15009_v4 = vld [vmem:[#allocation5_spill] sm:$0xff] }
 0xfda   :  { %v11477_v38 = vpop.f32.mrf.mxu1  ;;  %v3002_v46 = vadd.f32 %v2975_v63, %v2880_v62  ;;  %v15005_v59 = vld [vmem:[#allocation51_spill] sm:$0xff]  ;;  %v3120_v61 = vadd.f32 %v11443_v43, %v2998_v52  ;;  %v3123_v36 = vadd.f32 %v11450_v23, %v3001_v58  ;;  %v11526_v63 = vadd.f32 %v11463_v50, %v2999_v18  ;;  %v15007_v43 = vld [vmem:[#allocation6_spill] sm:$0xff]  ;;  %v15011_v52 = vld [vmem:[#allocation9_spill] sm:$0xff] }
 0xfdb   :  { %v9723_v51 = vpop.f32.mrf.mxu0  ;;  %v3122_v47 = vadd.f32 %v15005_v59, %v3000_v54 }
 0xfdc   :  { %v3097_v8 = vpop.f32.mrf.mxu1  ;;  %v3005_v0 = vadd.f32 %v9723_v51, %v2883_v10 }
 0xfdd   :  { %v2978_v11 = vpop.f32.mrf.mxu0  ;;  %v11531_v41 = vadd.f32 %v3097_v8, %v3002_v46 }
 0xfde   :  { %v9741_v57 = vpop.f32.mrf.mxu1  ;;  %v3003_v60 = vadd.f32 %v2978_v11, %v2881_v13  ;;  %v11529_v11 = vadd.f32 %v11477_v38, %v3004_v17 }
 0xfdf   :  { %v9746_v44 = vpop.f32.mrf.mxu0  ;;  %v11534_v10 = vadd.f32 %v9741_v57, %v3005_v0  ;;  %v15014_v0 = vld [vmem:[#allocation10_spill] sm:$0xff] }
 0xfe0   :  { %v3236_v22 = vadd.f32 %v9746_v44, %v3114_v42  ;;  %v3100_v27 = vpop.f32.mrf.mxu1 }
 0xfe1   :  { %v3171_v37 = vpop.f32.mrf.mxu0  ;;  %v11536_v7 = vadd.f32 %v3100_v27, %v3003_v60 }
 0xfe2   :  { %v3258_v9 = vadd.f32 %v11495_v14, %v3236_v22  ;;  %v3234_v20 = vadd.f32 %v3171_v37, %v3112_v40  ;;  %v15008_v22 = vld [vmem:[#allocation3_spill] sm:$0xff] }
 0xfe3   :  { %v9747_v34 = vpop.f32.mrf.mxu0 }
 0xfe4   :  { %v3274_v33 = vmax.f32 %v3258_v9, 0.0  ;;  %v3256_v1 = vadd.f32 %v11495_v14, %v3234_v20  ;;  %v3237_v49 = vadd.f32 %v9747_v34, %v3115_v32 }
 0xfe5   :  { %v3174_v56 = vpop.f32.mrf.mxu0 }
 0xfe6   :  { %v3259_v5 = vadd.f32 %v11495_v14, %v3237_v49  ;;  %v3235_v42 = vadd.f32 %v3174_v56, %v3113_v29  ;;  %v11521_v16 = vmul.f32 %v3274_v33, %v15006_v12  ;;  %v3272_v44 = vmax.f32 %v3256_v1, 0.0  ;;  %v15012_v33 = vld [vmem:[#allocation7_spill] sm:$0xff] }
 0xfe7   :  { %v9750_v28 = vpop.f32.mrf.mxu0 }
 0xfe8   :  { %v3275_v51 = vmax.f32 %v3259_v5, 0.0  ;;  %v3257_v21 = vadd.f32 %v11495_v14, %v3235_v42  ;;  %v3240_v62 = vadd.f32 %v9750_v28, %v3118_v39  ;;  %v3614_v50 = vrot.slane %v11521_v16, 1 }
 0xfe9   :  { %v3187_v35 = vpop.f32.mrf.mxu0  ;;  %v11543_v25 = vmul.f32 %v3272_v44, %v15008_v22  ;;  %v3307_v19 = vrot.slane %v11521_v16, 7 }
 0xfea   :  { %v11539_v40 = vmul.f32 %v3275_v51, %v15007_v43  ;;  %v3238_v23 = vadd.f32 %v3187_v35, %v3116_v45  ;;  %v3273_v38 = vmax.f32 %v3257_v21, 0.0  ;;  %v3262_v8 = vadd.f32 %v11495_v14, %v3240_v62  ;;  %v15017_v21 = vld [vmem:[#allocation8_spill] sm:$0xff] }
 0xfeb   :  { %v9751_v13 = vpop.f32.mrf.mxu0  ;;  %v14855_v34 = vrot.slane %v11543_v25, 7 }
 0xfec   :  { %v14856_v26 = vrot.slane %v11539_v40, 1  ;;  %v3260_v31 = vadd.f32 %v11495_v14, %v3238_v23  ;;  %v3241_v15 = vadd.f32 %v9751_v13, %v3119_v6  ;;  %v11552_v37 = vmul.f32 %v3273_v38, %v15009_v4 }
 0xfed   :  { %v3278_v24 = vmax.f32 %v3262_v8, 0.0  ;;  %v3190_v29 = vpop.f32.mrf.mxu0  ;;  %v3308_v2 = vrot.slane %v11539_v40, 7  ;;  %v15034_v4 = vrot.slane %v11543_v25, 1 }
 0xfee   :  { %v11561_v9 = vsel %vm2251_vm6, %v3614_v50, %v14856_v26  ;;  %v3276_v20 = vmax.f32 %v3260_v31, 0.0  ;;  %v3263_v30 = vadd.f32 %v11495_v14, %v3241_v15  ;;  %v3239_v48 = vadd.f32 %v3190_v29, %v3117_v55 }
 0xfef   :  { %v3306_v54 = vrot.slane %v11552_v37, 7  ;;  %v11566_v58 = vmul.f32 %v3278_v24, %v15011_v52  ;;  %v9754_v57 = vpop.f32.mrf.mxu0  ;;  %v11571_v18 = vsel %vm1943_vm5, %v3307_v19, %v3308_v2  ;;  %v11579_v3 = vpack.c.bf16 %v11521_v16, %v11552_v37 }
 0xff0   :  { %v11574_v1 = vmul.f32 %v3276_v20, %v15012_v33  ;;  %v3279_v49 = vmax.f32 %v3263_v30, 0.0  ;;  %v3261_v53 = vadd.f32 %v11495_v14, %v3239_v48  ;;  %v3244_v45 = vadd.f32 %v9754_v57, %v3122_v47 }
 0xff1   :  { %15013 = vst [vmem:[#allocation33_spill] sm:$0xff] %v11579_v3  ;;  %v3203_v6 = vpop.f32.mrf.mxu0  ;;  %v11585_v17 = vsel %vm1943_vm5, %v14855_v34, %v3306_v54  ;;  %v11589_v46 = vsel %vm1943_vm5, %v3306_v54, %v3307_v19  ;;  %v3311_v51 = vrot.slane %v11566_v58, 7  ;;  %v14857_v48 = vrot.slane %v11552_v37, 1  ;;  %v15019_v54 = vld [vmem:[#allocation21_spill] sm:$0xff] }
 0xff2   :  { %v11593_v60 = vmul.f32 %v3279_v49, %v15014_v0  ;;  %v3277_v5 = vmax.f32 %v3261_v53, 0.0  ;;  %v3266_v42 = vadd.f32 %v11495_v14, %v3244_v45  ;;  %v3242_v55 = vadd.f32 %v3203_v6, %v3120_v61  ;;  %v15020_v49 = vld [vmem:[#allocation12_spill] sm:$0xff] }
 0xff3   :  { %v9755_v59 = vpop.f32.mrf.mxu0  ;;  %v11598_v47 = vpack.c.bf16 %v11574_v1, %v11539_v40  ;;  %v11602_v27 = vpack.c.bf16 %v11589_v46, %v11585_v17  ;;  %v3309_v44 = vrot.slane %v11574_v1, 7  ;;  %v15033_v33 = vrot.slane %v11552_v37, 1 }
 0xff4   :  { %v11609_v62 = vmul.f32 %v3277_v5, %v15017_v21  ;;  %v3282_v61 = vmax.f32 %v3266_v42, 0.0  ;;  %v3264_v35 = vadd.f32 %v11495_v14, %v3242_v55  ;;  %v3245_v38 = vadd.f32 %v9755_v59, %v3123_v36 }
 0xff5   :  { %15015 = vst [vmem:[#allocation40_spill] sm:$0xff] %v11598_v47  ;;  %15016 = vst [vmem:[#allocation41_spill] sm:$0xff] %v11602_v27  ;;  %v3206_v8 = vpop.f32.mrf.mxu0  ;;  %v11615_v13 = vsel %vm1943_vm5, %v3308_v2, %v3309_v44  ;;  %v3312_v31 = vrot.slane %v11593_v60, 7  ;;  %v15030_v21 = vrot.slane %v11543_v25, 7 }
 0xff6   :  { %v3310_v19 = vrot.slane %v11609_v62, 7  ;;  %v3280_v24 = vmax.f32 %v3264_v35, 0.0  ;;  %v3243_v29 = vadd.f32 %v3206_v8, %v11526_v63  ;;  %v3267_v20 = vadd.f32 %v11495_v14, %v3245_v38 }
 0xff7   :  { %v9758_v30 = vpop.f32.mrf.mxu0  ;;  %v11624_v36 = vpack.c.bf16 %v11615_v13, %v11571_v18  ;;  %v11628_v2 = vsel %vm1943_vm5, %v3311_v51, %v3312_v31  ;;  %v11632_v57 = vmul.f32 %v3282_v61, %v15019_v54  ;;  %v11640_v45 = vpack.c.bf16 %v11566_v58, %v11609_v62 }
 0xff8   :  { %v11635_v53 = vmul.f32 %v3280_v24, %v15020_v49  ;;  %v3265_v63 = vadd.f32 %v11495_v14, %v3243_v29  ;;  %v3283_v6 = vmax.f32 %v3267_v20, 0.0  ;;  %v3248_v5 = vadd.f32 %v9758_v30, %v11529_v11  ;;  %v15021_v11 = vld [vmem:[#allocation25_spill] sm:$0xff] }
 0xff9   :  { %15018 = vst [vmem:[#allocation38_spill] sm:$0xff] %v11624_v36  ;;  %v3219_v42 = vpop.f32.mrf.mxu0  ;;  %v11645_v55 = vsel %vm1943_vm5, %v3310_v19, %v3311_v51  ;;  %v11649_v59 = vsel %vm1943_vm5, %v3309_v44, %v3310_v19  ;;  %v15022_v20 = vld [vmem:[#allocation17_spill] sm:$0xff]  ;;  %v3617_v0 = vrot.slane %v11609_v62, 1 }
 0xffa   :  { %v3281_v61 = vmax.f32 %v3265_v63, 0.0  ;;  %v3246_v35 = vadd.f32 %v3219_v42, %v11531_v41  ;;  %v11654_v38 = vpack.c.bf16 %v11635_v53, %v11593_v60  ;;  %v11658_v8 = vpack.c.bf16 %v11645_v55, %v11649_v59 }
 0xffb   :  { %v11661_v24 = vmul.f32 %v3283_v6, %v15021_v11  ;;  %v3270_v51 = vadd.f32 %v11495_v14, %v3248_v5  ;;  %v9759_v29 = vpop.f32.mrf.mxu0  ;;  %v3313_v44 = vrot.slane %v11635_v53, 7  ;;  %v3315_v41 = vrot.slane %v11632_v57, 7 }
 0xffc   :  { %v11669_v30 = vmul.f32 %v3281_v61, %v15022_v20  ;;  %v3268_v63 = vadd.f32 %v11495_v14, %v3246_v35  ;;  %v3249_v42 = vadd.f32 %v9759_v29, %v11534_v10  ;;  %v15023_v35 = vld [vmem:[#allocation29_spill] sm:$0xff] }
 0xffd   :  { %v3286_v32 = vmax.f32 %v3270_v51, 0.0  ;;  %v3222_v28 = vpop.f32.mrf.mxu0  ;;  %v11676_v5 = vsel %vm1943_vm5, %v3312_v31, %v3313_v44  ;;  %v3316_v23 = vrot.slane %v11661_v24, 7  ;;  %v11699_v51 = vsel %vm2251_vm6, %v14857_v48, %v3614_v50  ;;  %v15027_v50 = vld [vmem:[#allocation37_spill] sm:$0xff] }
 0xffe   :  { %v3314_v19 = vrot.slane %v11669_v30, 7  ;;  %v3284_v15 = vmax.f32 %v3268_v63, 0.0  ;;  %v3271_v61 = vadd.f32 %v11495_v14, %v3249_v42  ;;  %v3247_v56 = vadd.f32 %v3222_v28, %v11536_v7  ;;  %v15024_v7 = vld [vmem:[#allocation35_spill] sm:$0xff] }
 0xfff   :  { %v11683_v34 = vmul.f32 %v3286_v32, %v15023_v35  ;;  %v11687_v10 = vpack.c.bf16 %v11676_v5, %v11628_v2  ;;  %v11691_v31 = vsel %vm1943_vm5, %v3315_v41, %v3316_v23 }
0x1000   :  { %v11702_v28 = vmul.f32 %v3284_v15, %v15024_v7  ;;  %v3287_v32 = vmax.f32 %v3271_v61, 0.0  ;;  %v3269_v29 = vadd.f32 %v11495_v14, %v3247_v56  ;;  %v11707_v63 = vsel %vm1943_vm5, %v3314_v19, %v3315_v41  ;;  %v15026_v61 = vld [vmem:[#allocation4_spill] sm:$0xff] }
0x1001   :  { %v3626_v6 = vrot.slane %v11683_v34, 1  ;;  %v11713_v26 = vsel %vm1943_vm5, %v3313_v44, %v3314_v19  ;;  %v3319_v41 = vrot.slane %v11683_v34, 7  ;;  %v11732_v44 = vpack.c.bf16 %v11561_v9, %v11699_v51 }
0x1002   :  { %15025 = vst [vmem:[#allocation42_spill] sm:$0xff] %v11702_v28  ;;  %v3317_v15 = vrot.slane %v11702_v28, 7  ;;  %v11719_v48 = vmul.f32 %v3287_v32, %v15026_v61  ;;  %v3285_v14 = vmax.f32 %v3269_v29, 0.0  ;;  %v11723_v56 = vpack.c.bf16 %v11702_v28, %v11661_v24 }
0x1003   :  { %v11728_v42 = vpack.c.bf16 %v11707_v63, %v11713_v26  ;;  %v3616_v19 = vrot.slane %v11574_v1, 1 }
0x1004   :  { %v11736_v32 = vmul.f32 %v3285_v14, %v15027_v50  ;;  %v11740_v29 = vpack.c.bf16 %v11543_v25, %v11719_v48  ;;  %v3320_v11 = vrot.slane %v11719_v48, 7  ;;  %v11745_v54 = vsel %vm1943_vm5, %v3316_v23, %v3317_v15 }
0x1005   :  { %v11749_v7 = vpack.c.bf16 %v11745_v54, %v11691_v31  ;;  %v3627_v20 = vrot.slane %v11719_v48, 1  ;;  %v15029_v14 = vrot.slane %v11539_v40, 1 }
0x1006   :  { %15028 = vst [vmem:[#allocation43_spill] sm:$0xff] %v11740_v29  ;;  %v3318_v52 = vrot.slane %v11736_v32, 7  ;;  %v3625_v23 = vrot.slane %v11736_v32, 1  ;;  %9762 = vmatprep.mubr.msk.bf16.mxu1 %vm381_vm2, %v11740_v29  ;;  %v11765_v49 = vsel %vm1943_vm5, %v3319_v41, %v3320_v11  ;;  %v11771_v61 = vsel %vm1943_vm5, %v3320_v11, %v15030_v21  ;;  %v15037_v29 = vld [vmem:[#allocation34_spill] sm:$0xff] }
0x1007   :  { %v11757_v50 = vsel %vm2251_vm6, %v15029_v14, %v3616_v19  ;;  %9763 = vmatmul.mubr.msk.bf16.vlgmr.msra.gmra.mxu1 %vm381_vm2, %v11579_v3  ;;  %v11777_v14 = vpack.c.bf16 %v11771_v61, %v11765_v49  ;;  %v11781_v35 = vsel %vm2251_vm6, %v3626_v6, %v3627_v20  ;;  %v11789_v21 = vsel %vm2251_vm6, %v15034_v4, %v15033_v33  ;;  %v10368_v33 = vld [vmem:[%s11307_s25 + $0x20] sm:$0xff]  }
0x1008   :  { %15032 = vst [vmem:[#allocation47_spill] sm:$0xff] %v11781_v35  ;;  %v15035_v11 = vmov %v15034_v4  ;;  %9766 = vmatprep.mubr.msk.bf16.mxu1 %vm381_vm2, %v11598_v47  ;;  %v11801_v43 = vsel %vm1943_vm5, %v3318_v52, %v3319_v41  ;;  %v11805_v12 = vsel %vm1943_vm5, %v3317_v15, %v3318_v52  ;;  %9797 = vmatpush3.bf16.msra.mxu1 %v15037_v29  ;;  %v10369_v41 = vld [vmem:[%s11307_s25 + $0x28] sm:$0xff]   ;;  %v3621_v47 = vrot.slane %v11669_v30, 1 }
0x1009   :  { %15031 = vst [vmem:[#allocation45_spill] sm:$0xff] %v11777_v14  ;;  %v11795_v22 = vsel %vm2251_vm6, %v3627_v20, %v15035_v11  ;;  %v11810_v4 = vsel %vm2251_vm6, %v3625_v23, %v3626_v6  ;;  %v3620_v20 = vrot.slane %v11635_v53, 1  ;;  %v11816_v11 = vpack.c.bf16 %v11801_v43, %v11805_v12  ;;  %9780 = vmatprep.mubr.msk.bf16.mxu0 %vm381_vm2, %v11777_v14  ;;  %v15038_v3 = vld [vmem:[#allocation39_spill] sm:$0xff] }
0x100a   :  { %15036 = vst [vmem:[#allocation44_spill] sm:$0xff] %v11795_v22  ;;  %v11824_v15 = vpack.c.bf16 %v11789_v21, %v11795_v22  ;;  %v11828_v6 = vpack.c.bf16 %v11781_v35, %v11810_v4  ;;  %9781 = vmatmul.mubr.msk.bf16.vlgmr.msra.gmra.mxu0 %vm381_vm2, %v11602_v27  ;;  %v3798_v14 = vpack.c.bf16 %v11585_v17, %v11771_v61  ;;  %v15039_v17 = vrot.slane %v11593_v60, 1 }
0x100b   :  { %v11839_v52 = vsel %vm2251_vm6, %v3616_v19, %v3617_v0  ;;  %9784 = vmatprep.mubr.msk.bf16.mxu0 %vm381_vm2, %v11624_v36  ;;  %9815 = vmatpush3.bf16.msra.mxu0 %v15038_v3  ;;  %v3800_v29 = vpack.c.bf16 %v11649_v59, %v11615_v13  ;;  %v15040_v61 = vrot.slane %v11566_v58, 1  ;;  %v3802_v59 = vpack.c.bf16 %v11713_v26, %v11676_v5 }
0x100c   :  { %v11848_v27 = vpack.c.bf16 %v11839_v52, %v11757_v50  ;;  %9832 = vmatprep.subr.bf16.mxu1 %v10368_v33  ;;  %v15043_v35 = vmov %v15039_v17  ;;  %9850 = vmatprep.subr.bf16.mxu0 %v10369_v41 }
0x100d   :  { %v11858_v19 = vsel %vm2251_vm6, %v15040_v61, %v15039_v17  ;;  %v15042_v3 = vmov %v15040_v61  ;;  %v11871_v13 = vsel %vm2251_vm6, %v15043_v35, %v3620_v20  ;;  %v15044_v17 = vrot.slane %v11661_v24, 1 }
0x100e   :  { %15041 = vst [vmem:[#allocation46_spill] sm:$0xff] %v11858_v19  ;;  %v11865_v36 = vsel %vm2251_vm6, %v3617_v0, %v15042_v3  ;;  %v15045_v61 = vrot.slane %v11632_v57, 1  ;;  %v11889_v3 = vsel %vm2251_vm6, %v3620_v20, %v3621_v47  ;;  %v3624_v20 = vrot.slane %v11702_v28, 1 }
0x100f   :  { %v11885_v0 = vpack.c.bf16 %v11858_v19, %v11865_v36  ;;  %v3804_v35 = vpack.c.bf16 %v11805_v12, %v11745_v54  ;;  %9767 = vmatmul.mubr.msk.bf16.gmra.mxu1 %vm381_vm2, %v11640_v45  ;;  %v15047_v28 = vrot.slane %v11661_v24, 1  ;;  %v3955_v54 = vpack.c.bf16 %v11593_v60, %v11566_v58 }
0x1010   :  { %v11881_v22 = vsel %vm2251_vm6, %v15045_v61, %v15044_v17  ;;  %v15046_v26 = vmov %v15045_v61  ;;  %v11901_v17 = vpack.c.bf16 %v11889_v3, %v11871_v13  ;;  %9770 = vmatprep.mubr.msk.bf16.mxu1 %vm381_vm2, %v11654_v38  ;;  %v11920_v19 = vsel %vm2251_vm6, %v3624_v20, %v3625_v23 }
0x1011   :  { %v11897_v5 = vsel %vm2251_vm6, %v3621_v47, %v15046_v26  ;;  %v4106_v47 = vpack.c.bf16 %v11699_v51, %v11789_v21  ;;  %v4108_v26 = vpack.c.bf16 %v11865_v36, %v11839_v52  ;;  %v3631_v12 = vsel %vm2251_vm6, %v15047_v28, %v3624_v20 }
0x1012   :  { %v11905_v61 = vpack.c.bf16 %v11881_v22, %v11897_v5  ;;  %v11929_v51 = vpack.c.bf16 %v11920_v19, %v3631_v12  ;;  %v4111_v36 = vpack.c.bf16 %v3631_v12, %v11881_v22  ;;  %v4110_v21 = vpack.c.bf16 %v11897_v5, %v11889_v3  ;;  %9785 = vmatmul.mubr.msk.bf16.gmra.mxu0 %vm381_vm2, %v11658_v8 }
0x1013   :  { %v3957_v23 = vpack.c.bf16 %v11661_v24, %v11632_v57  ;;  %v4112_v28 = vpack.c.bf16 %v11810_v4, %v11920_v19  ;;  %v3959_v58 = vpack.c.bf16 %v11719_v48, %v11683_v34  ;;  %9788 = vmatprep.mubr.msk.bf16.mxu0 %vm381_vm2, %v11687_v10  ;;  %v11946_v22 = vpack.c.bf16 %v11632_v57, %v11669_v30  ;;  %v10370_v48 = vld [vmem:[%s11307_s25 + $0x30] sm:$0xff]  }
0x1014   :  { %v11958_v60 = vpack.c.bf16 %v11683_v34, %v11736_v32  ;;  %v10371_v34 = vld [vmem:[%s11307_s25 + $0x38] sm:$0xff]   ;;  %v15048_v57 = vpack.c.bf16 %v11571_v18, %v11589_v46  ;;  %v15049_v24 = vpack.c.bf16 %v11628_v2, %v11645_v55  ;;  %v15050_v18 = vpack.c.bf16 %v11691_v31, %v11707_v63  ;;  %v10372_v55 = vld [vmem:[%s11307_s25 + $0x40] sm:$0xff]  }
0x1015   :  { %v3952_v46 = vpack.c.bf16 %v11552_v37, %v11543_v25  ;;  %v15051_v2 = vpack.c.bf16 %v11765_v49, %v11801_v43  ;;  %v3954_v31 = vpack.c.bf16 %v11609_v62, %v11574_v1  ;;  %v15052_v63 = vpack.c.bf16 %v11539_v40, %v11521_v16  ;;  %v15054_v16 = vld [vmem:[#allocation46_spill] sm:$0xff]  ;;  %v15057_v1 = vld [vmem:[#allocation41_spill] sm:$0xff]  ;;  %v15058_v62 = vld [vmem:[#allocation44_spill] sm:$0xff] }
0x1016   :  { %v15053_v43 = vpack.c.bf16 %v11757_v50, %v11561_v9  ;;  %v3956_v25 = vpack.c.bf16 %v11669_v30, %v11635_v53  ;;  %v15055_v40 = vpack.c.bf16 %v11871_v13, %v15054_v16  ;;  %v15056_v37 = vld [vmem:[#allocation42_spill] sm:$0xff]  ;;  %v15059_v49 = vld [vmem:[#allocation47_spill] sm:$0xff]  ;;  %v15061_v30 = vld [vmem:[#allocation33_spill] sm:$0xff] }
0x1017   :  { %9771 = vmatmul.mubr.msk.bf16.gmra.mxu1 %vm381_vm2, %v11946_v22  ;;  %v3958_v9 = vpack.c.bf16 %v11736_v32, %v15056_v37  ;;  %v15060_v53 = vpack.c.bf16 %v15058_v62, %v15059_v49  ;;  %v15062_v50 = vld [vmem:[#allocation38_spill] sm:$0xff]  ;;  %v15063_v32 = vld [vmem:[#allocation40_spill] sm:$0xff] }
0x1018   :  { %9774 = vmatprep.mubr.msk.bf16.mxu1 %vm381_vm2, %v11723_v56 }
0x101a   :  { %9789 = vmatmul.mubr.msk.bf16.gmra.mxu0 %vm381_vm2, %v11728_v42 }
0x101b   :  { %9792 = vmatprep.mubr.msk.bf16.mxu0 %vm381_vm2, %v11749_v7 }
0x101f   :  { %9775 = vmatmul.mubr.msk.bf16.gmra.mxu1 %vm381_vm2, %v11958_v60 }
0x1020   :  { %9798 = vmatprep.mubr.msk.bf16.mxu1 %vm381_vm2, %v11824_v15 }
0x1022   :  { %9793 = vmatmul.mubr.msk.bf16.gmra.mxu0 %vm381_vm2, %v11816_v11 }
0x1023   :  { %9816 = vmatprep.mubr.msk.bf16.mxu0 %vm381_vm2, %v3798_v14 }
0x1027   :  { %9799 = vmatmul.mubr.msk.bf16.vlgmr.msra.gmra.mxu1 %vm381_vm2, %v11732_v44 }
0x1028   :  { %9802 = vmatprep.mubr.msk.bf16.mxu1 %vm381_vm2, %v11848_v27  ;;  %9833 = vmatpush3.bf16.msra.mxu1 %v10368_v33 }
0x1029   :  { %9868 = vmatprep.subr.bf16.mxu1 %v10370_v48 }
0x102a   :  { %9817 = vmatmul.mubr.msk.bf16.vlgmr.msra.gmra.mxu0 %vm381_vm2, %v15048_v57 }
0x102b   :  { %9820 = vmatprep.mubr.msk.bf16.mxu0 %vm381_vm2, %v3800_v29  ;;  %9851 = vmatpush3.bf16.msra.mxu0 %v10369_v41 }
0x102c   :  { %9886 = vmatprep.subr.bf16.mxu0 %v10371_v34 }
0x102f   :  { %9803 = vmatmul.mubr.msk.bf16.gmra.mxu1 %vm381_vm2, %v11885_v0 }
0x1030   :  { %9806 = vmatprep.mubr.msk.bf16.mxu1 %vm381_vm2, %v11901_v17 }
0x1032   :  { %9821 = vmatmul.mubr.msk.bf16.gmra.mxu0 %vm381_vm2, %v15049_v24 }
0x1033   :  { %9824 = vmatprep.mubr.msk.bf16.mxu0 %vm381_vm2, %v3802_v59 }
0x1037   :  { %9807 = vmatmul.mubr.msk.bf16.gmra.mxu1 %vm381_vm2, %v11905_v61 }
0x1038   :  { %9810 = vmatprep.mubr.msk.bf16.mxu1 %vm381_vm2, %v11929_v51 }
0x103a   :  { %9825 = vmatmul.mubr.msk.bf16.gmra.mxu0 %vm381_vm2, %v15050_v18 }
0x103b   :  { %9828 = vmatprep.mubr.msk.bf16.mxu0 %vm381_vm2, %v3804_v35 }
0x103f   :  { %9811 = vmatmul.mubr.msk.bf16.gmra.mxu1 %vm381_vm2, %v11828_v6 }
0x1040   :  { %9834 = vmatprep.mubr.msk.bf16.mxu1 %vm381_vm2, %v3952_v46 }
0x1042   :  { %9829 = vmatmul.mubr.msk.bf16.gmra.mxu0 %vm381_vm2, %v15051_v2  ;;  %v10373_v2 = vld [vmem:[%s12102_s4 + $0x8] sm:$0xff]  }
0x1043   :  { %9852 = vmatprep.mubr.msk.bf16.mxu0 %vm381_vm2, %v4106_v47 }
0x1047   :  { %9835 = vmatmul.mubr.msk.bf16.vlgmr.msra.gmra.mxu1 %vm381_vm2, %v15052_v63 }
0x1048   :  { %9838 = vmatprep.mubr.msk.bf16.mxu1 %vm381_vm2, %v3954_v31  ;;  %9869 = vmatpush3.bf16.msra.mxu1 %v10370_v48 }
0x1049   :  { %9904 = vmatprep.subr.bf16.mxu1 %v10372_v55 }
0x104a   :  { %9853 = vmatmul.mubr.msk.bf16.vlgmr.msra.gmra.mxu0 %vm381_vm2, %v15053_v43 }
0x104b   :  { %9856 = vmatprep.mubr.msk.bf16.mxu0 %vm381_vm2, %v4108_v26  ;;  %9887 = vmatpush3.bf16.msra.mxu0 %v10371_v34 }
0x104c   :  { %9922 = vmatprep.subr.bf16.mxu0 %v10373_v2 }
0x104f   :  { %9839 = vmatmul.mubr.msk.bf16.gmra.mxu1 %vm381_vm2, %v3955_v54 }
0x1050   :  { %9842 = vmatprep.mubr.msk.bf16.mxu1 %vm381_vm2, %v3956_v25 }
0x1052   :  { %9857 = vmatmul.mubr.msk.bf16.gmra.mxu0 %vm381_vm2, %v15055_v40 }
0x1053   :  { %9860 = vmatprep.mubr.msk.bf16.mxu0 %vm381_vm2, %v4110_v21 }
0x1057   :  { %9843 = vmatmul.mubr.msk.bf16.gmra.mxu1 %vm381_vm2, %v3957_v23 }
0x1058   :  { %9846 = vmatprep.mubr.msk.bf16.mxu1 %vm381_vm2, %v3958_v9 }
0x105a   :  { %9861 = vmatmul.mubr.msk.bf16.gmra.mxu0 %vm381_vm2, %v4111_v36 }
0x105b   :  { %9864 = vmatprep.mubr.msk.bf16.mxu0 %vm381_vm2, %v4112_v28 }
0x105f   :  { %9847 = vmatmul.mubr.msk.bf16.gmra.mxu1 %vm381_vm2, %v3959_v58 }
0x1060   :  { %9870 = vmatprep.mubr.msk.bf16.mxu1 %vm381_vm2, %v15057_v1 }
0x1062   :  { %9865 = vmatmul.mubr.msk.bf16.gmra.mxu0 %vm381_vm2, %v15060_v53 }
0x1063   :  { %9888 = vmatprep.mubr.msk.bf16.mxu0 %vm381_vm2, %v15061_v30 }
0x1067   :  { %9871 = vmatmul.mubr.msk.bf16.vlgmr.msra.gmra.mxu1 %vm381_vm2, %v15062_v50 }
0x1068   :  { %9874 = vmatprep.mubr.msk.bf16.mxu1 %vm381_vm2, %v11658_v8  ;;  %9905 = vmatpush3.bf16.msra.mxu1 %v10372_v55 }
0x106a   :  { %9889 = vmatmul.mubr.msk.bf16.vlgmr.msra.gmra.mxu0 %vm381_vm2, %v15063_v32 }
0x106b   :  { %9892 = vmatprep.mubr.msk.bf16.mxu0 %vm381_vm2, %v11640_v45  ;;  %v15064_v45 = vld [vmem:[#allocation45_spill] sm:$0xff]  ;;  %9923 = vmatpush3.bf16.msra.mxu0 %v10373_v2 }
0x106f   :  { %9875 = vmatmul.mubr.msk.bf16.gmra.mxu1 %vm381_vm2, %v11687_v10 }
0x1070   :  { %9878 = vmatprep.mubr.msk.bf16.mxu1 %vm381_vm2, %v11728_v42 }
0x1072   :  { %9893 = vmatmul.mubr.msk.bf16.gmra.mxu0 %vm381_vm2, %v11654_v38  ;;  %v15065_v38 = vld [vmem:[#allocation43_spill] sm:$0xff] }
0x1073   :  { %9896 = vmatprep.mubr.msk.bf16.mxu0 %vm381_vm2, %v11946_v22 }
0x1077   :  { %9879 = vmatmul.mubr.msk.bf16.gmra.mxu1 %vm381_vm2, %v11749_v7 }
0x1078   :  { %9882 = vmatprep.mubr.msk.bf16.mxu1 %vm381_vm2, %v11816_v11 }
0x107a   :  { %9897 = vmatmul.mubr.msk.bf16.gmra.mxu0 %vm381_vm2, %v11723_v56 }
0x107b   :  { %9900 = vmatprep.mubr.msk.bf16.mxu0 %vm381_vm2, %v11958_v60 }
0x107f   :  { %9883 = vmatmul.mubr.msk.bf16.gmra.mxu1 %vm381_vm2, %v15064_v45  ;;  %v10374_v45 = vld [vmem:[%s12102_s4] sm:$0xff]  }
0x1080   :  { %9906 = vmatprep.mubr.msk.bf16.mxu1 %vm381_vm2, %v11732_v44  ;;  %9940 = vmatprep.subr.bf16.mxu1 %v10374_v45 }
0x1082   :  { %9901 = vmatmul.mubr.msk.bf16.gmra.mxu0 %vm381_vm2, %v15065_v38 }
0x1087   :  { %9907 = vmatmul.mubr.msk.bf16.vlgmr.msra.gmra.mxu1 %vm381_vm2, %v11848_v27 }
0x1088   :  { %9910 = vmatprep.mubr.msk.bf16.mxu1 %vm381_vm2, %v11885_v0  ;;  %9941 = vmatpush3.bf16.msra.mxu1 %v10374_v45 }
0x108f   :  { %9911 = vmatmul.mubr.msk.bf16.gmra.mxu1 %vm381_vm2, %v11901_v17 }
0x1090   :  { %9914 = vmatprep.mubr.msk.bf16.mxu1 %vm381_vm2, %v11905_v61 }
0x1097   :  { %9915 = vmatmul.mubr.msk.bf16.gmra.mxu1 %vm381_vm2, %v11929_v51 }
0x1098   :  { %9918 = vmatprep.mubr.msk.bf16.mxu1 %vm381_vm2, %v11828_v6 }
0x109f   :  { %9919 = vmatmul.mubr.msk.bf16.gmra.mxu1 %vm381_vm2, %v11824_v15 }
0x10c7   :  { %v9764_v8 = vpop.f32.mrf.mxu1 }
0x10c9   :  { %v3422_v27 = vpop.f32.mrf.mxu1 }
0x10ca   :  { %v9782_v10 = vpop.f32.mrf.mxu0 }
0x10cb   :  { %v3558_v7 = vadd.f32 %v9782_v10, %v9764_v8  ;;  %v9765_v42 = vpop.f32.mrf.mxu1 }
0x10cc   :  { %v3549_v56 = vpop.f32.mrf.mxu0 }
0x10cd   :  { %v3550_v44 = vadd.f32 %v3549_v56, %v3422_v27  ;;  %v12087_v14 = vpop.f32.mrf.mxu1 }
0x10ce   :  { %v9783_v4 = vpop.f32.mrf.mxu0 }
0x10cf   :  { %v3561_v33 = vadd.f32 %v9783_v4, %v9765_v42  ;;  %v9768_v11 = vpop.f32.mrf.mxu1 }
0x10d0   :  { %v12089_v52 = vpop.f32.mrf.mxu0 }
0x10d1   :  { %v3438_v41 = vpop.f32.mrf.mxu1 }
0x10d2   :  { %v9786_v29 = vpop.f32.mrf.mxu0 }
0x10d3   :  { %v3574_v6 = vadd.f32 %v9786_v29, %v9768_v11  ;;  %v9769_v19 = vpop.f32.mrf.mxu1 }
0x10d4   :  { %v3565_v13 = vpop.f32.mrf.mxu0 }
0x10d5   :  { %v3566_v15 = vadd.f32 %v3565_v13, %v3438_v41  ;;  %v12091_v59 = vpop.f32.mrf.mxu1 }
0x10d6   :  { %v9787_v0 = vpop.f32.mrf.mxu0 }
0x10d7   :  { %v3577_v3 = vadd.f32 %v9787_v0, %v9769_v19  ;;  %v9772_v35 = vpop.f32.mrf.mxu1 }
0x10d8   :  { %v12093_v5 = vpop.f32.mrf.mxu0 }
0x10d9   :  { %v3454_v17 = vpop.f32.mrf.mxu1 }
0x10da   :  { %v9790_v61 = vpop.f32.mrf.mxu0 }
0x10db   :  { %v3590_v20 = vadd.f32 %v9790_v61, %v9772_v35  ;;  %v9773_v47 = vpop.f32.mrf.mxu1 }
0x10dc   :  { %v3581_v26 = vpop.f32.mrf.mxu0 }
0x10dd   :  { %v3582_v12 = vadd.f32 %v3581_v26, %v3454_v17  ;;  %v12095_v54 = vpop.f32.mrf.mxu1 }
0x10de   :  { %v9791_v51 = vpop.f32.mrf.mxu0 }
0x10df   :  { %v3593_v36 = vadd.f32 %v9791_v51, %v9773_v47  ;;  %v9776_v21 = vpop.f32.mrf.mxu1 }
0x10e0   :  { %v12097_v23 = vpop.f32.mrf.mxu0 }
0x10e1   :  { %v3470_v28 = vpop.f32.mrf.mxu1 }
0x10e2   :  { %v9794_v58 = vpop.f32.mrf.mxu0 }
0x10e3   :  { %v3606_v22 = vadd.f32 %v9794_v58, %v9776_v21  ;;  %v9777_v60 = vpop.f32.mrf.mxu1 }
0x10e4   :  { %v3597_v48 = vpop.f32.mrf.mxu0 }
0x10e5   :  { %v3598_v34 = vadd.f32 %v3597_v48, %v3470_v28  ;;  %v12104_v57 = vpop.f32.mrf.mxu1 }
0x10e6   :  { %v9795_v24 = vpop.f32.mrf.mxu0 }
0x10e7   :  { %v3609_v18 = vadd.f32 %v9795_v24, %v9777_v60  ;;  %v9800_v46 = vpop.f32.mrf.mxu1 }
0x10e8   :  { %v3784_v55 = vadd.f32 %v9800_v46, %v3558_v7  ;;  %v12107_v31 = vpop.f32.mrf.mxu0 }
0x10e9   :  { %v3719_v63 = vpop.f32.mrf.mxu1 }
0x10ea   :  { %v3782_v43 = vadd.f32 %v3719_v63, %v3550_v44  ;;  %v9818_v25 = vpop.f32.mrf.mxu0 }
0x10eb   :  { %v3938_v16 = vadd.f32 %v9818_v25, %v3784_v55  ;;  %v9801_v40 = vpop.f32.mrf.mxu1 }
0x10ec   :  { %v3785_v37 = vadd.f32 %v9801_v40, %v3561_v33  ;;  %v3873_v9 = vpop.f32.mrf.mxu0  ;;  %v12117_v33 = vld [vmem:[%s12102_s4 + $0x10] sm:$0xff]  }
0x10ed   :  { %v3936_v1 = vadd.f32 %v3873_v9, %v3782_v43  ;;  %v12109_v62 = vpop.f32.mrf.mxu1  ;;  %15066 = vst [vmem:[#allocation49_spill] sm:$0xff] %v12117_v33  ;;  %9958 = vmatprep.subr.bf16.mxu0 %v12117_v33 }
0x10ee   :  { %v9819_v49 = vpop.f32.mrf.mxu0 }
0x10ef   :  { %v3939_v53 = vadd.f32 %v9819_v49, %v3785_v37  ;;  %v9804_v30 = vpop.f32.mrf.mxu1 }
0x10f0   :  { %v3788_v50 = vadd.f32 %v9804_v30, %v3574_v6  ;;  %v12111_v32 = vpop.f32.mrf.mxu0 }
0x10f1   :  { %v3735_v38 = vpop.f32.mrf.mxu1 }
0x10f2   :  { %v3786_v8 = vadd.f32 %v3735_v38, %v3566_v15  ;;  %v9822_v27 = vpop.f32.mrf.mxu0 }
0x10f3   :  { %v3942_v10 = vadd.f32 %v9822_v27, %v3788_v50  ;;  %v9805_v7 = vpop.f32.mrf.mxu1  ;;  %v12149_v50 = vld [vmem:[%s12102_s4 + $0x18] sm:$0xff]  }
0x10f4   :  { %v3789_v42 = vadd.f32 %v9805_v7, %v3577_v3  ;;  %v3889_v56 = vpop.f32.mrf.mxu0  ;;  %15068 = vst [vmem:[#allocation50_spill] sm:$0xff] %v12149_v50  ;;  %9976 = vmatprep.subr.bf16.mxu1 %v12149_v50 }
0x10f5   :  { %v3940_v44 = vadd.f32 %v3889_v56, %v3786_v8  ;;  %v12114_v4 = vpop.f32.mrf.mxu1 }
0x10f6   :  { %v9823_v11 = vpop.f32.mrf.mxu0 }
0x10f7   :  { %v3943_v41 = vadd.f32 %v9823_v11, %v3789_v42  ;;  %v9808_v29 = vpop.f32.mrf.mxu1 }
0x10f8   :  { %v3792_v6 = vadd.f32 %v9808_v29, %v3590_v20  ;;  %v12120_v19 = vpop.f32.mrf.mxu0 }
0x10f9   :  { %v3751_v13 = vpop.f32.mrf.mxu1 }
0x10fa   :  { %v3790_v15 = vadd.f32 %v3751_v13, %v3582_v12  ;;  %v9826_v0 = vpop.f32.mrf.mxu0 }
0x10fb   :  { %v3946_v35 = vadd.f32 %v9826_v0, %v3792_v6  ;;  %v9809_v17 = vpop.f32.mrf.mxu1 }
0x10fc   :  { %v3793_v3 = vadd.f32 %v9809_v17, %v3593_v36  ;;  %v3905_v61 = vpop.f32.mrf.mxu0 }
0x10fd   :  { %v3944_v47 = vadd.f32 %v3905_v61, %v3790_v15  ;;  %v12122_v26 = vpop.f32.mrf.mxu1 }
0x10fe   :  { %v9827_v51 = vpop.f32.mrf.mxu0 }
0x10ff   :  { %v3947_v21 = vadd.f32 %v9827_v51, %v3793_v3  ;;  %v9812_v28 = vpop.f32.mrf.mxu1 }
0x1100   :  { %v12124_v58 = vadd.f32 %v9812_v28, %v3606_v22  ;;  %v12126_v60 = vpop.f32.mrf.mxu0 }
0x1101   :  { %v3767_v20 = vpop.f32.mrf.mxu1 }
0x1102   :  { %v3794_v48 = vadd.f32 %v3767_v20, %v3598_v34  ;;  %v12128_v24 = vpop.f32.mrf.mxu0 }
0x1103   :  { %v9813_v12 = vpop.f32.mrf.mxu1 }
0x1104   :  { %v12130_v46 = vadd.f32 %v9813_v12, %v3609_v18  ;;  %v3921_v36 = vpop.f32.mrf.mxu0 }
0x1105   :  { %v3948_v2 = vadd.f32 %v3921_v36, %v3794_v48  ;;  %v12132_v55 = vpop.f32.mrf.mxu1 }
0x1106   :  { %v12134_v63 = vpop.f32.mrf.mxu0 }
0x1107   :  { %v9836_v43 = vpop.f32.mrf.mxu1 }
0x1108   :  { %v12136_v25 = vadd.f32 %v9836_v43, %v3938_v16  ;;  %v12138_v22 = vpop.f32.mrf.mxu0 }
0x1109   :  { %15067 = vst [vmem:[#allocation48_spill] sm:$0xff] %v12138_v22  ;;  %v4027_v40 = vpop.f32.mrf.mxu1 }
0x110a   :  { %v12140_v37 = vadd.f32 %v4027_v40, %v3936_v1  ;;  %v9854_v34 = vpop.f32.mrf.mxu0 }
0x110b   :  { %v9837_v9 = vpop.f32.mrf.mxu1 }
0x110c   :  { %v12142_v49 = vadd.f32 %v9837_v9, %v3939_v53  ;;  %v12144_v18 = vpop.f32.mrf.mxu0 }
0x110d   :  { %v12146_v30 = vpop.f32.mrf.mxu1 }
0x110e   :  { %v12151_v45 = vpop.f32.mrf.mxu0 }
0x110f   :  { %v9840_v38 = vpop.f32.mrf.mxu1 }
0x1110   :  { %v12154_v16 = vadd.f32 %v9840_v38, %v3942_v10  ;;  %v12156_v8 = vpop.f32.mrf.mxu0 }
0x1111   :  { %v4043_v1 = vpop.f32.mrf.mxu1 }
0x1112   :  { %v12158_v27 = vadd.f32 %v4043_v1, %v3940_v44  ;;  %v12160_v53 = vpop.f32.mrf.mxu0 }
0x1113   :  { %v9841_v7 = vpop.f32.mrf.mxu1 }
0x1114   :  { %v12162_v42 = vadd.f32 %v9841_v7, %v3943_v41  ;;  %v12164_v56 = vpop.f32.mrf.mxu0 }
0x1115   :  { %v12166_v11 = vpop.f32.mrf.mxu1 }
0x1116   :  { %v12168_v29 = vpop.f32.mrf.mxu0 }
0x1117   :  { %v9844_v6 = vpop.f32.mrf.mxu1 }
0x1118   :  { %v12170_v13 = vadd.f32 %v9844_v6, %v3946_v35  ;;  %v12172_v10 = vpop.f32.mrf.mxu0 }
0x1119   :  { %v4059_v15 = vpop.f32.mrf.mxu1 }
0x111a   :  { %15069 = vst [vmem:[#allocation51_spill] sm:$0xff] %v12170_v13  ;;  %v12174_v0 = vadd.f32 %v4059_v15, %v3944_v47  ;;  %v12176_v44 = vpop.f32.mrf.mxu0 }
0x111b   :  { %15070 = vst [vmem:[#allocation34_spill] sm:$0xff] %v12176_v44  ;;  %v9845_v17 = vpop.f32.mrf.mxu1 }
0x111c   :  { %v12178_v3 = vadd.f32 %v9845_v17, %v3947_v21  ;;  %v12180_v41 = vpop.f32.mrf.mxu0 }
0x111d   :  { %v12182_v61 = vpop.f32.mrf.mxu1 }
0x111e   :  { %15071 = vst [vmem:[#allocation39_spill] sm:$0xff] %v12178_v3  ;;  %v12184_v51 = vpop.f32.mrf.mxu0 }
0x111f   :  { %15072 = vst [vmem:[#allocation46_spill] sm:$0xff] %v12184_v51  ;;  %v12186_v28 = vpop.f32.mrf.mxu1 }
0x1120   :  { %v12188_v35 = vpop.f32.mrf.mxu0 }
0x1121   :  { %15073 = vst [vmem:[#allocation42_spill] sm:$0xff] %v12188_v35  ;;  %v4075_v20 = vpop.f32.mrf.mxu1 }
0x1122   :  { %v12190_v48 = vadd.f32 %v4075_v20, %v3948_v2  ;;  %v12192_v47 = vpop.f32.mrf.mxu0 }
0x1123   :  { %v12194_v12 = vpop.f32.mrf.mxu1 }
0x1124   :  { %15074 = vst [vmem:[#allocation41_spill] sm:$0xff] %v12190_v48  ;;  %v12196_v36 = vpop.f32.mrf.mxu0 }
0x1125   :  { %15075 = vst [vmem:[#allocation44_spill] sm:$0xff] %v12196_v36  ;;  %v12198_v21 = vpop.f32.mrf.mxu1 }
0x1126   :  { %15076 = vst [vmem:[#allocation47_spill] sm:$0xff] %v12198_v21  ;;  %v12200_v43 = vpop.f32.mrf.mxu0 }
0x1127   :  { %15077 = vst [vmem:[#allocation33_spill] sm:$0xff] %v12200_v43  ;;  %v9872_v40 = vpop.f32.mrf.mxu1 }
0x1128   :  { %v12202_v9 = vpop.f32.mrf.mxu0 }
0x1129   :  { %15078 = vst [vmem:[#allocation38_spill] sm:$0xff] %v12202_v9  ;;  %v4303_v38 = vpop.f32.mrf.mxu1 }
0x112a   :  { %v9890_v1 = vpop.f32.mrf.mxu0 }
0x112b   :  { %v9873_v7 = vpop.f32.mrf.mxu1 }
0x112c   :  { %v12204_v6 = vpop.f32.mrf.mxu0 }
0x112d   :  { %v4306_v2 = vpop.f32.mrf.mxu1 }
0x112e   :  { %v9891_v15 = vpop.f32.mrf.mxu0 }
0x112f   :  { %v12206_v17 = vpop.f32.mrf.mxu1 }
0x1130   :  { %v4428_v50 = vpop.f32.mrf.mxu0 }
0x1131   :  { %v4319_v20 = vpop.f32.mrf.mxu1 }
0x1132   :  { %v12212_v21 = vpop.f32.mrf.mxu0 }
0x1133   :  { %v12208_v33 = vpop.f32.mrf.mxu1  ;;  %15080 = vst [vmem:[#allocation45_spill] sm:$0xff] %v12212_v21  ;;  %v4246_v21 = vadd.f32 %v9854_v34, %v12136_v25 }
0x1134   :  { %v4441_v36 = vpop.f32.mrf.mxu0 }
0x1135   :  { %v12210_v39 = vpop.f32.mrf.mxu1  ;;  %v4368_v13 = vadd.f32 %v9872_v40, %v4246_v21 }
0x1136   :  { %15079 = vst [vmem:[#allocation40_spill] sm:$0xff] %v12210_v39  ;;  %v12222_v51 = vpop.f32.mrf.mxu0 }
0x1137   :  { %v12214_v43 = vpop.f32.mrf.mxu1  ;;  %15085 = vst [vmem:[#allocation55_spill] sm:$0xff] %v12222_v51  ;;  %v4490_v22 = vadd.f32 %v9890_v1, %v4368_v13 }
0x1138   :  { %15081 = vst [vmem:[#allocation43_spill] sm:$0xff] %v12214_v43  ;;  %v3553_v43 = vadd.f32 %v12089_v52, %v12087_v14  ;;  %v12246_v14 = vld [vmem:[%s8532_s8] ss:$0 sm:$0xff] }
0x1139   :  { %v12216_v9 = vpop.f32.mrf.mxu1 }
0x113a   :  { %15082 = vst [vmem:[#allocation52_spill] sm:$0xff] %v12216_v9 }
0x113b   :  { %v12218_v48 = vpop.f32.mrf.mxu1 }
0x113c   :  { %15083 = vst [vmem:[#allocation53_spill] sm:$0xff] %v12218_v48  ;;  %v3783_v48 = vadd.f32 %v12109_v62, %v3553_v43 }
0x113d   :  { %v12220_v35 = vpop.f32.mrf.mxu1 }
0x113e   :  { %15084 = vst [vmem:[#allocation54_spill] sm:$0xff] %v12220_v35  ;;  %v12235_v35 = vpop.f32.mrf.mxu0  ;;  %v3937_v25 = vadd.f32 %v12111_v32, %v3783_v48 }
0x113f   :  { %v12224_v3 = vpop.f32.mrf.mxu1 }
0x1140   :  { %15086 = vst [vmem:[#allocation56_spill] sm:$0xff] %v12224_v3  ;;  %v4247_v3 = vadd.f32 %v12151_v45, %v12142_v49  ;;  %v12244_v34 = vpop.f32.mrf.mxu0  ;;  %v4091_v62 = vadd.f32 %v12146_v30, %v3937_v25  ;;  %v3569_v49 = vadd.f32 %v12093_v5, %v12091_v59  ;;  %v3585_v59 = vadd.f32 %v12097_v23, %v12095_v54 }
0x1141   :  { %v12232_v44 = vpop.f32.mrf.mxu1  ;;  %v4248_v5 = vadd.f32 %v12164_v56, %v12158_v27  ;;  %v3950_v23 = vadd.f32 %v12128_v24, %v12124_v58  ;;  %v15093_v58 = vld [vmem:[#allocation6_spill] sm:$0xff] }
0x1142   :  { %15087 = vst [vmem:[#allocation57_spill] sm:$0xff] %v12232_v44  ;;  %v4369_v39 = vadd.f32 %v9873_v7, %v4247_v3  ;;  %v12252_v45 = vpop.f32.mrf.mxu0  ;;  %v15088_v3 = vld [vmem:[#allocation11_spill] sm:$0xff]  ;;  %v3787_v1 = vadd.f32 %v12114_v4, %v3569_v49  ;;  %v4245_v30 = vadd.f32 %v12156_v8, %v4091_v62 }
0x1143   :  { %v12237_v51 = vpop.f32.mrf.mxu1  ;;  %v4370_v62 = vadd.f32 %v4319_v20, %v4248_v5  ;;  %v15092_v20 = vld [vmem:[#allocation14_spill] sm:$0xff] }
0x1144   :  { %v4491_v40 = vadd.f32 %v9891_v15, %v4369_v39  ;;  %v12266_v25 = vpop.f32.mrf.mxu0  ;;  %v3941_v8 = vadd.f32 %v12120_v19, %v3787_v1  ;;  %v3601_v19 = vadd.f32 %v12107_v31, %v12104_v57  ;;  %v3951_v31 = vadd.f32 %v12134_v63, %v12130_v46 }
0x1145   :  { %v12241_v9 = vpop.f32.mrf.mxu1  ;;  %v4252_v46 = vadd.f32 %v12180_v41, %v12174_v0 }
0x1146   :  { %v4095_v56 = vadd.f32 %v12166_v11, %v3941_v8  ;;  %v4492_v11 = vadd.f32 %v4441_v36, %v4370_v62  ;;  %v3795_v57 = vadd.f32 %v12132_v55, %v3601_v19  ;;  %v4105_v63 = vadd.f32 %v12194_v12, %v3951_v31  ;;  %v15100_v8 = vld [vmem:[#allocation39_spill] sm:$0xff] }
0x1147   :  { %v9908_v52 = vpop.f32.mrf.mxu1  ;;  %v15097_v0 = vld [vmem:[#allocation56_spill] sm:$0xff]  ;;  %v15108_v31 = vld [vmem:[#allocation55_spill] sm:$0xff] }
0x1148   :  { %v4612_v21 = vadd.f32 %v9908_v52, %v4490_v22  ;;  %v4244_v22 = vadd.f32 %v12144_v18, %v12140_v37  ;;  %v15090_v37 = vld [vmem:[#allocation15_spill] sm:$0xff] }
0x1149   :  { %v4547_v43 = vpop.f32.mrf.mxu1 }
0x114a   :  { %v4634_v44 = vadd.f32 %v12246_v14, %v4612_v21  ;;  %v4366_v15 = vadd.f32 %v4303_v38, %v4244_v22  ;;  %v3791_v21 = vadd.f32 %v12122_v26, %v3585_v59  ;;  %v4104_v26 = vadd.f32 %v12186_v28, %v3950_v23  ;;  %v15095_v59 = vld [vmem:[#allocation48_spill] sm:$0xff] }
0x114b   :  { %v9909_v13 = vpop.f32.mrf.mxu1  ;;  %v4250_v28 = vadd.f32 %v12160_v53, %v12154_v16  ;;  %v4251_v22 = vadd.f32 %v12168_v29, %v12162_v42  ;;  %v15094_v42 = vld [vmem:[#allocation40_spill] sm:$0xff]  ;;  %v3949_v5 = vadd.f32 %v15095_v59, %v3795_v57 }
0x114c   :  { %v12255_v32 = vadd.f32 %v15088_v3, %v4634_v44  ;;  %v4613_v48 = vadd.f32 %v9909_v13, %v4491_v40  ;;  %v4367_v44 = vadd.f32 %v4306_v2, %v4245_v30  ;;  %v4488_v38 = vadd.f32 %v12204_v6, %v4366_v15  ;;  %v12281_v40 = vpop.f32.mrf.mxu0  ;;  %v15096_v15 = vld [vmem:[#allocation52_spill] sm:$0xff] }
0x114d   :  { %v4550_v39 = vpop.f32.mrf.mxu1  ;;  %v4258_v55 = vadd.f32 %v12192_v47, %v4104_v26  ;;  %v4372_v16 = vadd.f32 %v12206_v17, %v4250_v28  ;;  %v4373_v53 = vadd.f32 %v12208_v33, %v4251_v22  ;;  %v15098_v47 = vld [vmem:[#allocation51_spill] sm:$0xff]  ;;  %v15101_v17 = vld [vmem:[#allocation46_spill] sm:$0xff] }
0x114e   :  { %15089 = vst [vmem:[#allocation11_spill] sm:$0xff] %v12255_v32  ;;  %v4635_v7 = vadd.f32 %v12246_v14, %v4613_v48  ;;  %v14881_v4 = vmax.f32 %v12255_v32, 0.0  ;;  %v4489_v2 = vadd.f32 %v4428_v50, %v4367_v44  ;;  %v3945_v50 = vadd.f32 %v12126_v60, %v3791_v21  ;;  %v15102_v33 = vld [vmem:[#allocation42_spill] sm:$0xff]  ;;  %v15105_v26 = vld [vmem:[#allocation47_spill] sm:$0xff] }
0x114f   :  { %v12268_v52 = vpop.f32.mrf.mxu1  ;;  %v4610_v6 = vadd.f32 %v4547_v43, %v4488_v38  ;;  %v4249_v60 = vadd.f32 %v12172_v10, %v4095_v56  ;;  %v9902_v43 = vpop.f32.mrf.mxu0  ;;  %v4374_v44 = vadd.f32 %v15096_v15, %v4252_v46  ;;  %v4380_v41 = vadd.f32 %v15097_v0, %v4258_v55  ;;  %v15103_v38 = vld [vmem:[#allocation41_spill] sm:$0xff]  ;;  %v15113_v15 = vld [vmem:[#allocation43_spill] sm:$0xff] }
0x1150   :  { %v12272_v18 = vadd.f32 %v15090_v37, %v4635_v7  ;;  %v12289_v13 = vmul.f32 %v14881_v4, %v15092_v20  ;;  %v4611_v3 = vadd.f32 %v4550_v39, %v4489_v2  ;;  %v4099_v36 = vadd.f32 %v12182_v61, %v3945_v50  ;;  %v15099_v37 = vld [vmem:[#allocation34_spill] sm:$0xff]  ;;  %v15104_v2 = vld [vmem:[#allocation44_spill] sm:$0xff]  ;;  %v15114_v0 = vld [vmem:[#allocation53_spill] sm:$0xff] }
0x1151   :  { %v4563_v54 = vpop.f32.mrf.mxu1  ;;  %v4371_v29 = vadd.f32 %v15094_v42, %v4249_v60  ;;  %v4632_v10 = vadd.f32 %v12246_v14, %v4610_v6  ;;  %v4254_v12 = vadd.f32 %v15099_v37, %v15098_v47  ;;  %v4255_v21 = vadd.f32 %v15101_v17, %v15100_v8  ;;  %v15109_v60 = vld [vmem:[#allocation13_spill] sm:$0xff] }
0x1152   :  { %15091 = vst [vmem:[#allocation15_spill] sm:$0xff] %v12272_v18  ;;  %v14879_v27 = vmax.f32 %v12272_v18, 0.0  ;;  %v4614_v30 = vadd.f32 %v4563_v54, %v4492_v11  ;;  %v4633_v61 = vadd.f32 %v12246_v14, %v4611_v3  ;;  %v4253_v62 = vadd.f32 %v15102_v33, %v4099_v36  ;;  %v4473_v54 = vpop.f32.mrf.mxu0  ;;  %v15106_v11 = vld [vmem:[#allocation33_spill] sm:$0xff]  ;;  %v15111_v36 = vld [vmem:[#allocation16_spill] sm:$0xff] }
0x1153   :  { %v9913_v49 = vpop.f32.mrf.mxu1  ;;  %v4256_v19 = vadd.f32 %v15104_v2, %v15103_v38  ;;  %v4103_v50 = vadd.f32 %v15105_v26, %v3949_v5  ;;  %v4259_v6 = vadd.f32 %v15106_v11, %v4105_v63  ;;  %v15107_v3 = vld [vmem:[#allocation45_spill] sm:$0xff]  ;;  %v4495_v28 = vadd.f32 %v15108_v31, %v4373_v53 }
0x1154   :  { %v12294_v24 = vmul.f32 %v14879_v27, %v15093_v58  ;;  %v4636_v23 = vadd.f32 %v12246_v14, %v4614_v30  ;;  %v4494_v57 = vadd.f32 %v15107_v3, %v4372_v16  ;;  %v4493_v22 = vadd.f32 %v12235_v35, %v4371_v29  ;;  %v9903_v47 = vpop.f32.mrf.mxu0  ;;  %v15115_v35 = vld [vmem:[#allocation19_spill] sm:$0xff] }
0x1155   :  { %v4566_v48 = vpop.f32.mrf.mxu1  ;;  %v12336_v46 = vadd.f32 %v4632_v10, %v15109_v60  ;;  %v12339_v55 = vadd.f32 %v4633_v61, %v15111_v36  ;;  %v4496_v42 = vadd.f32 %v12252_v45, %v4374_v44  ;;  %v4502_v59 = vadd.f32 %v9902_v43, %v4380_v41  ;;  %v15117_v61 = vld [vmem:[#allocation38_spill] sm:$0xff] }
0x1156   :  { %v4381_v5 = vadd.f32 %v12237_v51, %v4259_v6  ;;  %v4616_v63 = vadd.f32 %v12268_v52, %v4494_v57  ;;  %v4376_v16 = vadd.f32 %v15113_v15, %v4254_v12  ;;  %v4377_v53 = vadd.f32 %v15114_v0, %v4255_v21  ;;  %v15118_v43 = vld [vmem:[#allocation54_spill] sm:$0xff]  ;;  %v15119_v51 = vld [vmem:[#allocation57_spill] sm:$0xff]  ;;  %v4476_v26 = vpop.f32.mrf.mxu0 }
0x1157   :  { %v12308_v39 = vpop.f32.mrf.mxu1  ;;  %15110 = vst [vmem:[#allocation40_spill] sm:$0xff] %v12336_v46  ;;  %15112 = vst [vmem:[#allocation48_spill] sm:$0xff] %v12339_v55  ;;  %v12347_v29 = vadd.f32 %v4636_v23, %v15115_v35  ;;  %v4615_v10 = vadd.f32 %v4566_v48, %v4493_v22  ;;  %v4257_v8 = vadd.f32 %v15117_v61, %v4103_v50  ;;  %v14880_v52 = vmax.f32 %v12336_v46, 0.0  ;;  %v15123_v22 = vld [vmem:[#allocation5_spill] sm:$0xff] }
0x1158   :  { %v4617_v17 = vadd.f32 %v9913_v49, %v4495_v28  ;;  %v4375_v44 = vadd.f32 %v15118_v43, %v4253_v62  ;;  %v4378_v41 = vadd.f32 %v15119_v51, %v4256_v19  ;;  %v14878_v12 = vmax.f32 %v12339_v55, 0.0  ;;  %v15163_v46 = vld [vmem:[#allocation37_spill] sm:$0xff] }
0x1159   :  { %v4579_v7 = vpop.f32.mrf.mxu1  ;;  %15116 = vst [vmem:[#allocation52_spill] sm:$0xff] %v12347_v29  ;;  %v4379_v38 = vadd.f32 %v12241_v9, %v4257_v8  ;;  %v4503_v23 = vadd.f32 %v9903_v47, %v4381_v5  ;;  %v4638_v48 = vadd.f32 %v12246_v14, %v4616_v63  ;;  %v4498_v49 = vadd.f32 %v12244_v34, %v4376_v16  ;;  %v15120_v9 = vld [vmem:[#allocation28_spill] sm:$0xff]  ;;  %v15122_v34 = vld [vmem:[#allocation3_spill] sm:$0xff]  ;;  %v15127_v16 = vld [vmem:[#allocation22_spill] sm:$0xff] }
0x115a   :  { %v4618_v33 = vadd.f32 %v4579_v7, %v4496_v42  ;;  %v4499_v7 = vadd.f32 %v12266_v25, %v4377_v53  ;;  %v14875_v62 = vmax.f32 %v12347_v29, 0.0  ;;  %v4637_v19 = vadd.f32 %v12246_v14, %v4615_v10  ;;  %v15124_v42 = vld [vmem:[#allocation18_spill] sm:$0xff]  ;;  %v15129_v47 = vld [vmem:[#allocation20_spill] sm:$0xff] }
0x115b   :  { %v9917_v56 = vpop.f32.mrf.mxu1  ;;  %v4639_v11 = vadd.f32 %v12246_v14, %v4617_v17  ;;  %v4497_v31 = vadd.f32 %v12281_v40, %v4375_v44  ;;  %v4500_v28 = vadd.f32 %v4473_v54, %v4378_v41  ;;  %v12370_v25 = vmul.f32 %v14880_v52, %v15122_v34  ;;  %v15126_v54 = vld [vmem:[#allocation7_spill] sm:$0xff]  ;;  %v15131_v10 = vld [vmem:[#allocation24_spill] sm:$0xff] }
0x115c   :  { %v4640_v6 = vadd.f32 %v12246_v14, %v4618_v33  ;;  %v12375_v60 = vmul.f32 %v14878_v12, %v15123_v22  ;;  %v4501_v36 = vadd.f32 %v4476_v26, %v4379_v38  ;;  %v4699_v40 = vrot.slane %v12289_v13, 7  ;;  %v15133_v8 = vld [vmem:[#allocation32_spill] sm:$0xff] }
0x115d   :  { %v4582_v30 = vpop.f32.mrf.mxu1  ;;  %v12386_v15 = vmul.f32 %v14875_v62, %v15126_v54  ;;  %v12389_v0 = vadd.f32 %v4637_v19, %v15127_v16  ;;  %v12392_v35 = vadd.f32 %v15129_v47, %v4639_v11  ;;  %v4621_v43 = vadd.f32 %v9917_v56, %v4499_v7  ;;  %v15136_v26 = vld [vmem:[#allocation4_spill] sm:$0xff] }
0x115e   :  { %v4619_v53 = vadd.f32 %v4582_v30, %v4497_v31  ;;  %v4698_v33 = vrot.slane %v12375_v60, 7  ;;  %v4697_v44 = vrot.slane %v12370_v25, 7  ;;  %v15135_v30 = vld [vmem:[#allocation29_spill] sm:$0xff] }
0x115f   :  { %v9920_v37 = vpop.f32.mrf.mxu1  ;;  %15128 = vst [vmem:[#allocation34_spill] sm:$0xff] %v12389_v0  ;;  %15130 = vst [vmem:[#allocation39_spill] sm:$0xff] %v12392_v35 }
0x1160   :  { %v4624_v45 = vadd.f32 %v9920_v37, %v4502_v59  ;;  %v12378_v59 = vadd.f32 %v15124_v42, %v4638_v48  ;;  %v12395_v37 = vadd.f32 %v4640_v6, %v15131_v10  ;;  %v4641_v56 = vadd.f32 %v12246_v14, %v4619_v53  ;;  %v15139_v53 = vld [vmem:[#allocation8_spill] sm:$0xff]  ;;  %v15140_v10 = vld [vmem:[#allocation27_spill] sm:$0xff] }
0x1161   :  { %v4595_v21 = vpop.f32.mrf.mxu1  ;;  %v4701_v48 = vrot.slane %v12386_v15, 7  ;;  %v4643_v6 = vadd.f32 %v12246_v14, %v4621_v43  ;;  %v12434_v31 = vsel %vm1943_vm5, %v4698_v33, %v4699_v40  ;;  %v12444_v16 = vsel %vm1943_vm5, %v4697_v44, %v4698_v33  ;;  %v15142_v43 = vld [vmem:[#allocation12_spill] sm:$0xff]  ;;  %v15143_v33 = vld [vmem:[#allocation31_spill] sm:$0xff] }
0x1162   :  { %v4646_v2 = vadd.f32 %v12246_v14, %v4624_v45  ;;  %15125 = vst [vmem:[#allocation51_spill] sm:$0xff] %v12378_v59  ;;  %15132 = vst [vmem:[#allocation46_spill] sm:$0xff] %v12395_v37  ;;  %v4622_v61 = vadd.f32 %v4595_v21, %v4500_v28  ;;  %v4620_v45 = vadd.f32 %v12308_v39, %v4498_v49  ;;  %v14876_v51 = vmax.f32 %v12378_v59, 0.0 }
0x1163   :  { %v9921_v50 = vpop.f32.mrf.mxu1  ;;  %v4700_v21 = vrot.slane %v12294_v24, 7  ;;  %v14874_v39 = vmax.f32 %v12389_v0, 0.0  ;;  %v14873_v49 = vmax.f32 %v12395_v37, 0.0  ;;  %v15157_v37 = vld [vmem:[#allocation35_spill] sm:$0xff] }
0x1164   :  { %v12364_v3 = vadd.f32 %v15120_v9, %v4646_v2  ;;  %v4625_v57 = vadd.f32 %v9921_v50, %v4503_v23  ;;  %v12413_v23 = vpack.c.bf16 %v12289_v13, %v12375_v60  ;;  %v14877_v2 = vmax.f32 %v12392_v35, 0.0 }
0x1165   :  { %v4644_v7 = vadd.f32 %v12246_v14, %v4622_v61  ;;  %v4598_v50 = vpop.f32.mrf.mxu1  ;;  %v4642_v11 = vadd.f32 %v12246_v14, %v4620_v45  ;;  %v12430_v9 = vpack.c.bf16 %v12386_v15, %v12294_v24  ;;  %v12449_v47 = vmul.f32 %v14874_v39, %v15139_v53 }
0x1166   :  { %15121 = vst [vmem:[#allocation56_spill] sm:$0xff] %v12364_v3  ;;  %v14872_v5 = vmax.f32 %v12364_v3, 0.0  ;;  %v4647_v63 = vadd.f32 %v12246_v14, %v4625_v57  ;;  %v12452_v61 = vadd.f32 %v4641_v56, %v15140_v10  ;;  %v12456_v45 = vsel %vm1943_vm5, %v4700_v21, %v4701_v48 }
0x1168   :  { %v12398_v17 = vadd.f32 %v15133_v8, %v4647_v63  ;;  %v12407_v41 = vmul.f32 %v14872_v5, %v15135_v30  ;;  %15141 = vst [vmem:[#allocation44_spill] sm:$0xff] %v12452_v61  ;;  %v4623_v8 = vadd.f32 %v4598_v50, %v4501_v36  ;;  %v12464_v5 = vadd.f32 %v4644_v7, %v15143_v33  ;;  %v15145_v50 = vld [vmem:[#allocation9_spill] sm:$0xff]  ;;  %v15146_v7 = vld [vmem:[#allocation23_spill] sm:$0xff] }
0x1169   :  { %v12481_v10 = vmul.f32 %v14876_v51, %v15145_v50  ;;  %v12484_v33 = vadd.f32 %v15146_v7, %v4642_v11  ;;  %v12504_v11 = vpack.c.bf16 %v12434_v31, %v12444_v16  ;;  %v12512_v7 = vld [vmem:[%s12102_s4 + $0x20] sm:$0xff]   ;;  %v12515_v51 = vld [vmem:[%s12102_s4 + $0x28] sm:$0xff]   ;;  %v14888_v12 = vmax.f32 %v12452_v61, 0.0 }
0x116a   :  { %15134 = vst [vmem:[#allocation42_spill] sm:$0xff] %v12398_v17  ;;  %v14871_v38 = vmax.f32 %v12398_v17, 0.0  ;;  %v14882_v42 = vrot.slane %v12407_v41, 7  ;;  %15144 = vst [vmem:[#allocation47_spill] sm:$0xff] %v12464_v5  ;;  %v4645_v27 = vadd.f32 %v12246_v14, %v4623_v8  ;;  %v15153_v8 = vld [vmem:[#allocation50_spill] sm:$0xff]  ;;  %v15155_v14 = vld [vmem:[#allocation36_spill] sm:$0xff] }
0x116b   :  { %15147 = vst [vmem:[#allocation33_spill] sm:$0xff] %v12484_v33  ;;  %v12538_v1 = vpack.c.bf16 %v12481_v10, %v12449_v47  ;;  %v15158_v0 = vmax.f32 %v12464_v5, 0.0  ;;  %v15160_v61 = vmax.f32 %v12484_v33, 0.0  ;;  %v5008_v50 = vrot.slane %v12386_v15, 1 }
0x116c   :  { %v12424_v19 = vmul.f32 %v14871_v38, %v15136_v26  ;;  %v12461_v38 = vmul.f32 %v14873_v49, %v15142_v43  ;;  %v15148_v49 = vld [vmem:[#allocation26_spill] sm:$0xff]  ;;  %v12549_v17 = vadd.f32 %v4645_v27, %v15155_v14  ;;  %v15159_v14 = vld [vmem:[#allocation21_spill] sm:$0xff] }
0x116d   :  { %v12487_v39 = vadd.f32 %v15148_v49, %v4643_v6  ;;  %v12508_v49 = vsel %vm1943_vm5, %v4699_v40, %v4700_v21  ;;  %v15152_v6 = vld [vmem:[#allocation49_spill] sm:$0xff]  ;;  %v12562_v35 = vmul.f32 %v15158_v0, %v15157_v37  ;;  %v12575_v29 = vmul.f32 %v15160_v61, %v15159_v14 }
0x116e   :  { %v12438_v28 = vpack.c.bf16 %v12370_v25, %v12424_v19  ;;  %v4712_v63 = vrot.slane %v12424_v19, 7  ;;  %v12524_v52 = vpack.c.bf16 %v12456_v45, %v12508_v49  ;;  %v4705_v21 = vrot.slane %v12461_v38, 7  ;;  %v15154_v40 = vld [vmem:[#allocation17_spill] sm:$0xff]  ;;  %15156 = vst [vmem:[#allocation13_spill] sm:$0xff] %v12549_v17 }
0x116f   :  { %15149 = vst [vmem:[#allocation45_spill] sm:$0xff] %v12487_v39  ;;  %v12546_v4 = vmul.f32 %v14888_v12, %v15154_v40  ;;  %v4709_v33 = vrot.slane %v12562_v35, 7  ;;  %v4707_v18 = vrot.slane %v12575_v29, 7  ;;  %v15164_v32 = vmax.f32 %v12549_v17, 0.0 }
0x1170   :  { %15138 = vst [vmem:[#allocation41_spill] sm:$0xff] %v12438_v28  ;;  %9924 = vmatprep.mubr.msk.bf16.mxu0 %vm381_vm2, %v12438_v28  ;;  %v12472_v36 = vsel %vm1943_vm5, %v14882_v42, %v4712_v63  ;;  %v12476_v56 = vsel %vm1943_vm5, %v4712_v63, %v4697_v44  ;;  %v15151_v44 = vld [vmem:[#allocation10_spill] sm:$0xff]  ;;  %v5004_v40 = vrot.slane %v12370_v25, 1  ;;  %v5005_v17 = vrot.slane %v12375_v60, 1 }
0x1171   :  { %9925 = vmatmul.mubr.msk.bf16.vlgmr.msra.gmra.mxu0 %vm381_vm2, %v12413_v23  ;;  %v12493_v62 = vpack.c.bf16 %v12476_v56, %v12472_v36  ;;  %v12498_v63 = vmul.f32 %v14877_v2, %v15151_v44  ;;  %v4702_v2 = vrot.slane %v12449_v47, 7  ;;  %v4706_v61 = vrot.slane %v12546_v4, 7 }
0x1172   :  { %9928 = vmatprep.mubr.msk.bf16.mxu0 %vm381_vm2, %v12430_v9  ;;  %9959 = vmatpush3.bf16.msra.mxu0 %v15152_v6  ;;  %v4703_v6 = vrot.slane %v12481_v10, 7  ;;  %v12616_v26 = vmul.f32 %v15164_v32, %v15163_v46  ;;  %v12620_v55 = vpack.c.bf16 %v12575_v29, %v12546_v4  ;;  %v12684_v44 = vsel %vm2251_vm6, %v5004_v40, %v5005_v17 }
0x1173   :  { %15150 = vst [vmem:[#allocation55_spill] sm:$0xff] %v12493_v62  ;;  %9942 = vmatprep.mubr.msk.bf16.mxu1 %vm381_vm2, %v12493_v62  ;;  %v4704_v42 = vrot.slane %v12498_v63, 7  ;;  %9994 = vmatprep.subr.bf16.mxu0 %v12512_v7  ;;  %v12557_v3 = vsel %vm1943_vm5, %v4701_v48, %v4702_v2  ;;  %v12566_v12 = vpack.c.bf16 %v12461_v38, %v12498_v63  ;;  %v15161_v48 = vld [vmem:[#allocation25_spill] sm:$0xff]  ;;  %v5013_v20 = vrot.slane %v12546_v4, 1 }
0x1174   :  { %9943 = vmatmul.mubr.msk.bf16.vlgmr.msra.gmra.mxu1 %vm381_vm2, %v12504_v11  ;;  %v12624_v37 = vsel %vm1943_vm5, %v4706_v61, %v4707_v18  ;;  %v4710_v46 = vrot.slane %v12616_v26, 7  ;;  %v12680_v53 = vpack.c.bf16 %v12407_v41, %v12616_v26  ;;  %v5191_v28 = vpack.c.bf16 %v12508_v49, %v12434_v31 }
0x1175   :  { %9946 = vmatprep.mubr.msk.bf16.mxu1 %vm381_vm2, %v12524_v52  ;;  %9977 = vmatpush3.bf16.msra.mxu1 %v15153_v8  ;;  %v12553_v8 = vsel %vm1943_vm5, %v4702_v2, %v4703_v6  ;;  %v12570_v27 = vsel %vm1943_vm5, %v4704_v42, %v4705_v21  ;;  %v15162_v2 = vmax.f32 %v12487_v39, 0.0  ;;  %v12592_v5 = vsel %vm1943_vm5, %v4703_v6, %v4704_v42 }
0x1176   :  { %10012 = vmatprep.subr.bf16.mxu1 %v12515_v51  ;;  %v12588_v0 = vpack.c.bf16 %v12553_v8, %v12557_v3  ;;  %v12628_v42 = vsel %vm1943_vm5, %v4705_v21, %v4706_v61  ;;  %v12676_v14 = vsel %vm1943_vm5, %v4709_v33, %v4710_v46 }
0x1177   :  { %v12580_v59 = vmul.f32 %v15162_v2, %v15161_v48  ;;  %v12598_v2 = vpack.c.bf16 %v12570_v27, %v12592_v5  ;;  %v12645_v21 = vpack.c.bf16 %v12624_v37, %v12628_v42  ;;  %v15165_v48 = vrot.slane %v12424_v19, 1 }
0x1179   :  { %9929 = vmatmul.mubr.msk.bf16.gmra.mxu0 %vm381_vm2, %v12538_v1  ;;  %v4708_v6 = vrot.slane %v12580_v59, 7  ;;  %v12632_v39 = vpack.c.bf16 %v12562_v35, %v12580_v59 }
0x117a   :  { %9932 = vmatprep.mubr.msk.bf16.mxu0 %vm381_vm2, %v12566_v12 }
0x117b   :  { %v12636_v32 = vsel %vm1943_vm5, %v4708_v6, %v4709_v33  ;;  %v12649_v61 = vsel %vm1943_vm5, %v4707_v18, %v4708_v6  ;;  %v12666_v18 = vsel %vm2251_vm6, %v15165_v48, %v5004_v40  ;;  %v15166_v6 = vrot.slane %v12407_v41, 7 }
0x117c   :  { %9947 = vmatmul.mubr.msk.bf16.gmra.mxu1 %vm381_vm2, %v12588_v0  ;;  %v12654_v30 = vpack.c.bf16 %v12636_v32, %v12649_v61  ;;  %v12688_v48 = vpack.c.bf16 %v12684_v44, %v12666_v18  ;;  %v5007_v33 = vrot.slane %v12294_v24, 1  ;;  %v5190_v40 = vpack.c.bf16 %v12444_v16, %v12476_v56  ;;  %v10379_v56 = vld [vmem:[%s12102_s4 + $0x30] sm:$0xff]  }
0x117d   :  { %9950 = vmatprep.mubr.msk.bf16.mxu1 %vm381_vm2, %v12598_v2  ;;  %v12672_v43 = vsel %vm1943_vm5, %v4710_v46, %v15166_v6  ;;  %v5009_v6 = vrot.slane %v12449_v47, 1  ;;  %v5006_v46 = vrot.slane %v12289_v13, 1 }
0x117e   :  { %15167 = vst [vmem:[#allocation16_spill] sm:$0xff] %v12688_v48  ;;  %v12697_v54 = vpack.c.bf16 %v12672_v43, %v12676_v14 }
0x117f   :  { %v12706_v22 = vsel %vm2251_vm6, %v5005_v17, %v5006_v46  ;;  %v12713_v58 = vsel %vm2251_vm6, %v5008_v50, %v5009_v6  ;;  %v12717_v34 = vsel %vm2251_vm6, %v5006_v46, %v5007_v33  ;;  %v12725_v17 = vsel %vm2251_vm6, %v5007_v33, %v5008_v50  ;;  %v10380_v50 = vld [vmem:[%s12102_s4 + $0x38] sm:$0xff]  }
0x1180   :  { %v12721_v16 = vpack.c.bf16 %v12717_v34, %v12706_v22  ;;  %v5010_v46 = vrot.slane %v12481_v10, 1  ;;  %v5192_v33 = vpack.c.bf16 %v12557_v3, %v12456_v45 }
0x1181   :  { %9933 = vmatmul.mubr.msk.bf16.gmra.mxu0 %vm381_vm2, %v12620_v55 }
0x1182   :  { %9936 = vmatprep.mubr.msk.bf16.mxu0 %vm381_vm2, %v12632_v39  ;;  %15168 = vst [vmem:[#allocation43_spill] sm:$0xff] %v12721_v16  ;;  %v5029_v62 = vsel %vm2251_vm6, %v5009_v6, %v5010_v46  ;;  %v5014_v6 = vrot.slane %v12575_v29, 1 }
0x1184   :  { %9951 = vmatmul.mubr.msk.bf16.gmra.mxu1 %vm381_vm2, %v12645_v21 }
0x1185   :  { %9954 = vmatprep.mubr.msk.bf16.mxu1 %vm381_vm2, %v12654_v30 }
0x1189   :  { %9937 = vmatmul.mubr.msk.bf16.gmra.mxu0 %vm381_vm2, %v12680_v53 }
0x118a   :  { %9960 = vmatprep.mubr.msk.bf16.mxu0 %vm381_vm2, %v12688_v48  ;;  %v5011_v48 = vrot.slane %v12498_v63, 1 }
0x118c   :  { %9955 = vmatmul.mubr.msk.bf16.gmra.mxu1 %vm381_vm2, %v12697_v54  ;;  %v5028_v49 = vsel %vm2251_vm6, %v5010_v46, %v5011_v48  ;;  %v5193_v46 = vpack.c.bf16 %v12592_v5, %v12553_v8 }
0x118d   :  { %9978 = vmatprep.mubr.msk.bf16.mxu1 %vm381_vm2, %v5190_v40  ;;  %v12730_v40 = vpack.c.bf16 %v12713_v58, %v12725_v17  ;;  %v12755_v3 = vpack.c.bf16 %v5028_v49, %v5029_v62 }
0x118f   :  { %15169 = vst [vmem:[#allocation53_spill] sm:$0xff] %v12755_v3 }
0x1191   :  { %9961 = vmatmul.mubr.msk.bf16.vlgmr.msra.gmra.mxu0 %vm381_vm2, %v12721_v16  ;;  %v5012_v16 = vrot.slane %v12461_v38, 1 }
0x1192   :  { %9964 = vmatprep.mubr.msk.bf16.mxu0 %vm381_vm2, %v12730_v40  ;;  %9995 = vmatpush3.bf16.msra.mxu0 %v12512_v7  ;;  %v5017_v7 = vrot.slane %v12616_v26, 1 }
0x1193   :  { %10030 = vmatprep.subr.bf16.mxu0 %v10379_v56  ;;  %v5026_v31 = vsel %vm2251_vm6, %v5012_v16, %v5013_v20  ;;  %v5027_v45 = vsel %vm2251_vm6, %v5011_v48, %v5012_v16  ;;  %v5194_v48 = vpack.c.bf16 %v12628_v42, %v12570_v27  ;;  %v5016_v16 = vrot.slane %v12562_v35, 1 }
0x1194   :  { %9979 = vmatmul.mubr.msk.bf16.vlgmr.msra.gmra.mxu1 %vm381_vm2, %v5191_v28  ;;  %v12759_v28 = vpack.c.bf16 %v5026_v31, %v5027_v45 }
0x1195   :  { %9982 = vmatprep.mubr.msk.bf16.mxu1 %vm381_vm2, %v5192_v33  ;;  %10013 = vmatpush3.bf16.msra.mxu1 %v12515_v51  ;;  %v5015_v51 = vrot.slane %v12580_v59, 1  ;;  %v5025_v33 = vsel %vm2251_vm6, %v5013_v20, %v5014_v6  ;;  %v5195_v20 = vpack.c.bf16 %v12649_v61, %v12624_v37 }
0x1196   :  { %10048 = vmatprep.subr.bf16.mxu1 %v10380_v50 }
0x1197   :  { %v5024_v5 = vsel %vm2251_vm6, %v5014_v6, %v5015_v51  ;;  %v5023_v27 = vsel %vm2251_vm6, %v5015_v51, %v5016_v16  ;;  %v5196_v6 = vpack.c.bf16 %v12676_v14, %v12636_v32  ;;  %v5197_v14 = vpack.c.bf16 %v12472_v36, %v12672_v43 }
0x1198   :  { %v12781_v8 = vpack.c.bf16 %v5024_v5, %v5025_v33  ;;  %v5498_v32 = vpack.c.bf16 %v12706_v22, %v12684_v44  ;;  %v5500_v22 = vpack.c.bf16 %v5029_v62, %v12713_v58  ;;  %v5350_v58 = vpack.c.bf16 %v12616_v26, %v12562_v35 }
0x1199   :  { %9965 = vmatmul.mubr.msk.bf16.gmra.mxu0 %vm381_vm2, %v12755_v3  ;;  %v5022_v3 = vsel %vm2251_vm6, %v5016_v16, %v5017_v7  ;;  %v5344_v16 = vpack.c.bf16 %v12375_v60, %v12370_v25  ;;  %v15171_v25 = vpack.c.bf16 %v12294_v24, %v12289_v13  ;;  %v5499_v60 = vpack.c.bf16 %v12725_v17, %v12717_v34 }
0x119a   :  { %9968 = vmatprep.mubr.msk.bf16.mxu0 %vm381_vm2, %v12759_v28  ;;  %v12785_v42 = vpack.c.bf16 %v5022_v3, %v5023_v27  ;;  %v15172_v13 = vpack.c.bf16 %v12498_v63, %v12481_v10  ;;  %v5501_v24 = vpack.c.bf16 %v5027_v45, %v5028_v49  ;;  %v5502_v34 = vpack.c.bf16 %v5025_v33, %v5026_v31 }
0x119b   :  { %v15173_v62 = vpack.c.bf16 %v12580_v59, %v12575_v29  ;;  %v15176_v29 = vld [vmem:[#allocation43_spill] sm:$0xff] }
0x119c   :  { %9983 = vmatmul.mubr.msk.bf16.gmra.mxu1 %vm381_vm2, %v5193_v46  ;;  %v5018_v46 = vrot.slane %v12407_v41, 1 }
0x119d   :  { %9986 = vmatprep.mubr.msk.bf16.mxu1 %vm381_vm2, %v5194_v48  ;;  %v15170_v48 = vrot.slane %v12424_v19, 1 }
0x119e   :  { %v5021_v51 = vsel %vm2251_vm6, %v5017_v7, %v5018_v46  ;;  %v10381_v7 = vld [vmem:[%s12102_s4 + $0x40] sm:$0xff]  }
0x119f   :  { %v5020_v37 = vsel %vm2251_vm6, %v5018_v46, %v15170_v48 }
0x11a0   :  { %v5043_v61 = vpack.c.bf16 %v5020_v37, %v5021_v51  ;;  %v5505_v35 = vpack.c.bf16 %v12666_v18, %v5020_v37  ;;  %v10382_v37 = vld [vmem:[%s12911_s12 + $0x8] sm:$0xff]  }
0x11a1   :  { %9969 = vmatmul.mubr.msk.bf16.gmra.mxu0 %vm381_vm2, %v12781_v8 }
0x11a2   :  { %9972 = vmatprep.mubr.msk.bf16.mxu0 %vm381_vm2, %v12785_v42 }
0x11a4   :  { %9987 = vmatmul.mubr.msk.bf16.gmra.mxu1 %vm381_vm2, %v5195_v20  ;;  %v5346_v20 = vpack.c.bf16 %v12449_v47, %v12386_v15  ;;  %v5348_v15 = vpack.c.bf16 %v12546_v4, %v12461_v38  ;;  %v5503_v4 = vpack.c.bf16 %v5023_v27, %v5024_v5  ;;  %v5504_v38 = vpack.c.bf16 %v5021_v51, %v5022_v3 }
0x11a5   :  { %9990 = vmatprep.mubr.msk.bf16.mxu1 %vm381_vm2, %v5196_v6  ;;  %v15174_v47 = vpack.c.bf16 %v12424_v19, %v12407_v41 }
0x11a9   :  { %9973 = vmatmul.mubr.msk.bf16.gmra.mxu0 %vm381_vm2, %v5043_v61 }
0x11aa   :  { %9996 = vmatprep.mubr.msk.bf16.mxu0 %vm381_vm2, %v5344_v16 }
0x11ac   :  { %9991 = vmatmul.mubr.msk.bf16.gmra.mxu1 %vm381_vm2, %v5197_v14 }
0x11ad   :  { %10014 = vmatprep.mubr.msk.bf16.mxu1 %vm381_vm2, %v5498_v32 }
0x11b1   :  { %9997 = vmatmul.mubr.msk.bf16.vlgmr.msra.gmra.mxu0 %vm381_vm2, %v15171_v25 }
0x11b2   :  { %10000 = vmatprep.mubr.msk.bf16.mxu0 %vm381_vm2, %v5346_v20  ;;  %10031 = vmatpush3.bf16.msra.mxu0 %v10379_v56 }
0x11b3   :  { %10066 = vmatprep.subr.bf16.mxu0 %v10381_v7 }
0x11b4   :  { %10015 = vmatmul.mubr.msk.bf16.vlgmr.msra.gmra.mxu1 %vm381_vm2, %v5499_v60 }
0x11b5   :  { %10018 = vmatprep.mubr.msk.bf16.mxu1 %vm381_vm2, %v5500_v22  ;;  %10049 = vmatpush3.bf16.msra.mxu1 %v10380_v50 }
0x11b6   :  { %10084 = vmatprep.subr.bf16.mxu1 %v10382_v37 }
0x11b9   :  { %10001 = vmatmul.mubr.msk.bf16.gmra.mxu0 %vm381_vm2, %v15172_v13 }
0x11ba   :  { %10004 = vmatprep.mubr.msk.bf16.mxu0 %vm381_vm2, %v5348_v15 }
0x11bc   :  { %10019 = vmatmul.mubr.msk.bf16.gmra.mxu1 %vm381_vm2, %v5501_v24 }
0x11bd   :  { %10022 = vmatprep.mubr.msk.bf16.mxu1 %vm381_vm2, %v5502_v34 }
0x11c1   :  { %10005 = vmatmul.mubr.msk.bf16.gmra.mxu0 %vm381_vm2, %v15173_v62 }
0x11c2   :  { %10008 = vmatprep.mubr.msk.bf16.mxu0 %vm381_vm2, %v5350_v58 }
0x11c4   :  { %10023 = vmatmul.mubr.msk.bf16.gmra.mxu1 %vm381_vm2, %v5503_v4 }
0x11c5   :  { %10026 = vmatprep.mubr.msk.bf16.mxu1 %vm381_vm2, %v5504_v38 }
0x11c9   :  { %10009 = vmatmul.mubr.msk.bf16.gmra.mxu0 %vm381_vm2, %v15174_v47 }
0x11ca   :  { %10032 = vmatprep.mubr.msk.bf16.mxu0 %vm381_vm2, %v12504_v11 }
0x11cc   :  { %10027 = vmatmul.mubr.msk.bf16.gmra.mxu1 %vm381_vm2, %v5505_v35  ;;  %v10383_v35 = vld [vmem:[%s12911_s12] sm:$0xff]  }
0x11cd   :  { %10050 = vmatprep.mubr.msk.bf16.mxu1 %vm381_vm2, %v12413_v23 }
0x11d1   :  { %10033 = vmatmul.mubr.msk.bf16.vlgmr.msra.gmra.mxu0 %vm381_vm2, %v12524_v52  ;;  %v15177_v52 = vld [vmem:[#allocation41_spill] sm:$0xff] }
0x11d2   :  { %10036 = vmatprep.mubr.msk.bf16.mxu0 %vm381_vm2, %v12588_v0  ;;  %10067 = vmatpush3.bf16.msra.mxu0 %v10381_v7 }
0x11d3   :  { %10102 = vmatprep.subr.bf16.mxu0 %v10383_v35 }
0x11d4   :  { %10051 = vmatmul.mubr.msk.bf16.vlgmr.msra.gmra.mxu1 %vm381_vm2, %v12430_v9 }
0x11d5   :  { %10054 = vmatprep.mubr.msk.bf16.mxu1 %vm381_vm2, %v12538_v1  ;;  %v15175_v1 = vld [vmem:[#allocation55_spill] sm:$0xff]  ;;  %10085 = vmatpush3.bf16.msra.mxu1 %v10382_v37 }
0x11d9   :  { %10037 = vmatmul.mubr.msk.bf16.gmra.mxu0 %vm381_vm2, %v12598_v2 }
0x11da   :  { %10040 = vmatprep.mubr.msk.bf16.mxu0 %vm381_vm2, %v12645_v21 }
0x11dc   :  { %10055 = vmatmul.mubr.msk.bf16.gmra.mxu1 %vm381_vm2, %v12566_v12  ;;  %v15179_v12 = vld [vmem:[#allocation16_spill] sm:$0xff] }
0x11dd   :  { %10058 = vmatprep.mubr.msk.bf16.mxu1 %vm381_vm2, %v12620_v55  ;;  %v15178_v55 = vld [vmem:[#allocation53_spill] sm:$0xff] }
0x11e1   :  { %10041 = vmatmul.mubr.msk.bf16.gmra.mxu0 %vm381_vm2, %v12654_v30 }
0x11e2   :  { %10044 = vmatprep.mubr.msk.bf16.mxu0 %vm381_vm2, %v12697_v54 }
0x11e4   :  { %10059 = vmatmul.mubr.msk.bf16.gmra.mxu1 %vm381_vm2, %v12632_v39 }
0x11e5   :  { %10062 = vmatprep.mubr.msk.bf16.mxu1 %vm381_vm2, %v12680_v53 }
0x11e9   :  { %10045 = vmatmul.mubr.msk.bf16.gmra.mxu0 %vm381_vm2, %v15175_v1 }
0x11ea   :  { %10068 = vmatprep.mubr.msk.bf16.mxu0 %vm381_vm2, %v15176_v29 }
0x11ec   :  { %10063 = vmatmul.mubr.msk.bf16.gmra.mxu1 %vm381_vm2, %v15177_v52 }
0x11f1   :  { %10069 = vmatmul.mubr.msk.bf16.vlgmr.msra.gmra.mxu0 %vm381_vm2, %v12730_v40 }
0x11f2   :  { %10072 = vmatprep.mubr.msk.bf16.mxu0 %vm381_vm2, %v15178_v55  ;;  %10103 = vmatpush3.bf16.msra.mxu0 %v10383_v35 }
0x11f9   :  { %10073 = vmatmul.mubr.msk.bf16.gmra.mxu0 %vm381_vm2, %v12759_v28 }
0x11fa   :  { %10076 = vmatprep.mubr.msk.bf16.mxu0 %vm381_vm2, %v12781_v8 }
0x1201   :  { %10077 = vmatmul.mubr.msk.bf16.gmra.mxu0 %vm381_vm2, %v12785_v42 }
0x1202   :  { %10080 = vmatprep.mubr.msk.bf16.mxu0 %vm381_vm2, %v5043_v61 }
0x1209   :  { %10081 = vmatmul.mubr.msk.bf16.gmra.mxu0 %vm381_vm2, %v15179_v12 }
0x1231   :  { %v9926_v59 = vpop.f32.mrf.mxu0 }
0x1233   :  { %v4814_v54 = vpop.f32.mrf.mxu0 }
0x1234   :  { %v9944_v30 = vpop.f32.mrf.mxu1 }
0x1235   :  { %v4950_v41 = vadd.f32 %v9944_v30, %v9926_v59  ;;  %v9927_v23 = vpop.f32.mrf.mxu0 }
0x1236   :  { %v4941_v39 = vpop.f32.mrf.mxu1 }
0x1237   :  { %v4942_v26 = vadd.f32 %v4941_v39, %v4814_v54  ;;  %v12898_v19 = vpop.f32.mrf.mxu0 }
0x1238   :  { %v9945_v9 = vpop.f32.mrf.mxu1 }
0x1239   :  { %v4953_v53 = vadd.f32 %v9945_v9, %v9927_v23  ;;  %v9930_v43 = vpop.f32.mrf.mxu0  ;;  %v12928_v23 = vld [vmem:[%s12911_s12 + $0x10] sm:$0xff]  }
0x123a   :  { %v12900_v36 = vpop.f32.mrf.mxu1  ;;  %15180 = vst [vmem:[#allocation19_spill] sm:$0xff] %v12928_v23  ;;  %10120 = vmatprep.subr.bf16.mxu1 %v12928_v23 }
0x123b   :  { %v4830_v10 = vpop.f32.mrf.mxu0 }
0x123c   :  { %v9948_v44 = vpop.f32.mrf.mxu1 }
0x123d   :  { %v4966_v63 = vadd.f32 %v9948_v44, %v9930_v43  ;;  %v9931_v11 = vpop.f32.mrf.mxu0 }
0x123e   :  { %v4957_v0 = vpop.f32.mrf.mxu1 }
0x123f   :  { %v4958_v2 = vadd.f32 %v4957_v0, %v4830_v10  ;;  %v12902_v21 = vpop.f32.mrf.mxu0 }
0x1240   :  { %v9949_v18 = vpop.f32.mrf.mxu1 }
0x1241   :  { %v4969_v17 = vadd.f32 %v9949_v18, %v9931_v11  ;;  %v9934_v56 = vpop.f32.mrf.mxu0 }
0x1242   :  { %v12904_v40 = vpop.f32.mrf.mxu1 }
0x1243   :  { %v4846_v50 = vpop.f32.mrf.mxu0 }
0x1244   :  { %v9952_v31 = vpop.f32.mrf.mxu1 }
0x1245   :  { %v4982_v49 = vadd.f32 %v9952_v31, %v9934_v56  ;;  %v9935_v3 = vpop.f32.mrf.mxu0 }
0x1246   :  { %v4973_v45 = vpop.f32.mrf.mxu1 }
0x1247   :  { %v4974_v28 = vadd.f32 %v4973_v45, %v4846_v50  ;;  %v12906_v33 = vpop.f32.mrf.mxu0 }
0x1248   :  { %v9953_v5 = vpop.f32.mrf.mxu1 }
0x1249   :  { %v4985_v8 = vadd.f32 %v9953_v5, %v9935_v3  ;;  %v9938_v27 = vpop.f32.mrf.mxu0 }
0x124a   :  { %v12913_v42 = vpop.f32.mrf.mxu1 }
0x124b   :  { %v4862_v46 = vpop.f32.mrf.mxu0 }
0x124c   :  { %v9956_v6 = vpop.f32.mrf.mxu1 }
0x124d   :  { %v4998_v51 = vadd.f32 %v9956_v6, %v9938_v27  ;;  %v9939_v48 = vpop.f32.mrf.mxu0 }
0x124e   :  { %v4989_v61 = vpop.f32.mrf.mxu1 }
0x124f   :  { %v4990_v16 = vadd.f32 %v4989_v61, %v4862_v46  ;;  %v12916_v14 = vpop.f32.mrf.mxu0 }
0x1250   :  { %v9957_v32 = vpop.f32.mrf.mxu1 }
0x1251   :  { %v5001_v7 = vadd.f32 %v9957_v32, %v9939_v48  ;;  %v9962_v20 = vpop.f32.mrf.mxu0 }
0x1252   :  { %v5176_v25 = vadd.f32 %v9962_v20, %v4950_v41  ;;  %v12918_v60 = vpop.f32.mrf.mxu1 }
0x1253   :  { %v5111_v22 = vpop.f32.mrf.mxu0 }
0x1254   :  { %v5174_v15 = vadd.f32 %v5111_v22, %v4942_v26  ;;  %v9980_v13 = vpop.f32.mrf.mxu1 }
0x1255   :  { %v5330_v24 = vadd.f32 %v9980_v13, %v5176_v25  ;;  %v9963_v34 = vpop.f32.mrf.mxu0 }
0x1256   :  { %v5177_v58 = vadd.f32 %v9963_v34, %v4953_v53  ;;  %v5265_v62 = vpop.f32.mrf.mxu1 }
0x1257   :  { %v12920_v4 = vadd.f32 %v5265_v62, %v5174_v15  ;;  %v12922_v38 = vpop.f32.mrf.mxu0  ;;  %v12958_v62 = vld [vmem:[%s12911_s12 + $0x18] sm:$0xff]  }
0x1258   :  { %v9981_v47 = vpop.f32.mrf.mxu1  ;;  %15181 = vst [vmem:[#allocation38_spill] sm:$0xff] %v12958_v62  ;;  %10138 = vmatprep.subr.bf16.mxu0 %v12958_v62 }
0x1259   :  { %v5331_v1 = vadd.f32 %v9981_v47, %v5177_v58  ;;  %v9966_v29 = vpop.f32.mrf.mxu0 }
0x125a   :  { %v5180_v52 = vadd.f32 %v9966_v29, %v4966_v63  ;;  %v12925_v55 = vpop.f32.mrf.mxu1 }
0x125b   :  { %v5127_v12 = vpop.f32.mrf.mxu0 }
0x125c   :  { %v5178_v59 = vadd.f32 %v5127_v12, %v4958_v2  ;;  %v9984_v54 = vpop.f32.mrf.mxu1 }
0x125d   :  { %v5334_v30 = vadd.f32 %v9984_v54, %v5180_v52  ;;  %v9967_v41 = vpop.f32.mrf.mxu0 }
0x125e   :  { %v5181_v39 = vadd.f32 %v9967_v41, %v4969_v17  ;;  %v5281_v26 = vpop.f32.mrf.mxu1 }
0x125f   :  { %v5332_v9 = vadd.f32 %v5281_v26, %v5178_v59  ;;  %v12930_v53 = vpop.f32.mrf.mxu0 }
0x1260   :  { %v9985_v43 = vpop.f32.mrf.mxu1 }
0x1261   :  { %v5335_v10 = vadd.f32 %v9985_v43, %v5181_v39  ;;  %v9970_v44 = vpop.f32.mrf.mxu0 }
0x1262   :  { %v5184_v63 = vadd.f32 %v9970_v44, %v4982_v49  ;;  %v12933_v11 = vpop.f32.mrf.mxu1 }
0x1263   :  { %v5143_v0 = vpop.f32.mrf.mxu0 }
0x1264   :  { %v5182_v2 = vadd.f32 %v5143_v0, %v4974_v28  ;;  %v9988_v18 = vpop.f32.mrf.mxu1 }
0x1265   :  { %v5338_v56 = vadd.f32 %v9988_v18, %v5184_v63  ;;  %v9971_v50 = vpop.f32.mrf.mxu0 }
0x1266   :  { %v5185_v31 = vadd.f32 %v9971_v50, %v4985_v8  ;;  %v5297_v3 = vpop.f32.mrf.mxu1 }
0x1267   :  { %v5336_v17 = vadd.f32 %v5297_v3, %v5182_v2  ;;  %v12935_v45 = vpop.f32.mrf.mxu0 }
0x1268   :  { %v9989_v5 = vpop.f32.mrf.mxu1 }
0x1269   :  { %v5339_v27 = vadd.f32 %v9989_v5, %v5185_v31  ;;  %v9974_v46 = vpop.f32.mrf.mxu0 }
0x126a   :  { %v12937_v6 = vadd.f32 %v9974_v46, %v4998_v51  ;;  %v12939_v48 = vpop.f32.mrf.mxu1 }
0x126b   :  { %v5159_v49 = vpop.f32.mrf.mxu0 }
0x126c   :  { %v5186_v37 = vadd.f32 %v5159_v49, %v4990_v16  ;;  %v12941_v61 = vpop.f32.mrf.mxu1 }
0x126d   :  { %v9975_v28 = vpop.f32.mrf.mxu0 }
0x126e   :  { %v12943_v32 = vadd.f32 %v9975_v28, %v5001_v7  ;;  %v5313_v8 = vpop.f32.mrf.mxu1 }
0x126f   :  { %v5340_v20 = vadd.f32 %v5313_v8, %v5186_v37  ;;  %v12945_v25 = vpop.f32.mrf.mxu0 }
0x1270   :  { %v12947_v22 = vpop.f32.mrf.mxu1 }
0x1271   :  { %v9998_v15 = vpop.f32.mrf.mxu0 }
0x1272   :  { %v12949_v13 = vadd.f32 %v9998_v15, %v5330_v24  ;;  %v12951_v51 = vpop.f32.mrf.mxu1 }
0x1273   :  { %v12953_v34 = vpop.f32.mrf.mxu0 }
0x1274   :  { %v12955_v58 = vpop.f32.mrf.mxu1 }
0x1275   :  { %v9999_v16 = vpop.f32.mrf.mxu0 }
0x1276   :  { %v12960_v7 = vadd.f32 %v9999_v16, %v5331_v1  ;;  %v12962_v47 = vpop.f32.mrf.mxu1 }
0x1277   :  { %v12964_v35 = vpop.f32.mrf.mxu0 }
0x1278   :  { %v12967_v29 = vpop.f32.mrf.mxu1 }
0x1279   :  { %v10002_v24 = vpop.f32.mrf.mxu0 }
0x127a   :  { %v12969_v52 = vadd.f32 %v10002_v24, %v5334_v30  ;;  %v12971_v12 = vpop.f32.mrf.mxu1 }
0x127b   :  { %v5435_v59 = vpop.f32.mrf.mxu0 }
0x127c   :  { %v12973_v54 = vadd.f32 %v5435_v59, %v5332_v9  ;;  %v12975_v41 = vpop.f32.mrf.mxu1 }
0x127d   :  { %v10003_v1 = vpop.f32.mrf.mxu0 }
0x127e   :  { %v12977_v39 = vadd.f32 %v10003_v1, %v5335_v10  ;;  %v12979_v26 = vpop.f32.mrf.mxu1 }
0x127f   :  { %v12981_v43 = vpop.f32.mrf.mxu0 }
0x1280   :  { %v12983_v44 = vpop.f32.mrf.mxu1 }
0x1281   :  { %v10006_v63 = vpop.f32.mrf.mxu0 }
0x1282   :  { %v12985_v0 = vadd.f32 %v10006_v63, %v5338_v56  ;;  %v12987_v30 = vpop.f32.mrf.mxu1 }
0x1283   :  { %v5451_v2 = vpop.f32.mrf.mxu0 }
0x1284   :  { %v12989_v18 = vadd.f32 %v5451_v2, %v5336_v17  ;;  %v12991_v9 = vpop.f32.mrf.mxu1 }
0x1285   :  { %v10007_v50 = vpop.f32.mrf.mxu0 }
0x1286   :  { %v12993_v31 = vadd.f32 %v10007_v50, %v5339_v27  ;;  %v12995_v10 = vpop.f32.mrf.mxu1 }
0x1287   :  { %v12997_v3 = vpop.f32.mrf.mxu0 }
0x1288   :  { %v12999_v5 = vpop.f32.mrf.mxu1 }
0x1289   :  { %v13001_v46 = vpop.f32.mrf.mxu0 }
0x128a   :  { %v13003_v56 = vpop.f32.mrf.mxu1 }
0x128b   :  { %15182 = vst [vmem:[#allocation54_spill] sm:$0xff] %v13003_v56  ;;  %v5467_v49 = vpop.f32.mrf.mxu0 }
0x128c   :  { %v13005_v37 = vadd.f32 %v5467_v49, %v5340_v20  ;;  %v13007_v17 = vpop.f32.mrf.mxu1 }
0x128d   :  { %15184 = vst [vmem:[#allocation28_spill] sm:$0xff] %v13007_v17  ;;  %v10011_v28 = vpop.f32.mrf.mxu0 }
0x128e   :  { %15183 = vst [vmem:[#allocation57_spill] sm:$0xff] %v13005_v37  ;;  %v13009_v8 = vpop.f32.mrf.mxu1  ;;  %v4945_v37 = vadd.f32 %v12900_v36, %v12898_v19  ;;  %v4993_v19 = vadd.f32 %v12918_v60, %v12916_v14 }
0x128f   :  { %15185 = vst [vmem:[#allocation18_spill] sm:$0xff] %v13009_v8  ;;  %v5470_v27 = vpop.f32.mrf.mxu0 }
0x1290   :  { %v13011_v15 = vpop.f32.mrf.mxu1 }
0x1291   :  { %15186 = vst [vmem:[#allocation22_spill] sm:$0xff] %v13011_v15  ;;  %v10034_v16 = vpop.f32.mrf.mxu0 }
0x1292   :  { %v13013_v24 = vpop.f32.mrf.mxu1 }
0x1293   :  { %15187 = vst [vmem:[#allocation20_spill] sm:$0xff] %v13013_v24  ;;  %v5695_v59 = vpop.f32.mrf.mxu0 }
0x1294   :  { %v13015_v1 = vpop.f32.mrf.mxu1 }
0x1295   :  { %v10035_v63 = vpop.f32.mrf.mxu0 }
0x1296   :  { %v13017_v2 = vpop.f32.mrf.mxu1 }
0x1297   :  { %15188 = vst [vmem:[#allocation24_spill] sm:$0xff] %v13017_v2  ;;  %v5698_v50 = vpop.f32.mrf.mxu0 }
0x1298   :  { %v13019_v20 = vpop.f32.mrf.mxu1 }
0x1299   :  { %15189 = vst [vmem:[#allocation32_spill] sm:$0xff] %v13019_v20  ;;  %v10038_v49 = vpop.f32.mrf.mxu0  ;;  %v5175_v20 = vadd.f32 %v12922_v38, %v4945_v37 }
0x129a   :  { %v13021_v62 = vpop.f32.mrf.mxu1 }
0x129b   :  { %15190 = vst [vmem:[#allocation27_spill] sm:$0xff] %v13021_v62  ;;  %v5711_v23 = vpop.f32.mrf.mxu0  ;;  %v5329_v38 = vadd.f32 %v12925_v55, %v5175_v20  ;;  %v5638_v55 = vadd.f32 %v12955_v58, %v12949_v13 }
0x129c   :  { %v13023_v57 = vpop.f32.mrf.mxu1 }
0x129d   :  { %15191 = vst [vmem:[#allocation31_spill] sm:$0xff] %v13023_v57  ;;  %v13025_v8 = vpop.f32.mrf.mxu0  ;;  %v4961_v57 = vadd.f32 %v12904_v40, %v12902_v21  ;;  %v5187_v21 = vadd.f32 %v12945_v25, %v4993_v19  ;;  %v5760_v58 = vadd.f32 %v10034_v16, %v5638_v55  ;;  %v13105_v19 = vld [vmem:[%s13067_s16] ss:$0 sm:$0xff] }
0x129e   :  { %v13027_v15 = vpop.f32.mrf.mxu1 }
0x129f   :  { %15192 = vst [vmem:[#allocation23_spill] sm:$0xff] %v13027_v15  ;;  %v13029_v24 = vpop.f32.mrf.mxu0  ;;  %v4977_v15 = vadd.f32 %v12913_v42, %v12906_v33  ;;  %v5179_v36 = vadd.f32 %v12930_v53, %v4961_v57  ;;  %v5482_v33 = vadd.f32 %v12953_v34, %v12920_v4  ;;  %v5483_v42 = vadd.f32 %v12964_v35, %v5329_v38 }
0x12a0   :  { %15193 = vst [vmem:[#allocation26_spill] sm:$0xff] %v13029_v24  ;;  %v13033_v17 = vpop.f32.mrf.mxu1  ;;  %v5342_v4 = vadd.f32 %v12941_v61, %v12937_v6  ;;  %v5640_v6 = vadd.f32 %v12979_v26, %v12973_v54  ;;  %v5646_v54 = vadd.f32 %v12991_v9, %v12985_v0  ;;  %v5644_v26 = vadd.f32 %v12995_v10, %v12989_v18  ;;  %v15201_v9 = vld [vmem:[#allocation22_spill] sm:$0xff]  ;;  %v15202_v18 = vld [vmem:[#allocation20_spill] sm:$0xff] }
0x12a1   :  { %15194 = vst [vmem:[#allocation49_spill] sm:$0xff] %v13033_v17  ;;  %v13035_v2 = vpop.f32.mrf.mxu0  ;;  %v5183_v37 = vadd.f32 %v12935_v45, %v4977_v15  ;;  %v5333_v57 = vadd.f32 %v12933_v11, %v5179_v36  ;;  %v5343_v11 = vadd.f32 %v12947_v22, %v12943_v32  ;;  %v5341_v45 = vadd.f32 %v12951_v51, %v5187_v21 }
0x12a2   :  { %v13038_v56 = vpop.f32.mrf.mxu1  ;;  %v5636_v35 = vadd.f32 %v12962_v47, %v5482_v33  ;;  %v5637_v13 = vadd.f32 %v12971_v12, %v5483_v42  ;;  %v5642_v15 = vadd.f32 %v12975_v41, %v12969_v52  ;;  %v5496_v32 = vadd.f32 %v13001_v46, %v5342_v4 }
0x12a3   :  { %15195 = vst [vmem:[#allocation50_spill] sm:$0xff] %v13038_v56  ;;  %v13042_v62 = vpop.f32.mrf.mxu0  ;;  %v5337_v60 = vadd.f32 %v12939_v48, %v5183_v37  ;;  %v5487_v25 = vadd.f32 %v12981_v43, %v5333_v57  ;;  %v5639_v48 = vadd.f32 %v12967_v29, %v12960_v7  ;;  %v5643_v47 = vadd.f32 %v12983_v44, %v12977_v39  ;;  %v15197_v44 = vld [vmem:[#allocation54_spill] sm:$0xff]  ;;  %v15204_v37 = vld [vmem:[#allocation32_spill] sm:$0xff] }
0x12a4   :  { %v13046_v24 = vpop.f32.mrf.mxu1  ;;  %v5497_v43 = vadd.f32 %v10011_v28, %v5343_v11  ;;  %v5495_v7 = vadd.f32 %v5470_v27, %v5341_v45  ;;  %v5758_v29 = vadd.f32 %v5695_v59, %v5636_v35  ;;  %v5759_v52 = vadd.f32 %v5698_v50, %v5637_v13  ;;  %v15198_v27 = vld [vmem:[#allocation28_spill] sm:$0xff]  ;;  %v15199_v59 = vld [vmem:[#allocation57_spill] sm:$0xff]  ;;  %v15206_v33 = vld [vmem:[#allocation31_spill] sm:$0xff] }
0x12a5   :  { %15196 = vst [vmem:[#allocation36_spill] sm:$0xff] %v13046_v24  ;;  %v13051_v17 = vpop.f32.mrf.mxu0  ;;  %v5491_v61 = vadd.f32 %v12997_v3, %v5337_v60  ;;  %v5641_v12 = vadd.f32 %v12987_v30, %v5487_v25  ;;  %v5761_v16 = vadd.f32 %v10035_v63, %v5639_v48  ;;  %v5764_v41 = vadd.f32 %v10038_v49, %v5642_v15  ;;  %v15200_v63 = vld [vmem:[#allocation18_spill] sm:$0xff] }
0x12a6   :  { %v13055_v56 = vpop.f32.mrf.mxu1  ;;  %v5882_v3 = vadd.f32 %v13015_v1, %v5760_v58  ;;  %v5762_v46 = vadd.f32 %v5711_v23, %v5640_v6  ;;  %v5647_v39 = vadd.f32 %v12999_v5, %v12993_v31  ;;  %v5650_v30 = vadd.f32 %v15198_v27, %v5496_v32  ;;  %v15203_v1 = vld [vmem:[#allocation24_spill] sm:$0xff]  ;;  %v15205_v5 = vld [vmem:[#allocation27_spill] sm:$0xff] }
0x12a7   :  { %v5730_v40 = vpop.f32.mrf.mxu0  ;;  %v5645_v28 = vadd.f32 %v15197_v44, %v5491_v61  ;;  %v5648_v50 = vadd.f32 %v15200_v63, %v15199_v59  ;;  %v5651_v36 = vadd.f32 %v15201_v9, %v5497_v43  ;;  %v5649_v10 = vadd.f32 %v15202_v18, %v5495_v7  ;;  %v15207_v55 = vld [vmem:[#allocation23_spill] sm:$0xff]  ;;  %v15208_v11 = vld [vmem:[#allocation26_spill] sm:$0xff] }
0x12a8   :  { %v13061_v24 = vpop.f32.mrf.mxu1  ;;  %v5880_v23 = vadd.f32 %v15203_v1, %v5758_v29  ;;  %v5883_v31 = vadd.f32 %v15204_v37, %v5761_v16  ;;  %v5881_v21 = vadd.f32 %v15205_v5, %v5759_v52  ;;  %v5886_v42 = vadd.f32 %v15206_v33, %v5764_v41  ;;  %v15209_v7 = vld [vmem:[#allocation49_spill] sm:$0xff]  ;;  %v15214_v27 = vld [vmem:[#allocation3_spill] sm:$0xff] }
0x12a9   :  { %v10046_v14 = vpop.f32.mrf.mxu0  ;;  %v5765_v57 = vadd.f32 %v13025_v8, %v5643_v47  ;;  %v5884_v4 = vadd.f32 %v15207_v55, %v5762_v46  ;;  %v5763_v45 = vadd.f32 %v15208_v11, %v5641_v12  ;;  %v5768_v48 = vadd.f32 %v13035_v2, %v5646_v54  ;;  %v15217_v33 = vld [vmem:[#allocation5_spill] sm:$0xff] }
0x12aa   :  { %v13072_v53 = vpop.f32.mrf.mxu1  ;;  %v5766_v13 = vadd.f32 %v13042_v62, %v5644_v26  ;;  %v5769_v58 = vadd.f32 %v13051_v17, %v5647_v39  ;;  %v5767_v15 = vadd.f32 %v5730_v40, %v5645_v28  ;;  %v5772_v32 = vadd.f32 %v10046_v14, %v5650_v30  ;;  %v15212_v54 = vld [vmem:[#allocation50_spill] sm:$0xff] }
0x12ab   :  { %v5743_v34 = vpop.f32.mrf.mxu0  ;;  %v5887_v29 = vadd.f32 %v15209_v7, %v5765_v57  ;;  %v5885_v26 = vadd.f32 %v15212_v54, %v5763_v45 }
0x12ac   :  { %v10064_v22 = vpop.f32.mrf.mxu1  ;;  %v5770_v12 = vadd.f32 %v5743_v34, %v5648_v50  ;;  %v15213_v14 = vld [vmem:[#allocation36_spill] sm:$0xff]  ;;  %v5888_v39 = vadd.f32 %v13055_v56, %v5766_v13  ;;  %v5891_v44 = vadd.f32 %v13061_v24, %v5769_v58 }
0x12ad   :  { %v10047_v51 = vpop.f32.mrf.mxu0  ;;  %v5890_v46 = vadd.f32 %v15213_v14, %v5768_v48 }
0x12ae   :  { %v5865_v49 = vpop.f32.mrf.mxu1  ;;  %v5773_v16 = vadd.f32 %v10047_v51, %v5651_v36  ;;  %v13131_v51 = vadd.f32 %v13072_v53, %v5767_v15  ;;  %v15215_v53 = vld [vmem:[#allocation6_spill] sm:$0xff]  ;;  %v15220_v15 = vld [vmem:[#allocation9_spill] sm:$0xff] }
0x12af   :  { %v5746_v20 = vpop.f32.mrf.mxu0  ;;  %v13138_v63 = vadd.f32 %v5865_v49, %v5770_v12 }
0x12b0   :  { %v10065_v6 = vpop.f32.mrf.mxu1  ;;  %v5771_v52 = vadd.f32 %v5746_v20, %v5649_v10  ;;  %v13133_v20 = vadd.f32 %v10064_v22, %v5772_v32 }
0x12b1   :  { %v10070_v0 = vpop.f32.mrf.mxu0  ;;  %v13140_v50 = vadd.f32 %v10065_v6, %v5773_v16 }
0x12b2   :  { %v6004_v38 = vadd.f32 %v10070_v0, %v5882_v3  ;;  %v15210_v3 = vld [vmem:[#allocation14_spill] sm:$0xff]  ;;  %v5868_v28 = vpop.f32.mrf.mxu1 }
0x12b3   :  { %v5939_v60 = vpop.f32.mrf.mxu0  ;;  %v13144_v36 = vadd.f32 %v5868_v28, %v5771_v52 }
0x12b4   :  { %v6026_v25 = vadd.f32 %v13105_v19, %v6004_v38  ;;  %v6002_v35 = vadd.f32 %v5939_v60, %v5880_v23 }
0x12b5   :  { %v10071_v61 = vpop.f32.mrf.mxu0 }
0x12b6   :  { %v6042_v43 = vmax.f32 %v6026_v25, 0.0  ;;  %v6024_v8 = vadd.f32 %v13105_v19, %v6002_v35  ;;  %v6005_v47 = vadd.f32 %v10071_v61, %v5883_v31 }
0x12b7   :  { %v5942_v41 = vpop.f32.mrf.mxu0 }
0x12b8   :  { %v13123_v2 = vmul.f32 %v6042_v43, %v15210_v3  ;;  %v6040_v62 = vmax.f32 %v6024_v8, 0.0  ;;  %v6027_v17 = vadd.f32 %v13105_v19, %v6005_v47  ;;  %v6003_v40 = vadd.f32 %v5942_v41, %v5881_v21  ;;  %v15221_v43 = vld [vmem:[#allocation7_spill] sm:$0xff] }
0x12b9   :  { %v10074_v34 = vpop.f32.mrf.mxu0 }
0x12ba   :  { %15211 = vst [vmem:[#allocation55_spill] sm:$0xff] %v13123_v2  ;;  %v13136_v30 = vmul.f32 %v6040_v62, %v15214_v27  ;;  %v6043_v59 = vmax.f32 %v6027_v17, 0.0  ;;  %v6025_v0 = vadd.f32 %v13105_v19, %v6003_v40  ;;  %v6008_v56 = vadd.f32 %v10074_v34, %v5886_v42  ;;  %v15222_v17 = vld [vmem:[#allocation10_spill] sm:$0xff] }
0x12bb   :  { %v5955_v9 = vpop.f32.mrf.mxu0  ;;  %v6075_v24 = vrot.slane %v13123_v2, 7  ;;  %v6382_v10 = vrot.slane %v13123_v2, 1 }
0x12bc   :  { %v13147_v18 = vmul.f32 %v6043_v59, %v15215_v53  ;;  %v6006_v22 = vadd.f32 %v5955_v9, %v5884_v4  ;;  %v6041_v1 = vmax.f32 %v6025_v0, 0.0  ;;  %v6030_v49 = vadd.f32 %v13105_v19, %v6008_v56  ;;  %v15225_v9 = vld [vmem:[#allocation8_spill] sm:$0xff]  ;;  %v15231_v56 = vld [vmem:[#allocation29_spill] sm:$0xff] }
0x12bd   :  { %v10075_v23 = vpop.f32.mrf.mxu0  ;;  %v14908_v38 = vrot.slane %v13136_v30, 7  ;;  %v15241_v27 = vrot.slane %v13136_v30, 1 }
0x12be   :  { %15216 = vst [vmem:[#allocation43_spill] sm:$0xff] %v13147_v18  ;;  %v14909_v37 = vrot.slane %v13147_v18, 1  ;;  %v6028_v5 = vadd.f32 %v13105_v19, %v6006_v22  ;;  %v6009_v21 = vadd.f32 %v10075_v23, %v5887_v29  ;;  %v13157_v42 = vmul.f32 %v6041_v1, %v15217_v33 }
0x12bf   :  { %v6046_v57 = vmax.f32 %v6030_v49, 0.0  ;;  %v5958_v60 = vpop.f32.mrf.mxu0  ;;  %v6076_v55 = vrot.slane %v13147_v18, 7 }
0x12c0   :  { %v13167_v45 = vsel %vm2251_vm6, %v6382_v10, %v14909_v37  ;;  %v6044_v25 = vmax.f32 %v6028_v5, 0.0  ;;  %v6031_v35 = vadd.f32 %v13105_v19, %v6009_v21  ;;  %v6007_v48 = vadd.f32 %v5958_v60, %v5885_v26  ;;  %v15226_v60 = vld [vmem:[#allocation21_spill] sm:$0xff] }
0x12c1   :  { %v6074_v13 = vrot.slane %v13157_v42, 7  ;;  %v13173_v58 = vpack.c.bf16 %v13123_v2, %v13157_v42  ;;  %v13176_v6 = vmul.f32 %v6046_v57, %v15220_v15  ;;  %v10078_v61 = vpop.f32.mrf.mxu0  ;;  %v13180_v32 = vsel %vm1943_vm5, %v6075_v24, %v6076_v55  ;;  %v10386_v2 = vld [vmem:[%s12911_s12 + $0x20] sm:$0xff]  }
0x12c2   :  { %v13183_v8 = vmul.f32 %v6044_v25, %v15221_v43  ;;  %v6047_v47 = vmax.f32 %v6031_v35, 0.0  ;;  %v6029_v7 = vadd.f32 %v13105_v19, %v6007_v48  ;;  %v6012_v29 = vadd.f32 %v10078_v61, %v5890_v46 }
0x12c3   :  { %15219 = vst [vmem:[#allocation41_spill] sm:$0xff] %v13173_v58  ;;  %v13188_v12 = vsel %vm1943_vm5, %v6074_v13, %v6075_v24  ;;  %v6079_v16 = vrot.slane %v13176_v6, 7  ;;  %v5971_v41 = vpop.f32.mrf.mxu0  ;;  %v13196_v62 = vsel %vm1943_vm5, %v14908_v38, %v6074_v13  ;;  %v6381_v21 = vrot.slane %v13157_v42, 1 }
0x12c4   :  { %v13199_v40 = vmul.f32 %v6047_v47, %v15222_v17  ;;  %v6045_v54 = vmax.f32 %v6029_v7, 0.0  ;;  %v6034_v26 = vadd.f32 %v13105_v19, %v6012_v29  ;;  %v6010_v14 = vadd.f32 %v5971_v41, %v5888_v39 }
0x12c5   :  { %v10079_v46 = vpop.f32.mrf.mxu0  ;;  %v13204_v28 = vpack.c.bf16 %v13183_v8, %v13147_v18  ;;  %v13208_v34 = vpack.c.bf16 %v13188_v12, %v13196_v62  ;;  %v6077_v59 = vrot.slane %v13183_v8, 7  ;;  %v15238_v43 = vrot.slane %v13136_v30, 7 }
0x12c6   :  { %v13215_v24 = vmul.f32 %v6045_v54, %v15225_v9  ;;  %v6050_v39 = vmax.f32 %v6034_v26, 0.0  ;;  %v6032_v22 = vadd.f32 %v13105_v19, %v6010_v14  ;;  %v6013_v1 = vadd.f32 %v10079_v46, %v5891_v44 }
0x12c7   :  { %15223 = vst [vmem:[#allocation53_spill] sm:$0xff] %v13204_v28  ;;  %15224 = vst [vmem:[#allocation16_spill] sm:$0xff] %v13208_v34  ;;  %v5974_v49 = vpop.f32.mrf.mxu0  ;;  %v13220_v23 = vsel %vm1943_vm5, %v6076_v55, %v6077_v59  ;;  %v6080_v5 = vrot.slane %v13199_v40, 7 }
0x12c8   :  { %v6078_v57 = vrot.slane %v13215_v24, 7  ;;  %v13226_v25 = vmul.f32 %v6050_v39, %v15226_v60  ;;  %v6048_v35 = vmax.f32 %v6032_v22, 0.0  ;;  %v6011_v48 = vadd.f32 %v5974_v49, %v13131_v51  ;;  %v15228_v51 = vld [vmem:[#allocation12_spill] sm:$0xff] }
0x12c9   :  { %v6035_v13 = vadd.f32 %v13105_v19, %v6013_v1  ;;  %v10082_v44 = vpop.f32.mrf.mxu0  ;;  %v13232_v61 = vpack.c.bf16 %v13220_v23, %v13180_v32  ;;  %v13236_v55 = vpack.c.bf16 %v13176_v6, %v13215_v24  ;;  %v13240_v47 = vsel %vm1943_vm5, %v6079_v16, %v6080_v5 }
0x12ca   :  { %v6083_v7 = vrot.slane %v13226_v25, 7  ;;  %v13245_v41 = vmul.f32 %v6048_v35, %v15228_v51  ;;  %v6033_v54 = vadd.f32 %v13105_v19, %v6011_v48  ;;  %v6016_v14 = vadd.f32 %v10082_v44, %v13133_v20  ;;  %v15229_v20 = vld [vmem:[#allocation25_spill] sm:$0xff] }
0x12cb   :  { %15227 = vst [vmem:[#allocation54_spill] sm:$0xff] %v13232_v61  ;;  %v6051_v26 = vmax.f32 %v6035_v13, 0.0  ;;  %v5987_v46 = vpop.f32.mrf.mxu0  ;;  %v13251_v39 = vsel %vm1943_vm5, %v6078_v57, %v6079_v16  ;;  %v13255_v22 = vsel %vm1943_vm5, %v6077_v59, %v6078_v57  ;;  %v6385_v51 = vrot.slane %v13215_v24, 1 }
0x12cc   :  { %v6049_v1 = vmax.f32 %v6033_v54, 0.0  ;;  %v6014_v49 = vadd.f32 %v5987_v46, %v13138_v63  ;;  %v13260_v35 = vpack.c.bf16 %v13245_v41, %v13199_v40  ;;  %v13264_v48 = vpack.c.bf16 %v13251_v39, %v13255_v22  ;;  %v15230_v63 = vld [vmem:[#allocation17_spill] sm:$0xff] }
0x12cd   :  { %v13267_v13 = vmul.f32 %v6051_v26, %v15229_v20  ;;  %v6038_v16 = vadd.f32 %v13105_v19, %v6016_v14  ;;  %v10083_v44 = vpop.f32.mrf.mxu0  ;;  %v6081_v59 = vrot.slane %v13245_v41, 7  ;;  %v13282_v26 = vsel %vm2251_vm6, %v6381_v21, %v6382_v10 }
0x12ce   :  { %v13274_v54 = vmul.f32 %v6049_v1, %v15230_v63  ;;  %v6036_v46 = vadd.f32 %v13105_v19, %v6014_v49  ;;  %v6017_v31 = vadd.f32 %v10083_v44, %v13140_v50 }
0x12cf   :  { %v6054_v0 = vmax.f32 %v6038_v16, 0.0  ;;  %v5990_v29 = vpop.f32.mrf.mxu0  ;;  %v13287_v57 = vsel %vm1943_vm5, %v6080_v5, %v6081_v59  ;;  %v6084_v1 = vrot.slane %v13267_v13, 7 }
0x12d0   :  { %v6082_v49 = vrot.slane %v13274_v54, 7  ;;  %v6052_v52 = vmax.f32 %v6036_v46, 0.0  ;;  %v6039_v50 = vadd.f32 %v13105_v19, %v6017_v31  ;;  %v6015_v44 = vadd.f32 %v5990_v29, %v13144_v36  ;;  %v15232_v46 = vld [vmem:[#allocation35_spill] sm:$0xff] }
0x12d1   :  { %v13294_v10 = vmul.f32 %v6054_v0, %v15231_v56  ;;  %v13298_v16 = vpack.c.bf16 %v13287_v57, %v13240_v47  ;;  %v13302_v5 = vpack.c.bf16 %v13226_v25, %v13274_v54  ;;  %v13306_v14 = vsel %vm1943_vm5, %v6083_v7, %v6084_v1 }
0x12d2   :  { %v13309_v38 = vmul.f32 %v6052_v52, %v15232_v46  ;;  %v6055_v31 = vmax.f32 %v6039_v50, 0.0  ;;  %v6037_v36 = vadd.f32 %v13105_v19, %v6015_v44  ;;  %v13314_v0 = vsel %vm1943_vm5, %v6082_v49, %v6083_v7  ;;  %v15233_v50 = vld [vmem:[#allocation4_spill] sm:$0xff] }
0x12d3   :  { %v6394_v29 = vrot.slane %v13294_v10, 1  ;;  %v6087_v37 = vrot.slane %v13294_v10, 7  ;;  %v13320_v4 = vsel %vm1943_vm5, %v6081_v59, %v6082_v49  ;;  %v15234_v59 = vrot.slane %v13136_v30, 1 }
0x12d4   :  { %v6085_v52 = vrot.slane %v13309_v38, 7  ;;  %v13326_v46 = vmul.f32 %v6055_v31, %v15233_v50  ;;  %v6053_v19 = vmax.f32 %v6037_v36, 0.0  ;;  %v13330_v7 = vpack.c.bf16 %v13309_v38, %v13267_v13  ;;  %v15235_v36 = vld [vmem:[#allocation37_spill] sm:$0xff] }
0x12d5   :  { %v13334_v44 = vpack.c.bf16 %v13314_v0, %v13320_v4  ;;  %v13340_v49 = vsel %vm2251_vm6, %v15234_v59, %v6381_v21  ;;  %v13344_v56 = vpack.c.bf16 %v13167_v45, %v13282_v26  ;;  %v6384_v31 = vrot.slane %v13183_v8, 1 }
0x12d6   :  { %v13348_v50 = vmul.f32 %v6053_v19, %v15235_v36  ;;  %v13352_v63 = vpack.c.bf16 %v13136_v30, %v13326_v46  ;;  %v6088_v20 = vrot.slane %v13326_v46, 7  ;;  %v13357_v60 = vsel %vm1943_vm5, %v6084_v1, %v6085_v52 }
0x12d7   :  { %v13361_v21 = vpack.c.bf16 %v13357_v60, %v13306_v14  ;;  %v6395_v59 = vrot.slane %v13326_v46, 1  ;;  %v15237_v19 = vrot.slane %v13147_v18, 1  ;;  %v15244_v18 = vld [vmem:[#allocation38_spill] sm:$0xff] }
0x12d8   :  { %15236 = vst [vmem:[#allocation28_spill] sm:$0xff] %v13352_v63  ;;  %v6086_v9 = vrot.slane %v13348_v50, 7  ;;  %v6393_v1 = vrot.slane %v13348_v50, 1  ;;  %10086 = vmatprep.mubr.msk.bf16.mxu1 %vm381_vm2, %v13352_v63  ;;  %v13377_v17 = vsel %vm1943_vm5, %v6087_v37, %v6088_v20  ;;  %v13383_v15 = vsel %vm1943_vm5, %v6088_v20, %v15238_v43  ;;  %v15243_v63 = vld [vmem:[#allocation19_spill] sm:$0xff] }
0x12d9   :  { %v13369_v36 = vsel %vm2251_vm6, %v15237_v19, %v6384_v31  ;;  %10087 = vmatmul.mubr.msk.bf16.vlgmr.msra.gmra.mxu1 %vm381_vm2, %v13173_v58  ;;  %v13389_v19 = vpack.c.bf16 %v13383_v15, %v13377_v17  ;;  %v13393_v33 = vpack.c.bf16 %v13294_v10, %v13348_v50  ;;  %v13397_v53 = vsel %vm2251_vm6, %v6394_v29, %v6395_v59 }
0x12da   :  { %15240 = vst [vmem:[#allocation18_spill] sm:$0xff] %v13397_v53  ;;  %v13403_v43 = vsel %vm2251_vm6, %v6395_v59, %v15241_v27  ;;  %10090 = vmatprep.mubr.msk.bf16.mxu1 %vm381_vm2, %v13204_v28  ;;  %v13409_v20 = vsel %vm1943_vm5, %v6086_v9, %v6087_v37  ;;  %v13413_v3 = vsel %vm1943_vm5, %v6085_v52, %v6086_v9  ;;  %v6388_v27 = vrot.slane %v13245_v41, 1 }
0x12db   :  { %15239 = vst [vmem:[#allocation57_spill] sm:$0xff] %v13389_v19  ;;  %15242 = vst [vmem:[#allocation22_spill] sm:$0xff] %v13403_v43  ;;  %10121 = vmatpush3.bf16.msra.mxu1 %v15243_v63  ;;  %v13418_v58 = vsel %vm2251_vm6, %v6393_v1, %v6394_v29  ;;  %v13424_v59 = vpack.c.bf16 %v13409_v20, %v13413_v3  ;;  %10104 = vmatprep.mubr.msk.bf16.mxu0 %vm381_vm2, %v13389_v19  ;;  %v10387_v29 = vld [vmem:[%s12911_s12 + $0x28] sm:$0xff]   ;;  %v6389_v28 = vrot.slane %v13274_v54, 1 }
0x12dc   :  { %v13432_v9 = vpack.c.bf16 %v13340_v49, %v13403_v43  ;;  %v13436_v63 = vpack.c.bf16 %v13397_v53, %v13418_v58  ;;  %10105 = vmatmul.mubr.msk.bf16.vlgmr.msra.gmra.mxu0 %vm381_vm2, %v13208_v34  ;;  %v6566_v19 = vpack.c.bf16 %v13196_v62, %v13383_v15  ;;  %v13447_v37 = vsel %vm2251_vm6, %v6384_v31, %v6385_v51 }
0x12dd   :  { %10108 = vmatprep.mubr.msk.bf16.mxu0 %vm381_vm2, %v13232_v61  ;;  %10139 = vmatpush3.bf16.msra.mxu0 %v15244_v18  ;;  %v13456_v34 = vpack.c.bf16 %v13447_v37, %v13369_v36  ;;  %v6568_v52 = vpack.c.bf16 %v13255_v22, %v13220_v23  ;;  %v15245_v15 = vrot.slane %v13199_v40, 1  ;;  %v15246_v62 = vrot.slane %v13176_v6, 1 }
0x12de   :  { %10156 = vmatprep.subr.bf16.mxu1 %v10386_v2  ;;  %v6570_v22 = vpack.c.bf16 %v13320_v4, %v13287_v57  ;;  %10174 = vmatprep.subr.bf16.mxu0 %v10387_v29 }
0x12df   :  { %v13466_v31 = vsel %vm2251_vm6, %v15246_v62, %v15245_v15  ;;  %v15248_v18 = vmov %v15246_v62  ;;  %v15249_v53 = vmov %v15245_v15  ;;  %v15251_v15 = vrot.slane %v13267_v13, 1 }
0x12e0   :  { %15247 = vst [vmem:[#allocation20_spill] sm:$0xff] %v13466_v31  ;;  %v13473_v61 = vsel %vm2251_vm6, %v6385_v51, %v15248_v18  ;;  %v13479_v23 = vsel %vm2251_vm6, %v15249_v53, %v6388_v27  ;;  %v15252_v62 = vrot.slane %v13226_v25, 1  ;;  %v13497_v18 = vsel %vm2251_vm6, %v6388_v27, %v6389_v28 }
0x12e1   :  { %15250 = vst [vmem:[#allocation24_spill] sm:$0xff] %v13479_v23  ;;  %v13493_v51 = vpack.c.bf16 %v13466_v31, %v13473_v61  ;;  %v6392_v27 = vrot.slane %v13309_v38, 1  ;;  %v6572_v53 = vpack.c.bf16 %v13413_v3, %v13357_v60  ;;  %10091 = vmatmul.mubr.msk.bf16.gmra.mxu1 %vm381_vm2, %v13236_v55  ;;  %v6876_v31 = vpack.c.bf16 %v13473_v61, %v13447_v37 }
0x12e2   :  { %v13489_v43 = vsel %vm2251_vm6, %v15252_v62, %v15251_v15  ;;  %v15253_v4 = vmov %v15252_v62  ;;  %v13509_v15 = vpack.c.bf16 %v13497_v18, %v13479_v23  ;;  %10094 = vmatprep.mubr.msk.bf16.mxu1 %vm381_vm2, %v13260_v35  ;;  %v15254_v3 = vrot.slane %v13267_v13, 1 }
0x12e3   :  { %v13505_v57 = vsel %vm2251_vm6, %v6389_v28, %v15253_v4  ;;  %v6874_v28 = vpack.c.bf16 %v13282_v26, %v13340_v49  ;;  %v6722_v4 = vpack.c.bf16 %v13215_v24, %v13183_v8  ;;  %v6398_v23 = vsel %vm2251_vm6, %v6392_v27, %v6393_v1 }
0x12e4   :  { %v13513_v62 = vpack.c.bf16 %v13489_v43, %v13505_v57  ;;  %v6399_v60 = vsel %vm2251_vm6, %v15254_v3, %v6392_v27  ;;  %v6723_v26 = vpack.c.bf16 %v13199_v40, %v13176_v6  ;;  %v6724_v8 = vpack.c.bf16 %v13274_v54, %v13245_v41  ;;  %10109 = vmatmul.mubr.msk.bf16.gmra.mxu0 %vm381_vm2, %v13264_v48  ;;  %v15260_v54 = vld [vmem:[#allocation55_spill] sm:$0xff] }
0x12e5   :  { %v13538_v24 = vpack.c.bf16 %v6398_v23, %v6399_v60  ;;  %v6879_v61 = vpack.c.bf16 %v6399_v60, %v13489_v43  ;;  %v6878_v49 = vpack.c.bf16 %v13505_v57, %v13497_v18  ;;  %v6725_v1 = vpack.c.bf16 %v13267_v13, %v13226_v25  ;;  %10112 = vmatprep.mubr.msk.bf16.mxu0 %vm381_vm2, %v13298_v16  ;;  %v15259_v13 = vld [vmem:[#allocation43_spill] sm:$0xff]  ;;  %v15272_v43 = vld [vmem:[#allocation54_spill] sm:$0xff] }
0x12e6   :  { %v6726_v6 = vpack.c.bf16 %v13348_v50, %v13309_v38  ;;  %v6880_v40 = vpack.c.bf16 %v13418_v58, %v6398_v23  ;;  %v6727_v41 = vpack.c.bf16 %v13326_v46, %v13294_v10  ;;  %v10388_v38 = vld [vmem:[%s12911_s12 + $0x30] sm:$0xff]   ;;  %v10389_v58 = vld [vmem:[%s12911_s12 + $0x38] sm:$0xff]   ;;  %v15255_v25 = vpack.c.bf16 %v13180_v32, %v13188_v12 }
0x12e7   :  { %v15257_v32 = vpack.c.bf16 %v13306_v14, %v13314_v0  ;;  %v6720_v12 = vpack.c.bf16 %v13157_v42, %v13136_v30  ;;  %v15261_v14 = vpack.c.bf16 %v15259_v13, %v15260_v54  ;;  %v15262_v30 = vpack.c.bf16 %v13369_v36, %v13167_v45  ;;  %v15265_v10 = vld [vmem:[#allocation20_spill] sm:$0xff]  ;;  %v15268_v0 = vld [vmem:[#allocation22_spill] sm:$0xff] }
0x12e8   :  { %v15263_v42 = vmov 0.0   ;;  %v15267_v45 = vld [vmem:[#allocation16_spill] sm:$0xff]  ;;  %v15269_v50 = vld [vmem:[#allocation18_spill] sm:$0xff] }
0x12e9   :  { %10095 = vmatmul.mubr.msk.bf16.gmra.mxu1 %vm381_vm2, %v13302_v5  ;;  %v15270_v36 = vpack.c.bf16 %v15268_v0, %v15269_v50 }
0x12ea   :  { %10098 = vmatprep.mubr.msk.bf16.mxu1 %vm381_vm2, %v13330_v7 }
0x12ec   :  { %10113 = vmatmul.mubr.msk.bf16.gmra.mxu0 %vm381_vm2, %v13334_v44 }
0x12ed   :  { %10116 = vmatprep.mubr.msk.bf16.mxu0 %vm381_vm2, %v13361_v21 }
0x12f1   :  { %10099 = vmatmul.mubr.msk.bf16.gmra.mxu1 %vm381_vm2, %v13393_v33 }
0x12f2   :  { %10122 = vmatprep.mubr.msk.bf16.mxu1 %vm381_vm2, %v13432_v9 }
0x12f4   :  { %10117 = vmatmul.mubr.msk.bf16.gmra.mxu0 %vm381_vm2, %v13424_v59 }
0x12f5   :  { %10140 = vmatprep.mubr.msk.bf16.mxu0 %vm381_vm2, %v6566_v19  ;;  %v15271_v19 = vld [vmem:[#allocation41_spill] sm:$0xff] }
0x12f9   :  { %10123 = vmatmul.mubr.msk.bf16.vlgmr.msra.gmra.mxu1 %vm381_vm2, %v13344_v56 }
0x12fa   :  { %10126 = vmatprep.mubr.msk.bf16.mxu1 %vm381_vm2, %v13456_v34  ;;  %10157 = vmatpush3.bf16.msra.mxu1 %v10386_v2  ;;  %v15256_v2 = vpack.c.bf16 %v13240_v47, %v13251_v39  ;;  %v15258_v47 = vpack.c.bf16 %v13377_v17, %v13409_v20  ;;  %v10390_v39 = vld [vmem:[%s12911_s12 + $0x40] sm:$0xff]   ;;  %v15264_v17 = vld [vmem:[#allocation24_spill] sm:$0xff]  ;;  %v15273_v20 = vld [vmem:[#allocation53_spill] sm:$0xff] }
0x12fb   :  { %10192 = vmatprep.subr.bf16.mxu1 %v10388_v38  ;;  %v15266_v46 = vpack.c.bf16 %v15264_v17, %v15265_v10 }
0x12fc   :  { %10141 = vmatmul.mubr.msk.bf16.vlgmr.msra.gmra.mxu0 %vm381_vm2, %v15255_v25 }
0x12fd   :  { %10144 = vmatprep.mubr.msk.bf16.mxu0 %vm381_vm2, %v6568_v52  ;;  %10175 = vmatpush3.bf16.msra.mxu0 %v10387_v29 }
0x12fe   :  { %10210 = vmatprep.subr.bf16.mxu0 %v10389_v58 }
0x1301   :  { %10127 = vmatmul.mubr.msk.bf16.gmra.mxu1 %vm381_vm2, %v13493_v51 }
0x1302   :  { %10130 = vmatprep.mubr.msk.bf16.mxu1 %vm381_vm2, %v13509_v15 }
0x1304   :  { %10145 = vmatmul.mubr.msk.bf16.gmra.mxu0 %vm381_vm2, %v15256_v2 }
0x1305   :  { %10148 = vmatprep.mubr.msk.bf16.mxu0 %vm381_vm2, %v6570_v22 }
0x1309   :  { %10131 = vmatmul.mubr.msk.bf16.gmra.mxu1 %vm381_vm2, %v13513_v62 }
0x130a   :  { %10134 = vmatprep.mubr.msk.bf16.mxu1 %vm381_vm2, %v13538_v24 }
0x130c   :  { %10149 = vmatmul.mubr.msk.bf16.gmra.mxu0 %vm381_vm2, %v15257_v32 }
0x130d   :  { %10152 = vmatprep.mubr.msk.bf16.mxu0 %vm381_vm2, %v6572_v53 }
0x1311   :  { %10135 = vmatmul.mubr.msk.bf16.gmra.mxu1 %vm381_vm2, %v13436_v63 }
0x1312   :  { %10158 = vmatprep.mubr.msk.bf16.mxu1 %vm381_vm2, %v6720_v12 }
0x1314   :  { %10153 = vmatmul.mubr.msk.bf16.gmra.mxu0 %vm381_vm2, %v15258_v47 }
0x1315   :  { %10176 = vmatprep.mubr.msk.bf16.mxu0 %vm381_vm2, %v6874_v28 }
0x1319   :  { %10159 = vmatmul.mubr.msk.bf16.vlgmr.msra.gmra.mxu1 %vm381_vm2, %v15261_v14 }
0x131a   :  { %10162 = vmatprep.mubr.msk.bf16.mxu1 %vm381_vm2, %v6722_v4  ;;  %10193 = vmatpush3.bf16.msra.mxu1 %v10388_v38 }
0x131b   :  { %10228 = vmatprep.subr.bf16.mxu1 %v10390_v39 }
0x131c   :  { %10177 = vmatmul.mubr.msk.bf16.vlgmr.msra.gmra.mxu0 %vm381_vm2, %v15262_v30 }
0x131d   :  { %10180 = vmatprep.mubr.msk.bf16.mxu0 %vm381_vm2, %v6876_v31  ;;  %10211 = vmatpush3.bf16.msra.mxu0 %v10389_v58 }
0x131e   :  { %10246 = vmatprep.subr.mxu0 %v15263_v42 }
0x1321   :  { %10163 = vmatmul.mubr.msk.bf16.gmra.mxu1 %vm381_vm2, %v6723_v26 }
0x1322   :  { %10166 = vmatprep.mubr.msk.bf16.mxu1 %vm381_vm2, %v6724_v8 }
0x1324   :  { %10181 = vmatmul.mubr.msk.bf16.gmra.mxu0 %vm381_vm2, %v15266_v46 }
0x1325   :  { %10184 = vmatprep.mubr.msk.bf16.mxu0 %vm381_vm2, %v6878_v49 }
0x1329   :  { %10167 = vmatmul.mubr.msk.bf16.gmra.mxu1 %vm381_vm2, %v6725_v1 }
0x132a   :  { %10170 = vmatprep.mubr.msk.bf16.mxu1 %vm381_vm2, %v6726_v6 }
0x132c   :  { %10185 = vmatmul.mubr.msk.bf16.gmra.mxu0 %vm381_vm2, %v6879_v61 }
0x132d   :  { %10188 = vmatprep.mubr.msk.bf16.mxu0 %vm381_vm2, %v6880_v40 }
0x1331   :  { %10171 = vmatmul.mubr.msk.bf16.gmra.mxu1 %vm381_vm2, %v6727_v41 }
0x1332   :  { %10194 = vmatprep.mubr.msk.bf16.mxu1 %vm381_vm2, %v15267_v45 }
0x1334   :  { %10189 = vmatmul.mubr.msk.bf16.gmra.mxu0 %vm381_vm2, %v15270_v36 }
0x1335   :  { %10212 = vmatprep.mubr.msk.bf16.mxu0 %vm381_vm2, %v15271_v19 }
0x1339   :  { %10195 = vmatmul.mubr.msk.bf16.vlgmr.msra.gmra.mxu1 %vm381_vm2, %v15272_v43 }
0x133a   :  { %10198 = vmatprep.mubr.msk.bf16.mxu1 %vm381_vm2, %v13264_v48  ;;  %10229 = vmatpush3.bf16.msra.mxu1 %v10390_v39 }
0x133c   :  { %10213 = vmatmul.mubr.msk.bf16.vlgmr.msra.gmra.mxu0 %vm381_vm2, %v15273_v20 }
0x133d   :  { %10216 = vmatprep.mubr.msk.bf16.mxu0 %vm381_vm2, %v13236_v55  ;;  %v15274_v55 = vld [vmem:[#allocation57_spill] sm:$0xff] }
0x1341   :  { %10199 = vmatmul.mubr.msk.bf16.gmra.mxu1 %vm381_vm2, %v13298_v16 }
0x1342   :  { %10202 = vmatprep.mubr.msk.bf16.mxu1 %vm381_vm2, %v13334_v44 }
0x1344   :  { %10217 = vmatmul.mubr.msk.bf16.gmra.mxu0 %vm381_vm2, %v13260_v35  ;;  %v15275_v35 = vld [vmem:[#allocation28_spill] sm:$0xff] }
0x1345   :  { %10220 = vmatprep.mubr.msk.bf16.mxu0 %vm381_vm2, %v13302_v5 }
0x1349   :  { %10203 = vmatmul.mubr.msk.bf16.gmra.mxu1 %vm381_vm2, %v13361_v21 }
0x134a   :  { %10206 = vmatprep.mubr.msk.bf16.mxu1 %vm381_vm2, %v13424_v59 }
0x134c   :  { %10221 = vmatmul.mubr.msk.bf16.gmra.mxu0 %vm381_vm2, %v13330_v7 }
0x134d   :  { %10224 = vmatprep.mubr.msk.bf16.mxu0 %vm381_vm2, %v13393_v33 }
0x1351   :  { %10207 = vmatmul.mubr.msk.bf16.gmra.mxu1 %vm381_vm2, %v15274_v55 }
0x1352   :  { %10230 = vmatprep.mubr.msk.bf16.mxu1 %vm381_vm2, %v13344_v56 }
0x1354   :  { %10225 = vmatmul.mubr.msk.bf16.gmra.mxu0 %vm381_vm2, %v15275_v35 }
0x1355   :  { %10262 = vmatprep.mubr.msk.f32.mxu0 %vm10434_vm1, %v15263_v42 }
0x1359   :  { %10231 = vmatmul.mubr.msk.bf16.vlgmr.msra.gmra.mxu1 %vm381_vm2, %v13456_v34 }
0x135a   :  { %10234 = vmatprep.mubr.msk.bf16.mxu1 %vm381_vm2, %v13493_v51 }
0x1361   :  { %10235 = vmatmul.mubr.msk.bf16.gmra.mxu1 %vm381_vm2, %v13509_v15 }
0x1362   :  { %10238 = vmatprep.mubr.msk.bf16.mxu1 %vm381_vm2, %v13513_v62 }
0x1369   :  { %10239 = vmatmul.mubr.msk.bf16.gmra.mxu1 %vm381_vm2, %v13538_v24 }
0x136a   :  { %10242 = vmatprep.mubr.msk.bf16.mxu1 %vm381_vm2, %v13436_v63 }
0x1371   :  { %10243 = vmatmul.mubr.msk.bf16.gmra.mxu1 %vm381_vm2, %v13432_v9 }
0x1399   :  { %v10088_v33 = vpop.f32.mrf.mxu1 }
0x139b   :  { %v6190_v34 = vpop.f32.mrf.mxu1 }
0x139c   :  { %v10106_v56 = vpop.f32.mrf.mxu0 }
0x139d   :  { %v6326_v48 = vadd.f32 %v10106_v56, %v10088_v33  ;;  %v10089_v16 = vpop.f32.mrf.mxu1 }
0x139e   :  { %v6317_v5 = vpop.f32.mrf.mxu0 }
0x139f   :  { %v6318_v7 = vadd.f32 %v6317_v5, %v6190_v34  ;;  %v6193_v44 = vpop.f32.mrf.mxu1 }
0x13a0   :  { %v10107_v21 = vpop.f32.mrf.mxu0 }
0x13a1   :  { %v6329_v59 = vadd.f32 %v10107_v21, %v10089_v16  ;;  %v10092_v37 = vpop.f32.mrf.mxu1 }
0x13a2   :  { %v6320_v29 = vpop.f32.mrf.mxu0 }
0x13a3   :  { %v6321_v52 = vadd.f32 %v6320_v29, %v6193_v44  ;;  %v6206_v31 = vpop.f32.mrf.mxu1 }
0x13a4   :  { %v10110_v23 = vpop.f32.mrf.mxu0 }
0x13a5   :  { %v6342_v22 = vadd.f32 %v10110_v23, %v10092_v37  ;;  %v10093_v63 = vpop.f32.mrf.mxu1 }
0x13a6   :  { %v6333_v51 = vpop.f32.mrf.mxu0 }
0x13a7   :  { %v6334_v18 = vadd.f32 %v6333_v51, %v6206_v31  ;;  %v6209_v9 = vpop.f32.mrf.mxu1 }
0x13a8   :  { %v10111_v53 = vpop.f32.mrf.mxu0 }
0x13a9   :  { %v6345_v57 = vadd.f32 %v10111_v53, %v10093_v63  ;;  %v10096_v15 = vpop.f32.mrf.mxu1 }
0x13aa   :  { %v6336_v62 = vpop.f32.mrf.mxu0 }
0x13ab   :  { %v6337_v27 = vadd.f32 %v6336_v62, %v6209_v9  ;;  %v6222_v28 = vpop.f32.mrf.mxu1 }
0x13ac   :  { %v10114_v4 = vpop.f32.mrf.mxu0 }
0x13ad   :  { %v6358_v3 = vadd.f32 %v10114_v4, %v10096_v15  ;;  %v10097_v60 = vpop.f32.mrf.mxu1 }
0x13ae   :  { %v6349_v26 = vpop.f32.mrf.mxu0 }
0x13af   :  { %v6350_v8 = vadd.f32 %v6349_v26, %v6222_v28  ;;  %v6225_v24 = vpop.f32.mrf.mxu1 }
0x13b0   :  { %v10115_v61 = vpop.f32.mrf.mxu0 }
0x13b1   :  { %v6361_v49 = vadd.f32 %v10115_v61, %v10097_v60  ;;  %v10100_v1 = vpop.f32.mrf.mxu1 }
0x13b2   :  { %v6352_v6 = vpop.f32.mrf.mxu0 }
0x13b3   :  { %v6353_v40 = vadd.f32 %v6352_v6, %v6225_v24  ;;  %v6238_v41 = vpop.f32.mrf.mxu1 }
0x13b4   :  { %v10118_v38 = vpop.f32.mrf.mxu0 }
0x13b5   :  { %v6374_v58 = vadd.f32 %v10118_v38, %v10100_v1  ;;  %v10101_v25 = vpop.f32.mrf.mxu1 }
0x13b6   :  { %v6365_v2 = vpop.f32.mrf.mxu0 }
0x13b7   :  { %v6366_v32 = vadd.f32 %v6365_v2, %v6238_v41  ;;  %v6241_v12 = vpop.f32.mrf.mxu1 }
0x13b8   :  { %v10119_v47 = vpop.f32.mrf.mxu0 }
0x13b9   :  { %v6377_v39 = vadd.f32 %v10119_v47, %v10101_v25  ;;  %v10124_v13 = vpop.f32.mrf.mxu1 }
0x13ba   :  { %v13686_v54 = vadd.f32 %v10124_v13, %v6326_v48  ;;  %v6368_v14 = vpop.f32.mrf.mxu0 }
0x13bb   :  { %v6369_v30 = vadd.f32 %v6368_v14, %v6241_v12  ;;  %v6487_v17 = vpop.f32.mrf.mxu1 }
0x13bc   :  { %v13688_v10 = vadd.f32 %v6487_v17, %v6318_v7  ;;  %v13690_v46 = vpop.f32.mrf.mxu0 }
0x13bd   :  { %v10125_v45 = vpop.f32.mrf.mxu1 }
0x13be   :  { %v6553_v0 = vadd.f32 %v10125_v45, %v6329_v59  ;;  %v13692_v50 = vpop.f32.mrf.mxu0 }
0x13bf   :  { %v6490_v36 = vpop.f32.mrf.mxu1 }
0x13c0   :  { %v6551_v19 = vadd.f32 %v6490_v36, %v6321_v52  ;;  %v10143_v43 = vpop.f32.mrf.mxu0 }
0x13c1   :  { %v6707_v20 = vadd.f32 %v10143_v43, %v6553_v0  ;;  %v10128_v55 = vpop.f32.mrf.mxu1 }
0x13c2   :  { %v6556_v35 = vadd.f32 %v10128_v55, %v6342_v22  ;;  %v6644_v33 = vpop.f32.mrf.mxu0 }
0x13c3   :  { %v6705_v34 = vadd.f32 %v6644_v33, %v6551_v19  ;;  %v6503_v56 = vpop.f32.mrf.mxu1 }
0x13c4   :  { %v6554_v48 = vadd.f32 %v6503_v56, %v6334_v18  ;;  %v10146_v16 = vpop.f32.mrf.mxu0 }
0x13c5   :  { %v6710_v5 = vadd.f32 %v10146_v16, %v6556_v35  ;;  %v10129_v7 = vpop.f32.mrf.mxu1 }
0x13c6   :  { %v6557_v44 = vadd.f32 %v10129_v7, %v6345_v57  ;;  %v6657_v21 = vpop.f32.mrf.mxu0 }
0x13c7   :  { %v6708_v37 = vadd.f32 %v6657_v21, %v6554_v48  ;;  %v6506_v29 = vpop.f32.mrf.mxu1 }
0x13c8   :  { %v6555_v59 = vadd.f32 %v6506_v29, %v6337_v27  ;;  %v10147_v31 = vpop.f32.mrf.mxu0 }
0x13c9   :  { %v6711_v23 = vadd.f32 %v10147_v31, %v6557_v44  ;;  %v10132_v63 = vpop.f32.mrf.mxu1 }
0x13ca   :  { %v6560_v52 = vadd.f32 %v10132_v63, %v6358_v3  ;;  %v6660_v51 = vpop.f32.mrf.mxu0 }
0x13cb   :  { %v6709_v9 = vadd.f32 %v6660_v51, %v6555_v59  ;;  %v6519_v53 = vpop.f32.mrf.mxu1 }
0x13cc   :  { %v6558_v22 = vadd.f32 %v6519_v53, %v6350_v8  ;;  %v10150_v15 = vpop.f32.mrf.mxu0 }
0x13cd   :  { %v6714_v62 = vadd.f32 %v10150_v15, %v6560_v52  ;;  %v10133_v28 = vpop.f32.mrf.mxu1 }
0x13ce   :  { %v6561_v18 = vadd.f32 %v10133_v28, %v6361_v49  ;;  %v6673_v4 = vpop.f32.mrf.mxu0 }
0x13cf   :  { %v6712_v60 = vadd.f32 %v6673_v4, %v6558_v22  ;;  %v6522_v26 = vpop.f32.mrf.mxu1 }
0x13d0   :  { %v6559_v57 = vadd.f32 %v6522_v26, %v6353_v40  ;;  %v10151_v24 = vpop.f32.mrf.mxu0 }
0x13d1   :  { %v6715_v61 = vadd.f32 %v10151_v24, %v6561_v18  ;;  %v10136_v1 = vpop.f32.mrf.mxu1 }
0x13d2   :  { %v6564_v27 = vadd.f32 %v10136_v1, %v6374_v58  ;;  %v6676_v6 = vpop.f32.mrf.mxu0 }
0x13d3   :  { %v6713_v41 = vadd.f32 %v6676_v6, %v6559_v57  ;;  %v6535_v38 = vpop.f32.mrf.mxu1 }
0x13d4   :  { %v6562_v3 = vadd.f32 %v6535_v38, %v6366_v32  ;;  %v10154_v25 = vpop.f32.mrf.mxu0 }
0x13d5   :  { %v6718_v2 = vadd.f32 %v10154_v25, %v6564_v27  ;;  %v10137_v12 = vpop.f32.mrf.mxu1 }
0x13d6   :  { %v6565_v8 = vadd.f32 %v10137_v12, %v6377_v39  ;;  %v6689_v47 = vpop.f32.mrf.mxu0 }
0x13d7   :  { %v6716_v13 = vadd.f32 %v6689_v47, %v6562_v3  ;;  %v6538_v14 = vpop.f32.mrf.mxu1 }
0x13d8   :  { %v6563_v49 = vadd.f32 %v6538_v14, %v6369_v30  ;;  %v10155_v17 = vpop.f32.mrf.mxu0 }
0x13d9   :  { %v6719_v45 = vadd.f32 %v10155_v17, %v6565_v8  ;;  %v13694_v0 = vpop.f32.mrf.mxu1 }
0x13da   :  { %v6692_v40 = vpop.f32.mrf.mxu0 }
0x13db   :  { %v6717_v36 = vadd.f32 %v6692_v40, %v6563_v49  ;;  %v13696_v19 = vpop.f32.mrf.mxu1 }
0x13dc   :  { %v13698_v58 = vpop.f32.mrf.mxu0 }
0x13dd   :  { %v10161_v43 = vpop.f32.mrf.mxu1 }
0x13de   :  { %v13700_v32 = vadd.f32 %v10161_v43, %v6707_v20  ;;  %v13702_v55 = vpop.f32.mrf.mxu0 }
0x13df   :  { %v6798_v39 = vpop.f32.mrf.mxu1 }
0x13e0   :  { %v13704_v35 = vadd.f32 %v6798_v39, %v6705_v34  ;;  %v13706_v33 = vpop.f32.mrf.mxu0 }
0x13e1   :  { %v10164_v30 = vpop.f32.mrf.mxu1 }
0x13e2   :  { %v13708_v56 = vadd.f32 %v10164_v30, %v6710_v5  ;;  %v13710_v48 = vpop.f32.mrf.mxu0 }
0x13e3   :  { %v6811_v16 = vpop.f32.mrf.mxu1 }
0x13e4   :  { %v6862_v7 = vadd.f32 %v6811_v16, %v6708_v37  ;;  %v13712_v44 = vpop.f32.mrf.mxu0 }
0x13e5   :  { %v10165_v21 = vpop.f32.mrf.mxu1 }
0x13e6   :  { %v6865_v29 = vadd.f32 %v10165_v21, %v6711_v23  ;;  %v6965_v20 = vpop.f32.mrf.mxu0 }
0x13e7   :  { %v7016_v59 = vadd.f32 %v6965_v20, %v6862_v7  ;;  %v6814_v31 = vpop.f32.mrf.mxu1 }
0x13e8   :  { %v6863_v63 = vadd.f32 %v6814_v31, %v6709_v9  ;;  %v10183_v52 = vpop.f32.mrf.mxu0 }
0x13e9   :  { %v7019_v34 = vadd.f32 %v10183_v52, %v6865_v29  ;;  %v10168_v51 = vpop.f32.mrf.mxu1 }
0x13ea   :  { %v6868_v53 = vadd.f32 %v10168_v51, %v6714_v62  ;;  %v6968_v22 = vpop.f32.mrf.mxu0 }
0x13eb   :  { %v7017_v15 = vadd.f32 %v6968_v22, %v6863_v63  ;;  %v6827_v5 = vpop.f32.mrf.mxu1 }
0x13ec   :  { %v6866_v28 = vadd.f32 %v6827_v5, %v6712_v60  ;;  %v10186_v18 = vpop.f32.mrf.mxu0 }
0x13ed   :  { %v7022_v4 = vadd.f32 %v10186_v18, %v6868_v53  ;;  %v10169_v26 = vpop.f32.mrf.mxu1 }
0x13ee   :  { %v6869_v37 = vadd.f32 %v10169_v26, %v6715_v61  ;;  %v6981_v57 = vpop.f32.mrf.mxu0 }
0x13ef   :  { %v7020_v24 = vadd.f32 %v6981_v57, %v6866_v28  ;;  %v6830_v1 = vpop.f32.mrf.mxu1  ;;  %v6706_v57 = vadd.f32 %v13690_v46, %v13686_v54 }
0x13f0   :  { %v6867_v23 = vadd.f32 %v6830_v1, %v6713_v41  ;;  %v10187_v27 = vpop.f32.mrf.mxu0 }
0x13f1   :  { %v7023_v6 = vadd.f32 %v10187_v27, %v6869_v37  ;;  %v10172_v38 = vpop.f32.mrf.mxu1 }
0x13f2   :  { %v6872_v9 = vadd.f32 %v10172_v38, %v6718_v2  ;;  %v6984_v3 = vpop.f32.mrf.mxu0 }
0x13f3   :  { %v7021_v25 = vadd.f32 %v6984_v3, %v6867_v23  ;;  %v6843_v12 = vpop.f32.mrf.mxu1  ;;  %v6704_v23 = vadd.f32 %v13692_v50, %v13688_v10 }
0x13f4   :  { %v6870_v62 = vadd.f32 %v6843_v12, %v6716_v13  ;;  %v10190_v8 = vpop.f32.mrf.mxu0 }
0x13f5   :  { %v7026_v47 = vadd.f32 %v10190_v8, %v6872_v9  ;;  %v10173_v14 = vpop.f32.mrf.mxu1  ;;  %v6858_v9 = vadd.f32 %v13696_v19, %v6704_v23 }
0x13f6   :  { %v6873_v60 = vadd.f32 %v10173_v14, %v6719_v45  ;;  %v6997_v49 = vpop.f32.mrf.mxu0 }
0x13f7   :  { %v7024_v17 = vadd.f32 %v6997_v49, %v6870_v62  ;;  %v6846_v40 = vpop.f32.mrf.mxu1 }
0x13f8   :  { %v6871_v61 = vadd.f32 %v6846_v40, %v6717_v36  ;;  %v10191_v43 = vpop.f32.mrf.mxu0 }
0x13f9   :  { %v7027_v39 = vadd.f32 %v10191_v43, %v6873_v60  ;;  %v10196_v30 = vpop.f32.mrf.mxu1 }
0x13fa   :  { %v7000_v41 = vpop.f32.mrf.mxu0 }
0x13fb   :  { %v7025_v16 = vadd.f32 %v7000_v41, %v6871_v61  ;;  %v7071_v7 = vpop.f32.mrf.mxu1 }
0x13fc   :  { %v10214_v21 = vpop.f32.mrf.mxu0 }
0x13fd   :  { %v10197_v2 = vpop.f32.mrf.mxu1 }
0x13fe   :  { %v7193_v29 = vpop.f32.mrf.mxu0 }
0x13ff   :  { %v7074_v20 = vpop.f32.mrf.mxu1 }
0x1400   :  { %v10215_v31 = vpop.f32.mrf.mxu0 }
0x1401   :  { %v13714_v13 = vpop.f32.mrf.mxu1 }
0x1402   :  { %v7196_v63 = vpop.f32.mrf.mxu0 }
0x1403   :  { %v7087_v52 = vpop.f32.mrf.mxu1 }
0x1404   :  { %v13716_v45 = vadd.f32 %v7087_v52, %v7016_v59  ;;  %v13718_v53 = vpop.f32.mrf.mxu0 }
0x1405   :  { %v10201_v51 = vpop.f32.mrf.mxu1 }
0x1406   :  { %v13720_v36 = vadd.f32 %v10201_v51, %v7019_v34  ;;  %v13724_v18 = vpop.f32.mrf.mxu0  ;;  %v6860_v34 = vadd.f32 %v13694_v0, %v6706_v57  ;;  %v7012_v0 = vadd.f32 %v13702_v55, %v6858_v9  ;;  %v13757_v55 = vld [vmem:[%s8536_s19] ss:$0 sm:$0xff]  ;;  %v13777_v9 = vld [vmem:[%s13762_s23 + $0x7] ss:$0 sm:$0xff] }
0x1407   :  { %v7090_v22 = vpop.f32.mrf.mxu1 }
0x1408   :  { %v13722_v5 = vadd.f32 %v7090_v22, %v7017_v15  ;;  %v10219_v27 = vpop.f32.mrf.mxu0  ;;  %v7014_v54 = vadd.f32 %v13698_v58, %v6860_v34  ;;  %v7134_v12 = vadd.f32 %v7071_v7, %v7012_v0  ;;  %v7013_v58 = vadd.f32 %v13710_v48, %v13704_v35  ;;  %v15276_v7 = vld [vmem:[#allocation11_spill] sm:$0xff]  ;;  %v15278_v22 = vld [vmem:[#allocation40_spill] sm:$0xff] }
0x1409   :  { %v10204_v28 = vpop.f32.mrf.mxu1 }
0x140a   :  { %v13726_v26 = vadd.f32 %v10204_v28, %v7022_v4  ;;  %v7212_v46 = vpop.f32.mrf.mxu0  ;;  %v7256_v40 = vadd.f32 %v7193_v29, %v7134_v12  ;;  %v7135_v61 = vadd.f32 %v7074_v20, %v7013_v58  ;;  %v15279_v28 = vmax.f32 %v15278_v22, 0.0  ;;  %v15283_v12 = vld [vmem:[#allocation3_spill] sm:$0xff] }
0x140b   :  { %v7103_v37 = vpop.f32.mrf.mxu1 }
0x140c   :  { %v13730_v1 = vadd.f32 %v7103_v37, %v7020_v24  ;;  %v7136_v24 = vadd.f32 %v10196_v30, %v7014_v54  ;;  %v10222_v62 = vpop.f32.mrf.mxu0  ;;  %v7257_v41 = vadd.f32 %v7196_v63, %v7135_v61  ;;  %v15280_v63 = vld [vmem:[#allocation14_spill] sm:$0xff]  ;;  %v15281_v54 = vld [vmem:[#allocation15_spill] sm:$0xff]  ;;  %v7261_v61 = vadd.f32 %v7212_v46, %v13722_v5 }
0x140d   :  { %v10205_v59 = vpop.f32.mrf.mxu1 }
0x140e   :  { %v13735_v15 = vadd.f32 %v10205_v59, %v7023_v6  ;;  %v7225_v43 = vpop.f32.mrf.mxu0 }
0x140f   :  { %v7106_v38 = vpop.f32.mrf.mxu1 }
0x1410   :  { %v13738_v4 = vadd.f32 %v7106_v38, %v7021_v25  ;;  %v7015_v25 = vadd.f32 %v13706_v33, %v13700_v32 }
0x1411   :  { %v10208_v3 = vpop.f32.mrf.mxu1 }
0x1412   :  { %v13744_v10 = vadd.f32 %v10208_v3, %v7026_v47  ;;  %v7258_v47 = vadd.f32 %v10214_v21, %v7136_v24  ;;  %v7137_v60 = vadd.f32 %v10197_v2, %v7015_v25  ;;  %v15277_v21 = vmax.f32 %v15276_v7, 0.0  ;;  %v13780_v3 = vld [vmem:[%s13762_s23 + $0x1] ss:$0 sm:$0xff] }
0x1413   :  { %v7119_v50 = vpop.f32.mrf.mxu1  ;;  %v7263_v25 = vadd.f32 %v10219_v27, %v13720_v36  ;;  %v15284_v27 = vld [vmem:[#allocation48_spill] sm:$0xff]  ;;  %v7266_v7 = vadd.f32 %v10222_v62, %v13726_v26 }
0x1414   :  { %v13747_v6 = vadd.f32 %v7119_v50, %v7024_v17  ;;  %v7259_v33 = vadd.f32 %v10215_v31, %v7137_v60  ;;  %v15282_v50 = vmax.f32 %v15281_v54, 0.0 }
0x1415   :  { %v10209_v19 = vpop.f32.mrf.mxu1 }
0x1416   :  { %v13751_v8 = vadd.f32 %v10209_v19, %v7027_v39 }
0x1417   :  { %v7122_v14 = vpop.f32.mrf.mxu1 }
0x1418   :  { %v13755_v49 = vadd.f32 %v7122_v14, %v7025_v16  ;;  %v10223_v16 = vpop.f32.mrf.mxu0 }
0x1419   :  { %v10232_v17 = vpop.f32.mrf.mxu1 }
0x141a   :  { %v7380_v30 = vadd.f32 %v10232_v17, %v7258_v47  ;;  %v7228_v23 = vpop.f32.mrf.mxu0  ;;  %v13796_v17 = vld [vmem:[%s13762_s23 + $0x4] ss:$0 sm:$0xff] }
0x141b   :  { %v7315_v32 = vpop.f32.mrf.mxu1 }
0x141c   :  { %v7402_v35 = vadd.f32 %v13757_v55, %v7380_v30  ;;  %v7378_v48 = vadd.f32 %v7315_v32, %v7256_v40  ;;  %v7018_v40 = vadd.f32 %v13712_v44, %v13708_v56  ;;  %v10226_v30 = vpop.f32.mrf.mxu0 }
0x141d   :  { %v10233_v39 = vpop.f32.mrf.mxu1 }
0x141e   :  { %v7418_v2 = vadd.f32 %v7402_v35, %v15277_v21  ;;  %v7400_v29 = vadd.f32 %v13757_v55, %v7378_v48  ;;  %v7381_v20 = vadd.f32 %v10233_v39, %v7259_v33  ;;  %v15285_v33 = vmax.f32 %v15284_v27, 0.0 }
0x141f   :  { %v7318_v52 = vpop.f32.mrf.mxu1  ;;  %v7140_v46 = vadd.f32 %v13714_v13, %v7018_v40 }
0x1420   :  { %v7434_v51 = vmax.f32 %v7418_v2, 0.0  ;;  %v7416_v37 = vadd.f32 %v7400_v29, %v15279_v28  ;;  %v7403_v31 = vadd.f32 %v13757_v55, %v7381_v20  ;;  %v7379_v57 = vadd.f32 %v7318_v52, %v7257_v41  ;;  %v7241_v20 = vpop.f32.mrf.mxu0  ;;  %v15286_v52 = vld [vmem:[#allocation6_spill] sm:$0xff] }
0x1421   :  { %v13771_v59 = vpop.f32.mrf.mxu1  ;;  %v7264_v29 = vadd.f32 %v7225_v43, %v13730_v1  ;;  %v7262_v54 = vadd.f32 %v13718_v53, %v7140_v46  ;;  %v7268_v40 = vadd.f32 %v7241_v20, %v13747_v6 }
0x1422   :  { %v13774_v34 = vmul.f32 %v7434_v51, %v15280_v63  ;;  %v7432_v38 = vmax.f32 %v7416_v37, 0.0  ;;  %v7419_v0 = vadd.f32 %v7403_v31, %v15282_v50  ;;  %v7401_v24 = vadd.f32 %v13757_v55, %v7379_v57 }
0x1423   :  { %v13785_v19 = vpop.f32.mrf.mxu1  ;;  %v7267_v57 = vadd.f32 %v10223_v16, %v13735_v15  ;;  %v7265_v50 = vadd.f32 %v7228_v23, %v13738_v4  ;;  %v15287_v16 = vld [vmem:[#allocation5_spill] sm:$0xff] }
0x1424   :  { %v13789_v14 = vmul.f32 %v7432_v38, %v15283_v12  ;;  %v8136_v47 = vmul.f32 %v13777_v9, %v13774_v34  ;;  %v7578_v60 = vmul.f32 %v13780_v3, %v13774_v34  ;;  %v7435_v36 = vmax.f32 %v7419_v0, 0.0 }
0x1425   :  { %v10237_v58 = vpop.f32.mrf.mxu1  ;;  %v7417_v35 = vadd.f32 %v7401_v24, %v15285_v33  ;;  %v7873_v56 = vmul.f32 %v13796_v17, %v13774_v34  ;;  %v7270_v0 = vadd.f32 %v10226_v30, %v13744_v10  ;;  %v10227_v24 = vpop.f32.mrf.mxu0 }
0x1426   :  { %v7385_v32 = vadd.f32 %v10237_v58, %v7263_v25  ;;  %v8154_v39 = vsel %vm381_vm2, %v8136_v47, 0.0  ;;  %v7600_v41 = vsel %vm381_vm2, %v7578_v60, 0.0  ;;  %v7576_v5 = vmul.f32 %v13780_v3, %v13789_v14 }
0x1427   :  { %v7334_v48 = vpop.f32.mrf.mxu1  ;;  %8155 = vadd.xlane.f32.xlu1 %v8154_v39  ;;  %7601 = vadd.xlane.f32.xlu0 %v7600_v41  ;;  %v13819_v51 = vmul.f32 %v7435_v36, %v15286_v52  ;;  %v7433_v22 = vmax.f32 %v7417_v35, 0.0  ;;  %v8150_v31 = vmul.f32 %v13777_v9, %v13789_v14  ;;  %v7893_v1 = vsel %vm381_vm2, %v7873_v56, 0.0  ;;  %v7244_v30 = vpop.f32.mrf.mxu0 }
0x1428   :  { %v13807_v21 = vadd.f32 %v13757_v55, %v7385_v32  ;;  %v7383_v2 = vadd.f32 %v7334_v48, %v7261_v61  ;;  %v7594_v37 = vsel %vm381_vm2, %v7576_v5, 0.0  ;;  %v7871_v43 = vmul.f32 %v13796_v17, %v13789_v14 }
0x1429   :  { %v10240_v44 = vpop.f32.mrf.mxu1  ;;  %v13835_v25 = vmul.f32 %v7433_v22, %v15287_v16  ;;  %v8196_v47 = vsel %vm381_vm2, %v8150_v31, 0.0  ;;  %v7579_v60 = vmul.f32 %v13780_v3, %v13819_v51  ;;  %v8137_v23 = vmul.f32 %v13777_v9, %v13819_v51 }
0x142a   :  { %v13816_v26 = vadd.f32 %v13757_v55, %v7383_v2  ;;  %v7388_v62 = vadd.f32 %v10240_v44, %v7266_v7  ;;  %v7887_v10 = vsel %vm381_vm2, %v7871_v43, 0.0  ;;  %v7384_v32 = vadd.f32 %v13771_v59, %v7262_v54  ;;  %v13897_v43 = vld [vmem:[%s13762_s23] ss:$0 sm:$0xff] }
0x142b   :  { %v7347_v28 = vpop.f32.mrf.mxu1  ;;  %7595 = vadd.xlane.f32.xlu1 %v7594_v37  ;;  %7894 = vadd.xlane.f32.xlu0 %v7893_v1  ;;  %v7874_v33 = vmul.f32 %v13796_v17, %v13819_v51  ;;  %v7260_v35 = vadd.f32 %v13724_v18, %v13716_v45  ;;  %v7271_v48 = vadd.f32 %v10227_v24, %v13751_v8  ;;  %v7603_v6 = vsel %vm381_vm2, %v7579_v60, 0.0  ;;  %v13913_v60 = vld [vmem:[%s13762_s23 + $0x5] ss:$0 sm:$0xff] }
0x142c   :  { %v13826_v13 = vadd.f32 %v13757_v55, %v7388_v62  ;;  %v7386_v63 = vadd.f32 %v7347_v28, %v7264_v29  ;;  %v8157_v59 = vsel %vm381_vm2, %v8137_v23, 0.0  ;;  %v7577_v2 = vmul.f32 %v13780_v3, %v13835_v25 }
0x142d   :  { %v10241_v38 = vpop.f32.mrf.mxu1  ;;  %v7269_v56 = vadd.f32 %v7244_v30, %v13755_v49  ;;  %v7382_v44 = vadd.f32 %v13785_v19, %v7260_v35  ;;  %v7657_v18 = vrot.slane %v13774_v34, 1  ;;  %v7658_v8 = vrot.slane %v13819_v51, 1  ;;  %v13924_v35 = vld [vmem:[%s13762_s23 + $0x8] ss:$0 sm:$0xff] }
0x142e   :  { %v7389_v15 = vadd.f32 %v10241_v38, %v7267_v57  ;;  %v13838_v12 = vadd.f32 %v13757_v55, %v7386_v63  ;;  %v7406_v5 = vadd.f32 %v13757_v55, %v7384_v32  ;;  %v7896_v29 = vsel %vm381_vm2, %v7874_v33, 0.0  ;;  %v13887_v57 = vld [vmem:[%s13762_s23 + $0x2] ss:$0 sm:$0xff] }
0x142f   :  { %v7350_v58 = vpop.f32.mrf.mxu1  ;;  %8197 = vadd.xlane.f32.xlu1 %v8196_v47  ;;  %7888 = vadd.xlane.f32.xlu0 %v7887_v10  ;;  %v7872_v49 = vmul.f32 %v13796_v17, %v13835_v25  ;;  %v7683_v62 = vsel %vm2251_vm6, %v7657_v18, %v7658_v8  ;;  %v7466_v52 = vrot.slane %v13774_v34, 7  ;;  %v7467_v22 = vrot.slane %v13819_v51, 7  ;;  %v15288_v63 = vld [vmem:[#allocation51_spill] sm:$0xff]  ;;  %v15290_v10 = vld [vmem:[#allocation52_spill] sm:$0xff] }
0x1430   :  { %v13844_v53 = vadd.f32 %v13757_v55, %v7389_v15  ;;  %v7387_v4 = vadd.f32 %v7350_v58, %v7265_v50  ;;  %v7597_v37 = vsel %vm381_vm2, %v7577_v2, 0.0  ;;  %v8135_v31 = vmul.f32 %v13777_v9, %v13835_v25  ;;  %v13910_v47 = vld [vmem:[%s13762_s23 + $0x3] ss:$0 sm:$0xff] }
0x1431   :  { %v10244_v61 = vpop.f32.mrf.mxu1  ;;  %v7492_v34 = vsel %vm1943_vm5, %v7466_v52, %v7467_v22  ;;  %v15289_v38 = vmax.f32 %v15288_v63, 0.0  ;;  %v7404_v50 = vadd.f32 %v13757_v55, %v7382_v44  ;;  %v7890_v24 = vsel %vm381_vm2, %v7872_v49, 0.0 }
0x1432   :  { %v13852_v36 = vadd.f32 %v13757_v55, %v7387_v4  ;;  %v7392_v27 = vadd.f32 %v10244_v61, %v7270_v0  ;;  %v7698_v15 = vmul.f32 %v13887_v57, %v7683_v62  ;;  %v8151_v16 = vsel %vm381_vm2, %v8135_v31, 0.0 }
0x1433   :  { %v7363_v39 = vpop.f32.mrf.mxu1  ;;  %7604 = vadd.xlane.f32.xlu1 %v7603_v6  ;;  %8158 = vadd.xlane.f32.xlu0 %v8157_v59  ;;  %v7422_v54 = vadd.f32 %v7406_v5, %v15289_v38  ;;  %v7507_v58 = vmul.f32 %v13897_v43, %v7492_v34  ;;  %v7786_v61 = vmul.f32 %v13910_v47, %v7492_v34  ;;  %v7656_v30 = vrot.slane %v13835_v25, 1 }
0x1434   :  { %v13861_v41 = vadd.f32 %v13757_v55, %v7392_v27  ;;  %v7390_v7 = vadd.f32 %v7363_v39, %v7268_v40  ;;  %v7720_v40 = vsel %vm381_vm2, %v7698_v15, 0.0  ;;  %v7465_v32 = vrot.slane %v13835_v25, 7  ;;  %v13928_v39 = vld [vmem:[%s13762_s23 + $0x6] ss:$0 sm:$0xff] }
0x1435   :  { %v10245_v45 = vpop.f32.mrf.mxu1  ;;  %v7438_v4 = vmax.f32 %v7422_v54, 0.0  ;;  %v7531_v27 = vsel %vm381_vm2, %v7507_v58, 0.0  ;;  %v7961_v33 = vmul.f32 %v13913_v60, %v7683_v62  ;;  %v13932_v6 = vsel %vm2251_vm6, %v7656_v30, %v7657_v18 }
0x1436   :  { %v13872_v46 = vadd.f32 %v13757_v55, %v7390_v7  ;;  %v7393_v20 = vadd.f32 %v10245_v45, %v7271_v48  ;;  %v7464_v48 = vrot.slane %v13789_v14, 7  ;;  %v13936_v7 = vsel %vm1943_vm5, %v7465_v32, %v7466_v52 }
0x1437   :  { %v7366_v19 = vpop.f32.mrf.mxu1  ;;  %7897 = vadd.xlane.f32.xlu1 %v7896_v29  ;;  %7598 = vadd.xlane.f32.xlu0 %v7597_v37  ;;  %v7655_v25 = vrot.slane %v13789_v14, 1  ;;  %v7808_v45 = vsel %vm381_vm2, %v7786_v61, 0.0  ;;  %v8224_v18 = vmul.f32 %v13924_v35, %v7683_v62  ;;  %v7981_v29 = vsel %vm381_vm2, %v7961_v33, 0.0  ;;  %v15296_v62 = vld [vmem:[#allocation34_spill] sm:$0xff] }
0x1438   :  { %v7391_v28 = vadd.f32 %v7366_v19, %v7269_v56  ;;  %v13890_v1 = vadd.f32 %v13757_v55, %v7393_v20  ;;  %v13943_v2 = vsel %vm1943_vm5, %v7464_v48, %v7465_v32  ;;  %v15292_v56 = vld [vmem:[#allocation9_spill] sm:$0xff]  ;;  %v8049_v49 = vmul.f32 %v13928_v39, %v7492_v34  ;;  %v15293_v20 = vld [vmem:[#allocation39_spill] sm:$0xff] }
0x1439   :  { %v7454_v44 = vmul.f32 %v7438_v4, %v15292_v56  ;;  %v13952_v5 = vsel %vm2251_vm6, %v7655_v25, %v7656_v30  ;;  %v15294_v19 = vmax.f32 %v15293_v20, 0.0  ;;  %v15297_v31 = vmax.f32 %v15296_v62, 0.0  ;;  %v15299_v30 = vld [vmem:[#allocation8_spill] sm:$0xff] }
0x143a   :  { %v13903_v0 = vadd.f32 %v13757_v55, %v7391_v28  ;;  %v15291_v55 = vmax.f32 %v15290_v10, 0.0  ;;  %v15295_v28 = vld [vmem:[#allocation7_spill] sm:$0xff]  ;;  %v8242_v38 = vsel %vm381_vm2, %v8224_v18, 0.0  ;;  %v7697_v10 = vmul.f32 %v13887_v57, %v13932_v6  ;;  %v15300_v18 = vld [vmem:[#allocation46_spill] sm:$0xff] }
0x143b   :  { %7891 = vadd.xlane.f32.xlu1 %v7890_v24  ;;  %8152 = vadd.xlane.f32.xlu0 %v8151_v16  ;;  %v7423_v52 = vadd.f32 %v13807_v21, %v15294_v19  ;;  %v7421_v63 = vadd.f32 %v13816_v26, %v15297_v31  ;;  %v7877_v54 = vmul.f32 %v13796_v17, %v7454_v44  ;;  %v7661_v51 = vrot.slane %v7454_v44, 1 }
0x143c   :  { %v7420_v23 = vadd.f32 %v7404_v50, %v15291_v55  ;;  %v8069_v50 = vsel %vm381_vm2, %v8049_v49, 0.0  ;;  %v7582_v34 = vmul.f32 %v13780_v3, %v7454_v44  ;;  %v8140_v58 = vmul.f32 %v13777_v9, %v7454_v44 }
0x143d   :  { %v7439_v24 = vmax.f32 %v7423_v52, 0.0  ;;  %v7437_v21 = vmax.f32 %v7421_v63, 0.0  ;;  %v7905_v16 = vsel %vm381_vm2, %v7877_v54, 0.0  ;;  %v7506_v33 = vmul.f32 %v13897_v43, %v13936_v7  ;;  %v15302_v63 = vld [vmem:[#allocation33_spill] sm:$0xff] }
0x143e   :  { %v7436_v59 = vmax.f32 %v7420_v23, 0.0  ;;  %v7612_v4 = vsel %vm381_vm2, %v7582_v34, 0.0  ;;  %v15298_v23 = vld [vmem:[#allocation10_spill] sm:$0xff]  ;;  %v7959_v31 = vmul.f32 %v13913_v60, %v13952_v5 }
0x143f   :  { %7721 = vadd.xlane.f32.xlu1 %v7720_v40  ;;  %7532 = vadd.xlane.f32.xlu0 %v7531_v27  ;;  %v13983_v40 = vmul.f32 %v7439_v24, %v15298_v23  ;;  %v13992_v32 = vmul.f32 %v7437_v21, %v15299_v30  ;;  %v8166_v27 = vsel %vm381_vm2, %v8140_v58, 0.0  ;;  %v7528_v52 = vsel %vm381_vm2, %v7506_v33, 0.0 }
0x1440   :  { %v13960_v37 = vmul.f32 %v7436_v59, %v15295_v28  ;;  %v7785_v59 = vmul.f32 %v13910_v47, %v13936_v7  ;;  %v7505_v28 = vmul.f32 %v13897_v43, %v13943_v2 }
0x1441   :  { %v7662_v56 = vrot.slane %v13983_v40, 1  ;;  %v7469_v20 = vrot.slane %v13992_v32, 7  ;;  %v7660_v19 = vrot.slane %v13992_v32, 1  ;;  %v8139_v14 = vmul.f32 %v13777_v9, %v13992_v32 }
0x1442   :  { %v7468_v15 = vrot.slane %v13960_v37, 7  ;;  %v7659_v26 = vrot.slane %v13960_v37, 1 }
0x1443   :  { %7809 = vadd.xlane.f32.xlu1 %v7808_v45  ;;  %7982 = vadd.xlane.f32.xlu0 %v7981_v29  ;;  %v7471_v45 = vrot.slane %v13983_v40, 7  ;;  %v15301_v29 = vmax.f32 %v15300_v18, 0.0  ;;  %v14012_v62 = vsel %vm2251_vm6, %v7661_v51, %v7662_v56 }
0x1444   :  { %v13980_v55 = vsel %vm1943_vm5, %v7467_v22, %v7468_v15  ;;  %v13989_v61 = vsel %vm2251_vm6, %v7658_v8, %v7659_v26  ;;  %v7717_v22 = vsel %vm381_vm2, %v7697_v10, 0.0  ;;  %v7470_v8 = vrot.slane %v7454_v44, 7 }
0x1445   :  { %v7424_v49 = vadd.f32 %v13838_v12, %v15301_v29  ;;  %v7805_v12 = vsel %vm381_vm2, %v7785_v59, 0.0  ;;  %v7696_v10 = vmul.f32 %v13887_v57, %v13952_v5  ;;  %v14043_v23 = vsel %vm2251_vm6, %v7659_v26, %v7660_v19 }
0x1446   :  { %v14016_v44 = vsel %vm1943_vm5, %v7470_v8, %v7471_v45  ;;  %v14029_v21 = vsel %vm1943_vm5, %v7469_v20, %v7470_v8  ;;  %v14047_v30 = vsel %vm1943_vm5, %v7468_v15, %v7469_v20  ;;  %v7784_v26 = vmul.f32 %v13910_v47, %v13943_v2  ;;  %v15309_v20 = vld [vmem:[#allocation21_spill] sm:$0xff] }
0x1447   :  { %8243 = vadd.xlane.f32.xlu1 %v8242_v38  ;;  %8070 = vadd.xlane.f32.xlu0 %v8069_v50  ;;  %v15303_v38 = vmax.f32 %v15302_v63, 0.0  ;;  %v15304_v50 = vld [vmem:[#allocation45_spill] sm:$0xff]  ;;  %v7440_v58 = vmax.f32 %v7424_v49, 0.0  ;;  %v7714_v29 = vsel %vm381_vm2, %v7696_v10, 0.0  ;;  %v8223_v15 = vmul.f32 %v13924_v35, %v13932_v6 }
0x1448   :  { %v15305_v34 = vmax.f32 %v15304_v50, 0.0  ;;  %v8228_v11 = vmul.f32 %v13924_v35, %v14012_v62 }
0x1449   :  { %v7426_v54 = vadd.f32 %v13826_v13, %v15303_v38  ;;  %v7975_v13 = vsel %vm381_vm2, %v7959_v31, 0.0  ;;  %v7960_v31 = vmul.f32 %v13913_v60, %v13932_v6  ;;  %v8239_v63 = vsel %vm381_vm2, %v8223_v15, 0.0 }
0x144a   :  { %v7427_v24 = vadd.f32 %v13844_v53, %v15305_v34  ;;  %v8047_v53 = vmul.f32 %v13928_v39, %v13943_v2  ;;  %v7875_v38 = vmul.f32 %v13796_v17, %v13960_v37 }
0x144b   :  { %7906 = vadd.xlane.f32.xlu1 %v7905_v16  ;;  %7613 = vadd.xlane.f32.xlu0 %v7612_v4  ;;  %v14033_v16 = vsel %vm2251_vm6, %v7660_v19, %v7661_v51  ;;  %v7525_v4 = vsel %vm381_vm2, %v7505_v28, 0.0  ;;  %v15307_v51 = vld [vmem:[#allocation44_spill] sm:$0xff]  ;;  %v7978_v10 = vsel %vm381_vm2, %v7960_v31, 0.0 }
0x144c   :  { %v7443_v33 = vmax.f32 %v7427_v24, 0.0  ;;  %v15308_v8 = vmax.f32 %v15307_v51, 0.0  ;;  %v8063_v49 = vsel %vm381_vm2, %v8047_v53, 0.0  ;;  %v7899_v53 = vsel %vm381_vm2, %v7875_v38, 0.0  ;;  %v15314_v38 = vld [vmem:[#allocation56_spill] sm:$0xff] }
0x144e   :  { %v7425_v18 = vadd.f32 %v13852_v36, %v15308_v8  ;;  %v7802_v36 = vsel %vm381_vm2, %v7784_v26, 0.0 }
0x144f   :  { %8167 = vadd.xlane.f32.xlu1 %v8166_v27  ;;  %7718 = vadd.xlane.f32.xlu0 %v7717_v22  ;;  %v7442_v27 = vmax.f32 %v7426_v54, 0.0  ;;  %v15306_v22 = vld [vmem:[#allocation12_spill] sm:$0xff] }
0x1450   :  { %v14050_v59 = vmul.f32 %v7440_v58, %v15306_v22  ;;  %v15311_v58 = vld [vmem:[#allocation17_spill] sm:$0xff]  ;;  %v15312_v22 = vld [vmem:[#allocation47_spill] sm:$0xff] }
0x1451   :  { %v14062_v19 = vmul.f32 %v7442_v27, %v15309_v20  ;;  %v7878_v27 = vmul.f32 %v13796_v17, %v13983_v40  ;;  %v15313_v51 = vmax.f32 %v15312_v22, 0.0  ;;  %v15318_v22 = vld [vmem:[#allocation35_spill] sm:$0xff] }
0x1452   :  { %v7663_v2 = vrot.slane %v14050_v59, 1  ;;  %v7472_v54 = vrot.slane %v14050_v59, 7 }
0x1453   :  { %7529 = vadd.xlane.f32.xlu1 %v7528_v52  ;;  %7806 = vadd.xlane.f32.xlu0 %v7805_v12  ;;  %v15310_v52 = vld [vmem:[#allocation25_spill] sm:$0xff]  ;;  %v7441_v12 = vmax.f32 %v7425_v18, 0.0  ;;  %v7474_v34 = vrot.slane %v14062_v19, 7  ;;  %v7428_v8 = vadd.f32 %v13872_v46, %v15313_v51  ;;  %v8238_v18 = vmul.f32 %v13924_v35, %v13952_v5 }
0x1454   :  { %v14065_v28 = vmul.f32 %v7443_v33, %v15310_v52  ;;  %v14077_v50 = vsel %vm2251_vm6, %v7662_v56, %v7663_v2  ;;  %v14083_v6 = vsel %vm1943_vm5, %v7471_v45, %v7472_v54  ;;  %v7665_v45 = vrot.slane %v14062_v19, 1 }
0x1455   :  { %v7908_v26 = vsel %vm381_vm2, %v7878_v27, 0.0  ;;  %v7444_v52 = vmax.f32 %v7428_v8, 0.0  ;;  %v7508_v8 = vmul.f32 %v13897_v43, %v13980_v55 }
0x1456   :  { %v7475_v24 = vrot.slane %v14065_v28, 7  ;;  %v7666_v33 = vrot.slane %v14065_v28, 1 }
0x1457   :  { %7526 = vadd.xlane.f32.xlu1 %v7525_v4  ;;  %7976 = vadd.xlane.f32.xlu0 %v7975_v13  ;;  %v14086_v4 = vmul.f32 %v7441_v12, %v15311_v58  ;;  %v8048_v13 = vmul.f32 %v13928_v39, %v13936_v7  ;;  %v8284_v12 = vsel %vm381_vm2, %v8238_v18, 0.0  ;;  %v15315_v58 = vmax.f32 %v15314_v38, 0.0  ;;  %v15319_v18 = vld [vmem:[#allocation13_spill] sm:$0xff] }
0x1458   :  { %v14093_v56 = vsel %vm1943_vm5, %v7474_v34, %v7475_v24  ;;  %v14112_v15 = vsel %vm2251_vm6, %v7665_v45, %v7666_v33  ;;  %v14144_v51 = vmul.f32 %v7444_v52, %v15318_v22  ;;  %v7787_v52 = vmul.f32 %v13910_v47, %v13980_v55 }
0x1459   :  { %v8066_v7 = vsel %vm381_vm2, %v8048_v13, 0.0  ;;  %v7664_v20 = vrot.slane %v14086_v4, 1  ;;  %v8225_v22 = vmul.f32 %v13924_v35, %v13989_v61 }
0x145b   :  { %7715 = vadd.xlane.f32.xlu1 %v7714_v29  ;;  %8064 = vadd.xlane.f32.xlu0 %v8063_v49  ;;  %v7473_v29 = vrot.slane %v14086_v4, 7  ;;  %v8141_v49 = vmul.f32 %v13777_v9, %v13983_v40  ;;  %v14121_v5 = vsel %vm2251_vm6, %v7664_v20, %v7665_v45  ;;  %v14137_v27 = vsel %vm2251_vm6, %v7663_v2, %v7664_v20 }
0x145c   :  { %v7534_v20 = vsel %vm381_vm2, %v7508_v8, 0.0 }
0x145d   :  { %v14117_v46 = vsel %vm1943_vm5, %v7473_v29, %v7474_v34  ;;  %v8169_v31 = vsel %vm381_vm2, %v8141_v49, 0.0  ;;  %v7430_v34 = vadd.f32 %v13861_v41, %v15315_v58  ;;  %v14141_v45 = vsel %vm1943_vm5, %v7472_v54, %v7473_v29 }
0x145e   :  { %v8138_v41 = vmul.f32 %v13777_v9, %v13960_v37  ;;  %v7699_v49 = vmul.f32 %v13887_v57, %v13989_v61 }
0x145f   :  { %7803 = vadd.xlane.f32.xlu1 %v7802_v36  ;;  %8240 = vadd.xlane.f32.xlu0 %v8239_v63  ;;  %v7580_v36 = vmul.f32 %v13780_v3, %v13960_v37  ;;  %v7583_v63 = vmul.f32 %v13780_v3, %v13983_v40  ;;  %v7446_v2 = vmax.f32 %v7430_v34, 0.0  ;;  %v7476_v37 = vrot.slane %v14144_v51, 7 }
0x1460   :  { %v8160_v29 = vsel %vm381_vm2, %v8138_v41, 0.0 }
0x1461   :  { %v7606_v40 = vsel %vm381_vm2, %v7580_v36, 0.0  ;;  %v15321_v36 = vld [vmem:[#allocation29_spill] sm:$0xff]  ;;  %v14171_v58 = vsel %vm1943_vm5, %v7475_v24, %v7476_v37 }
0x1463   :  { %7979 = vadd.xlane.f32.xlu1 %v7978_v10  ;;  %7900 = vadd.xlane.f32.xlu0 %v7899_v53  ;;  %v15316_v10 = vld [vmem:[#allocation42_spill] sm:$0xff] }
0x1464   :  { %v15317_v13 = vmax.f32 %v15316_v10, 0.0  ;;  %v7723_v10 = vsel %vm381_vm2, %v7699_v49, 0.0 }
0x1466   :  { %v7431_v53 = vadd.f32 %v13890_v1, %v15317_v13  ;;  %v7615_v1 = vsel %vm381_vm2, %v7583_v63, 0.0  ;;  %v7962_v13 = vmul.f32 %v13913_v60, %v13989_v61 }
0x1467   :  { %8067 = vadd.xlane.f32.xlu1 %v8066_v7  ;;  %7909 = vadd.xlane.f32.xlu0 %v7908_v26  ;;  %v15320_v26 = vmax.f32 %v15319_v18, 0.0 }
0x1468   :  { %v7447_v7 = vmax.f32 %v7431_v53, 0.0  ;;  %v7811_v53 = vsel %vm381_vm2, %v7787_v52, 0.0  ;;  %v7876_v52 = vmul.f32 %v13796_v17, %v13992_v32 }
0x1469   :  { %v7429_v54 = vadd.f32 %v13903_v0, %v15320_v26  ;;  %v15322_v0 = vld [vmem:[#allocation4_spill] sm:$0xff]  ;;  %v8245_v26 = vsel %vm381_vm2, %v8225_v22, 0.0  ;;  %v7790_v22 = vmul.f32 %v13910_v47, %v14016_v44 }
0x146a   :  { %v14167_v63 = vmul.f32 %v7447_v7, %v15322_v0  ;;  %v8050_v7 = vmul.f32 %v13928_v39, %v13980_v55 }
0x146b   :  { %8285 = vadd.xlane.f32.xlu1 %v8284_v12  ;;  %8170 = vadd.xlane.f32.xlu0 %v8169_v31  ;;  %v7667_v12 = vrot.slane %v14144_v51, 1  ;;  %v14164_v31 = vmul.f32 %v7446_v2, %v15321_v36  ;;  %v7445_v38 = vmax.f32 %v7429_v54, 0.0  ;;  %v7984_v2 = vsel %vm381_vm2, %v7962_v13, 0.0 }
0x146c   :  { %v7670_v8 = vrot.slane %v14167_v63, 1  ;;  %v7581_v54 = vmul.f32 %v13780_v3, %v13992_v32  ;;  %v8163_v32 = vsel %vm381_vm2, %v8139_v14, 0.0  ;;  %v7700_v14 = vmul.f32 %v13887_v57, %v14043_v23 }
0x146d   :  { %v14175_v34 = vsel %vm2251_vm6, %v7666_v33, %v7667_v12  ;;  %v7478_v24 = vrot.slane %v14164_v31, 7  ;;  %v7479_v33 = vrot.slane %v14167_v63, 7 }
0x146e   :  { %v14214_v55 = vsel %vm2251_vm6, %v7670_v8, %v7655_v25  ;;  %v7609_v36 = vsel %vm381_vm2, %v7581_v54, 0.0  ;;  %v7510_v54 = vmul.f32 %v13897_v43, %v14029_v21 }
0x146f   :  { %7607 = vadd.xlane.f32.xlu1 %v7606_v40  ;;  %7616 = vadd.xlane.f32.xlu0 %v7615_v1  ;;  %v15323_v40 = vld [vmem:[#allocation37_spill] sm:$0xff]  ;;  %v7669_v1 = vrot.slane %v14164_v31, 1  ;;  %v14195_v61 = vsel %vm1943_vm5, %v7478_v24, %v7479_v33  ;;  %v14201_v18 = vsel %vm1943_vm5, %v7479_v33, %v7464_v48  ;;  %v7820_v33 = vsel %vm381_vm2, %v7790_v22, 0.0 }
0x1470   :  { %v14184_v41 = vmul.f32 %v7445_v38, %v15323_v40  ;;  %v7902_v38 = vsel %vm381_vm2, %v7876_v52, 0.0  ;;  %v7509_v52 = vmul.f32 %v13897_v43, %v14047_v30  ;;  %v7964_v22 = vmul.f32 %v13913_v60, %v14033_v16 }
0x1472   :  { %v7477_v48 = vrot.slane %v14184_v41, 7  ;;  %v7668_v49 = vrot.slane %v14184_v41, 1 }
0x1473   :  { %8161 = vadd.xlane.f32.xlu1 %v8160_v29  ;;  %7535 = vadd.xlane.f32.xlu0 %v7534_v20  ;;  %v14208_v29 = vsel %vm2251_vm6, %v7669_v1, %v7670_v8  ;;  %v8072_v20 = vsel %vm381_vm2, %v8050_v7, 0.0  ;;  %v7881_v8 = vmul.f32 %v13796_v17, %v14062_v19  ;;  %v7511_v7 = vmul.f32 %v13897_v43, %v14016_v44 }
0x1474   :  { %v14226_v25 = vsel %vm1943_vm5, %v7476_v37, %v7477_v48  ;;  %v14230_v0 = vsel %vm2251_vm6, %v7667_v12, %v7668_v49  ;;  %v14237_v13 = vsel %vm1943_vm5, %v7477_v48, %v7478_v24  ;;  %v7965_v37 = vmul.f32 %v13913_v60, %v14012_v62 }
0x1475   :  { %v8053_v24 = vmul.f32 %v13928_v39, %v14016_v44  ;;  %v7586_v48 = vmul.f32 %v13780_v3, %v14062_v19 }
0x1476   :  { %v7993_v40 = vsel %vm381_vm2, %v7965_v37, 0.0  ;;  %v7788_v37 = vmul.f32 %v13910_v47, %v14047_v30 }
0x1477   :  { %7724 = vadd.xlane.f32.xlu1 %v7723_v10  ;;  %7812 = vadd.xlane.f32.xlu0 %v7811_v53  ;;  %v7702_v10 = vmul.f32 %v13887_v57, %v14012_v62  ;;  %v14244_v53 = vsel %vm2251_vm6, %v7668_v49, %v7669_v1  ;;  %v8081_v1 = vsel %vm381_vm2, %v8053_v24, 0.0  ;;  %v7543_v62 = vsel %vm381_vm2, %v7511_v7, 0.0 }
0x1478   :  { %v7540_v49 = vsel %vm381_vm2, %v7510_v54, 0.0  ;;  %v7624_v44 = vsel %vm381_vm2, %v7586_v48, 0.0  ;;  %v7963_v24 = vmul.f32 %v13913_v60, %v14043_v23  ;;  %v8226_v7 = vmul.f32 %v13924_v35, %v14043_v23 }
0x1479   :  { %v7732_v12 = vsel %vm381_vm2, %v7702_v10, 0.0  ;;  %v7789_v10 = vmul.f32 %v13910_v47, %v14029_v21  ;;  %v8227_v54 = vmul.f32 %v13924_v35, %v14033_v16  ;;  %v7587_v48 = vmul.f32 %v13780_v3, %v14065_v28 }
0x147b   :  { %7985 = vadd.xlane.f32.xlu1 %v7984_v2  ;;  %8246 = vadd.xlane.f32.xlu0 %v8245_v26  ;;  %v8254_v2 = vsel %vm381_vm2, %v8228_v11, 0.0  ;;  %v7917_v26 = vsel %vm381_vm2, %v7881_v8, 0.0  ;;  %v8052_v11 = vmul.f32 %v13928_v39, %v14029_v21  ;;  %v8051_v8 = vmul.f32 %v13928_v39, %v14047_v30 }
0x147c   :  { %v8248_v21 = vsel %vm381_vm2, %v8226_v7, 0.0  ;;  %v8251_v30 = vsel %vm381_vm2, %v8227_v54, 0.0  ;;  %v7791_v54 = vmul.f32 %v13910_v47, %v14083_v6 }
0x147f   :  { %8073 = vadd.xlane.f32.xlu1 %v8072_v20  ;;  %7610 = vadd.xlane.f32.xlu0 %v7609_v36  ;;  %v7701_v20 = vmul.f32 %v13887_v57, %v14033_v16  ;;  %v7627_v16 = vsel %vm381_vm2, %v7587_v48, 0.0 }
0x1481   :  { %v7729_v36 = vsel %vm381_vm2, %v7701_v20, 0.0  ;;  %v8145_v20 = vmul.f32 %v13777_v9, %v14065_v28 }
0x1483   :  { %7903 = vadd.xlane.f32.xlu1 %v7902_v38  ;;  %8164 = vadd.xlane.f32.xlu0 %v8163_v32  ;;  %v7537_v38 = vsel %vm381_vm2, %v7509_v52, 0.0  ;;  %v7726_v32 = vsel %vm381_vm2, %v7700_v14, 0.0  ;;  %v7879_v14 = vmul.f32 %v13796_v17, %v14050_v59 }
0x1487   :  { %7733 = vadd.xlane.f32.xlu1 %v7732_v12  ;;  %7994 = vadd.xlane.f32.xlu0 %v7993_v40  ;;  %v7817_v12 = vsel %vm381_vm2, %v7789_v10, 0.0  ;;  %v7814_v40 = vsel %vm381_vm2, %v7788_v37, 0.0  ;;  %v7966_v10 = vmul.f32 %v13913_v60, %v14077_v50 }
0x148b   :  { %7821 = vadd.xlane.f32.xlu1 %v7820_v33  ;;  %8082 = vadd.xlane.f32.xlu0 %v8081_v1  ;;  %v7990_v33 = vsel %vm381_vm2, %v7964_v22, 0.0  ;;  %v7987_v1 = vsel %vm381_vm2, %v7963_v24, 0.0  ;;  %v7882_v22 = vmul.f32 %v13796_v17, %v14065_v28  ;;  %v7512_v28 = vmul.f32 %v13897_v43, %v14083_v6 }
0x148f   :  { %8255 = vadd.xlane.f32.xlu1 %v8254_v2  ;;  %7918 = vadd.xlane.f32.xlu0 %v7917_v26  ;;  %v8078_v2 = vsel %vm381_vm2, %v8052_v11, 0.0  ;;  %v8075_v26 = vsel %vm381_vm2, %v8051_v8, 0.0  ;;  %v7920_v11 = vsel %vm381_vm2, %v7882_v22, 0.0 }
0x1493   :  { %7544 = vadd.xlane.f32.xlu1 %v7543_v62  ;;  %7541 = vadd.xlane.f32.xlu0 %v7540_v49  ;;  %v8142_v62 = vmul.f32 %v13777_v9, %v14050_v59  ;;  %v7584_v49 = vmul.f32 %v13780_v3, %v14050_v59  ;;  %v8229_v59 = vmul.f32 %v13924_v35, %v14077_v50 }
0x1495   :  { %v8172_v23 = vsel %vm381_vm2, %v8142_v62, 0.0  ;;  %v8257_v8 = vsel %vm381_vm2, %v8229_v59, 0.0  ;;  %v7703_v62 = vmul.f32 %v13887_v57, %v14077_v50 }
0x1497   :  { %7625 = vadd.xlane.f32.xlu1 %v7624_v44  ;;  %7730 = vadd.xlane.f32.xlu0 %v7729_v36  ;;  %v7618_v36 = vsel %vm381_vm2, %v7584_v49, 0.0  ;;  %v7515_v49 = vmul.f32 %v13897_v43, %v14093_v56 }
0x149b   :  { %7538 = vadd.xlane.f32.xlu1 %v7537_v38  ;;  %7727 = vadd.xlane.f32.xlu0 %v7726_v32  ;;  %v8181_v38 = vsel %vm381_vm2, %v8145_v20, 0.0 }
0x149f   :  { %7818 = vadd.xlane.f32.xlu1 %v7817_v12  ;;  %7815 = vadd.xlane.f32.xlu0 %v7814_v40  ;;  %v7911_v12 = vsel %vm381_vm2, %v7879_v14, 0.0  ;;  %v7996_v40 = vsel %vm381_vm2, %v7966_v10, 0.0  ;;  %v7706_v14 = vmul.f32 %v13887_v57, %v14112_v15  ;;  %v7880_v10 = vmul.f32 %v13796_v17, %v14086_v4 }
0x14a1   :  { %v7744_v59 = vsel %vm381_vm2, %v7706_v14, 0.0  ;;  %v7705_v14 = vmul.f32 %v13887_v57, %v14121_v5 }
0x14a3   :  { %7991 = vadd.xlane.f32.xlu1 %v7990_v33  ;;  %7988 = vadd.xlane.f32.xlu0 %v7987_v1  ;;  %v8054_v1 = vmul.f32 %v13928_v39, %v14083_v6  ;;  %v7585_v6 = vmul.f32 %v13780_v3, %v14086_v4 }
0x14a7   :  { %8079 = vadd.xlane.f32.xlu1 %v8078_v2  ;;  %8076 = vadd.xlane.f32.xlu0 %v8075_v26  ;;  %v8084_v26 = vsel %vm381_vm2, %v8054_v1, 0.0  ;;  %v7914_v1 = vsel %vm381_vm2, %v7880_v10, 0.0 }
0x14ab   :  { %8249 = vadd.xlane.f32.xlu1 %v8248_v21  ;;  %8252 = vadd.xlane.f32.xlu0 %v8251_v30  ;;  %v7546_v21 = vsel %vm381_vm2, %v7512_v28, 0.0 }
0x14af   :  { %8173 = vadd.xlane.f32.xlu1 %v8172_v23  ;;  %7628 = vadd.xlane.f32.xlu0 %v7627_v16  ;;  %v7823_v23 = vsel %vm381_vm2, %v7791_v54, 0.0  ;;  %v7735_v16 = vsel %vm381_vm2, %v7703_v62, 0.0  ;;  %v7514_v62 = vmul.f32 %v13897_v43, %v14117_v46 }
0x14b0   :  { %v14312_v44 = vpop.xlane.xlu1 %8155  ;;  %v14314_v52 = vpop.xlane.xlu0 %7601 }
0x14b3   :  { %7619 = vadd.xlane.f32.xlu1 %v7618_v36  ;;  %8182 = vadd.xlane.f32.xlu0 %v8181_v38  ;;  %v7555_v36 = vsel %vm381_vm2, %v7515_v49, 0.0  ;;  %v7621_v38 = vsel %vm381_vm2, %v7585_v6, 0.0  ;;  %v8057_v6 = vmul.f32 %v13928_v39, %v14093_v56 }
0x14b4   :  { %v14322_v32 = vpop.xlane.xlu1 %7595  ;;  %v14324_v37 = vpop.xlane.xlu0 %7894 }
0x14b7   :  { %7912 = vadd.xlane.f32.xlu1 %v7911_v12  ;;  %7997 = vadd.xlane.f32.xlu0 %v7996_v40 }
0x14b8   :  { %v14332_v24 = vpop.xlane.xlu1 %8197  ;;  %v14334_v33 = vpop.xlane.xlu0 %7888 }
0x14bb   :  { %7921 = vadd.xlane.f32.xlu1 %v7920_v11  ;;  %8258 = vadd.xlane.f32.xlu0 %v8257_v8  ;;  %v7794_v11 = vmul.f32 %v13910_v47, %v14093_v56  ;;  %v7885_v8 = vmul.f32 %v13796_v17, %v14164_v31  ;;  %v7741_v56 = vsel %vm381_vm2, %v7705_v14, 0.0 }
0x14bc   :  { %v7605_v2 = vpop.xlane.xlu1 %7604  ;;  %v14342_v7 = vpop.xlane.xlu0 %8158 }
0x14bd   :  { %v7832_v54 = vsel %vm381_vm2, %v7794_v11, 0.0  ;;  %v7793_v11 = vmul.f32 %v13910_v47, %v14117_v46 }
0x14bf   :  { %8085 = vadd.xlane.f32.xlu1 %v8084_v26  ;;  %7547 = vadd.xlane.f32.xlu0 %v7546_v21  ;;  %v7929_v21 = vsel %vm381_vm2, %v7885_v8, 0.0 }
0x14c0   :  { %v14350_v30 = vpop.xlane.xlu1 %7897  ;;  %v14352_v48 = vpop.xlane.xlu0 %7598 }
0x14c3   :  { %7824 = vadd.xlane.f32.xlu1 %v7823_v23  ;;  %7736 = vadd.xlane.f32.xlu0 %v7735_v16 }
0x14c4   :  { %v14360_v20 = vpop.xlane.xlu1 %7891  ;;  %v14362_v50 = vpop.xlane.xlu0 %8152 }
0x14c7   :  { %7556 = vadd.xlane.f32.xlu1 %v7555_v36  ;;  %7622 = vadd.xlane.f32.xlu0 %v7621_v38  ;;  %v7552_v36 = vsel %vm381_vm2, %v7514_v62, 0.0 }
0x14c8   :  { %v7722_v12 = vpop.xlane.xlu1 %7721  ;;  %v7533_v22 = vpop.xlane.xlu0 %7532 }
0x14c9   :  { %v14370_v40 = vadd.f32 %v7605_v2, %v7533_v22  ;;  %v7969_v2 = vmul.f32 %v13913_v60, %v14112_v15  ;;  %v8093_v22 = vsel %vm381_vm2, %v8057_v6, 0.0 }
0x14cb   :  { %7745 = vadd.xlane.f32.xlu1 %v7744_v59  ;;  %7915 = vadd.xlane.f32.xlu0 %v7914_v1  ;;  %v8005_v16 = vsel %vm381_vm2, %v7969_v2, 0.0  ;;  %v7590_v59 = vmul.f32 %v13780_v3, %v14164_v31  ;;  %v8148_v3 = vmul.f32 %v13777_v9, %v14164_v31  ;;  %v7829_v2 = vsel %vm381_vm2, %v7793_v11, 0.0 }
0x14cc   :  { %v7810_v28 = vpop.xlane.xlu1 %7809  ;;  %v14378_v26 = vpop.xlane.xlu0 %7982 }
0x14cd   :  { %v8190_v14 = vsel %vm381_vm2, %v8148_v3, 0.0  ;;  %v7513_v3 = vmul.f32 %v13897_v43, %v14141_v45 }
0x14cf   :  { %7833 = vadd.xlane.f32.xlu1 %v7832_v54  ;;  %7930 = vadd.xlane.f32.xlu0 %v7929_v21  ;;  %v7636_v54 = vsel %vm381_vm2, %v7590_v59, 0.0  ;;  %v7968_v21 = vmul.f32 %v13913_v60, %v14121_v5 }
0x14d0   :  { %v14386_v23 = vpop.xlane.xlu1 %8243  ;;  %v14388_v49 = vpop.xlane.xlu0 %8070 }
0x14d1   :  { %v8002_v31 = vsel %vm381_vm2, %v7968_v21, 0.0  ;;  %v7883_v21 = vmul.f32 %v13796_v17, %v14144_v51 }
0x14d3   :  { %8006 = vadd.xlane.f32.xlu1 %v8005_v16  ;;  %7553 = vadd.xlane.f32.xlu0 %v7552_v36  ;;  %v68_v16 = vstv %s8540_s28  ;;  %v7923_v17 = vsel %vm381_vm2, %v7883_v21, 0.0 }
0x14d4   :  { %v14396_v38 = vpop.xlane.xlu1 %7906  ;;  %v14398_v10 = vpop.xlane.xlu0 %7613  ;;  %69 = vst [vmem:[#allocation2] sm:$0x1] %v68_v16 }
0x14d7   :  { %8094 = vadd.xlane.f32.xlu1 %v8093_v22  ;;  %7742 = vadd.xlane.f32.xlu0 %v7741_v56  ;;  %v8230_v22 = vmul.f32 %v13924_v35, %v14137_v27  ;;  %v7967_v56 = vmul.f32 %v13913_v60, %v14137_v27 }
0x14d8   :  { %v14409_v1 = vpop.xlane.xlu1 %8167  ;;  %v7719_v8 = vpop.xlane.xlu0 %7718 }
0x14db   :  { %7637 = vadd.xlane.f32.xlu1 %v7636_v54  ;;  %7830 = vadd.xlane.f32.xlu0 %v7829_v2 }
0x14dc   :  { %v7530_v62 = vpop.xlane.xlu1 %7529  ;;  %v7807_v36 = vpop.xlane.xlu0 %7806 }
0x14dd   :  { %v7642_v6 = vadd.f32 %v14314_v52, %v7530_v62  ;;  %v8260_v62 = vsel %vm381_vm2, %v8230_v22, 0.0  ;;  %v7549_v22 = vsel %vm381_vm2, %v7513_v3, 0.0 }
0x14df   :  { %v7762_v59 = vadd.f32 %v7722_v12, %v7642_v6  ;;  %8191 = vadd.xlane.f32.xlu1 %v8190_v14  ;;  %8003 = vadd.xlane.f32.xlu0 %v8002_v31  ;;  %v7999_v12 = vsel %vm381_vm2, %v7967_v56, 0.0 }
0x14e0   :  { %v7527_v11 = vpop.xlane.xlu1 %7526  ;;  %v14425_v2 = vpop.xlane.xlu0 %7976 }
0x14e1   :  { %v7641_v54 = vadd.f32 %v14352_v48, %v7527_v11  ;;  %v7850_v52 = vadd.f32 %v7810_v28, %v7762_v59 }
0x14e3   :  { %v7761_v16 = vadd.f32 %v7719_v8, %v7641_v54  ;;  %8261 = vadd.xlane.f32.xlu1 %v8260_v62  ;;  %v14434_v6 = vadd.f32 %v14350_v30, %v7850_v52  ;;  %8000 = vadd.xlane.f32.xlu0 %v7999_v12  ;;  %v7704_v8 = vmul.f32 %v13887_v57, %v14137_v27  ;;  %v10423_v54 = vld [vmem:[%s13762_s23 + $0x1] ss:$0 sm:$0xff] }
0x14e4   :  { %v14436_v48 = vpop.xlane.xlu1 %7715  ;;  %v14438_v28 = vpop.xlane.xlu0 %8064  ;;  %v8146_v30 = vmul.f32 %v13777_v9, %v14144_v51  ;;  %v7792_v27 = vmul.f32 %v13910_v47, %v14141_v45  ;;  %v7575_v52 = vmul.f32 %v10423_v54, %v14167_v63  ;;  %v8056_v12 = vmul.f32 %v13928_v39, %v14117_v46 }
0x14e5   :  { %v7849_v14 = vadd.f32 %v7807_v36, %v7761_v16  ;;  %v7738_v11 = vsel %vm381_vm2, %v7704_v8, 0.0 }
0x14e6   :  { %v7826_v16 = vsel %vm381_vm2, %v7792_v27, 0.0  ;;  %v7591_v21 = vsel %vm381_vm2, %v7575_v52, 0.0  ;;  %v10425_v27 = vld [vmem:[%s13762_s23 + $0x4] ss:$0 sm:$0xff] }
0x14e7   :  { %v7937_v59 = vadd.f32 %v14324_v37, %v7849_v14  ;;  %7550 = vadd.xlane.f32.xlu1 %v7549_v22  ;;  %7924 = vadd.xlane.f32.xlu0 %v7923_v17  ;;  %v8184_v37 = vsel %vm381_vm2, %v8146_v30, 0.0  ;;  %v14467_v14 = vld [vmem:[%s13762_s23 + $0x7] ss:$0 sm:$0xff]  ;;  %v7516_v17 = vmul.f32 %v13897_v43, %v14171_v58 }
0x14e8   :  { %v14447_v31 = vpop.xlane.xlu1 %7803  ;;  %v14449_v36 = vpop.xlane.xlu0 %8240 }
0x14e9   :  { %v8025_v56 = vadd.f32 %v14378_v26, %v7937_v59  ;;  %v7588_v59 = vmul.f32 %v10423_v54, %v14144_v51  ;;  %v7558_v52 = vsel %vm381_vm2, %v7516_v17, 0.0  ;;  %v7707_v51 = vmul.f32 %v13887_v57, %v14175_v34 }
0x14eb   :  { %7739 = vadd.xlane.f32.xlu1 %v7738_v11  ;;  %v8113_v9 = vadd.f32 %v14388_v49, %v8025_v56  ;;  %8185 = vadd.xlane.f32.xlu0 %v8184_v37  ;;  %v8149_v49 = vmul.f32 %v14467_v14, %v14167_v63  ;;  %v7630_v11 = vsel %vm381_vm2, %v7588_v59, 0.0  ;;  %v7886_v37 = vmul.f32 %v10425_v27, %v14167_v63 }
0x14ec   :  { %v14459_v62 = vpop.xlane.xlu1 %7979  ;;  %v7901_v3 = vpop.xlane.xlu0 %7900  ;;  %v7795_v63 = vmul.f32 %v13910_v47, %v14171_v58 }
0x14ed   :  { %v8201_v26 = vadd.f32 %v14342_v7, %v8113_v9  ;;  %v8090_v7 = vsel %vm381_vm2, %v8056_v12, 0.0  ;;  %v8193_v46 = vsel %vm381_vm2, %v8149_v49, 0.0  ;;  %v7932_v12 = vsel %vm381_vm2, %v7886_v37, 0.0 }
0x14ee   :  { %v7747_v49 = vsel %vm381_vm2, %v7707_v51, 0.0  ;;  %v7835_v37 = vsel %vm381_vm2, %v7795_v63, 0.0 }
0x14ef   :  { %7827 = vadd.xlane.f32.xlu1 %v7826_v16  ;;  %7592 = vadd.xlane.f32.xlu0 %v7591_v21  ;;  %v7970_v21 = vmul.f32 %v13913_v60, %v14175_v34 }
0x14f0   :  { %v14471_v22 = vpop.xlane.xlu1 %8067  ;;  %v14473_v8 = vpop.xlane.xlu0 %7909 }
0x14f1   :  { %v8008_v17 = vsel %vm381_vm2, %v7970_v21, 0.0  ;;  %v7589_v21 = vmul.f32 %v10423_v54, %v14184_v41 }
0x14f3   :  { %8091 = vadd.xlane.f32.xlu1 %v8090_v7  ;;  %8194 = vadd.xlane.f32.xlu0 %v8193_v46 }
0x14f4   :  { %v14480_v30 = vpop.xlane.xlu1 %8285  ;;  %v14482_v56 = vpop.xlane.xlu0 %8170 }
0x14f5   :  { %15324 = vst [vmem:[#allocation32_spill] sm:$0xff] %v14480_v30 }
0x14f7   :  { %7631 = vadd.xlane.f32.xlu1 %v7630_v11  ;;  %7559 = vadd.xlane.f32.xlu0 %v7558_v52  ;;  %v7884_v11 = vmul.f32 %v10425_v27, %v14184_v41  ;;  %v8058_v52 = vmul.f32 %v13928_v39, %v14171_v58 }
0x14f8   :  { %v7608_v9 = vpop.xlane.xlu1 %7607  ;;  %v14490_v16 = vpop.xlane.xlu0 %7616 }
0x14f9   :  { %v8096_v27 = vsel %vm381_vm2, %v8058_v52, 0.0 }
0x14fb   :  { %7933 = vadd.xlane.f32.xlu1 %v7932_v12  ;;  %7748 = vadd.xlane.f32.xlu0 %v7747_v49  ;;  %v7926_v49 = vsel %vm381_vm2, %v7884_v11, 0.0 }
0x14fc   :  { %v8162_v7 = vpop.xlane.xlu1 %8161  ;;  %v7536_v59 = vpop.xlane.xlu0 %7535 }
0x14fd   :  { %v14498_v46 = vadd.f32 %v7608_v9, %v7536_v59  ;;  %v8147_v9 = vmul.f32 %v14467_v14, %v14184_v41  ;;  %v7504_v41 = vmul.f32 %v13897_v43, %v14201_v18 }
0x14ff   :  { %8009 = vadd.xlane.f32.xlu1 %v8008_v17  ;;  %7836 = vadd.xlane.f32.xlu0 %v7835_v37  ;;  %v8187_v11 = vsel %vm381_vm2, %v8147_v9, 0.0 }
0x1500   :  { %v7725_v51 = vpop.xlane.xlu1 %7724  ;;  %v7813_v30 = vpop.xlane.xlu0 %7812 }
0x1501   :  { %v7763_v12 = vadd.f32 %v7725_v51, %v14370_v40  ;;  %v7503_v51 = vmul.f32 %v13897_v43, %v14195_v61 }
0x1503   :  { %v7851_v59 = vadd.f32 %v7813_v30, %v7763_v12  ;;  %7927 = vadd.xlane.f32.xlu1 %v7926_v49  ;;  %8097 = vadd.xlane.f32.xlu0 %v8096_v27  ;;  %v7633_v30 = vsel %vm381_vm2, %v7589_v21, 0.0  ;;  %v7522_v12 = vsel %vm381_vm2, %v7504_v41, 0.0  ;;  %v7695_v49 = vmul.f32 %v13887_v57, %v14214_v55 }
0x1504   :  { %v7986_v63 = vpop.xlane.xlu1 %7985  ;;  %v8247_v17 = vpop.xlane.xlu0 %8246  ;;  %v7798_v21 = vmul.f32 %v13910_v47, %v14195_v61 }
0x1505   :  { %v8026_v58 = vadd.f32 %v7986_v63, %v14434_v6  ;;  %v14512_v37 = vadd.f32 %v7901_v3, %v7851_v59  ;;  %v14514_v40 = vadd.f32 %v8247_v17, %v8201_v26  ;;  %v7519_v3 = vsel %vm381_vm2, %v7503_v51, 0.0 }
0x1506   :  { %v7710_v26 = vmul.f32 %v13887_v57, %v14208_v29  ;;  %v7711_v63 = vsel %vm381_vm2, %v7695_v49, 0.0  ;;  %v7844_v17 = vsel %vm381_vm2, %v7798_v21, 0.0 }
0x1507   :  { %8188 = vadd.xlane.f32.xlu1 %v8187_v11  ;;  %7634 = vadd.xlane.f32.xlu0 %v7633_v30  ;;  %v7974_v11 = vmul.f32 %v13913_v60, %v14214_v55  ;;  %v7973_v30 = vmul.f32 %v13913_v60, %v14208_v29 }
0x1508   :  { %v8074_v54 = vpop.xlane.xlu1 %8073  ;;  %v14522_v6 = vpop.xlane.xlu0 %7610  ;;  %v7756_v27 = vsel %vm381_vm2, %v7710_v26, 0.0  ;;  %v8061_v26 = vmul.f32 %v13928_v39, %v14195_v61 }
0x1509   :  { %v8114_v52 = vadd.f32 %v8074_v54, %v8026_v58  ;;  %v7783_v58 = vmul.f32 %v13910_v47, %v14201_v18  ;;  %v8020_v47 = vsel %vm381_vm2, %v7974_v11, 0.0 }
0x150b   :  { %7520 = vadd.xlane.f32.xlu1 %v7519_v3  ;;  %v14530_v9 = vadd.f32 %v8162_v7, %v8114_v52  ;;  %7523 = vadd.xlane.f32.xlu0 %v7522_v12  ;;  %v7799_v51 = vsel %vm381_vm2, %v7783_v58, 0.0  ;;  %v8062_v52 = vmul.f32 %v13928_v39, %v14201_v18  ;;  %v8017_v3 = vsel %vm381_vm2, %v7973_v30, 0.0 }
0x150c   :  { %v14532_v43 = vpop.xlane.xlu1 %7903  ;;  %v14534_v59 = vpop.xlane.xlu0 %8164  ;;  %v8105_v18 = vsel %vm381_vm2, %v8061_v26, 0.0 }
0x150d   :  { %v8108_v49 = vsel %vm381_vm2, %v8062_v52, 0.0 }
0x150f   :  { %7757 = vadd.xlane.f32.xlu1 %v7756_v27  ;;  %7712 = vadd.xlane.f32.xlu0 %v7711_v63  ;;  %v10426_v27 = vld [vmem:[%s13762_s23] ss:$0 sm:$0xff]  ;;  %v8237_v63 = vmul.f32 %v13924_v35, %v14214_v55  ;;  %v8236_v55 = vmul.f32 %v13924_v35, %v14208_v29 }
0x1510   :  { %v7734_v57 = vpop.xlane.xlu1 %7733  ;;  %v14542_v7 = vpop.xlane.xlu0 %7994  ;;  %v7517_v21 = vmul.f32 %v10426_v27, %v14226_v25 }
0x1512   :  { %v7561_v11 = vsel %vm381_vm2, %v7517_v21, 0.0 }
0x1513   :  { %7845 = vadd.xlane.f32.xlu1 %v7844_v17  ;;  %7800 = vadd.xlane.f32.xlu0 %v7799_v51  ;;  %v10427_v51 = vld [vmem:[%s13762_s23 + $0x2] ss:$0 sm:$0xff] }
0x1514   :  { %v7822_v41 = vpop.xlane.xlu1 %7821  ;;  %v14550_v54 = vpop.xlane.xlu0 %8082  ;;  %v7708_v30 = vmul.f32 %v10427_v51, %v14230_v0 }
0x1516   :  { %v7750_v26 = vsel %vm381_vm2, %v7708_v30, 0.0 }
0x1517   :  { %8021 = vadd.xlane.f32.xlu1 %v8020_v47  ;;  %8018 = vadd.xlane.f32.xlu0 %v8017_v3  ;;  %v8281_v47 = vsel %vm381_vm2, %v8237_v63, 0.0  ;;  %v7518_v63 = vmul.f32 %v10426_v27, %v14237_v13  ;;  %v7709_v27 = vmul.f32 %v10427_v51, %v14244_v53 }
0x1518   :  { %v14558_v12 = vpop.xlane.xlu1 %8255  ;;  %v14560_v60 = vpop.xlane.xlu0 %7918 }
0x151b   :  { %8109 = vadd.xlane.f32.xlu1 %v8108_v49  ;;  %8106 = vadd.xlane.f32.xlu0 %v8105_v18  ;;  %v8278_v18 = vsel %vm381_vm2, %v8236_v55, 0.0 }
0x151c   :  { %v7545_v39 = vpop.xlane.xlu1 %7544  ;;  %v7542_v58 = vpop.xlane.xlu0 %7541 }
0x151d   :  { %v14569_v61 = vadd.f32 %v14490_v16, %v7545_v39  ;;  %v7646_v17 = vadd.f32 %v14398_v10, %v7542_v58  ;;  %v10428_v10 = vld [vmem:[%s13762_s23 + $0x3] ss:$0 sm:$0xff] }
0x151e   :  { %v7796_v49 = vmul.f32 %v10428_v10, %v14226_v25 }
0x151f   :  { %7562 = vadd.xlane.f32.xlu1 %v7561_v11  ;;  %v7766_v52 = vadd.f32 %v7734_v57, %v7646_v17  ;;  %8282 = vadd.xlane.f32.xlu0 %v8281_v47  ;;  %v10429_v17 = vld [vmem:[%s13762_s23 + $0x5] ss:$0 sm:$0xff] }
0x1520   :  { %v14578_v3 = vpop.xlane.xlu1 %7625  ;;  %v7731_v16 = vpop.xlane.xlu0 %7730  ;;  %v7838_v58 = vsel %vm381_vm2, %v7796_v49, 0.0  ;;  %v7972_v11 = vmul.f32 %v10429_v17, %v14244_v53 }
0x1521   :  { %v7854_v21 = vadd.f32 %v7822_v41, %v7766_v52  ;;  %v7564_v41 = vsel %vm381_vm2, %v7518_v63, 0.0  ;;  %v7753_v63 = vsel %vm381_vm2, %v7709_v27, 0.0 }
0x1523   :  { %7751 = vadd.xlane.f32.xlu1 %v7750_v26  ;;  %8279 = vadd.xlane.f32.xlu0 %v8278_v18  ;;  %v14586_v35 = vadd.f32 %v14473_v8, %v7854_v21  ;;  %v10430_v21 = vld [vmem:[%s13762_s23 + $0x6] ss:$0 sm:$0xff] }
0x1524   :  { %v7539_v39 = vpop.xlane.xlu1 %7538  ;;  %v7728_v29 = vpop.xlane.xlu0 %7727  ;;  %v8060_v49 = vmul.f32 %v10430_v21, %v14237_v13 }
0x1525   :  { %v7645_v57 = vadd.f32 %v14522_v6, %v7539_v39  ;;  %v7764_v47 = vadd.f32 %v7728_v29, %v14498_v46  ;;  %v8014_v6 = vsel %vm381_vm2, %v7972_v11, 0.0 }
0x1527   :  { %7839 = vadd.xlane.f32.xlu1 %v7838_v58  ;;  %v7765_v30 = vadd.f32 %v7731_v16, %v7645_v57  ;;  %7565 = vadd.xlane.f32.xlu0 %v7564_v41  ;;  %v7797_v16 = vmul.f32 %v10428_v10, %v14237_v13  ;;  %v8102_v57 = vsel %vm381_vm2, %v8060_v49, 0.0  ;;  %v8144_v58 = vmul.f32 %v14467_v14, %v14062_v19 }
0x1528   :  { %v7819_v8 = vpop.xlane.xlu1 %7818  ;;  %v7816_v55 = vpop.xlane.xlu0 %7815  ;;  %v7971_v13 = vmul.f32 %v10429_v17, %v14230_v0  ;;  %v8055_v49 = vmul.f32 %v10430_v21, %v14141_v45 }
0x1529   :  { %v7853_v52 = vadd.f32 %v7819_v8, %v7765_v30  ;;  %v7852_v26 = vadd.f32 %v7816_v55, %v7764_v47  ;;  %v7841_v11 = vsel %vm381_vm2, %v7797_v16, 0.0  ;;  %v8178_v27 = vsel %vm381_vm2, %v8144_v58, 0.0  ;;  %v10431_v47 = vld [vmem:[%s13762_s23 + $0x8] ss:$0 sm:$0xff] }
0x152a   :  { %v8235_v19 = vmul.f32 %v10431_v47, %v14244_v53  ;;  %v8011_v55 = vsel %vm381_vm2, %v7971_v13, 0.0  ;;  %v8234_v53 = vmul.f32 %v10431_v47, %v14230_v0  ;;  %v8233_v16 = vmul.f32 %v10431_v47, %v14175_v34 }
0x152b   :  { %v7941_v18 = vadd.f32 %v14396_v38, %v7853_v52  ;;  %8015 = vadd.xlane.f32.xlu1 %v8014_v6  ;;  %7754 = vadd.xlane.f32.xlu0 %v7753_v63  ;;  %v7940_v46 = vadd.f32 %v14532_v43, %v7852_v26  ;;  %v8143_v63 = vmul.f32 %v14467_v14, %v14086_v4 }
0x152c   :  { %v7992_v51 = vpop.xlane.xlu1 %7991  ;;  %v14603_v29 = vpop.xlane.xlu0 %7988  ;;  %v8275_v6 = vsel %vm381_vm2, %v8235_v19, 0.0  ;;  %v8231_v45 = vmul.f32 %v10431_v47, %v14121_v5 }
0x152d   :  { %v8029_v39 = vadd.f32 %v14542_v7, %v7941_v18  ;;  %v8028_v38 = vadd.f32 %v7992_v51, %v7940_v46  ;;  %v8175_v51 = vsel %vm381_vm2, %v8143_v63, 0.0 }
0x152f   :  { %8103 = vadd.xlane.f32.xlu1 %v8102_v57  ;;  %v8117_v10 = vadd.f32 %v14550_v54, %v8029_v39  ;;  %7842 = vadd.xlane.f32.xlu0 %v7841_v11  ;;  %v8059_v54 = vmul.f32 %v10430_v21, %v14226_v25  ;;  %v8269_v21 = vsel %vm381_vm2, %v8233_v16, 0.0  ;;  %v8232_v39 = vmul.f32 %v10431_v47, %v14112_v15 }
0x1530   :  { %v8080_v43 = vpop.xlane.xlu1 %8079  ;;  %v14611_v41 = vpop.xlane.xlu0 %8076  ;;  %v8263_v57 = vsel %vm381_vm2, %v8231_v45, 0.0 }
0x1531   :  { %v8116_v7 = vadd.f32 %v8080_v43, %v8028_v38  ;;  %v14614_v30 = vadd.f32 %v14482_v56, %v8117_v10  ;;  %v8266_v34 = vsel %vm381_vm2, %v8232_v39, 0.0 }
0x1533   :  { %v8204_v8 = vadd.f32 %v14409_v1, %v8116_v7  ;;  %8179 = vadd.xlane.f32.xlu1 %v8178_v27  ;;  %8012 = vadd.xlane.f32.xlu0 %v8011_v55  ;;  %v8099_v1 = vsel %vm381_vm2, %v8059_v54, 0.0 }
0x1534   :  { %v8250_v17 = vpop.xlane.xlu1 %8249  ;;  %v14625_v26 = vpop.xlane.xlu0 %8252 }
0x1535   :  { %v14623_v52 = vadd.f32 %v14558_v12, %v8204_v8  ;;  %v14628_v56 = vadd.f32 %v8250_v17, %v14530_v9  ;;  %v8272_v12 = vsel %vm381_vm2, %v8234_v53, 0.0  ;;  %v8087_v9 = vsel %vm381_vm2, %v8055_v49, 0.0  ;;  %v9054_v8 = vld [vmem:[#allocation2] ss:$0 sm:$0xff] }
0x1537   :  { %8276 = vadd.xlane.f32.xlu1 %v8275_v6  ;;  %8100 = vadd.xlane.f32.xlu0 %v8099_v1 }
0x1538   :  { %v8174_v25 = vpop.xlane.xlu1 %8173  ;;  %v7629_v18 = vpop.xlane.xlu0 %7628 }
0x153b   :  { %8273 = vadd.xlane.f32.xlu1 %v8272_v12  ;;  %8088 = vadd.xlane.f32.xlu0 %v8087_v9 }
0x153c   :  { %v7620_v0 = vpop.xlane.xlu1 %7619  ;;  %v14639_v46 = vpop.xlane.xlu0 %8182 }
0x153f   :  { %8176 = vadd.xlane.f32.xlu1 %v8175_v51  ;;  %8270 = vadd.xlane.f32.xlu0 %v8269_v21 }
0x1540   :  { %v7913_v4 = vpop.xlane.xlu1 %7912  ;;  %v7998_v14 = vpop.xlane.xlu0 %7997 }
0x1541   :  { %v8030_v51 = vadd.f32 %v7998_v14, %v14586_v35  ;;  %v14671_v14 = vld [vmem:[%s14663_s2 + $0x38] sm:$0xff] }
0x1543   :  { %8264 = vadd.xlane.f32.xlu1 %v8263_v57  ;;  %8267 = vadd.xlane.f32.xlu0 %v8266_v34 }
0x1544   :  { %v7922_v58 = vpop.xlane.xlu1 %7921  ;;  %v8259_v38 = vpop.xlane.xlu0 %8258 }
0x1548   :  { %v8086_v11 = vpop.xlane.xlu1 %8085  ;;  %v7548_v13 = vpop.xlane.xlu0 %7547 }
0x1549   :  { %v7648_v10 = vadd.f32 %v7620_v0, %v7548_v13  ;;  %v8118_v21 = vadd.f32 %v8086_v11, %v8030_v51  ;;  %v8293_v13 = vadd.f32 %v8259_v38, %v14614_v30  ;;  %v14687_v30 = vld [vmem:[%s14663_s2 + $0x20] sm:$0xff] }
0x154b   :  { %v8206_v35 = vadd.f32 %v8174_v25, %v8118_v21 }
0x154c   :  { %v7825_v5 = vpop.xlane.xlu1 %7824  ;;  %v7737_v43 = vpop.xlane.xlu0 %7736 }
0x154d   :  { %v7767_v7 = vadd.f32 %v7737_v43, %v14569_v61 }
0x154f   :  { %v7855_v27 = vadd.f32 %v7825_v5, %v7767_v7  ;;  %v14676_v7 = vld [vmem:[%s14663_s2 + $0x30] sm:$0xff] }
0x1550   :  { %v7557_v15 = vpop.xlane.xlu1 %7556  ;;  %v7623_v19 = vpop.xlane.xlu0 %7622 }
0x1551   :  { %v14648_v47 = vadd.f32 %v7629_v18, %v7557_v15  ;;  %v7943_v55 = vadd.f32 %v7913_v4, %v7855_v27  ;;  %v8318_v27 = vmul.f32 %v14676_v7, %v8293_v13 }
0x1554   :  { %v7746_v54 = vpop.xlane.xlu1 %7745  ;;  %8429 = vperm.xlu1 %10323, %v9054_v8   ;;  %v14650_v17 = vpop.xlane.xlu0 %7915 }
0x1558   :  { %v7834_v6 = vpop.xlane.xlu1 %7833  ;;  %v14652_v53 = vpop.xlane.xlu0 %7930 }
0x1559   :  { %8327 = vperm.xlu0 %10324, %v9054_v8  }
0x155c   :  { %v8007_v1 = vpop.xlane.xlu1 %8006  ;;  %v7554_v49 = vpop.xlane.xlu0 %7553 }
0x155d   :  { %v7650_v12 = vadd.f32 %v14578_v3, %v7554_v49  ;;  %v8027_v3 = vadd.f32 %v14603_v29, %v14512_v37 }
0x155f   :  { %v7770_v61 = vadd.f32 %v7746_v54, %v7650_v12  ;;  %v8115_v4 = vadd.f32 %v14611_v41, %v8027_v3  ;;  %v14682_v41 = vld [vmem:[%s14663_s2 + $0x28] sm:$0xff]  ;;  %v14698_v12 = vld [vmem:[%s14663_s2 + $0x10] sm:$0xff] }
0x1560   :  { %v8095_v63 = vpop.xlane.xlu1 %8094  ;;  %v7743_v9 = vpop.xlane.xlu0 %7742  ;;  %v8317_v38 = vmul.f32 %v14682_v41, %v14623_v52 }
0x1561   :  { %v7858_v18 = vadd.f32 %v7834_v6, %v7770_v61 }
0x1563   :  { %v14657_v0 = vadd.f32 %v7922_v58, %v7858_v18  ;;  %v8203_v58 = vadd.f32 %v14534_v59, %v8115_v4  ;;  %v8314_v18 = vmul.f32 %v14698_v12, %v14514_v40 }
0x1564   :  { %v14655_v16 = vpop.xlane.xlu1 %7637  ;;  %v7831_v45 = vpop.xlane.xlu0 %7830 }
0x1565   :  { %v8291_v11 = vadd.f32 %v14625_v26, %v8203_v58 }
0x1567   :  { %v8316_v54 = vmul.f32 %v14687_v30, %v8291_v11 }
0x1568   :  { %v14667_v39 = vpop.xlane.xlu1 %8191  ;;  %v8004_v57 = vpop.xlane.xlu0 %8003 }
0x156c   :  { %v8262_v34 = vpop.xlane.xlu1 %8261  ;;  %v8001_v5 = vpop.xlane.xlu0 %8000 }
0x156d   :  { %v8294_v43 = vadd.f32 %v8262_v34, %v8206_v35  ;;  %v14678_v37 = vadd.f32 %v8001_v5, %v7943_v55  ;;  %v14693_v55 = vld [vmem:[%s14663_s2 + $0x18] sm:$0xff] }
0x156e   :  { %v8315_v52 = vmul.f32 %v14693_v55, %v14628_v56 }
0x156f   :  { %v8319_v29 = vmul.f32 %v14671_v14, %v8294_v43 }
0x1570   :  { %v7551_v25 = vpop.xlane.xlu1 %7550  ;;  %v7925_v59 = vpop.xlane.xlu0 %7924 }
0x1571   :  { %v7649_v15 = vadd.f32 %v7623_v19, %v7551_v25  ;;  %10247 = vmatpush3.msra.mxu0 %v8319_v29 }
0x1572   :  { %10248 = vmatprep.subr.mxu0 %v15263_v42 }
0x1573   :  { %v7769_v8 = vadd.f32 %v7743_v9, %v7649_v15  ;;  %10249 = vmatpush3.msra.mxu0 %v8318_v27 }
0x1574   :  { %10250 = vmatprep.subr.mxu0 %v15263_v42  ;;  %v7740_v26 = vpop.xlane.xlu1 %7739  ;;  %v8186_v49 = vpop.xlane.xlu0 %8185 }
0x1575   :  { %v7857_v19 = vadd.f32 %v7831_v45, %v7769_v8  ;;  %v7768_v6 = vadd.f32 %v7740_v26, %v7648_v10  ;;  %10251 = vmatpush3.msra.mxu0 %v8317_v38 }
0x1576   :  { %10252 = vmatprep.subr.mxu0 %v15263_v42 }
0x1577   :  { %v7945_v61 = vadd.f32 %v14560_v60, %v7857_v19  ;;  %10253 = vmatpush3.msra.mxu0 %v8316_v54 }
0x1578   :  { %10254 = vmatprep.subr.mxu0 %v15263_v42  ;;  %v7828_v9 = vpop.xlane.xlu1 %7827  ;;  %v7593_v10 = vpop.xlane.xlu0 %7592 }
0x1579   :  { %v7856_v51 = vadd.f32 %v7828_v9, %v7768_v6  ;;  %10255 = vmatpush3.msra.mxu0 %v8315_v52  ;;  %v8033_v45 = vadd.f32 %v8007_v1, %v7945_v61 }
0x157a   :  { %10256 = vmatprep.subr.mxu0 %v15263_v42 }
0x157b   :  { %v7944_v3 = vadd.f32 %v14650_v17, %v7856_v51  ;;  %10257 = vmatpush3.msra.mxu0 %v8314_v18  ;;  %v8121_v21 = vadd.f32 %v8095_v63, %v8033_v45 }
0x157c   :  { %v8092_v56 = vpop.xlane.xlu1 %8091  ;;  %10258 = vmatprep.subr.mxu0 %v15263_v42  ;;  %v14710_v4 = vpop.xlane.xlu0 %8194 }
0x157d   :  { %v8032_v60 = vadd.f32 %v8004_v57, %v7944_v3  ;;  %v14713_v35 = vadd.f32 %v14639_v46, %v8121_v21 }
0x157f   :  { %v14715_v40 = vadd.f32 %v8092_v56, %v8032_v60 }
0x1580   :  { %v7632_v34 = vpop.xlane.xlu1 %7631  ;;  %v7560_v58 = vpop.xlane.xlu0 %7559 }
0x1584   :  { %v14717_v1 = vpop.xlane.xlu1 %7933  ;;  %v7749_v13 = vpop.xlane.xlu0 %7748 }
0x1585   :  { %v7771_v17 = vadd.f32 %v7749_v13, %v14648_v47 }
0x1588   :  { %v8010_v5 = vpop.xlane.xlu1 %8009  ;;  %v7837_v63 = vpop.xlane.xlu0 %7836 }
0x1589   :  { %v7859_v43 = vadd.f32 %v7837_v63, %v7771_v17  ;;  %v8034_v29 = vadd.f32 %v8010_v5, %v14657_v0 }
0x158b   :  { %v14721_v25 = vadd.f32 %v7925_v59, %v7859_v43 }
0x158c   :  { %v7928_v57 = vpop.xlane.xlu1 %7927  ;;  %v8098_v11 = vpop.xlane.xlu0 %8097 }
0x158d   :  { %v8122_v46 = vadd.f32 %v8098_v11, %v8034_v29 }
0x158f   :  { %v14725_v15 = vadd.f32 %v8186_v49, %v8122_v46 }
0x1590   :  { %v14723_v27 = vpop.xlane.xlu1 %8188  ;;  %v7635_v38 = vpop.xlane.xlu0 %7634 }
0x1594   :  { %v7521_v8 = vpop.xlane.xlu1 %7520  ;;  %v7524_v26 = vpop.xlane.xlu0 %7523 }
0x1595   :  { %v7640_v54 = vadd.f32 %v14322_v32, %v7524_v26  ;;  %v7639_v52 = vadd.f32 %v7593_v10, %v7521_v8 }
0x1597   :  { %v7760_v47 = vadd.f32 %v14436_v48, %v7640_v54 }
0x1598   :  { %v7758_v19 = vpop.xlane.xlu1 %7757  ;;  %v7713_v6 = vpop.xlane.xlu0 %7712 }
0x1599   :  { %v7848_v0 = vadd.f32 %v14447_v31, %v7760_v47  ;;  %v7759_v61 = vadd.f32 %v7713_v6, %v7639_v52 }
0x159b   :  { %v7936_v59 = vadd.f32 %v14360_v20, %v7848_v0  ;;  %v14742_v20 = vld [vmem:[%s14663_s2 + $0x8] sm:$0xff] }
0x159c   :  { %v7846_v9 = vpop.xlane.xlu1 %7845  ;;  %v7801_v18 = vpop.xlane.xlu0 %7800 }
0x159d   :  { %v8024_v49 = vadd.f32 %v14459_v62, %v7936_v59  ;;  %v7847_v51 = vadd.f32 %v7801_v18, %v7759_v61 }
0x159f   :  { %v8112_v45 = vadd.f32 %v14471_v22, %v8024_v49  ;;  %v7935_v32 = vadd.f32 %v14334_v33, %v7847_v51 }
0x15a0   :  { %v8022_v48 = vpop.xlane.xlu1 %8021  ;;  %v8019_v3 = vpop.xlane.xlu0 %8018 }
0x15a1   :  { %v8023_v10 = vadd.f32 %v14425_v2, %v7935_v32  ;;  %v8200_v21 = vadd.f32 %v14312_v44, %v8112_v45  ;;  %v14749_v44 = vld [vmem:[%s14663_s2] sm:$0xff] }
0x15a3   :  { %v8111_v31 = vadd.f32 %v14438_v28, %v8023_v10  ;;  %v8288_v33 = vadd.f32 %v14386_v23, %v8200_v21  ;;  %v8303_v28 = vld [vmem:[%s14739_s6] sm:$0x3f] }
0x15a4   :  { %v8110_v62 = vpop.xlane.xlu1 %8109  ;;  %v8107_v22 = vpop.xlane.xlu0 %8106 }
0x15a5   :  { %v8199_v56 = vadd.f32 %v14362_v50, %v8111_v31  ;;  %v8313_v2 = vmul.f32 %v14742_v20, %v8288_v33  ;;  %v7652_v50 = vadd.f32 %v7632_v34, %v7560_v58  ;;  %v15325_v31 = vld [vmem:[#allocation32_spill] sm:$0xff] }
0x15a7   :  { %10259 = vmatpush3.msra.mxu0 %v8313_v2  ;;  %v8287_v13 = vadd.f32 %v14449_v36, %v8199_v56 }
0x15a8   :  { %v7563_v60 = vpop.xlane.xlu1 %7562  ;;  %v8283_v17 = vpop.xlane.xlu0 %8282  ;;  %10260 = vmatprep.subr.mxu0 %v15263_v42 }
0x15a9   :  { %v8312_v5 = vmul.f32 %v14749_v44, %v8287_v13  ;;  %v7653_v47 = vadd.f32 %v7635_v38, %v7563_v60 }
0x15ab   :  { %10261 = vmatpush3.msra.mxu0 %v8312_v5 }
0x15ac   :  { %v7752_v63 = vpop.xlane.xlu1 %7751  ;;  %10263 = vmatmul.mubr.msk.f32.vlgmr.msra.gmra.mxu0 %vm1466_vm4, %v8303_v28  ;;  %v8280_v23 = vpop.xlane.xlu0 %8279  ;;  %10265 = vmatprep.subr.mxu0 %v15263_v42 }
0x15ad   :  { %10281 = vmatprep.mubr.msk.f32.mxu0 %vm10434_vm1, %v15263_v42  ;;  %v7772_v43 = vadd.f32 %v7752_v63, %v7652_v50 }
0x15b0   :  { %v7840_v29 = vpop.xlane.xlu1 %7839  ;;  %v7566_v36 = vpop.xlane.xlu0 %7565 }
0x15b1   :  { %v7654_v11 = vadd.f32 %v14655_v16, %v7566_v36  ;;  %v7860_v46 = vadd.f32 %v7840_v29, %v7772_v43 }
0x15b3   :  { %v7774_v8 = vadd.f32 %v7758_v19, %v7654_v11  ;;  %v7948_v52 = vadd.f32 %v7928_v57, %v7860_v46 }
0x15b4   :  { %v8016_v26 = vpop.xlane.xlu1 %8015  ;;  %v7755_v54 = vpop.xlane.xlu0 %7754 }
0x15b5   :  { %v7862_v6 = vadd.f32 %v7846_v9, %v7774_v8  ;;  %v7773_v59 = vadd.f32 %v7755_v54, %v7653_v47  ;;  %v8036_v18 = vadd.f32 %v8016_v26, %v7948_v52 }
0x15b7   :  { %v7950_v0 = vadd.f32 %v14717_v1, %v7862_v6 }
0x15b8   :  { %v8104_v61 = vpop.xlane.xlu1 %8103  ;;  %v7843_v34 = vpop.xlane.xlu0 %7842 }
0x15b9   :  { %v8038_v58 = vadd.f32 %v8022_v48, %v7950_v0  ;;  %v7861_v49 = vadd.f32 %v7843_v34, %v7773_v59  ;;  %v8124_v32 = vadd.f32 %v8104_v61, %v8036_v18 }
0x15bb   :  { %v8126_v51 = vadd.f32 %v8110_v62, %v8038_v58  ;;  %v7949_v45 = vadd.f32 %v14652_v53, %v7861_v49  ;;  %v8212_v57 = vadd.f32 %v14667_v39, %v8124_v32 }
0x15bc   :  { %v8180_v16 = vpop.xlane.xlu1 %8179  ;;  %v8013_v10 = vpop.xlane.xlu0 %8012 }
0x15bd   :  { %v8037_v19 = vadd.f32 %v8019_v3, %v7949_v45  ;;  %v8214_v21 = vadd.f32 %v14332_v24, %v8126_v51  ;;  %v8035_v1 = vadd.f32 %v8013_v10, %v14721_v25  ;;  %v8300_v2 = vadd.f32 %v8280_v23, %v8212_v57 }
0x15bf   :  { %v8125_v38 = vadd.f32 %v8107_v22, %v8037_v19  ;;  %v8302_v33 = vadd.f32 %v15325_v31, %v8214_v21  ;;  %v8419_v13 = vmul.f32 %v14682_v41, %v8300_v2 }
0x15c0   :  { %v8277_v9 = vpop.xlane.xlu1 %8276  ;;  %v8101_v48 = vpop.xlane.xlu0 %8100 }
0x15c1   :  { %v8213_v56 = vadd.f32 %v14710_v4, %v8125_v38  ;;  %v8123_v62 = vadd.f32 %v8101_v48, %v8035_v1  ;;  %v8421_v53 = vmul.f32 %v14671_v14, %v8302_v33 }
0x15c3   :  { %v8211_v60 = vadd.f32 %v14723_v27, %v8123_v62  ;;  %10266 = vmatpush3.msra.mxu0 %v8421_v53  ;;  %v8301_v24 = vadd.f32 %v8283_v17, %v8213_v56 }
0x15c4   :  { %v8274_v3 = vpop.xlane.xlu1 %8273  ;;  %v8089_v22 = vpop.xlane.xlu0 %8088  ;;  %10267 = vmatprep.subr.mxu0 %v15263_v42 }
0x15c5   :  { %v8299_v39 = vadd.f32 %v8277_v9, %v8211_v60  ;;  %v8420_v25 = vmul.f32 %v14676_v7, %v8301_v24  ;;  %v8298_v5 = vadd.f32 %v8274_v3, %v14725_v15  ;;  %v8119_v14 = vadd.f32 %v8089_v22, %v14678_v37 }
0x15c6   :  { %v8208_v7 = vadd.f32 %v8180_v16, %v14715_v40 }
0x15c7   :  { %10268 = vmatpush3.msra.mxu0 %v8420_v25  ;;  %v8418_v27 = vmul.f32 %v14687_v30, %v8299_v39  ;;  %v8417_v41 = vmul.f32 %v14693_v55, %v8298_v5  ;;  %v8405_v55 = vld [vmem:[%s14739_s6] sm:$0x3f] }
0x15c8   :  { %v8177_v4 = vpop.xlane.xlu1 %8176  ;;  %v8271_v28 = vpop.xlane.xlu0 %8270  ;;  %10269 = vmatprep.subr.mxu0 %v15263_v42 }
0x15c9   :  { %v8297_v17 = vadd.f32 %v8271_v28, %v14713_v35  ;;  %10270 = vmatpush3.msra.mxu0 %v8419_v13  ;;  %v8207_v63 = vadd.f32 %v8177_v4, %v8119_v14 }
0x15ca   :  { %10271 = vmatprep.subr.mxu0 %v15263_v42 }
0x15cb   :  { %10272 = vmatpush3.msra.mxu0 %v8418_v27  ;;  %v8416_v50 = vmul.f32 %v14698_v12, %v8297_v17 }
0x15cc   :  { %v8265_v15 = vpop.xlane.xlu1 %8264  ;;  %v8268_v23 = vpop.xlane.xlu0 %8267  ;;  %10273 = vmatprep.subr.mxu0 %v15263_v42 }
0x15cd   :  { %v8295_v37 = vadd.f32 %v8265_v15, %v8207_v63  ;;  %v8296_v30 = vadd.f32 %v8268_v23, %v8208_v7  ;;  %10274 = vmatpush3.msra.mxu0 %v8417_v41 }
0x15ce   :  { %10275 = vmatprep.subr.mxu0 %v15263_v42 }
0x15cf   :  { %v8414_v35 = vmul.f32 %v14749_v44, %v8295_v37  ;;  %v8415_v43 = vmul.f32 %v14742_v20, %v8296_v30  ;;  %10276 = vmatpush3.msra.mxu0 %v8416_v50 }
0x15d0   :  { %10277 = vmatprep.subr.mxu0 %v15263_v42  ;;  %v8430_v29 = vpop.permute.xlu1 %8429 }
0x15d1   :  { %10278 = vmatpush3.msra.mxu0 %v8415_v43 }
0x15d2   :  { %10279 = vmatprep.subr.mxu0 %v15263_v42 }
0x15d3   :  { %10280 = vmatpush3.msra.mxu0 %v8414_v35 }
0x15d4   :  { %10282 = vmatmul.mubr.msk.f32.vlgmr.msra.gmra.mxu0 %vm1466_vm4, %v8405_v55  ;;  %v8328_v12 = vpop.permute.xlu0 %8327 }
0x166c   :  { %v8399_v40 = vpop.f32.mrf.mxu0 }
0x166d   :  { %v8400_v44 = vadd.f32 %v8399_v40, %v8328_v12 }
0x166e   :  { %v10264_v20 = vpop.f32.mrf.mxu0 }
0x166f   :  { %8404 = vst.msk [vmem:[%s8541_s10] sm:$0x3f] %vm8403_vm7, %v8400_v44 }
0x1694   :  { %v8501_v36 = vpop.f32.mrf.mxu0 }
0x1695   :  { %v8502_v11 = vadd.f32 %v8501_v36, %v8430_v29 }
0x1696   :  { %v10283_v46 = vpop.f32.mrf.mxu0 }
0x1697   :  { %9056 = vst.msk [vmem:[%s8541_s10 + $0x8] sm:$0x3f] %vm8403_vm7, %v8502_v11 }

</bundles_post_ra>
